<compile_context>
chip_gen: v5e
topology: v5e:2x2
jax: 0.10.0
libtpu: 0.0.40
codegen_flags: <defaults>
</compile_context>

<pallas_src>
import jax
import jax.numpy as jnp
from jax import lax
from jax.experimental import pallas as pl
from jax.experimental.pallas import tpu as pltpu

# ---- problem sizes implied by the module (MNIST-pairs: 2x14x14 inputs) ----
B = 2                     # batch
H = W = 14                # spatial
K1, C1O = 5, 24           # conv1: 1 -> 24, kernel 5   => 10x10, pool -> 5x5
K2, C2O = 3, 48           # conv2: 24 -> 48, kernel 3  => 3x3
OW1 = H - K1 + 1          # 10
P = OW1 // 2              # 5   (pooled spatial)
S2 = P - K2 + 1           # 3   (conv2 output spatial)
NCLS = 10
NB_HIDDEN = 32

NCHB = 2 * B              # (image-channel, batch) pairs processed together = 4
NROW1 = OW1 * OW1 * NCHB  # 400 conv1 / im2col rows, ordered (dx, dy, py, px, ch, b)
NROWP = P * P * NCHB      # 100 pooled rows, row = py*(P*NCHB) + px*NCHB + chb
PSTR = P * NCHB           # 20  (py row-stride)
# conv2 output row i = y*PSTR + x*NCHB + chb ; number of rows that covers them:
NR2 = (S2 - 1) * PSTR + (S2 - 1) * NCHB + NCHB   # 52


# ------------------------------- Pallas kernel -------------------------------

def fused_kernel(p1_ref, w1_ref, b1_ref, w2_ref, b2_ref, w3_ref, b3_ref,
                 wa_ref, wb_ref, bc2_ref, wc3_ref, bc3_ref,
                 cls_ref, cmp_ref):
    hi = lax.Precision.HIGHEST

    # conv1 (both classifiers, both image channels, all positions): one matmul.
    c1 = jnp.dot(p1_ref[...], w1_ref[...],
                 preferred_element_type=jnp.float32, precision=hi) + b1_ref[...]
    # c1: (400, 48); rows ordered (dx, dy, py, px, ch, b); lanes 0..23 = cls1,
    # 24..47 = cls2 (cross terms are unused and later killed by block-diag W2).

    # 2x2 / stride-2 max-pool + tanh, fully vectorized (row order was arranged
    # on the host so each pool step is a max of two contiguous halves).
    half = NROW1 // 2
    mx = jnp.maximum(c1[:half], c1[half:])                 # max over dx  (200, 48)
    h1 = jnp.tanh(jnp.maximum(mx[:NROWP], mx[NROWP:]))     # max over dy  (100, 48)
    # h1 row = py*PSTR + px*NCHB + chb

    # conv2: 9 tap matmuls over shifted contiguous row windows of h1 with a
    # block-diagonal (48, 96) weight per tap; output row i = y*PSTR + x*NCHB + chb.
    acc2 = jnp.zeros((NR2, 2 * C2O), jnp.float32) + b2_ref[...]
    for ky in range(K2):
        for kx in range(K2):
            s = ky * PSTR + kx * NCHB
            acc2 = acc2 + jnp.dot(h1[s:s + NR2], w2_ref[ky, kx],
                                  preferred_element_type=jnp.float32,
                                  precision=hi)
    h2 = jnp.tanh(acc2)                                    # (52, 96)

    # fc1: 9 position matmuls; the 4 rows of one (y, x) position are contiguous.
    fc = jnp.zeros((NCHB, 2 * NCLS), jnp.float32) + b3_ref[...]
    for y in range(S2):
        for x in range(S2):
            o = y * PSTR + x * NCHB
            fc = fc + jnp.dot(h2[o:o + NCHB], w3_ref[y, x],
                              preferred_element_type=jnp.float32, precision=hi)
    t = jnp.tanh(fc)                                       # (4, 20)
    cls_ref[...] = t
    # rows 0..1 = classifier1 (cols 0..9 valid), rows 2..3 = classifier2
    # (cols 10..19 valid); invalid quadrants are harmless garbage.

    # comparator: tanh(fc2(cat(x1, x2))) -> fc3.  The concat is realized with
    # zero-padded split weights, so the garbage columns of `t` are annihilated.
    h = jnp.dot(t[:B], wa_ref[...], preferred_element_type=jnp.float32,
                precision=hi)
    h = h + jnp.dot(t[B:], wb_ref[...], preferred_element_type=jnp.float32,
                    precision=hi)
    h = jnp.tanh(h + bc2_ref[...])
    cmp_ref[...] = jnp.dot(h, wc3_ref[...], preferred_element_type=jnp.float32,
                           precision=hi) + bc3_ref[...]


# ------------------------------ host wrappers --------------------------------

def _vmem_spec():
    return pl.BlockSpec(memory_space=pltpu.MemorySpace.VMEM)


def _im2col_pairs(x):
    """x: (B, 2, 14, 14) -> (400, 25).

    Rows ordered (dx, dy, py, px, ch, b), columns (ky, kx), where the conv1
    output position is (2*py + dy, 2*px + dx).  This ordering makes the 2x2
    max-pool inside the kernel a pair of contiguous-half maxima.
    """
    wins = jnp.stack([x[:, :, ky:ky + OW1, kx:kx + OW1]
                      for ky in range(K1) for kx in range(K1)], axis=-1)
    wins = wins.reshape(B, 2, P, 2, P, 2, K1 * K1)        # (b, ch, py, dy, px, dx, k)
    wins = jnp.transpose(wins, (5, 3, 2, 4, 1, 0, 6))      # (dx, dy, py, px, ch, b, k)
    return wins.reshape(NROW1, K1 * K1).astype(jnp.float32)


@jax.jit
def no_sharing_forward(x, kw):
    """x: (B, 2, 14, 14) NCHW.  kw: prebuilt kernel-layout weights.

    Returns (out (B, 2), x1 (B, 10), x2 (B, 10))."""
    p1 = _im2col_pairs(x)
    args = (p1,) + tuple(kw)
    cls_out, cmp_out = pl.pallas_call(
        fused_kernel,
        out_shape=(jax.ShapeDtypeStruct((NCHB, 2 * NCLS), jnp.float32),
                   jax.ShapeDtypeStruct((B, 2), jnp.float32)),
        in_specs=[_vmem_spec() for _ in range(len(args))],
        out_specs=(_vmem_spec(), _vmem_spec()),
    )(*args)
    x1 = cls_out[:B, :NCLS]
    x2 = cls_out[B:, NCLS:]
    return cmp_out, x1, x2


# --------------------- parameters (torch-shaped, deterministic) --------------

def _uniform(key, shape, bound):
    return jax.random.uniform(key, shape, jnp.float32, minval=-bound, maxval=bound)


def init_classifier_params(key):
    ks = jax.random.split(key, 6)
    bw1 = 1.0 / (1 * K1 * K1) ** 0.5
    bw2 = 1.0 / (C1O * K2 * K2) ** 0.5
    bw3 = 1.0 / (C2O * S2 * S2) ** 0.5
    return (_uniform(ks[0], (C1O, 1, K1, K1), bw1),
            _uniform(ks[1], (C1O,), bw1),
            _uniform(ks[2], (C2O, C1O, K2, K2), bw2),
            _uniform(ks[3], (C2O,), bw2),
            _uniform(ks[4], (NCLS, C2O * S2 * S2), bw3),
            _uniform(ks[5], (NCLS,), bw3))


def init_comparator_params(key, nh):
    ks = jax.random.split(key, 4)
    bw2 = 1.0 / (2 * NCLS) ** 0.5
    bw3 = 1.0 / nh ** 0.5
    return (_uniform(ks[0], (nh, 2 * NCLS), bw2),
            _uniform(ks[1], (nh,), bw2),
            _uniform(ks[2], (2, nh), bw3),
            _uniform(ks[3], (2,), bw3))


def build_kernel_weights(cls1, cls2, cmp):
    """Convert torch-layout params to the fused kernel layout (host-side, once)."""
    w1a, b1a, w2a, b2a, w3a, b3a = cls1
    w1b, b1b, w2b, b2b, w3b, b3b = cls2

    # conv1: columns 0..23 -> classifier1, 24..47 -> classifier2
    w1c = jnp.concatenate([w1a.reshape(C1O, K1 * K1).T,
                           w1b.reshape(C1O, K1 * K1).T], axis=1)            # (25, 48)
    b1c = jnp.concatenate([b1a, b1b])[None, :]                              # (1, 48)

    # conv2: per-tap block-diagonal (48, 96) = diag(W2_1[ky,kx], W2_2[ky,kx])
    t2a = jnp.transpose(w2a, (2, 3, 1, 0))                                  # (3,3,24,48)
    t2b = jnp.transpose(w2b, (2, 3, 1, 0))
    z2 = jnp.zeros_like(t2a)
    w2bd = jnp.concatenate([jnp.concatenate([t2a, z2], axis=3),
                            jnp.concatenate([z2, t2b], axis=3)], axis=2)     # (3,3,48,96)
    b2c = jnp.concatenate([b2a, b2b])[None, :]                               # (1, 96)

    # fc1: per-position block-diagonal (96, 20); torch flatten order is (c, y, x)
    t3a = jnp.transpose(w3a.reshape(NCLS, C2O, S2, S2), (2, 3, 1, 0))        # (3,3,48,10)
    t3b = jnp.transpose(w3b.reshape(NCLS, C2O, S2, S2), (2, 3, 1, 0))
    z3 = jnp.zeros_like(t3a)
    w3bd = jnp.concatenate([jnp.concatenate([t3a, z3], axis=3),
                            jnp.concatenate([z3, t3b], axis=3)], axis=2)     # (3,3,96,20)
    b3c = jnp.concatenate([b3a, b3b])[None, :]                               # (1, 20)

    # comparator: split fc2 weight, zero-padded so the invalid columns of the
    # fused classifier block are annihilated inside the kernel.
    wf2, bf2, wf3, bf3 = cmp
    w2t = wf2.T                                                              # (20, nh)
    row = jnp.arange(2 * NCLS)[:, None]
    wa = jnp.where(row < NCLS, w2t, 0.0)                                     # (20, nh)
    wb = jnp.where(row >= NCLS, w2t, 0.0)                                    # (20, nh)
    bc2 = bf2[None, :]
    wc3 = wf3.T                                                              # (nh, 2)
    bc3 = bf3[None, :]
    return (w1c, b1c, w2bd, b2c, w3bd, b3c, wa, wb, bc2, wc3, bc3)


# ------------------------- pure-JAX reference (check) ------------------------

def ref_classifier(x_img, p):
    w1, b1, w2, b2, w3, b3 = p
    hi = lax.Precision.HIGHEST
    xi = x_img[:, None, :, :]                                                # NCHW
    c1 = lax.conv_general_dilated(xi, w1, (1, 1), 'VALID',
                                  precision=hi) + b1[None, :, None, None]
    p1 = lax.reduce_window(c1, -jnp.inf, lax.max, (1, 1, 2, 2), (1, 1, 2, 2), 'VALID')
    h1 = jnp.tanh(p1)
    c2 = lax.conv_general_dilated(h1, w2, (1, 1), 'VALID',
                                  precision=hi) + b2[None, :, None, None]
    h2 = jnp.tanh(c2)
    return jnp.tanh(jnp.dot(h2.reshape(B, C2O * S2 * S2), w3.T, precision=hi) + b3)


def ref_comparator(x1, x2, p):
    w2, b2, w3, b3 = p
    hi = lax.Precision.HIGHEST
    h = jnp.tanh(jnp.dot(jnp.concatenate([x1, x2], axis=1), w2.T, precision=hi) + b2)
    return jnp.dot(h, w3.T, precision=hi) + b3


# ----------------------------------- main ------------------------------------

if __name__ == "__main__":
    key = jax.random.PRNGKey(0)
    kx, kc1, kc2, kcm = jax.random.split(key, 4)

    x = jax.random.normal(kx, (B, 2, H, W), jnp.float32)

    cls1_t = init_classifier_params(kc1)
    cls2_t = init_classifier_params(kc2)
    cmp_t = init_comparator_params(kcm, NB_HIDDEN)

    kw = build_kernel_weights(cls1_t, cls2_t, cmp_t)

    out, x1, x2 = no_sharing_forward(x, kw)
    jax.block_until_ready((out, x1, x2))

    # correctness check vs. pure-JAX reference
    r1 = ref_classifier(x[:, 0], cls1_t)
    r2 = ref_classifier(x[:, 1], cls2_t)
    rout = ref_comparator(r1, r2, cmp_t)

    assert out.shape == (B, 2) and x1.shape == (B, NCLS) and x2.shape == (B, NCLS)
    for got, want in ((x1, r1), (x2, r2), (out, rout)):
        assert jnp.allclose(got, want, atol=2e-2, rtol=2e-2), (got, want)

    print("KERNEL_OK")
</pallas_src>

<mosaic_0001>
module attributes {stable_mosaic.version = 11 : i64} {
  func.func @fused_kernel(%arg0: memref<400x25xf32, #tpu.memory_space<vmem>>, %arg1: memref<25x48xf32, #tpu.memory_space<vmem>>, %arg2: memref<1x48xf32, #tpu.memory_space<vmem>>, %arg3: memref<3x3x48x96xf32, #tpu.memory_space<vmem>>, %arg4: memref<1x96xf32, #tpu.memory_space<vmem>>, %arg5: memref<3x3x96x20xf32, #tpu.memory_space<vmem>>, %arg6: memref<1x20xf32, #tpu.memory_space<vmem>>, %arg7: memref<20x32xf32, #tpu.memory_space<vmem>>, %arg8: memref<20x32xf32, #tpu.memory_space<vmem>>, %arg9: memref<1x32xf32, #tpu.memory_space<vmem>>, %arg10: memref<32x2xf32, #tpu.memory_space<vmem>>, %arg11: memref<1x2xf32, #tpu.memory_space<vmem>>, %arg12: memref<4x20xf32, #tpu.memory_space<vmem>>, %arg13: memref<2x2xf32, #tpu.memory_space<vmem>>) attributes {dimension_semantics = [], scalar_prefetch = 0 : i64, scratch_operands = 0 : i64, tpu.core_type = #tpu.core_type<tc>} {
    %c0 = arith.constant 0 : index
    %c0_0 = arith.constant 0 : index
    %0 = vector.load %arg0[%c0, %c0_0] : memref<400x25xf32, #tpu.memory_space<vmem>>, vector<400x25xf32>
    %c0_1 = arith.constant 0 : index
    %c0_2 = arith.constant 0 : index
    %1 = vector.load %arg1[%c0_1, %c0_2] : memref<25x48xf32, #tpu.memory_space<vmem>>, vector<25x48xf32>
    %cst = arith.constant dense<0.000000e+00> : vector<400x48xf32>
    %2 = tpu.matmul %0, %1, %cst {dimension_numbers = #tpu.dot_dimension_numbers<[1], [0], [0], [1], [0, 0, 1, 1], [], []>, precision = #tpu.contract_precision<fp32>} : vector<400x25xf32>, vector<25x48xf32>, vector<400x48xf32> -> vector<400x48xf32>
    %c0_3 = arith.constant 0 : index
    %c0_4 = arith.constant 0 : index
    %3 = vector.load %arg2[%c0_3, %c0_4] : memref<1x48xf32, #tpu.memory_space<vmem>>, vector<1x48xf32>
    %4 = vector.broadcast %3 : vector<1x48xf32> to vector<400x48xf32>
    %5 = arith.addf %2, %4 : vector<400x48xf32>
    %6 = vector.extract_strided_slice %5 {offsets = [0, 0], sizes = [200, 48], strides = [1, 1]} : vector<400x48xf32> to vector<200x48xf32>
    %7 = vector.extract_strided_slice %5 {offsets = [200, 0], sizes = [200, 48], strides = [1, 1]} : vector<400x48xf32> to vector<200x48xf32>
    %8 = arith.maximumf %6, %7 : vector<200x48xf32>
    %9 = vector.extract_strided_slice %8 {offsets = [0, 0], sizes = [100, 48], strides = [1, 1]} : vector<200x48xf32> to vector<100x48xf32>
    %10 = vector.extract_strided_slice %8 {offsets = [100, 0], sizes = [100, 48], strides = [1, 1]} : vector<200x48xf32> to vector<100x48xf32>
    %11 = arith.maximumf %9, %10 : vector<100x48xf32>
    %12 = math.tanh %11 : vector<100x48xf32>
    %cst_5 = arith.constant 0.000000e+00 : f32
    %13 = vector.broadcast %cst_5 : f32 to vector<52x96xf32>
    %c0_6 = arith.constant 0 : index
    %c0_7 = arith.constant 0 : index
    %14 = vector.load %arg4[%c0_6, %c0_7] : memref<1x96xf32, #tpu.memory_space<vmem>>, vector<1x96xf32>
    %15 = vector.broadcast %14 : vector<1x96xf32> to vector<52x96xf32>
    %16 = arith.addf %13, %15 : vector<52x96xf32>
    %17 = vector.extract_strided_slice %12 {offsets = [0, 0], sizes = [52, 48], strides = [1, 1]} : vector<100x48xf32> to vector<52x48xf32>
    %c0_8 = arith.constant 0 : index
    %c0_9 = arith.constant 0 : index
    %c0_10 = arith.constant 0 : index
    %c0_11 = arith.constant 0 : index
    %18 = vector.load %arg3[%c0_8, %c0_9, %c0_10, %c0_11] : memref<3x3x48x96xf32, #tpu.memory_space<vmem>>, vector<1x1x48x96xf32>
    %19 = vector.shape_cast %18 : vector<1x1x48x96xf32> to vector<48x96xf32>
    %cst_12 = arith.constant dense<0.000000e+00> : vector<52x96xf32>
    %20 = tpu.matmul %17, %19, %cst_12 {dimension_numbers = #tpu.dot_dimension_numbers<[1], [0], [0], [1], [0, 0, 1, 1], [], []>, precision = #tpu.contract_precision<fp32>} : vector<52x48xf32>, vector<48x96xf32>, vector<52x96xf32> -> vector<52x96xf32>
    %21 = arith.addf %16, %20 : vector<52x96xf32>
    %22 = vector.extract_strided_slice %12 {offsets = [4, 0], sizes = [52, 48], strides = [1, 1]} : vector<100x48xf32> to vector<52x48xf32>
    %c0_13 = arith.constant 0 : index
    %c1 = arith.constant 1 : index
    %c0_14 = arith.constant 0 : index
    %c0_15 = arith.constant 0 : index
    %23 = vector.load %arg3[%c0_13, %c1, %c0_14, %c0_15] : memref<3x3x48x96xf32, #tpu.memory_space<vmem>>, vector<1x1x48x96xf32>
    %24 = vector.shape_cast %23 : vector<1x1x48x96xf32> to vector<48x96xf32>
    %cst_16 = arith.constant dense<0.000000e+00> : vector<52x96xf32>
    %25 = tpu.matmul %22, %24, %cst_16 {dimension_numbers = #tpu.dot_dimension_numbers<[1], [0], [0], [1], [0, 0, 1, 1], [], []>, precision = #tpu.contract_precision<fp32>} : vector<52x48xf32>, vector<48x96xf32>, vector<52x96xf32> -> vector<52x96xf32>
    %26 = arith.addf %21, %25 : vector<52x96xf32>
    %27 = vector.extract_strided_slice %12 {offsets = [8, 0], sizes = [52, 48], strides = [1, 1]} : vector<100x48xf32> to vector<52x48xf32>
    %c0_17 = arith.constant 0 : index
    %c2 = arith.constant 2 : index
    %c0_18 = arith.constant 0 : index
    %c0_19 = arith.constant 0 : index
    %28 = vector.load %arg3[%c0_17, %c2, %c0_18, %c0_19] : memref<3x3x48x96xf32, #tpu.memory_space<vmem>>, vector<1x1x48x96xf32>
    %29 = vector.shape_cast %28 : vector<1x1x48x96xf32> to vector<48x96xf32>
    %cst_20 = arith.constant dense<0.000000e+00> : vector<52x96xf32>
    %30 = tpu.matmul %27, %29, %cst_20 {dimension_numbers = #tpu.dot_dimension_numbers<[1], [0], [0], [1], [0, 0, 1, 1], [], []>, precision = #tpu.contract_precision<fp32>} : vector<52x48xf32>, vector<48x96xf32>, vector<52x96xf32> -> vector<52x96xf32>
    %31 = arith.addf %26, %30 : vector<52x96xf32>
    %32 = vector.extract_strided_slice %12 {offsets = [20, 0], sizes = [52, 48], strides = [1, 1]} : vector<100x48xf32> to vector<52x48xf32>
    %c1_21 = arith.constant 1 : index
    %c0_22 = arith.constant 0 : index
    %c0_23 = arith.constant 0 : index
    %c0_24 = arith.constant 0 : index
    %33 = vector.load %arg3[%c1_21, %c0_22, %c0_23, %c0_24] : memref<3x3x48x96xf32, #tpu.memory_space<vmem>>, vector<1x1x48x96xf32>
    %34 = vector.shape_cast %33 : vector<1x1x48x96xf32> to vector<48x96xf32>
    %cst_25 = arith.constant dense<0.000000e+00> : vector<52x96xf32>
    %35 = tpu.matmul %32, %34, %cst_25 {dimension_numbers = #tpu.dot_dimension_numbers<[1], [0], [0], [1], [0, 0, 1, 1], [], []>, precision = #tpu.contract_precision<fp32>} : vector<52x48xf32>, vector<48x96xf32>, vector<52x96xf32> -> vector<52x96xf32>
    %36 = arith.addf %31, %35 : vector<52x96xf32>
    %37 = vector.extract_strided_slice %12 {offsets = [24, 0], sizes = [52, 48], strides = [1, 1]} : vector<100x48xf32> to vector<52x48xf32>
    %c1_26 = arith.constant 1 : index
    %c1_27 = arith.constant 1 : index
    %c0_28 = arith.constant 0 : index
    %c0_29 = arith.constant 0 : index
    %38 = vector.load %arg3[%c1_26, %c1_27, %c0_28, %c0_29] : memref<3x3x48x96xf32, #tpu.memory_space<vmem>>, vector<1x1x48x96xf32>
    %39 = vector.shape_cast %38 : vector<1x1x48x96xf32> to vector<48x96xf32>
    %cst_30 = arith.constant dense<0.000000e+00> : vector<52x96xf32>
    %40 = tpu.matmul %37, %39, %cst_30 {dimension_numbers = #tpu.dot_dimension_numbers<[1], [0], [0], [1], [0, 0, 1, 1], [], []>, precision = #tpu.contract_precision<fp32>} : vector<52x48xf32>, vector<48x96xf32>, vector<52x96xf32> -> vector<52x96xf32>
    %41 = arith.addf %36, %40 : vector<52x96xf32>
    %42 = vector.extract_strided_slice %12 {offsets = [28, 0], sizes = [52, 48], strides = [1, 1]} : vector<100x48xf32> to vector<52x48xf32>
    %c1_31 = arith.constant 1 : index
    %c2_32 = arith.constant 2 : index
    %c0_33 = arith.constant 0 : index
    %c0_34 = arith.constant 0 : index
    %43 = vector.load %arg3[%c1_31, %c2_32, %c0_33, %c0_34] : memref<3x3x48x96xf32, #tpu.memory_space<vmem>>, vector<1x1x48x96xf32>
    %44 = vector.shape_cast %43 : vector<1x1x48x96xf32> to vector<48x96xf32>
    %cst_35 = arith.constant dense<0.000000e+00> : vector<52x96xf32>
    %45 = tpu.matmul %42, %44, %cst_35 {dimension_numbers = #tpu.dot_dimension_numbers<[1], [0], [0], [1], [0, 0, 1, 1], [], []>, precision = #tpu.contract_precision<fp32>} : vector<52x48xf32>, vector<48x96xf32>, vector<52x96xf32> -> vector<52x96xf32>
    %46 = arith.addf %41, %45 : vector<52x96xf32>
    %47 = vector.extract_strided_slice %12 {offsets = [40, 0], sizes = [52, 48], strides = [1, 1]} : vector<100x48xf32> to vector<52x48xf32>
    %c2_36 = arith.constant 2 : index
    %c0_37 = arith.constant 0 : index
    %c0_38 = arith.constant 0 : index
    %c0_39 = arith.constant 0 : index
    %48 = vector.load %arg3[%c2_36, %c0_37, %c0_38, %c0_39] : memref<3x3x48x96xf32, #tpu.memory_space<vmem>>, vector<1x1x48x96xf32>
    %49 = vector.shape_cast %48 : vector<1x1x48x96xf32> to vector<48x96xf32>
    %cst_40 = arith.constant dense<0.000000e+00> : vector<52x96xf32>
    %50 = tpu.matmul %47, %49, %cst_40 {dimension_numbers = #tpu.dot_dimension_numbers<[1], [0], [0], [1], [0, 0, 1, 1], [], []>, precision = #tpu.contract_precision<fp32>} : vector<52x48xf32>, vector<48x96xf32>, vector<52x96xf32> -> vector<52x96xf32>
    %51 = arith.addf %46, %50 : vector<52x96xf32>
    %52 = vector.extract_strided_slice %12 {offsets = [44, 0], sizes = [52, 48], strides = [1, 1]} : vector<100x48xf32> to vector<52x48xf32>
    %c2_41 = arith.constant 2 : index
    %c1_42 = arith.constant 1 : index
    %c0_43 = arith.constant 0 : index
    %c0_44 = arith.constant 0 : index
    %53 = vector.load %arg3[%c2_41, %c1_42, %c0_43, %c0_44] : memref<3x3x48x96xf32, #tpu.memory_space<vmem>>, vector<1x1x48x96xf32>
    %54 = vector.shape_cast %53 : vector<1x1x48x96xf32> to vector<48x96xf32>
    %cst_45 = arith.constant dense<0.000000e+00> : vector<52x96xf32>
    %55 = tpu.matmul %52, %54, %cst_45 {dimension_numbers = #tpu.dot_dimension_numbers<[1], [0], [0], [1], [0, 0, 1, 1], [], []>, precision = #tpu.contract_precision<fp32>} : vector<52x48xf32>, vector<48x96xf32>, vector<52x96xf32> -> vector<52x96xf32>
    %56 = arith.addf %51, %55 : vector<52x96xf32>
    %57 = vector.extract_strided_slice %12 {offsets = [48, 0], sizes = [52, 48], strides = [1, 1]} : vector<100x48xf32> to vector<52x48xf32>
    %c2_46 = arith.constant 2 : index
    %c2_47 = arith.constant 2 : index
    %c0_48 = arith.constant 0 : index
    %c0_49 = arith.constant 0 : index
    %58 = vector.load %arg3[%c2_46, %c2_47, %c0_48, %c0_49] : memref<3x3x48x96xf32, #tpu.memory_space<vmem>>, vector<1x1x48x96xf32>
    %59 = vector.shape_cast %58 : vector<1x1x48x96xf32> to vector<48x96xf32>
    %cst_50 = arith.constant dense<0.000000e+00> : vector<52x96xf32>
    %60 = tpu.matmul %57, %59, %cst_50 {dimension_numbers = #tpu.dot_dimension_numbers<[1], [0], [0], [1], [0, 0, 1, 1], [], []>, precision = #tpu.contract_precision<fp32>} : vector<52x48xf32>, vector<48x96xf32>, vector<52x96xf32> -> vector<52x96xf32>
    %61 = arith.addf %56, %60 : vector<52x96xf32>
    %62 = math.tanh %61 : vector<52x96xf32>
    %cst_51 = arith.constant 0.000000e+00 : f32
    %63 = vector.broadcast %cst_51 : f32 to vector<4x20xf32>
    %c0_52 = arith.constant 0 : index
    %c0_53 = arith.constant 0 : index
    %64 = vector.load %arg6[%c0_52, %c0_53] : memref<1x20xf32, #tpu.memory_space<vmem>>, vector<1x20xf32>
    %65 = vector.broadcast %64 : vector<1x20xf32> to vector<4x20xf32>
    %66 = arith.addf %63, %65 : vector<4x20xf32>
    %67 = vector.extract_strided_slice %62 {offsets = [0, 0], sizes = [4, 96], strides = [1, 1]} : vector<52x96xf32> to vector<4x96xf32>
    %c0_54 = arith.constant 0 : index
    %c0_55 = arith.constant 0 : index
    %c0_56 = arith.constant 0 : index
    %c0_57 = arith.constant 0 : index
    %68 = vector.load %arg5[%c0_54, %c0_55, %c0_56, %c0_57] : memref<3x3x96x20xf32, #tpu.memory_space<vmem>>, vector<1x1x96x20xf32>
    %69 = vector.shape_cast %68 : vector<1x1x96x20xf32> to vector<96x20xf32>
    %cst_58 = arith.constant dense<0.000000e+00> : vector<4x20xf32>
    %70 = tpu.matmul %67, %69, %cst_58 {dimension_numbers = #tpu.dot_dimension_numbers<[1], [0], [0], [1], [0, 0, 1, 1], [], []>, precision = #tpu.contract_precision<fp32>} : vector<4x96xf32>, vector<96x20xf32>, vector<4x20xf32> -> vector<4x20xf32>
    %71 = arith.addf %66, %70 : vector<4x20xf32>
    %72 = vector.extract_strided_slice %62 {offsets = [4, 0], sizes = [4, 96], strides = [1, 1]} : vector<52x96xf32> to vector<4x96xf32>
    %c0_59 = arith.constant 0 : index
    %c1_60 = arith.constant 1 : index
    %c0_61 = arith.constant 0 : index
    %c0_62 = arith.constant 0 : index
    %73 = vector.load %arg5[%c0_59, %c1_60, %c0_61, %c0_62] : memref<3x3x96x20xf32, #tpu.memory_space<vmem>>, vector<1x1x96x20xf32>
    %74 = vector.shape_cast %73 : vector<1x1x96x20xf32> to vector<96x20xf32>
    %cst_63 = arith.constant dense<0.000000e+00> : vector<4x20xf32>
    %75 = tpu.matmul %72, %74, %cst_63 {dimension_numbers = #tpu.dot_dimension_numbers<[1], [0], [0], [1], [0, 0, 1, 1], [], []>, precision = #tpu.contract_precision<fp32>} : vector<4x96xf32>, vector<96x20xf32>, vector<4x20xf32> -> vector<4x20xf32>
    %76 = arith.addf %71, %75 : vector<4x20xf32>
    %77 = vector.extract_strided_slice %62 {offsets = [8, 0], sizes = [4, 96], strides = [1, 1]} : vector<52x96xf32> to vector<4x96xf32>
    %c0_64 = arith.constant 0 : index
    %c2_65 = arith.constant 2 : index
    %c0_66 = arith.constant 0 : index
    %c0_67 = arith.constant 0 : index
    %78 = vector.load %arg5[%c0_64, %c2_65, %c0_66, %c0_67] : memref<3x3x96x20xf32, #tpu.memory_space<vmem>>, vector<1x1x96x20xf32>
    %79 = vector.shape_cast %78 : vector<1x1x96x20xf32> to vector<96x20xf32>
    %cst_68 = arith.constant dense<0.000000e+00> : vector<4x20xf32>
    %80 = tpu.matmul %77, %79, %cst_68 {dimension_numbers = #tpu.dot_dimension_numbers<[1], [0], [0], [1], [0, 0, 1, 1], [], []>, precision = #tpu.contract_precision<fp32>} : vector<4x96xf32>, vector<96x20xf32>, vector<4x20xf32> -> vector<4x20xf32>
    %81 = arith.addf %76, %80 : vector<4x20xf32>
    %82 = vector.extract_strided_slice %62 {offsets = [20, 0], sizes = [4, 96], strides = [1, 1]} : vector<52x96xf32> to vector<4x96xf32>
    %c1_69 = arith.constant 1 : index
    %c0_70 = arith.constant 0 : index
    %c0_71 = arith.constant 0 : index
    %c0_72 = arith.constant 0 : index
    %83 = vector.load %arg5[%c1_69, %c0_70, %c0_71, %c0_72] : memref<3x3x96x20xf32, #tpu.memory_space<vmem>>, vector<1x1x96x20xf32>
    %84 = vector.shape_cast %83 : vector<1x1x96x20xf32> to vector<96x20xf32>
    %cst_73 = arith.constant dense<0.000000e+00> : vector<4x20xf32>
    %85 = tpu.matmul %82, %84, %cst_73 {dimension_numbers = #tpu.dot_dimension_numbers<[1], [0], [0], [1], [0, 0, 1, 1], [], []>, precision = #tpu.contract_precision<fp32>} : vector<4x96xf32>, vector<96x20xf32>, vector<4x20xf32> -> vector<4x20xf32>
    %86 = arith.addf %81, %85 : vector<4x20xf32>
    %87 = vector.extract_strided_slice %62 {offsets = [24, 0], sizes = [4, 96], strides = [1, 1]} : vector<52x96xf32> to vector<4x96xf32>
    %c1_74 = arith.constant 1 : index
    %c1_75 = arith.constant 1 : index
    %c0_76 = arith.constant 0 : index
    %c0_77 = arith.constant 0 : index
    %88 = vector.load %arg5[%c1_74, %c1_75, %c0_76, %c0_77] : memref<3x3x96x20xf32, #tpu.memory_space<vmem>>, vector<1x1x96x20xf32>
    %89 = vector.shape_cast %88 : vector<1x1x96x20xf32> to vector<96x20xf32>
    %cst_78 = arith.constant dense<0.000000e+00> : vector<4x20xf32>
    %90 = tpu.matmul %87, %89, %cst_78 {dimension_numbers = #tpu.dot_dimension_numbers<[1], [0], [0], [1], [0, 0, 1, 1], [], []>, precision = #tpu.contract_precision<fp32>} : vector<4x96xf32>, vector<96x20xf32>, vector<4x20xf32> -> vector<4x20xf32>
    %91 = arith.addf %86, %90 : vector<4x20xf32>
    %92 = vector.extract_strided_slice %62 {offsets = [28, 0], sizes = [4, 96], strides = [1, 1]} : vector<52x96xf32> to vector<4x96xf32>
    %c1_79 = arith.constant 1 : index
    %c2_80 = arith.constant 2 : index
    %c0_81 = arith.constant 0 : index
    %c0_82 = arith.constant 0 : index
    %93 = vector.load %arg5[%c1_79, %c2_80, %c0_81, %c0_82] : memref<3x3x96x20xf32, #tpu.memory_space<vmem>>, vector<1x1x96x20xf32>
    %94 = vector.shape_cast %93 : vector<1x1x96x20xf32> to vector<96x20xf32>
    %cst_83 = arith.constant dense<0.000000e+00> : vector<4x20xf32>
    %95 = tpu.matmul %92, %94, %cst_83 {dimension_numbers = #tpu.dot_dimension_numbers<[1], [0], [0], [1], [0, 0, 1, 1], [], []>, precision = #tpu.contract_precision<fp32>} : vector<4x96xf32>, vector<96x20xf32>, vector<4x20xf32> -> vector<4x20xf32>
    %96 = arith.addf %91, %95 : vector<4x20xf32>
    %97 = vector.extract_strided_slice %62 {offsets = [40, 0], sizes = [4, 96], strides = [1, 1]} : vector<52x96xf32> to vector<4x96xf32>
    %c2_84 = arith.constant 2 : index
    %c0_85 = arith.constant 0 : index
    %c0_86 = arith.constant 0 : index
    %c0_87 = arith.constant 0 : index
    %98 = vector.load %arg5[%c2_84, %c0_85, %c0_86, %c0_87] : memref<3x3x96x20xf32, #tpu.memory_space<vmem>>, vector<1x1x96x20xf32>
    %99 = vector.shape_cast %98 : vector<1x1x96x20xf32> to vector<96x20xf32>
    %cst_88 = arith.constant dense<0.000000e+00> : vector<4x20xf32>
    %100 = tpu.matmul %97, %99, %cst_88 {dimension_numbers = #tpu.dot_dimension_numbers<[1], [0], [0], [1], [0, 0, 1, 1], [], []>, precision = #tpu.contract_precision<fp32>} : vector<4x96xf32>, vector<96x20xf32>, vector<4x20xf32> -> vector<4x20xf32>
    %101 = arith.addf %96, %100 : vector<4x20xf32>
    %102 = vector.extract_strided_slice %62 {offsets = [44, 0], sizes = [4, 96], strides = [1, 1]} : vector<52x96xf32> to vector<4x96xf32>
    %c2_89 = arith.constant 2 : index
    %c1_90 = arith.constant 1 : index
    %c0_91 = arith.constant 0 : index
    %c0_92 = arith.constant 0 : index
    %103 = vector.load %arg5[%c2_89, %c1_90, %c0_91, %c0_92] : memref<3x3x96x20xf32, #tpu.memory_space<vmem>>, vector<1x1x96x20xf32>
    %104 = vector.shape_cast %103 : vector<1x1x96x20xf32> to vector<96x20xf32>
    %cst_93 = arith.constant dense<0.000000e+00> : vector<4x20xf32>
    %105 = tpu.matmul %102, %104, %cst_93 {dimension_numbers = #tpu.dot_dimension_numbers<[1], [0], [0], [1], [0, 0, 1, 1], [], []>, precision = #tpu.contract_precision<fp32>} : vector<4x96xf32>, vector<96x20xf32>, vector<4x20xf32> -> vector<4x20xf32>
    %106 = arith.addf %101, %105 : vector<4x20xf32>
    %107 = vector.extract_strided_slice %62 {offsets = [48, 0], sizes = [4, 96], strides = [1, 1]} : vector<52x96xf32> to vector<4x96xf32>
    %c2_94 = arith.constant 2 : index
    %c2_95 = arith.constant 2 : index
    %c0_96 = arith.constant 0 : index
    %c0_97 = arith.constant 0 : index
    %108 = vector.load %arg5[%c2_94, %c2_95, %c0_96, %c0_97] : memref<3x3x96x20xf32, #tpu.memory_space<vmem>>, vector<1x1x96x20xf32>
    %109 = vector.shape_cast %108 : vector<1x1x96x20xf32> to vector<96x20xf32>
    %cst_98 = arith.constant dense<0.000000e+00> : vector<4x20xf32>
    %110 = tpu.matmul %107, %109, %cst_98 {dimension_numbers = #tpu.dot_dimension_numbers<[1], [0], [0], [1], [0, 0, 1, 1], [], []>, precision = #tpu.contract_precision<fp32>} : vector<4x96xf32>, vector<96x20xf32>, vector<4x20xf32> -> vector<4x20xf32>
    %111 = arith.addf %106, %110 : vector<4x20xf32>
    %112 = math.tanh %111 : vector<4x20xf32>
    %c0_99 = arith.constant 0 : index
    %c0_100 = arith.constant 0 : index
    %113 = vector.load %arg12[%c0_99, %c0_100] : memref<4x20xf32, #tpu.memory_space<vmem>>, vector<4x20xf32>
    tpu.vector_store %arg12[%c0_99, %c0_100], %112 {strides = array<i32>} : memref<4x20xf32, #tpu.memory_space<vmem>>, vector<4x20xf32>,
    %114 = vector.extract_strided_slice %112 {offsets = [0, 0], sizes = [2, 20], strides = [1, 1]} : vector<4x20xf32> to vector<2x20xf32>
    %c0_101 = arith.constant 0 : index
    %c0_102 = arith.constant 0 : index
    %115 = vector.load %arg7[%c0_101, %c0_102] : memref<20x32xf32, #tpu.memory_space<vmem>>, vector<20x32xf32>
    %cst_103 = arith.constant dense<0.000000e+00> : vector<2x32xf32>
    %116 = tpu.matmul %114, %115, %cst_103 {dimension_numbers = #tpu.dot_dimension_numbers<[1], [0], [0], [1], [0, 0, 1, 1], [], []>, precision = #tpu.contract_precision<fp32>} : vector<2x20xf32>, vector<20x32xf32>, vector<2x32xf32> -> vector<2x32xf32>
    %117 = vector.extract_strided_slice %112 {offsets = [2, 0], sizes = [2, 20], strides = [1, 1]} : vector<4x20xf32> to vector<2x20xf32>
    %c0_104 = arith.constant 0 : index
    %c0_105 = arith.constant 0 : index
    %118 = vector.load %arg8[%c0_104, %c0_105] : memref<20x32xf32, #tpu.memory_space<vmem>>, vector<20x32xf32>
    %cst_106 = arith.constant dense<0.000000e+00> : vector<2x32xf32>
    %119 = tpu.matmul %117, %118, %cst_106 {dimension_numbers = #tpu.dot_dimension_numbers<[1], [0], [0], [1], [0, 0, 1, 1], [], []>, precision = #tpu.contract_precision<fp32>} : vector<2x20xf32>, vector<20x32xf32>, vector<2x32xf32> -> vector<2x32xf32>
    %120 = arith.addf %116, %119 : vector<2x32xf32>
    %c0_107 = arith.constant 0 : index
    %c0_108 = arith.constant 0 : index
    %121 = vector.load %arg9[%c0_107, %c0_108] : memref<1x32xf32, #tpu.memory_space<vmem>>, vector<1x32xf32>
    %122 = vector.broadcast %121 : vector<1x32xf32> to vector<2x32xf32>
    %123 = arith.addf %120, %122 : vector<2x32xf32>
    %124 = math.tanh %123 : vector<2x32xf32>
    %c0_109 = arith.constant 0 : index
    %c0_110 = arith.constant 0 : index
    %125 = vector.load %arg10[%c0_109, %c0_110] : memref<32x2xf32, #tpu.memory_space<vmem>>, vector<32x2xf32>
    %cst_111 = arith.constant dense<0.000000e+00> : vector<2x2xf32>
    %126 = tpu.matmul %124, %125, %cst_111 {dimension_numbers = #tpu.dot_dimension_numbers<[1], [0], [0], [1], [0, 0, 1, 1], [], []>, precision = #tpu.contract_precision<fp32>} : vector<2x32xf32>, vector<32x2xf32>, vector<2x2xf32> -> vector<2x2xf32>
    %c0_112 = arith.constant 0 : index
    %c0_113 = arith.constant 0 : index
    %127 = vector.load %arg11[%c0_112, %c0_113] : memref<1x2xf32, #tpu.memory_space<vmem>>, vector<1x2xf32>
    %128 = vector.broadcast %127 : vector<1x2xf32> to vector<2x2xf32>
    %129 = arith.addf %126, %128 : vector<2x2xf32>
    %c0_114 = arith.constant 0 : index
    %c0_115 = arith.constant 0 : index
    %130 = vector.load %arg13[%c0_114, %c0_115] : memref<2x2xf32, #tpu.memory_space<vmem>>, vector<2x2xf32>
    tpu.vector_store %arg13[%c0_114, %c0_115], %129 {strides = array<i32>} : memref<2x2xf32, #tpu.memory_space<vmem>>, vector<2x2xf32>,
    return
  }
}

</mosaic_0001>

<bundles_post_ra>
// kernel: no_sharing_forward.1
= control target key start
LH: loop header
LB: loop body
LE: loop exit
PB: predicated region body
PF: predicated region fallthrough
CT: control target
= control target key end

     0   :  { %vm253_vm0 = vcmask 1040384   ;;  %vm102_vm1 = vcmask 203776   ;;  %s15231_s0 = inlined_call_operand.vmem [shape: f32[400,25], index: 0, kind: input, shape index: {}]   ;;  %s15232_s1 = inlined_call_operand.vmem [shape: f32[25,48], index: 1, kind: input, shape index: {}]   ;;  %s15233_s2 = inlined_call_operand.vmem [shape: f32[1,48], index: 2, kind: input, shape index: {}]   ;;  %s15234_s3 = inlined_call_operand.vmem [shape: f32[3,3,48,96], index: 3, kind: input, shape index: {}]   ;;  %s15235_s4 = inlined_call_operand.vmem [shape: f32[1,96], index: 4, kind: input, shape index: {}]   ;;  %s15236_s5 = inlined_call_operand.vmem [shape: f32[3,3,96,20], index: 5, kind: input, shape index: {}]   ;;  %s15237_s6 = inlined_call_operand.vmem [shape: f32[1,20], index: 6, kind: input, shape index: {}]   ;;  %s15238_s7 = inlined_call_operand.vmem [shape: f32[20,32], index: 7, kind: input, shape index: {}]   ;;  %s15239_s8 = inlined_call_operand.vmem [shape: f32[20,32], index: 8, kind: input, shape index: {}]   ;;  %s15240_s9 = inlined_call_operand.vmem [shape: f32[1,32], index: 9, kind: input, shape index: {}]   ;;  %s15241_s10 = inlined_call_operand.vmem [shape: f32[32,2], index: 10, kind: input, shape index: {}]   ;;  %s15242_s11 = inlined_call_operand.vmem [shape: f32[1,2], index: 11, kind: input, shape index: {}]   ;;  %s15243_s12 = inlined_call_operand.vmem [shape: f32[4,20], index: 12, kind: output, shape index: {0}]   ;;  %s15244_s13 = inlined_call_operand.hbm [shape: f32[2,2], index: 13, kind: output, shape index: {1}]  }
   0x1   :  { %v97_v0 = vld [vmem:[%s15232_s1 + $0x18] sm:$0x1]  ;;  %v96_v1 = vld [vmem:[%s15232_s1 + $0x10] sm:$0xff]  ;;  %v95_v2 = vld [vmem:[%s15232_s1 + $0x8] sm:$0xff] }
   0x2   :  { %v255_v3 = vsel %vm253_vm0, %v97_v0, 0  ;;  %v9453_v4 = vand.u32 4294901760, %v96_v1  ;;  %v9455_v5 = vand.u32 4294901760, %v95_v2  ;;  %v94_v6 = vld [vmem:[%s15232_s1] sm:$0xff]  ;;  %v45_v8 = vld [vmem:[%s15231_s0 + $0x8] sm:$0xff]  ;;  %v46_v17 = vld [vmem:[%s15231_s0 + $0x10] sm:$0xff] }
   0x3   :  { %v44_v7 = vld [vmem:[%s15231_s0] sm:$0xff]  ;;  %v9466_v9 = vand.u32 4294901760, %v255_v3  ;;  %v9468_v10 = vand.u32 4294901760, %v94_v6  ;;  %v107_v12 = vsel %vm102_vm1, %v45_v8, 0  ;;  %v110_v26 = vsel %vm102_vm1, %v46_v17, 0 }
   0x4   :  { %v104_v11 = vsel %vm102_vm1, %v44_v7, 0  ;;  %v697_v13 = vsub.f32 %v96_v1, %v9453_v4  ;;  %v703_v15 = vsub.f32 %v95_v2, %v9455_v5  ;;  %v9476_v16 = vand.u32 4294901760, %v107_v12 }
   0x5   :  { %v9473_v14 = vand.u32 4294901760, %v104_v11  ;;  %270 = vmatpush.msra.mxu0 %v9466_v9  ;;  %v691_v18 = vsub.f32 %v255_v3, %v9466_v9  ;;  %1203 = vmatpush.msra.mxu3 %v9466_v9  ;;  %v709_v19 = vsub.f32 %v94_v6, %v9468_v10 }
   0x6   :  { %v698_v21 = vand.u32 4294901760, %v697_v13  ;;  %v704_v22 = vand.u32 4294901760, %v703_v15  ;;  %v286_v23 = vsub.f32 %v107_v12, %v9476_v16 }
   0x7   :  { %v278_v20 = vsub.f32 %v104_v11, %v9473_v14  ;;  %272 = vmatpush.msra.mxu0 %v9453_v4  ;;  %929 = vmatpush.msra.mxu2 %v691_v18  ;;  %v692_v24 = vand.u32 4294901760, %v691_v18  ;;  %v710_v25 = vand.u32 4294901760, %v709_v19 }
   0x8   :  { %19 = vsyncpa [#allocation3], 0  ;;  %1205 = vmatpush.msra.mxu3 %v9453_v4  ;;  %v699_v28 = vsub.f32 %v697_v13, %v698_v21  ;;  %v705_v30 = vsub.f32 %v703_v15, %v704_v22  ;;  %v287_v32 = vand.u32 4294901760, %v286_v23  ;;  %v9492_v33 = vand.u32 4294901760, %v110_v26  ;;  %v47_v38 = vld [vmem:[%s15231_s0 + $0x18] sm:$0xff]  ;;  %v48_v47 = vld [vmem:[%s15231_s0 + $0x20] sm:$0xff] }
   0x9   :  { %v279_v27 = vand.u32 4294901760, %v278_v20  ;;  %274 = vmatpush.msra.mxu0 %v9455_v5  ;;  %932 = vmatpush.msra.mxu2 %v697_v13  ;;  %v693_v29 = vsub.f32 %v691_v18, %v692_v24  ;;  %v711_v36 = vsub.f32 %v709_v19, %v710_v25  ;;  %v113_v43 = vsel %vm102_vm1, %v47_v38, 0  ;;  %v49_v54 = vld [vmem:[%s15231_s0 + $0x28] sm:$0xff]  ;;  %v50_v61 = vld [vmem:[%s15231_s0 + $0x30] sm:$0xff]  ;;  %v52_v11 = vld [vmem:[%s15231_s0 + $0x40] sm:$0xff]  ;;  %s9373_s29 = smov [#allocation2]  }
   0xa   :  { %1207 = vmatpush.msra.mxu3 %v9455_v5  ;;  %v700_v35 = vand.u32 4294901760, %v699_v28  ;;  %v706_v39 = vand.u32 4294901760, %v705_v30  ;;  %v288_v40 = vsub.f32 %v286_v23, %v287_v32  ;;  %v294_v41 = vsub.f32 %v110_v26, %v9492_v33  ;;  %s9141_s30 = sshll.u32 %s9373_s29, 4  ;;  %s9143_s15 = sshll.u32 %s15244_s13, 4  ;;  %s9142_s30 = int_to_ptr.vmem [resolvable:$true] %s9141_s30  ;;  %s9144_s15 = int_to_ptr.hbm [resolvable:$true] %s9143_s15 }
   0xb   :  { %v280_v31 = vsub.f32 %v278_v20, %v279_v27  ;;  %276 = vmatpush.msra.mxu0 %v9468_v10  ;;  %v694_v34 = vand.u32 4294901760, %v693_v29  ;;  %935 = vmatpush.msra.mxu2 %v703_v15  ;;  %v712_v42 = vand.u32 4294901760, %v711_v36  ;;  %v9501_v46 = vand.u32 4294901760, %v113_v43 }
   0xc   :  { %1209 = vmatpush.msra.mxu3 %v9468_v10  ;;  %v289_v44 = vand.u32 4294901760, %v288_v40  ;;  %v295_v45 = vand.u32 4294901760, %v294_v41  ;;  %v116_v50 = vsel %vm102_vm1, %v48_v47, 0  ;;  %v119_v57 = vsel %vm102_vm1, %v49_v54, 0 }
   0xd   :  { %v281_v37 = vand.u32 4294901760, %v280_v31  ;;  %1526 = vmatpush.msrb.mxu0 %v692_v24  ;;  %695 = vmatpush.msra.mxu1 %v694_v34  ;;  %v302_v49 = vsub.f32 %v113_v43, %v9501_v46  ;;  %v9512_v53 = vand.u32 4294901760, %v116_v50  ;;  %v9521_v60 = vand.u32 4294901760, %v119_v57 }
   0xe   :  { %938 = vmatpush.msra.mxu2 %v709_v19  ;;  %1213 = vmatmul.f32.vlgmr.msra.gmra.mxu3 %v279_v27  ;;  %v296_v48 = vsub.f32 %v294_v41, %v295_v45  ;;  %v122_v0 = vsel %vm102_vm1, %v50_v61, 0  ;;  %v128_v15 = vsel %vm102_vm1, %v52_v11, 0  ;;  %v54_v27 = vld [vmem:[%s15231_s0 + $0x50] sm:$0xff]  ;;  %v60_v11 = vld [vmem:[%s15231_s0 + $0x80] sm:$0xff]  ;;  %vm1999_vm2 = vcmask 1043456  }
   0xf   :  { %282 = vmatmul.f32.vlgmr.msra.gmra.mxu0 %v281_v37  ;;  %941 = vmatmul.f32.vlgmr.msra.gmra.mxu2 %v278_v20  ;;  %v303_v52 = vand.u32 4294901760, %v302_v49  ;;  %v310_v56 = vsub.f32 %v116_v50, %v9512_v53  ;;  %v318_v63 = vsub.f32 %v119_v57, %v9521_v60  ;;  %v9529_v3 = vand.u32 4294901760, %v122_v0  ;;  %v53_v20 = vld [vmem:[%s15231_s0 + $0x48] sm:$0xff] }
  0x10   :  { %701 = vmatpush.msra.mxu1 %v700_v35  ;;  %1530 = vmatpush.msrb.mxu0 %v698_v21  ;;  %v297_v51 = vand.u32 4294901760, %v296_v48  ;;  %v9545_v19 = vand.u32 4294901760, %v128_v15  ;;  %v134_v30 = vsel %vm102_vm1, %v54_v27, 0  ;;  %v55_v35 = vld [vmem:[%s15231_s0 + $0x58] sm:$0xff]  ;;  %v57_v50 = vld [vmem:[%s15231_s0 + $0x68] sm:$0xff]  ;;  %vm2075_vm3 = vcmask 392192  }
  0x11   :  { %v304_v55 = vsub.f32 %v302_v49, %v303_v52  ;;  %v311_v59 = vand.u32 4294901760, %v310_v56  ;;  %v319_v2 = vand.u32 4294901760, %v318_v63  ;;  %v326_v6 = vsub.f32 %v122_v0, %v9529_v3 }
  0x12   :  { %707 = vmatpush.msra.mxu1 %v706_v39  ;;  %1534 = vmatpush.msrb.mxu0 %v704_v22  ;;  %v342_v22 = vsub.f32 %v128_v15, %v9545_v19  ;;  %v9561_v34 = vand.u32 4294901760, %v134_v30  ;;  %v137_v38 = vsel %vm102_vm1, %v55_v35, 0  ;;  %v143_v54 = vsel %vm102_vm1, %v57_v50, 0 }
  0x13   :  { %v305_v58 = vand.u32 4294901760, %v304_v55  ;;  %v312_v62 = vsub.f32 %v310_v56, %v311_v59  ;;  %v9585_v57 = vand.u32 4294901760, %v143_v54  ;;  %v152_v15 = vsel %vm102_vm1, %v60_v11, 0 }
  0x14   :  { %713 = vmatpush.msra.mxu1 %v712_v42  ;;  %1538 = vmatpush.msrb.mxu0 %v710_v25  ;;  %v343_v25 = vand.u32 4294901760, %v342_v22  ;;  %v358_v37 = vsub.f32 %v134_v30, %v9561_v34  ;;  %v56_v42 = vld [vmem:[%s15231_s0 + $0x60] sm:$0xff]  ;;  %vm5820_vm4 = vcmask 785408   ;;  %vm8564_vm5 = vcmask 158720  }
  0x15   :  { %715 = vmatmul.f32.vlgmr.msra.gmra.mxu1 %v9473_v14  ;;  %v313_v1 = vand.u32 4294901760, %v312_v62  ;;  %v382_v61 = vsub.f32 %v143_v54, %v9585_v57  ;;  %vm8574_vm6 = vcmask 162816   ;;  %vm8943_vm7 = vcmask 261120  }
  0x16   :  { %1753 = vmatpush.msrb.mxu1 %v9466_v9  ;;  %1219 = vmatmul.f32.gmra.mxu3 %v287_v32  ;;  %v327_v9 = vand.u32 4294901760, %v326_v6  ;;  %v344_v28 = vsub.f32 %v342_v22, %v343_v25  ;;  %v359_v40 = vand.u32 4294901760, %v358_v37  ;;  %vm9132_vm8 = vcmask 9216  }
  0x17   :  { %290 = vmatmul.f32.gmra.mxu0 %v289_v44  ;;  %946 = vmatmul.f32.gmra.mxu2 %v286_v23  ;;  %v131_v23 = vsel %vm102_vm1, %v53_v20, 0  ;;  %v383_v0 = vand.u32 4294901760, %v382_v61  ;;  %v9609_v20 = vand.u32 4294901760, %v152_v15 }
  0x18   :  { %1755 = vmatpush.msrb.mxu1 %v9453_v4  ;;  %v51_v4 = vld [vmem:[%s15231_s0 + $0x38] sm:$0xff]  ;;  %v328_v12 = vsub.f32 %v326_v6, %v327_v9  ;;  %v9553_v26 = vand.u32 4294901760, %v131_v23  ;;  %v345_v31 = vand.u32 4294901760, %v344_v28  ;;  %v360_v43 = vsub.f32 %v358_v37, %v359_v40 }
  0x19   :  { %v125_v7 = vsel %vm102_vm1, %v51_v4, 0  ;;  %v384_v4 = vsub.f32 %v382_v61, %v383_v0 }
  0x1a   :  { %1757 = vmatpush.msrb.mxu1 %v9455_v5  ;;  %v320_v5 = vsub.f32 %v318_v63, %v319_v2  ;;  %v329_v17 = vand.u32 4294901760, %v328_v12  ;;  %v350_v29 = vsub.f32 %v131_v23, %v9553_v26  ;;  %v361_v47 = vand.u32 4294901760, %v360_v43 }
  0x1b   :  { %v406_v23 = vsub.f32 %v152_v15, %v9609_v20 }
  0x1c   :  { %1759 = vmatpush.msrb.mxu1 %v9468_v10  ;;  %v321_v8 = vand.u32 4294901760, %v320_v5  ;;  %v9537_v10 = vand.u32 4294901760, %v125_v7  ;;  %v351_v32 = vand.u32 4294901760, %v350_v29 }
  0x1d   :  { %719 = vmatmul.f32.gmra.mxu1 %v9476_v16  ;;  %v407_v27 = vand.u32 4294901760, %v406_v23 }
  0x1e   :  { %1225 = vmatmul.f32.gmra.mxu3 %v295_v45  ;;  %v334_v13 = vsub.f32 %v125_v7, %v9537_v10  ;;  %v352_v36 = vsub.f32 %v350_v29, %v351_v32  ;;  %v140_v45 = vsel %vm102_vm1, %v56_v42, 0  ;;  %v385_v7 = vand.u32 4294901760, %v384_v4 }
  0x1f   :  { %298 = vmatmul.f32.gmra.mxu0 %v297_v51  ;;  %951 = vmatmul.f32.gmra.mxu2 %v294_v41  ;;  %v9569_v41 = vand.u32 4294901760, %v137_v38  ;;  %v408_v30 = vsub.f32 %v406_v23, %v407_v27 }
  0x20   :  { %v335_v18 = vand.u32 4294901760, %v334_v13  ;;  %v353_v39 = vand.u32 4294901760, %v352_v36  ;;  %v9630_v36 = vld [vmem:[%s15233_s2] ss:$0 sm:$0xff] }
  0x21   :  { %v366_v44 = vsub.f32 %v137_v38, %v9569_v41 }
  0x22   :  { %v336_v21 = vsub.f32 %v334_v13, %v335_v18 }
  0x23   :  { %v367_v48 = vand.u32 4294901760, %v366_v44 }
  0x24   :  { %v337_v24 = vand.u32 4294901760, %v336_v21  ;;  %v61_v21 = vld [vmem:[%s15231_s0 + $0x88] sm:$0xff] }
  0x25   :  { %723 = vmatmul.f32.gmra.mxu1 %v9492_v33  ;;  %v368_v51 = vsub.f32 %v366_v44, %v367_v48 }
  0x26   :  { %1231 = vmatmul.f32.gmra.mxu3 %v303_v52 }
  0x27   :  { %306 = vmatmul.f32.gmra.mxu0 %v305_v58  ;;  %956 = vmatmul.f32.gmra.mxu2 %v302_v49  ;;  %v9577_v49 = vand.u32 4294901760, %v140_v45  ;;  %v369_v55 = vand.u32 4294901760, %v368_v51  ;;  %v58_v58 = vld [vmem:[%s15231_s0 + $0x70] sm:$0xff] }
  0x28   :  { %v146_v62 = vsel %vm102_vm1, %v58_v58, 0  ;;  %v64_v58 = vld [vmem:[%s15231_s0 + $0xa0] sm:$0xff] }
  0x29   :  { %v374_v52 = vsub.f32 %v140_v45, %v9577_v49 }
  0x2d   :  { %727 = vmatmul.f32.gmra.mxu1 %v9501_v46 }
  0x2e   :  { %1237 = vmatmul.f32.gmra.mxu3 %v311_v59 }
  0x2f   :  { %314 = vmatmul.f32.gmra.mxu0 %v313_v1  ;;  %961 = vmatmul.f32.gmra.mxu2 %v310_v56  ;;  %v375_v56 = vand.u32 4294901760, %v374_v52  ;;  %v9593_v1 = vand.u32 4294901760, %v146_v62 }
  0x31   :  { %v376_v59 = vsub.f32 %v374_v52, %v375_v56  ;;  %v390_v5 = vsub.f32 %v146_v62, %v9593_v1 }
  0x35   :  { %731 = vmatmul.f32.gmra.mxu1 %v9512_v53 }
  0x36   :  { %1243 = vmatmul.f32.gmra.mxu3 %v319_v2  ;;  %v59_v2 = vld [vmem:[%s15231_s0 + $0x78] sm:$0xff] }
  0x37   :  { %322 = vmatmul.f32.gmra.mxu0 %v321_v8  ;;  %966 = vmatmul.f32.gmra.mxu2 %v318_v63  ;;  %v377_v63 = vand.u32 4294901760, %v376_v59  ;;  %v391_v8 = vand.u32 4294901760, %v390_v5 }
  0x39   :  { %v392_v12 = vsub.f32 %v390_v5, %v391_v8 }
  0x3d   :  { %735 = vmatmul.f32.gmra.mxu1 %v9521_v60 }
  0x3e   :  { %1249 = vmatmul.f32.gmra.mxu3 %v327_v9 }
  0x3f   :  { %330 = vmatmul.f32.gmra.mxu0 %v329_v17  ;;  %971 = vmatmul.f32.gmra.mxu2 %v326_v6  ;;  %v149_v6 = vsel %vm102_vm1, %v59_v2, 0  ;;  %v393_v17 = vand.u32 4294901760, %v392_v12  ;;  %v164_v2 = vsel %vm102_vm1, %v64_v58, 0 }
  0x40   :  { %v9601_v9 = vand.u32 4294901760, %v149_v6 }
  0x45   :  { %739 = vmatmul.f32.gmra.mxu1 %v9529_v3 }
  0x46   :  { %1255 = vmatmul.f32.gmra.mxu3 %v335_v18 }
  0x47   :  { %338 = vmatmul.f32.gmra.mxu0 %v337_v24  ;;  %976 = vmatmul.f32.gmra.mxu2 %v334_v13  ;;  %v398_v13 = vsub.f32 %v149_v6, %v9601_v9  ;;  %v155_v24 = vsel %vm102_vm1, %v61_v21, 0  ;;  %v9650_v6 = vand.u32 4294901760, %v164_v2 }
  0x48   :  { %v9617_v28 = vand.u32 4294901760, %v155_v24 }
  0x49   :  { %v399_v18 = vand.u32 4294901760, %v398_v13 }
  0x4d   :  { %743 = vmatmul.f32.gmra.mxu1 %v9537_v10 }
  0x4e   :  { %1261 = vmatmul.f32.gmra.mxu3 %v343_v25 }
  0x4f   :  { %346 = vmatmul.f32.gmra.mxu0 %v345_v31  ;;  %981 = vmatmul.f32.gmra.mxu2 %v342_v22  ;;  %v400_v22 = vsub.f32 %v398_v13, %v399_v18  ;;  %v414_v31 = vsub.f32 %v155_v24, %v9617_v28 }
  0x51   :  { %v401_v25 = vand.u32 4294901760, %v400_v22  ;;  %v415_v38 = vand.u32 4294901760, %v414_v31 }
  0x55   :  { %747 = vmatmul.f32.gmra.mxu1 %v9545_v19 }
  0x56   :  { %1267 = vmatmul.f32.gmra.mxu3 %v351_v32 }
  0x57   :  { %354 = vmatmul.f32.gmra.mxu0 %v353_v39  ;;  %986 = vmatmul.f32.gmra.mxu2 %v350_v29  ;;  %v62_v29 = vld [vmem:[%s15231_s0 + $0x90] sm:$0xff] }
  0x58   :  { %v158_v32 = vsel %vm102_vm1, %v62_v29, 0 }
  0x59   :  { %v9625_v35 = vand.u32 4294901760, %v158_v32 }
  0x5b   :  { %v422_v42 = vsub.f32 %v158_v32, %v9625_v35 }
  0x5d   :  { %751 = vmatmul.f32.gmra.mxu1 %v9553_v26  ;;  %v423_v50 = vand.u32 4294901760, %v422_v42 }
  0x5e   :  { %1273 = vmatmul.f32.gmra.mxu3 %v359_v40  ;;  %v63_v40 = vld [vmem:[%s15231_s0 + $0x98] sm:$0xff] }
  0x5f   :  { %362 = vmatmul.f32.gmra.mxu0 %v361_v47  ;;  %991 = vmatmul.f32.gmra.mxu2 %v358_v37  ;;  %v409_v37 = vand.u32 4294901760, %v408_v30  ;;  %v161_v45 = vsel %vm102_vm1, %v63_v40, 0 }
  0x65   :  { %755 = vmatmul.f32.gmra.mxu1 %v9561_v34 }
  0x66   :  { %1279 = vmatmul.f32.gmra.mxu3 %v367_v48 }
  0x67   :  { %370 = vmatmul.f32.gmra.mxu0 %v369_v55  ;;  %996 = vmatmul.f32.gmra.mxu2 %v366_v44  ;;  %v416_v44 = vsub.f32 %v414_v31, %v415_v38  ;;  %v9639_v55 = vand.u32 4294901760, %v161_v45 }
  0x6d   :  { %759 = vmatmul.f32.gmra.mxu1 %v9569_v41 }
  0x6e   :  { %1285 = vmatmul.f32.gmra.mxu3 %v375_v56 }
  0x6f   :  { %378 = vmatmul.f32.gmra.mxu0 %v377_v63  ;;  %1001 = vmatmul.f32.gmra.mxu2 %v374_v52  ;;  %v417_v52 = vand.u32 4294901760, %v416_v44 }
  0x75   :  { %763 = vmatmul.f32.gmra.mxu1 %v9577_v49 }
  0x76   :  { %1291 = vmatmul.f32.gmra.mxu3 %v383_v0  ;;  %v430_v0 = vsub.f32 %v161_v45, %v9639_v55 }
  0x77   :  { %386 = vmatmul.f32.gmra.mxu0 %v385_v7  ;;  %1006 = vmatmul.f32.gmra.mxu2 %v382_v61  ;;  %v424_v61 = vsub.f32 %v422_v42, %v423_v50 }
  0x78   :  { %v431_v12 = vand.u32 4294901760, %v430_v0 }
  0x7d   :  { %767 = vmatmul.f32.gmra.mxu1 %v9585_v57 }
  0x7e   :  { %1297 = vmatmul.f32.gmra.mxu3 %v391_v8  ;;  %v425_v8 = vand.u32 4294901760, %v424_v61 }
  0x7f   :  { %394 = vmatmul.f32.gmra.mxu0 %v393_v17  ;;  %1011 = vmatmul.f32.gmra.mxu2 %v390_v5  ;;  %v65_v17 = vld [vmem:[%s15231_s0 + $0xa8] sm:$0xff] }
  0x80   :  { %v167_v24 = vsel %vm102_vm1, %v65_v17, 0 }
  0x85   :  { %771 = vmatmul.f32.gmra.mxu1 %v9593_v1 }
  0x86   :  { %1303 = vmatmul.f32.gmra.mxu3 %v399_v18  ;;  %v438_v18 = vsub.f32 %v164_v2, %v9650_v6 }
  0x87   :  { %402 = vmatmul.f32.gmra.mxu0 %v401_v25  ;;  %1016 = vmatmul.f32.gmra.mxu2 %v398_v13 }
  0x88   :  { %v439_v29 = vand.u32 4294901760, %v438_v18 }
  0x8c   :  { %v283_v39 = vpop.f32.mrf.mxu0 }
  0x8d   :  { %775 = vmatmul.f32.gmra.mxu1 %v9601_v9  ;;  %v284_v43 = vadd.f32 %v9630_v36, %v283_v39  ;;  %v66_v39 = vld [vmem:[%s15231_s0 + $0xb0] sm:$0xff] }
  0x8e   :  { %1309 = vmatmul.f32.gmra.mxu3 %v407_v27 }
  0x8f   :  { %410 = vmatmul.f32.gmra.mxu0 %v409_v37  ;;  %1021 = vmatmul.f32.gmra.mxu2 %v406_v23  ;;  %v432_v23 = vsub.f32 %v430_v0, %v431_v12  ;;  %v9661_v37 = vand.u32 4294901760, %v167_v24 }
  0x91   :  { %v1214_v54 = vpop.f32.mrf.mxu3  ;;  %v446_v45 = vsub.f32 %v167_v24, %v9661_v37  ;;  %v68_v24 = vld [vmem:[%s15231_s0 + $0xc0] sm:$0xff] }
  0x92   :  { %v716_v47 = vpop.f32.mrf.mxu1  ;;  %v942_v48 = vpop.f32.mrf.mxu2 }
  0x93   :  { %v717_v51 = vadd.f32 %v716_v47, %v284_v43  ;;  %v170_v47 = vsel %vm102_vm1, %v66_v39, 0  ;;  %v447_v58 = vand.u32 4294901760, %v446_v45 }
  0x94   :  { %v291_v56 = vpop.f32.mrf.mxu0 }
  0x95   :  { %v943_v59 = vadd.f32 %v942_v48, %v717_v51  ;;  %779 = vmatmul.f32.gmra.mxu1 %v9609_v20  ;;  %v292_v62 = vadd.f32 %v9630_v36, %v291_v56  ;;  %v9672_v51 = vand.u32 4294901760, %v170_v47 }
  0x96   :  { %1315 = vmatmul.f32.gmra.mxu3 %v415_v38 }
  0x97   :  { %418 = vmatmul.f32.gmra.mxu0 %v417_v52  ;;  %v9646_v63 = vadd.f32 %v1214_v54, %v943_v59  ;;  %1026 = vmatmul.f32.gmra.mxu2 %v414_v31  ;;  %v433_v31 = vand.u32 4294901760, %v432_v23 }
  0x99   :  { %15572 = vst [vmem:[#allocation5_spill] sm:$0xff] %v9646_v63  ;;  %v1220_v11 = vpop.f32.mrf.mxu3 }
  0x9a   :  { %v720_v4 = vpop.f32.mrf.mxu1  ;;  %v947_v5 = vpop.f32.mrf.mxu2 }
  0x9b   :  { %v721_v7 = vadd.f32 %v720_v4, %v292_v62  ;;  %v67_v62 = vld [vmem:[%s15231_s0 + $0xb8] sm:$0xff] }
  0x9c   :  { %v299_v13 = vpop.f32.mrf.mxu0 }
  0x9d   :  { %v948_v15 = vadd.f32 %v947_v5, %v721_v7  ;;  %783 = vmatmul.f32.gmra.mxu1 %v9617_v28  ;;  %v300_v21 = vadd.f32 %v9630_v36, %v299_v13  ;;  %v448_v5 = vsub.f32 %v446_v45, %v447_v58  ;;  %v173_v7 = vsel %vm102_vm1, %v67_v62, 0 }
  0x9e   :  { %1321 = vmatmul.f32.gmra.mxu3 %v423_v50 }
  0x9f   :  { %426 = vmatmul.f32.gmra.mxu0 %v425_v8  ;;  %v9658_v22 = vadd.f32 %v1220_v11, %v948_v15  ;;  %1031 = vmatmul.f32.gmra.mxu2 %v422_v42  ;;  %v440_v42 = vsub.f32 %v438_v18, %v439_v29  ;;  %v449_v15 = vand.u32 4294901760, %v448_v5 }
  0xa1   :  { %15573 = vst [vmem:[#allocation6_spill] sm:$0xff] %v9658_v22  ;;  %v1226_v32 = vpop.f32.mrf.mxu3  ;;  %v441_v54 = vand.u32 4294901760, %v440_v42 }
  0xa2   :  { %v724_v25 = vpop.f32.mrf.mxu1  ;;  %v952_v27 = vpop.f32.mrf.mxu2 }
  0xa3   :  { %v725_v30 = vadd.f32 %v724_v25, %v300_v21  ;;  %v9683_v21 = vand.u32 4294901760, %v173_v7 }
  0xa4   :  { %v307_v38 = vpop.f32.mrf.mxu0 }
  0xa5   :  { %v953_v40 = vadd.f32 %v952_v27, %v725_v30  ;;  %787 = vmatmul.f32.gmra.mxu1 %v9625_v35  ;;  %v308_v43 = vadd.f32 %v9630_v36, %v307_v38  ;;  %v462_v30 = vsub.f32 %v173_v7, %v9683_v21 }
  0xa6   :  { %1327 = vmatmul.f32.gmra.mxu3 %v431_v12 }
  0xa7   :  { %434 = vmatmul.f32.gmra.mxu0 %v433_v31  ;;  %v9668_v44 = vadd.f32 %v1226_v32, %v953_v40  ;;  %1036 = vmatmul.f32.gmra.mxu2 %v430_v0  ;;  %v454_v0 = vsub.f32 %v170_v47, %v9672_v51  ;;  %v176_v31 = vsel %vm102_vm1, %v68_v24, 0  ;;  %v463_v47 = vand.u32 4294901760, %v462_v30 }
  0xa8   :  { %v9694_v39 = vand.u32 4294901760, %v176_v31 }
  0xa9   :  { %15574 = vst [vmem:[#allocation7_spill] sm:$0xff] %v9668_v44  ;;  %v1232_v56 = vpop.f32.mrf.mxu3  ;;  %v455_v12 = vand.u32 4294901760, %v454_v0 }
  0xaa   :  { %v728_v48 = vpop.f32.mrf.mxu1  ;;  %v957_v50 = vpop.f32.mrf.mxu2 }
  0xab   :  { %v729_v52 = vadd.f32 %v728_v48, %v308_v43 }
  0xac   :  { %v315_v59 = vpop.f32.mrf.mxu0 }
  0xad   :  { %v958_v61 = vadd.f32 %v957_v50, %v729_v52  ;;  %791 = vmatmul.f32.gmra.mxu1 %v9639_v55  ;;  %v316_v2 = vadd.f32 %v9630_v36, %v315_v59  ;;  %v470_v52 = vsub.f32 %v176_v31, %v9694_v39 }
  0xae   :  { %1333 = vmatmul.f32.gmra.mxu3 %v439_v29 }
  0xaf   :  { %442 = vmatmul.f32.gmra.mxu0 %v441_v54  ;;  %v9680_v4 = vadd.f32 %v1232_v56, %v958_v61  ;;  %1041 = vmatmul.f32.gmra.mxu2 %v438_v18  ;;  %v456_v18 = vsub.f32 %v454_v0, %v455_v12 }
  0xb1   :  { %15575 = vst [vmem:[#allocation8_spill] sm:$0xff] %v9680_v4  ;;  %v1238_v17 = vpop.f32.mrf.mxu3  ;;  %v457_v42 = vand.u32 4294901760, %v456_v18 }
  0xb2   :  { %v732_v8 = vpop.f32.mrf.mxu1  ;;  %v962_v11 = vpop.f32.mrf.mxu2 }
  0xb3   :  { %v733_v13 = vadd.f32 %v732_v8, %v316_v2  ;;  %v471_v2 = vand.u32 4294901760, %v470_v52 }
  0xb4   :  { %v323_v23 = vpop.f32.mrf.mxu0 }
  0xb5   :  { %v963_v25 = vadd.f32 %v962_v11, %v733_v13  ;;  %795 = vmatmul.f32.gmra.mxu1 %v9650_v6  ;;  %v324_v27 = vadd.f32 %v9630_v36, %v323_v23 }
  0xb6   :  { %1339 = vmatmul.f32.gmra.mxu3 %v447_v58  ;;  %v464_v58 = vsub.f32 %v462_v30, %v463_v47 }
  0xb7   :  { %450 = vmatmul.f32.gmra.mxu0 %v449_v15  ;;  %v9690_v29 = vadd.f32 %v1238_v17, %v963_v25  ;;  %1046 = vmatmul.f32.gmra.mxu2 %v446_v45  ;;  %v69_v45 = vld [vmem:[%s15231_s0 + $0xc8] sm:$0xff]  ;;  %v70_v15 = vld [vmem:[%s15231_s0 + $0xd0] sm:$0xff] }
  0xb8   :  { %v179_v59 = vsel %vm102_vm1, %v69_v45, 0  ;;  %v465_v7 = vand.u32 4294901760, %v464_v58  ;;  %v182_v25 = vsel %vm102_vm1, %v70_v15, 0 }
  0xb9   :  { %15576 = vst [vmem:[#allocation9_spill] sm:$0xff] %v9690_v29  ;;  %v1244_v43 = vpop.f32.mrf.mxu3  ;;  %v9705_v11 = vand.u32 4294901760, %v179_v59  ;;  %v9716_v31 = vand.u32 4294901760, %v182_v25 }
  0xba   :  { %v736_v32 = vpop.f32.mrf.mxu1  ;;  %v967_v38 = vpop.f32.mrf.mxu2 }
  0xbb   :  { %v737_v40 = vadd.f32 %v736_v32, %v324_v27  ;;  %v478_v24 = vsub.f32 %v179_v59, %v9705_v11 }
  0xbc   :  { %v331_v48 = vpop.f32.mrf.mxu0 }
  0xbd   :  { %v968_v50 = vadd.f32 %v967_v38, %v737_v40  ;;  %799 = vmatmul.f32.gmra.mxu1 %v9661_v37  ;;  %v332_v54 = vadd.f32 %v9630_v36, %v331_v48 }
  0xbe   :  { %1345 = vmatmul.f32.gmra.mxu3 %v455_v12 }
  0xbf   :  { %458 = vmatmul.f32.gmra.mxu0 %v457_v42  ;;  %v9702_v56 = vadd.f32 %v1244_v43, %v968_v50  ;;  %1051 = vmatmul.f32.gmra.mxu2 %v454_v0  ;;  %v472_v0 = vsub.f32 %v470_v52, %v471_v2  ;;  %v479_v42 = vand.u32 4294901760, %v478_v24  ;;  %v486_v50 = vsub.f32 %v182_v25, %v9716_v31 }
  0xc1   :  { %15577 = vst [vmem:[#allocation10_spill] sm:$0xff] %v9702_v56  ;;  %v1250_v8 = vpop.f32.mrf.mxu3  ;;  %v473_v38 = vand.u32 4294901760, %v472_v0 }
  0xc2   :  { %v740_v61 = vpop.f32.mrf.mxu1  ;;  %v972_v62 = vpop.f32.mrf.mxu2 }
  0xc3   :  { %v741_v5 = vadd.f32 %v740_v61, %v332_v54  ;;  %v480_v54 = vsub.f32 %v478_v24, %v479_v42 }
  0xc4   :  { %v339_v13 = vpop.f32.mrf.mxu0 }
  0xc5   :  { %v973_v17 = vadd.f32 %v972_v62, %v741_v5  ;;  %803 = vmatmul.f32.gmra.mxu1 %v9672_v51  ;;  %v340_v12 = vadd.f32 %v9630_v36, %v339_v13  ;;  %v487_v62 = vand.u32 4294901760, %v486_v50 }
  0xc6   :  { %1351 = vmatmul.f32.gmra.mxu3 %v463_v47 }
  0xc7   :  { %466 = vmatmul.f32.gmra.mxu0 %v465_v7  ;;  %v9712_v23 = vadd.f32 %v1250_v8, %v973_v17  ;;  %1056 = vmatmul.f32.gmra.mxu2 %v462_v30  ;;  %v71_v30 = vld [vmem:[%s15231_s0 + $0xd8] sm:$0xff]  ;;  %v481_v7 = vand.u32 4294901760, %v480_v54  ;;  %v72_v17 = vld [vmem:[%s15231_s0 + $0xe0] sm:$0xff] }
  0xc8   :  { %v185_v58 = vsel %vm102_vm1, %v71_v30, 0 }
  0xc9   :  { %15578 = vst [vmem:[#allocation11_spill] sm:$0xff] %v9712_v23  ;;  %v1256_v40 = vpop.f32.mrf.mxu3  ;;  %v9727_v13 = vand.u32 4294901760, %v185_v58 }
  0xca   :  { %v744_v18 = vpop.f32.mrf.mxu1  ;;  %v977_v27 = vpop.f32.mrf.mxu2 }
  0xcb   :  { %v745_v32 = vadd.f32 %v744_v18, %v340_v12  ;;  %v494_v25 = vsub.f32 %v185_v58, %v9727_v13  ;;  %v188_v18 = vsel %vm102_vm1, %v72_v17, 0 }
  0xcc   :  { %v347_v43 = vpop.f32.mrf.mxu0 }
  0xcd   :  { %v978_v48 = vadd.f32 %v977_v27, %v745_v32  ;;  %807 = vmatmul.f32.gmra.mxu1 %v9683_v21  ;;  %v348_v47 = vadd.f32 %v9630_v36, %v347_v43  ;;  %v495_v30 = vand.u32 4294901760, %v494_v25 }
  0xce   :  { %1357 = vmatmul.f32.gmra.mxu3 %v471_v2 }
  0xcf   :  { %474 = vmatmul.f32.gmra.mxu0 %v473_v38  ;;  %v9724_v45 = vadd.f32 %v1256_v40, %v978_v48  ;;  %1061 = vmatmul.f32.gmra.mxu2 %v470_v52  ;;  %v488_v52 = vsub.f32 %v486_v50, %v487_v62  ;;  %v9738_v38 = vand.u32 4294901760, %v188_v18 }
  0xd1   :  { %15579 = vst [vmem:[#allocation12_spill] sm:$0xff] %v9724_v45  ;;  %v1262_v8 = vpop.f32.mrf.mxu3  ;;  %v489_v43 = vand.u32 4294901760, %v488_v52  ;;  %v502_v58 = vsub.f32 %v188_v18, %v9738_v38  ;;  %v74_v18 = vld [vmem:[%s15231_s0 + $0xf0] sm:$0xff] }
  0xd2   :  { %v748_v59 = vpop.f32.mrf.mxu1  ;;  %v982_v61 = vpop.f32.mrf.mxu2 }
  0xd3   :  { %v749_v5 = vadd.f32 %v748_v59, %v348_v47 }
  0xd4   :  { %v355_v15 = vpop.f32.mrf.mxu0 }
  0xd5   :  { %v983_v0 = vadd.f32 %v982_v61, %v749_v5  ;;  %811 = vmatmul.f32.gmra.mxu1 %v9694_v39  ;;  %v356_v2 = vadd.f32 %v9630_v36, %v355_v15  ;;  %v496_v61 = vsub.f32 %v494_v25, %v495_v30  ;;  %v503_v15 = vand.u32 4294901760, %v502_v58 }
  0xd6   :  { %1363 = vmatmul.f32.gmra.mxu3 %v479_v42 }
  0xd7   :  { %482 = vmatmul.f32.gmra.mxu0 %v481_v7  ;;  %v9734_v12 = vadd.f32 %v1262_v8, %v983_v0  ;;  %1066 = vmatmul.f32.gmra.mxu2 %v478_v24  ;;  %v73_v24 = vld [vmem:[%s15231_s0 + $0xe8] sm:$0xff]  ;;  %v497_v0 = vand.u32 4294901760, %v496_v61 }
  0xd8   :  { %v191_v5 = vsel %vm102_vm1, %v73_v24, 0 }
  0xd9   :  { %15580 = vst [vmem:[#allocation13_spill] sm:$0xff] %v9734_v12  ;;  %v1268_v48 = vpop.f32.mrf.mxu3 }
  0xda   :  { %v752_v27 = vpop.f32.mrf.mxu1  ;;  %v987_v32 = vpop.f32.mrf.mxu2 }
  0xdb   :  { %v753_v40 = vadd.f32 %v752_v27, %v356_v2  ;;  %v9749_v2 = vand.u32 4294901760, %v191_v5 }
  0xdc   :  { %v363_v47 = vpop.f32.mrf.mxu0 }
  0xdd   :  { %v988_v54 = vadd.f32 %v987_v32, %v753_v40  ;;  %815 = vmatmul.f32.gmra.mxu1 %v9705_v11  ;;  %v364_v42 = vadd.f32 %v9630_v36, %v363_v47 }
  0xde   :  { %1369 = vmatmul.f32.gmra.mxu3 %v487_v62 }
  0xdf   :  { %490 = vmatmul.f32.gmra.mxu0 %v489_v43  ;;  %v9746_v59 = vadd.f32 %v1268_v48, %v988_v54  ;;  %1071 = vmatmul.f32.gmra.mxu2 %v486_v50  ;;  %v504_v50 = vsub.f32 %v502_v58, %v503_v15  ;;  %v510_v43 = vsub.f32 %v191_v5, %v9749_v2  ;;  %v194_v48 = vsel %vm102_vm1, %v74_v18, 0 }
  0xe0   :  { %v9760_v24 = vand.u32 4294901760, %v194_v48 }
  0xe1   :  { %15581 = vst [vmem:[#allocation14_spill] sm:$0xff] %v9746_v59  ;;  %v1274_v52 = vpop.f32.mrf.mxu3  ;;  %v505_v61 = vand.u32 4294901760, %v504_v50 }
  0xe2   :  { %v756_v7 = vpop.f32.mrf.mxu1  ;;  %v992_v8 = vpop.f32.mrf.mxu2  ;;  %v518_v5 = vsub.f32 %v194_v48, %v9760_v24  ;;  %v76_v48 = vld [vmem:[%s15231_s0 + $0x100] sm:$0xff] }
  0xe3   :  { %v757_v17 = vadd.f32 %v756_v7, %v364_v42 }
  0xe4   :  { %v371_v27 = vpop.f32.mrf.mxu0  ;;  %v519_v50 = vand.u32 4294901760, %v518_v5 }
  0xe5   :  { %v993_v32 = vadd.f32 %v992_v8, %v757_v17  ;;  %819 = vmatmul.f32.gmra.mxu1 %v9716_v31  ;;  %v372_v62 = vadd.f32 %v9630_v36, %v371_v27  ;;  %v511_v8 = vand.u32 4294901760, %v510_v43 }
  0xe6   :  { %1375 = vmatmul.f32.gmra.mxu3 %v495_v30 }
  0xe7   :  { %498 = vmatmul.f32.gmra.mxu0 %v497_v0  ;;  %v9756_v40 = vadd.f32 %v1274_v52, %v993_v32  ;;  %1076 = vmatmul.f32.gmra.mxu2 %v494_v25  ;;  %v75_v25 = vld [vmem:[%s15231_s0 + $0xf8] sm:$0xff]  ;;  %v512_v52 = vsub.f32 %v510_v43, %v511_v8 }
  0xe8   :  { %v197_v27 = vsel %vm102_vm1, %v75_v25, 0 }
  0xe9   :  { %15582 = vst [vmem:[#allocation15_spill] sm:$0xff] %v9756_v40  ;;  %v1280_v7 = vpop.f32.mrf.mxu3 }
  0xea   :  { %v760_v47 = vpop.f32.mrf.mxu1  ;;  %v997_v54 = vpop.f32.mrf.mxu2 }
  0xeb   :  { %v761_v42 = vadd.f32 %v760_v47, %v372_v62  ;;  %v513_v47 = vand.u32 4294901760, %v512_v52 }
  0xec   :  { %v379_v17 = vpop.f32.mrf.mxu0 }
  0xed   :  { %v998_v59 = vadd.f32 %v997_v54, %v761_v42  ;;  %823 = vmatmul.f32.gmra.mxu1 %v9727_v13  ;;  %v380_v30 = vadd.f32 %v9630_v36, %v379_v17  ;;  %v9771_v42 = vand.u32 4294901760, %v197_v27  ;;  %v200_v17 = vsel %vm102_vm1, %v76_v48, 0 }
  0xee   :  { %1381 = vmatmul.f32.gmra.mxu3 %v503_v15  ;;  %v9782_v52 = vand.u32 4294901760, %v200_v17 }
  0xef   :  { %506 = vmatmul.f32.gmra.mxu0 %v505_v61  ;;  %v9768_v0 = vadd.f32 %v1280_v7, %v998_v59  ;;  %1081 = vmatmul.f32.gmra.mxu2 %v502_v58  ;;  %v520_v58 = vsub.f32 %v518_v5, %v519_v50  ;;  %v526_v7 = vsub.f32 %v197_v27, %v9771_v42 }
  0xf1   :  { %15583 = vst [vmem:[#allocation16_spill] sm:$0xff] %v9768_v0  ;;  %v1286_v54 = vpop.f32.mrf.mxu3  ;;  %v527_v0 = vand.u32 4294901760, %v526_v7 }
  0xf2   :  { %v764_v18 = vpop.f32.mrf.mxu1  ;;  %v1002_v32 = vpop.f32.mrf.mxu2 }
  0xf3   :  { %v765_v62 = vadd.f32 %v764_v18, %v380_v30 }
  0xf4   :  { %v387_v40 = vpop.f32.mrf.mxu0 }
  0xf5   :  { %v1003_v59 = vadd.f32 %v1002_v32, %v765_v62  ;;  %827 = vmatmul.f32.gmra.mxu1 %v9738_v38  ;;  %v388_v15 = vadd.f32 %v9630_v36, %v387_v40  ;;  %v521_v32 = vand.u32 4294901760, %v520_v58  ;;  %v77_v40 = vld [vmem:[%s15231_s0 + $0x108] sm:$0xff] }
  0xf6   :  { %1387 = vmatmul.f32.gmra.mxu3 %v511_v8 }
  0xf7   :  { %514 = vmatmul.f32.gmra.mxu0 %v513_v47  ;;  %v9778_v61 = vadd.f32 %v1286_v54, %v1003_v59  ;;  %1086 = vmatmul.f32.gmra.mxu2 %v510_v43  ;;  %v534_v43 = vsub.f32 %v200_v17, %v9782_v52  ;;  %v528_v47 = vsub.f32 %v526_v7, %v527_v0  ;;  %v203_v54 = vsel %vm102_vm1, %v77_v40, 0 }
  0xf9   :  { %15584 = vst [vmem:[#allocation17_spill] sm:$0xff] %v9778_v61  ;;  %v1292_v62 = vpop.f32.mrf.mxu3  ;;  %v535_v58 = vand.u32 4294901760, %v534_v43 }
  0xfa   :  { %v768_v25 = vpop.f32.mrf.mxu1  ;;  %v1007_v30 = vpop.f32.mrf.mxu2 }
  0xfb   :  { %v769_v18 = vadd.f32 %v768_v25, %v388_v15  ;;  %v529_v25 = vand.u32 4294901760, %v528_v47 }
  0xfc   :  { %v395_v12 = vpop.f32.mrf.mxu0 }
  0xfd   :  { %v1008_v45 = vadd.f32 %v1007_v30, %v769_v18  ;;  %831 = vmatmul.f32.gmra.mxu1 %v9749_v2  ;;  %v396_v8 = vadd.f32 %v9630_v36, %v395_v12  ;;  %v9793_v18 = vand.u32 4294901760, %v203_v54  ;;  %v78_v12 = vld [vmem:[%s15231_s0 + $0x110] sm:$0xff] }
  0xfe   :  { %1393 = vmatmul.f32.gmra.mxu3 %v519_v50 }
  0xff   :  { %522 = vmatmul.f32.gmra.mxu0 %v521_v32  ;;  %v9790_v27 = vadd.f32 %v1292_v62, %v1008_v45  ;;  %1091 = vmatmul.f32.gmra.mxu2 %v518_v5  ;;  %v536_v5 = vsub.f32 %v534_v43, %v535_v58  ;;  %v542_v32 = vsub.f32 %v203_v54, %v9793_v18  ;;  %v206_v62 = vsel %vm102_vm1, %v78_v12, 0 }
 0x100   :  { %v9804_v47 = vand.u32 4294901760, %v206_v62 }
 0x101   :  { %15585 = vst [vmem:[#allocation18_spill] sm:$0xff] %v9790_v27  ;;  %v1298_v30 = vpop.f32.mrf.mxu3  ;;  %v543_v56 = vand.u32 4294901760, %v542_v32 }
 0x102   :  { %v772_v48 = vpop.f32.mrf.mxu1  ;;  %v1012_v59 = vpop.f32.mrf.mxu2 }
 0x103   :  { %v773_v15 = vadd.f32 %v772_v48, %v396_v8 }
 0x104   :  { %v403_v23 = vpop.f32.mrf.mxu0 }
 0x105   :  { %v1013_v45 = vadd.f32 %v1012_v59, %v773_v15  ;;  %835 = vmatmul.f32.gmra.mxu1 %v9760_v24  ;;  %v404_v50 = vadd.f32 %v9630_v36, %v403_v23  ;;  %v537_v59 = vand.u32 4294901760, %v536_v5  ;;  %v79_v23 = vld [vmem:[%s15231_s0 + $0x118] sm:$0xff] }
 0x106   :  { %1399 = vmatmul.f32.gmra.mxu3 %v527_v0 }
 0x107   :  { %530 = vmatmul.f32.gmra.mxu0 %v529_v25  ;;  %v9800_v17 = vadd.f32 %v1298_v30, %v1013_v45  ;;  %1096 = vmatmul.f32.gmra.mxu2 %v526_v7  ;;  %v550_v7 = vsub.f32 %v206_v62, %v9804_v47  ;;  %v544_v25 = vsub.f32 %v542_v32, %v543_v56  ;;  %v209_v30 = vsel %vm102_vm1, %v79_v23, 0 }
 0x109   :  { %15586 = vst [vmem:[#allocation19_spill] sm:$0xff] %v9800_v17  ;;  %v1304_v15 = vpop.f32.mrf.mxu3  ;;  %v551_v5 = vand.u32 4294901760, %v550_v7 }
 0x10a   :  { %v776_v40 = vpop.f32.mrf.mxu1  ;;  %v1017_v8 = vpop.f32.mrf.mxu2 }
 0x10b   :  { %v777_v48 = vadd.f32 %v776_v40, %v404_v50  ;;  %v545_v40 = vand.u32 4294901760, %v544_v25 }
 0x10c   :  { %v411_v29 = vpop.f32.mrf.mxu0 }
 0x10d   :  { %v1018_v4 = vadd.f32 %v1017_v8, %v777_v48  ;;  %839 = vmatmul.f32.gmra.mxu1 %v9771_v42  ;;  %v412_v0 = vadd.f32 %v9630_v36, %v411_v29  ;;  %v9815_v48 = vand.u32 4294901760, %v209_v30  ;;  %v80_v29 = vld [vmem:[%s15231_s0 + $0x120] sm:$0xff] }
 0x10e   :  { %1405 = vmatmul.f32.gmra.mxu3 %v535_v58 }
 0x10f   :  { %538 = vmatmul.f32.gmra.mxu0 %v537_v59  ;;  %v9812_v54 = vadd.f32 %v1304_v15, %v1018_v4  ;;  %1101 = vmatmul.f32.gmra.mxu2 %v534_v43  ;;  %v552_v43 = vsub.f32 %v550_v7, %v551_v5  ;;  %v558_v59 = vsub.f32 %v209_v30, %v9815_v48  ;;  %v212_v15 = vsel %vm102_vm1, %v80_v29, 0 }
 0x110   :  { %v9826_v25 = vand.u32 4294901760, %v212_v15 }
 0x111   :  { %15587 = vst [vmem:[#allocation20_spill] sm:$0xff] %v9812_v54  ;;  %v1310_v8 = vpop.f32.mrf.mxu3  ;;  %v559_v54 = vand.u32 4294901760, %v558_v59 }
 0x112   :  { %v780_v12 = vpop.f32.mrf.mxu1  ;;  %v1022_v45 = vpop.f32.mrf.mxu2  ;;  %15589 = vst [vmem:[#allocation22_spill] sm:$0xff] %v9826_v25 }
 0x113   :  { %v781_v50 = vadd.f32 %v780_v12, %v412_v0 }
 0x114   :  { %v419_v44 = vpop.f32.mrf.mxu0 }
 0x115   :  { %v1023_v4 = vadd.f32 %v1022_v45, %v781_v50  ;;  %843 = vmatmul.f32.gmra.mxu1 %v9782_v52  ;;  %v420_v58 = vadd.f32 %v9630_v36, %v419_v44  ;;  %v553_v45 = vand.u32 4294901760, %v552_v43  ;;  %v81_v44 = vld [vmem:[%s15231_s0 + $0x128] sm:$0xff] }
 0x116   :  { %1411 = vmatmul.f32.gmra.mxu3 %v543_v56 }
 0x117   :  { %546 = vmatmul.f32.gmra.mxu0 %v545_v40  ;;  %v9822_v62 = vadd.f32 %v1310_v8, %v1023_v4  ;;  %1106 = vmatmul.f32.gmra.mxu2 %v542_v32  ;;  %v566_v32 = vsub.f32 %v212_v15, %v9826_v25  ;;  %v560_v40 = vsub.f32 %v558_v59, %v559_v54  ;;  %v215_v8 = vsel %vm102_vm1, %v81_v44, 0 }
 0x119   :  { %15588 = vst [vmem:[#allocation21_spill] sm:$0xff] %v9822_v62  ;;  %v1316_v50 = vpop.f32.mrf.mxu3  ;;  %v567_v43 = vand.u32 4294901760, %v566_v32 }
 0x11a   :  { %v784_v23 = vpop.f32.mrf.mxu1  ;;  %v1027_v0 = vpop.f32.mrf.mxu2 }
 0x11b   :  { %v785_v12 = vadd.f32 %v784_v23, %v420_v58  ;;  %v561_v23 = vand.u32 4294901760, %v560_v40 }
 0x11c   :  { %v427_v22 = vpop.f32.mrf.mxu0 }
 0x11d   :  { %v1028_v17 = vadd.f32 %v1027_v0, %v785_v12  ;;  %847 = vmatmul.f32.gmra.mxu1 %v9793_v18  ;;  %v428_v56 = vadd.f32 %v9630_v36, %v427_v22  ;;  %v9837_v12 = vand.u32 4294901760, %v215_v8  ;;  %v82_v22 = vld [vmem:[%s15231_s0 + $0x130] sm:$0xff] }
 0x11e   :  { %1417 = vmatmul.f32.gmra.mxu3 %v551_v5 }
 0x11f   :  { %554 = vmatmul.f32.gmra.mxu0 %v553_v45  ;;  %v9834_v30 = vadd.f32 %v1316_v50, %v1028_v17  ;;  %1111 = vmatmul.f32.gmra.mxu2 %v550_v7  ;;  %15591 = vst [vmem:[#allocation24_spill] sm:$0xff] %v9837_v12  ;;  %v568_v7 = vsub.f32 %v566_v32, %v567_v43  ;;  %v218_v50 = vsel %vm102_vm1, %v82_v22, 0 }
 0x120   :  { %v574_v45 = vsub.f32 %v215_v8, %v9837_v12  ;;  %v9848_v40 = vand.u32 4294901760, %v218_v50 }
 0x121   :  { %15590 = vst [vmem:[#allocation23_spill] sm:$0xff] %v9834_v30  ;;  %v1322_v0 = vpop.f32.mrf.mxu3 }
 0x122   :  { %v788_v29 = vpop.f32.mrf.mxu1  ;;  %v1032_v4 = vpop.f32.mrf.mxu2  ;;  %15593 = vst [vmem:[#allocation26_spill] sm:$0xff] %v9848_v40  ;;  %v575_v30 = vand.u32 4294901760, %v574_v45 }
 0x123   :  { %v789_v58 = vadd.f32 %v788_v29, %v428_v56 }
 0x124   :  { %v435_v62 = vpop.f32.mrf.mxu0 }
 0x125   :  { %v1033_v17 = vadd.f32 %v1032_v4, %v789_v58  ;;  %851 = vmatmul.f32.gmra.mxu1 %v9804_v47  ;;  %v436_v5 = vadd.f32 %v9630_v36, %v435_v62  ;;  %v569_v4 = vand.u32 4294901760, %v568_v7  ;;  %v83_v62 = vld [vmem:[%s15231_s0 + $0x138] sm:$0xff] }
 0x126   :  { %1423 = vmatmul.f32.gmra.mxu3 %v559_v54 }
 0x127   :  { %562 = vmatmul.f32.gmra.mxu0 %v561_v23  ;;  %v9844_v15 = vadd.f32 %v1322_v0, %v1033_v17  ;;  %1116 = vmatmul.f32.gmra.mxu2 %v558_v59  ;;  %v582_v59 = vsub.f32 %v218_v50, %v9848_v40  ;;  %v576_v23 = vsub.f32 %v574_v45, %v575_v30  ;;  %v221_v0 = vsel %vm102_vm1, %v83_v62, 0 }
 0x129   :  { %15592 = vst [vmem:[#allocation25_spill] sm:$0xff] %v9844_v15  ;;  %v1328_v58 = vpop.f32.mrf.mxu3  ;;  %v583_v7 = vand.u32 4294901760, %v582_v59 }
 0x12a   :  { %v792_v44 = vpop.f32.mrf.mxu1  ;;  %v1037_v56 = vpop.f32.mrf.mxu2 }
 0x12b   :  { %v793_v29 = vadd.f32 %v792_v44, %v436_v5  ;;  %v577_v44 = vand.u32 4294901760, %v576_v23 }
 0x12c   :  { %v443_v27 = vpop.f32.mrf.mxu0 }
 0x12d   :  { %v1038_v61 = vadd.f32 %v1037_v56, %v793_v29  ;;  %855 = vmatmul.f32.gmra.mxu1 %v9815_v48  ;;  %v444_v54 = vadd.f32 %v9630_v36, %v443_v27  ;;  %v9859_v29 = vand.u32 4294901760, %v221_v0  ;;  %v84_v27 = vld [vmem:[%s15231_s0 + $0x140] sm:$0xff] }
 0x12e   :  { %1429 = vmatmul.f32.gmra.mxu3 %v567_v43 }
 0x12f   :  { %570 = vmatmul.f32.gmra.mxu0 %v569_v4  ;;  %v9856_v8 = vadd.f32 %v1328_v58, %v1038_v61  ;;  %1121 = vmatmul.f32.gmra.mxu2 %v566_v32  ;;  %v584_v32 = vsub.f32 %v582_v59, %v583_v7  ;;  %v590_v4 = vsub.f32 %v221_v0, %v9859_v29  ;;  %v224_v58 = vsel %vm102_vm1, %v84_v27, 0 }
 0x130   :  { %v9870_v23 = vand.u32 4294901760, %v224_v58 }
 0x131   :  { %15594 = vst [vmem:[#allocation27_spill] sm:$0xff] %v9856_v8  ;;  %v1334_v56 = vpop.f32.mrf.mxu3  ;;  %v591_v8 = vand.u32 4294901760, %v590_v4 }
 0x132   :  { %v796_v22 = vpop.f32.mrf.mxu1  ;;  %v1042_v17 = vpop.f32.mrf.mxu2  ;;  %15596 = vst [vmem:[#allocation29_spill] sm:$0xff] %v9870_v23 }
 0x133   :  { %v797_v5 = vadd.f32 %v796_v22, %v444_v54 }
 0x134   :  { %v451_v15 = vpop.f32.mrf.mxu0 }
 0x135   :  { %v1043_v61 = vadd.f32 %v1042_v17, %v797_v5  ;;  %859 = vmatmul.f32.gmra.mxu1 %v9826_v25  ;;  %v452_v43 = vadd.f32 %v9630_v36, %v451_v15  ;;  %v585_v17 = vand.u32 4294901760, %v584_v32  ;;  %v85_v15 = vld [vmem:[%s15231_s0 + $0x148] sm:$0xff] }
 0x136   :  { %1435 = vmatmul.f32.gmra.mxu3 %v575_v30 }
 0x137   :  { %578 = vmatmul.f32.gmra.mxu0 %v577_v44  ;;  %v9866_v50 = vadd.f32 %v1334_v56, %v1043_v61  ;;  %1126 = vmatmul.f32.gmra.mxu2 %v574_v45  ;;  %v598_v45 = vsub.f32 %v224_v58, %v9870_v23  ;;  %v592_v44 = vsub.f32 %v590_v4, %v591_v8  ;;  %v227_v56 = vsel %vm102_vm1, %v85_v15, 0 }
 0x139   :  { %15595 = vst [vmem:[#allocation28_spill] sm:$0xff] %v9866_v50  ;;  %v1340_v5 = vpop.f32.mrf.mxu3  ;;  %v599_v32 = vand.u32 4294901760, %v598_v45 }
 0x13a   :  { %v800_v62 = vpop.f32.mrf.mxu1  ;;  %v1047_v54 = vpop.f32.mrf.mxu2 }
 0x13b   :  { %v801_v22 = vadd.f32 %v800_v62, %v452_v43  ;;  %v593_v62 = vand.u32 4294901760, %v592_v44 }
 0x13c   :  { %v459_v63 = vpop.f32.mrf.mxu0 }
 0x13d   :  { %v1048_v25 = vadd.f32 %v1047_v54, %v801_v22  ;;  %863 = vmatmul.f32.gmra.mxu1 %v9837_v12  ;;  %v460_v30 = vadd.f32 %v9630_v36, %v459_v63  ;;  %v9881_v22 = vand.u32 4294901760, %v227_v56  ;;  %v86_v63 = vld [vmem:[%s15231_s0 + $0x150] sm:$0xff] }
 0x13e   :  { %1441 = vmatmul.f32.gmra.mxu3 %v583_v7 }
 0x13f   :  { %586 = vmatmul.f32.gmra.mxu0 %v585_v17  ;;  %v9878_v0 = vadd.f32 %v1340_v5, %v1048_v25  ;;  %1131 = vmatmul.f32.gmra.mxu2 %v582_v59  ;;  %v600_v59 = vsub.f32 %v598_v45, %v599_v32  ;;  %v606_v17 = vsub.f32 %v227_v56, %v9881_v22  ;;  %v230_v5 = vsel %vm102_vm1, %v86_v63, 0 }
 0x140   :  { %v9892_v44 = vand.u32 4294901760, %v230_v5 }
 0x141   :  { %15597 = vst [vmem:[#allocation30_spill] sm:$0xff] %v9878_v0  ;;  %v1346_v54 = vpop.f32.mrf.mxu3  ;;  %v607_v0 = vand.u32 4294901760, %v606_v17 }
 0x142   :  { %v804_v27 = vpop.f32.mrf.mxu1  ;;  %v1052_v61 = vpop.f32.mrf.mxu2 }
 0x143   :  { %v805_v43 = vadd.f32 %v804_v27, %v460_v30 }
 0x144   :  { %v467_v50 = vpop.f32.mrf.mxu0 }
 0x145   :  { %v1053_v25 = vadd.f32 %v1052_v61, %v805_v43  ;;  %867 = vmatmul.f32.gmra.mxu1 %v9848_v40  ;;  %v468_v7 = vadd.f32 %v9630_v36, %v467_v50  ;;  %v601_v61 = vand.u32 4294901760, %v600_v59  ;;  %v87_v50 = vld [vmem:[%s15231_s0 + $0x158] sm:$0xff] }
 0x146   :  { %1447 = vmatmul.f32.gmra.mxu3 %v591_v8 }
 0x147   :  { %594 = vmatmul.f32.gmra.mxu0 %v593_v62  ;;  %v9888_v58 = vadd.f32 %v1346_v54, %v1053_v25  ;;  %1136 = vmatmul.f32.gmra.mxu2 %v590_v4  ;;  %v614_v4 = vsub.f32 %v230_v5, %v9892_v44  ;;  %v608_v62 = vsub.f32 %v606_v17, %v607_v0  ;;  %v233_v54 = vsel %vm102_vm1, %v87_v50, 0 }
 0x149   :  { %15598 = vst [vmem:[#allocation31_spill] sm:$0xff] %v9888_v58  ;;  %v1352_v43 = vpop.f32.mrf.mxu3  ;;  %v615_v59 = vand.u32 4294901760, %v614_v4 }
 0x14a   :  { %v808_v15 = vpop.f32.mrf.mxu1  ;;  %v1057_v30 = vpop.f32.mrf.mxu2 }
 0x14b   :  { %v809_v27 = vadd.f32 %v808_v15, %v468_v7  ;;  %v609_v15 = vand.u32 4294901760, %v608_v62 }
 0x14c   :  { %v475_v40 = vpop.f32.mrf.mxu0 }
 0x14d   :  { %v1058_v12 = vadd.f32 %v1057_v30, %v809_v27  ;;  %871 = vmatmul.f32.gmra.mxu1 %v9859_v29  ;;  %v476_v8 = vadd.f32 %v9630_v36, %v475_v40  ;;  %v9903_v27 = vand.u32 4294901760, %v233_v54  ;;  %v616_v40 = vsub.f32 %v614_v4, %v615_v59 }
 0x14e   :  { %1453 = vmatmul.f32.gmra.mxu3 %v599_v32 }
 0x14f   :  { %602 = vmatmul.f32.gmra.mxu0 %v601_v61  ;;  %v9900_v56 = vadd.f32 %v1352_v43, %v1058_v12  ;;  %1141 = vmatmul.f32.gmra.mxu2 %v598_v45  ;;  %v88_v12 = vld [vmem:[%s15231_s0 + $0x160] sm:$0xff]  ;;  %v622_v61 = vsub.f32 %v233_v54, %v9903_v27 }
 0x150   :  { %v236_v43 = vsel %vm102_vm1, %v88_v12, 0 }
 0x151   :  { %15599 = vst [vmem:[#allocation32_spill] sm:$0xff] %v9900_v56  ;;  %v1358_v30 = vpop.f32.mrf.mxu3 }
 0x152   :  { %v812_v63 = vpop.f32.mrf.mxu1  ;;  %v1062_v25 = vpop.f32.mrf.mxu2 }
 0x153   :  { %v813_v7 = vadd.f32 %v812_v63, %v476_v8  ;;  %v617_v63 = vand.u32 4294901760, %v616_v40 }
 0x154   :  { %v483_v58 = vpop.f32.mrf.mxu0 }
 0x155   :  { %v1063_v5 = vadd.f32 %v1062_v25, %v813_v7  ;;  %875 = vmatmul.f32.gmra.mxu1 %v9870_v23  ;;  %v484_v45 = vadd.f32 %v9630_v36, %v483_v58  ;;  %v623_v25 = vand.u32 4294901760, %v622_v61  ;;  %v9914_v7 = vand.u32 4294901760, %v236_v43  ;;  %v89_v58 = vld [vmem:[%s15231_s0 + $0x168] sm:$0xff] }
 0x156   :  { %1459 = vmatmul.f32.gmra.mxu3 %v607_v0 }
 0x157   :  { %610 = vmatmul.f32.gmra.mxu0 %v609_v15  ;;  %v9910_v32 = vadd.f32 %v1358_v30, %v1063_v5  ;;  %1146 = vmatmul.f32.gmra.mxu2 %v606_v17  ;;  %v624_v17 = vsub.f32 %v622_v61, %v623_v25  ;;  %v630_v54 = vsub.f32 %v236_v43, %v9914_v7  ;;  %v239_v15 = vsel %vm102_vm1, %v89_v58, 0 }
 0x158   :  { %v9928_v40 = vand.u32 4294901760, %v239_v15 }
 0x159   :  { %15600 = vst [vmem:[#allocation33_spill] sm:$0xff] %v9910_v32  ;;  %v1364_v23 = vpop.f32.mrf.mxu3  ;;  %v625_v5 = vand.u32 4294901760, %v624_v17  ;;  %v631_v12 = vand.u32 4294901760, %v630_v54 }
 0x15a   :  { %v816_v50 = vpop.f32.mrf.mxu1  ;;  %v1067_v8 = vpop.f32.mrf.mxu2 }
 0x15b   :  { %v817_v62 = vadd.f32 %v816_v50, %v484_v45 }
 0x15c   :  { %v9916_v56 = vpop.f32.mrf.mxu0 }
 0x15d   :  { %v1068_v36 = vadd.f32 %v1067_v8, %v817_v62  ;;  %879 = vmatmul.f32.gmra.mxu1 %v9881_v22 }
 0x15e   :  { %1465 = vmatmul.f32.gmra.mxu3 %v615_v59  ;;  %v638_v59 = vsub.f32 %v239_v15, %v9928_v40 }
 0x15f   :  { %618 = vmatmul.f32.gmra.mxu0 %v617_v63  ;;  %v9922_v0 = vadd.f32 %v1364_v23, %v1068_v36  ;;  %1151 = vmatmul.f32.gmra.mxu2 %v614_v4  ;;  %v90_v23 = vld [vmem:[%s15231_s0 + $0x170] sm:$0xff]  ;;  %v632_v4 = vsub.f32 %v630_v54, %v631_v12 }
 0x160   :  { %v242_v43 = vsel %vm102_vm1, %v90_v23, 0  ;;  %v639_v62 = vand.u32 4294901760, %v638_v59 }
 0x161   :  { %v633_v8 = vand.u32 4294901760, %v632_v4  ;;  %v9940_v63 = vand.u32 4294901760, %v242_v43 }
 0x162   :  { %v9926_v30 = vpop.f32.mrf.mxu1  ;;  %v640_v58 = vsub.f32 %v638_v59, %v639_v62 }
 0x164   :  { %v9930_v45 = vpop.f32.mrf.mxu0 }
 0x165   :  { %15601 = vst [vmem:[#allocation34_spill] sm:$0xff] %v9930_v45  ;;  %883 = vmatmul.f32.gmra.mxu1 %v9892_v44 }
 0x166   :  { %1471 = vmatmul.f32.gmra.mxu3 %v623_v25  ;;  %v646_v25 = vsub.f32 %v242_v43, %v9940_v63 }
 0x167   :  { %626 = vmatmul.f32.gmra.mxu0 %v625_v5  ;;  %1156 = vmatmul.f32.gmra.mxu2 %v622_v61  ;;  %v91_v61 = vld [vmem:[%s15231_s0 + $0x178] sm:$0xff]  ;;  %v641_v5 = vand.u32 4294901760, %v640_v58 }
 0x168   :  { %v245_v17 = vsel %vm102_vm1, %v91_v61, 0  ;;  %v647_v23 = vand.u32 4294901760, %v646_v25 }
 0x169   :  { %v9952_v4 = vand.u32 4294901760, %v245_v17 }
 0x16a   :  { %v9938_v50 = vpop.f32.mrf.mxu1  ;;  %v648_v43 = vsub.f32 %v646_v25, %v647_v23 }
 0x16b   :  { %15602 = vst [vmem:[#allocation35_spill] sm:$0xff] %v9938_v50 }
 0x16c   :  { %v9942_v36 = vpop.f32.mrf.mxu0  ;;  %v649_v58 = vand.u32 4294901760, %v648_v43 }
 0x16d   :  { %15603 = vst [vmem:[#allocation36_spill] sm:$0xff] %v9942_v36  ;;  %887 = vmatmul.f32.gmra.mxu1 %v9903_v27 }
 0x16e   :  { %1477 = vmatmul.f32.gmra.mxu3 %v631_v12  ;;  %v654_v12 = vsub.f32 %v245_v17, %v9952_v4 }
 0x16f   :  { %634 = vmatmul.f32.gmra.mxu0 %v633_v8  ;;  %1161 = vmatmul.f32.gmra.mxu2 %v630_v54  ;;  %v92_v54 = vld [vmem:[%s15231_s0 + $0x180] sm:$0xff] }
 0x170   :  { %v248_v8 = vsel %vm102_vm1, %v92_v54, 0 }
 0x171   :  { %v9964_v36 = vand.u32 4294901760, %v248_v8 }
 0x172   :  { %v9950_v15 = vpop.f32.mrf.mxu1 }
 0x173   :  { %15604 = vst [vmem:[#allocation37_spill] sm:$0xff] %v9950_v15  ;;  %v655_v15 = vand.u32 4294901760, %v654_v12 }
 0x174   :  { %v9954_v32 = vpop.f32.mrf.mxu0 }
 0x175   :  { %15605 = vst [vmem:[#allocation38_spill] sm:$0xff] %v9954_v32  ;;  %891 = vmatmul.f32.gmra.mxu1 %v9914_v7  ;;  %v656_v17 = vsub.f32 %v654_v12, %v655_v15 }
 0x176   :  { %1483 = vmatmul.f32.gmra.mxu3 %v639_v62  ;;  %v662_v62 = vsub.f32 %v248_v8, %v9964_v36 }
 0x177   :  { %642 = vmatmul.f32.gmra.mxu0 %v641_v5  ;;  %1166 = vmatmul.f32.gmra.mxu2 %v638_v59  ;;  %v93_v59 = vld [vmem:[%s15231_s0 + $0x188] sm:$0xff]  ;;  %v657_v43 = vand.u32 4294901760, %v656_v17 }
 0x178   :  { %v251_v5 = vsel %vm102_vm1, %v93_v59, 0 }
 0x179   :  { %v9976_v50 = vand.u32 4294901760, %v251_v5 }
 0x17a   :  { %v9962_v61 = vpop.f32.mrf.mxu1 }
 0x17b   :  { %15606 = vst [vmem:[#allocation39_spill] sm:$0xff] %v9962_v61  ;;  %v663_v61 = vand.u32 4294901760, %v662_v62 }
 0x17c   :  { %v9966_v32 = vpop.f32.mrf.mxu0 }
 0x17d   :  { %15607 = vst [vmem:[#allocation40_spill] sm:$0xff] %v9966_v32  ;;  %895 = vmatmul.f32.gmra.mxu1 %v9928_v40 }
 0x17e   :  { %1489 = vmatmul.f32.gmra.mxu3 %v647_v23 }
 0x17f   :  { %650 = vmatmul.f32.gmra.mxu0 %v649_v58  ;;  %1171 = vmatmul.f32.gmra.mxu2 %v646_v25  ;;  %v664_v58 = vsub.f32 %v662_v62, %v663_v61  ;;  %v670_v25 = vsub.f32 %v251_v5, %v9976_v50 }
 0x181   :  { %v665_v23 = vand.u32 4294901760, %v664_v58  ;;  %v671_v59 = vand.u32 4294901760, %v670_v25 }
 0x182   :  { %v9974_v54 = vpop.f32.mrf.mxu1 }
 0x183   :  { %15608 = vst [vmem:[#allocation41_spill] sm:$0xff] %v9974_v54  ;;  %v672_v17 = vsub.f32 %v670_v25, %v671_v59 }
 0x184   :  { %v9978_v32 = vpop.f32.mrf.mxu0 }
 0x185   :  { %899 = vmatmul.f32.gmra.mxu1 %v9940_v63 }
 0x186   :  { %1495 = vmatmul.f32.gmra.mxu3 %v655_v15 }
 0x187   :  { %658 = vmatmul.f32.gmra.mxu0 %v657_v43  ;;  %1176 = vmatmul.f32.gmra.mxu2 %v654_v12  ;;  %v673_v43 = vand.u32 4294901760, %v672_v17 }
 0x18a   :  { %v9982_v8 = vpop.f32.mrf.mxu1 }
 0x18c   :  { %v9984_v45 = vpop.f32.mrf.mxu0 }
 0x18d   :  { %15609 = vst [vmem:[#allocation42_spill] sm:$0xff] %v9984_v45  ;;  %903 = vmatmul.f32.gmra.mxu1 %v9952_v4 }
 0x18e   :  { %1501 = vmatmul.f32.gmra.mxu3 %v663_v61 }
 0x18f   :  { %666 = vmatmul.f32.gmra.mxu0 %v665_v23  ;;  %1181 = vmatmul.f32.gmra.mxu2 %v662_v62 }
 0x192   :  { %v9987_v54 = vpop.f32.mrf.mxu1 }
 0x193   :  { %15610 = vst [vmem:[#allocation43_spill] sm:$0xff] %v9987_v54 }
 0x194   :  { %v9989_v12 = vpop.f32.mrf.mxu0 }
 0x195   :  { %15611 = vst [vmem:[#allocation44_spill] sm:$0xff] %v9989_v12  ;;  %907 = vmatmul.f32.gmra.mxu1 %v9964_v36 }
 0x196   :  { %1507 = vmatmul.f32.gmra.mxu3 %v671_v59 }
 0x197   :  { %674 = vmatmul.f32.gmra.mxu0 %v673_v43  ;;  %1186 = vmatmul.f32.gmra.mxu2 %v670_v25 }
 0x19a   :  { %v9992_v15 = vpop.f32.mrf.mxu1 }
 0x19b   :  { %15612 = vst [vmem:[#allocation45_spill] sm:$0xff] %v9992_v15 }
 0x19c   :  { %v9994_v5 = vpop.f32.mrf.mxu0 }
 0x19d   :  { %15613 = vst [vmem:[#allocation46_spill] sm:$0xff] %v9994_v5  ;;  %911 = vmatmul.f32.gmra.mxu1 %v9976_v50 }
 0x19f   :  { %1540 = vmatmul.f32.vlgmr.msrb.gmra.mxu0 %v9473_v14 }
 0x1a2   :  { %v9998_v62 = vpop.f32.mrf.mxu1 }
 0x1a3   :  { %15614 = vst [vmem:[#allocation47_spill] sm:$0xff] %v9998_v62 }
 0x1a4   :  { %v10000_v61 = vpop.f32.mrf.mxu0 }
 0x1a5   :  { %15615 = vst [vmem:[#allocation48_spill] sm:$0xff] %v10000_v61  ;;  %1761 = vmatmul.f32.vlgmr.msrb.gmra.mxu1 %v9473_v14 }
 0x1a7   :  { %1544 = vmatmul.f32.gmra.mxu0 %v9476_v16 }
 0x1aa   :  { %v10004_v58 = vpop.f32.mrf.mxu1 }
 0x1ab   :  { %15616 = vst [vmem:[#allocation49_spill] sm:$0xff] %v10004_v58 }
 0x1ac   :  { %v10006_v25 = vpop.f32.mrf.mxu0 }
 0x1ad   :  { %15617 = vst [vmem:[#allocation50_spill] sm:$0xff] %v10006_v25  ;;  %1765 = vmatmul.f32.gmra.mxu1 %v9476_v16 }
 0x1af   :  { %1548 = vmatmul.f32.gmra.mxu0 %v9492_v33 }
 0x1b2   :  { %v10010_v23 = vpop.f32.mrf.mxu1 }
 0x1b3   :  { %15618 = vst [vmem:[#allocation51_spill] sm:$0xff] %v10010_v23 }
 0x1b4   :  { %v10012_v59 = vpop.f32.mrf.mxu0 }
 0x1b5   :  { %1769 = vmatmul.f32.gmra.mxu1 %v9492_v33 }
 0x1b7   :  { %1552 = vmatmul.f32.gmra.mxu0 %v9501_v46 }
 0x1ba   :  { %v10016_v17 = vpop.f32.mrf.mxu1 }
 0x1bc   :  { %v10018_v14 = vpop.f32.mrf.mxu0 }
 0x1bd   :  { %1773 = vmatmul.f32.gmra.mxu1 %v9501_v46 }
 0x1bf   :  { %1556 = vmatmul.f32.gmra.mxu0 %v9512_v53 }
 0x1c2   :  { %v10022_v43 = vpop.f32.mrf.mxu1 }
 0x1c4   :  { %v10024_v16 = vpop.f32.mrf.mxu0 }
 0x1c5   :  { %1777 = vmatmul.f32.gmra.mxu1 %v9512_v53 }
 0x1c7   :  { %1560 = vmatmul.f32.gmra.mxu0 %v9521_v60 }
 0x1ca   :  { %v10028_v23 = vpop.f32.mrf.mxu1 }
 0x1cc   :  { %v10030_v33 = vpop.f32.mrf.mxu0 }
 0x1cd   :  { %1781 = vmatmul.f32.gmra.mxu1 %v9521_v60 }
 0x1cf   :  { %1564 = vmatmul.f32.gmra.mxu0 %v9529_v3 }
 0x1d2   :  { %v10034_v25 = vpop.f32.mrf.mxu1 }
 0x1d4   :  { %v10036_v46 = vpop.f32.mrf.mxu0 }
 0x1d5   :  { %1785 = vmatmul.f32.gmra.mxu1 %v9529_v3 }
 0x1d7   :  { %1568 = vmatmul.f32.gmra.mxu0 %v9537_v10 }
 0x1da   :  { %v10040_v58 = vpop.f32.mrf.mxu1 }
 0x1dc   :  { %v10042_v53 = vpop.f32.mrf.mxu0 }
 0x1dd   :  { %1789 = vmatmul.f32.gmra.mxu1 %v9537_v10 }
 0x1df   :  { %1572 = vmatmul.f32.gmra.mxu0 %v9545_v19 }
 0x1e2   :  { %v10046_v61 = vpop.f32.mrf.mxu1 }
 0x1e3   :  { %15619 = vst [vmem:[#allocation52_spill] sm:$0xff] %v10046_v61 }
 0x1e4   :  { %v10048_v60 = vpop.f32.mrf.mxu0 }
 0x1e5   :  { %15620 = vst [vmem:[#allocation53_spill] sm:$0xff] %v10048_v60  ;;  %1793 = vmatmul.f32.gmra.mxu1 %v9545_v19 }
 0x1e7   :  { %1576 = vmatmul.f32.gmra.mxu0 %v9553_v26 }
 0x1ea   :  { %v10052_v62 = vpop.f32.mrf.mxu1 }
 0x1eb   :  { %15621 = vst [vmem:[#allocation54_spill] sm:$0xff] %v10052_v62 }
 0x1ec   :  { %v10054_v3 = vpop.f32.mrf.mxu0 }
 0x1ed   :  { %15622 = vst [vmem:[#allocation55_spill] sm:$0xff] %v10054_v3  ;;  %1797 = vmatmul.f32.gmra.mxu1 %v9553_v26 }
 0x1ef   :  { %1580 = vmatmul.f32.gmra.mxu0 %v9561_v34 }
 0x1f2   :  { %v10058_v5 = vpop.f32.mrf.mxu1 }
 0x1f3   :  { %15623 = vst [vmem:[#allocation56_spill] sm:$0xff] %v10058_v5 }
 0x1f4   :  { %v10060_v10 = vpop.f32.mrf.mxu0 }
 0x1f5   :  { %15624 = vst [vmem:[#allocation57_spill] sm:$0xff] %v10060_v10  ;;  %1801 = vmatmul.f32.gmra.mxu1 %v9561_v34 }
 0x1f7   :  { %1584 = vmatmul.f32.gmra.mxu0 %v9569_v41 }
 0x1fa   :  { %v10064_v15 = vpop.f32.mrf.mxu1 }
 0x1fb   :  { %15625 = vst [vmem:[#allocation58_spill] sm:$0xff] %v10064_v15 }
 0x1fc   :  { %v10066_v19 = vpop.f32.mrf.mxu0 }
 0x1fd   :  { %15626 = vst [vmem:[#allocation59_spill] sm:$0xff] %v10066_v19  ;;  %1805 = vmatmul.f32.gmra.mxu1 %v9569_v41 }
 0x1ff   :  { %1588 = vmatmul.f32.gmra.mxu0 %v9577_v49 }
 0x202   :  { %v10070_v3 = vpop.f32.mrf.mxu1 }
 0x203   :  { %15627 = vst [vmem:[#allocation60_spill] sm:$0xff] %v10070_v3 }
 0x204   :  { %v10072_v26 = vpop.f32.mrf.mxu0 }
 0x205   :  { %15628 = vst [vmem:[#allocation61_spill] sm:$0xff] %v10072_v26  ;;  %1809 = vmatmul.f32.gmra.mxu1 %v9577_v49 }
 0x207   :  { %1592 = vmatmul.f32.gmra.mxu0 %v9585_v57 }
 0x20a   :  { %v10076_v10 = vpop.f32.mrf.mxu1 }
 0x20b   :  { %15629 = vst [vmem:[#allocation62_spill] sm:$0xff] %v10076_v10 }
 0x20c   :  { %v10078_v34 = vpop.f32.mrf.mxu0 }
 0x20d   :  { %15630 = vst [vmem:[#allocation63_spill] sm:$0xff] %v10078_v34  ;;  %1813 = vmatmul.f32.gmra.mxu1 %v9585_v57 }
 0x20f   :  { %1596 = vmatmul.f32.gmra.mxu0 %v9593_v1 }
 0x212   :  { %v10082_v19 = vpop.f32.mrf.mxu1 }
 0x213   :  { %15631 = vst [vmem:[#allocation64_spill] sm:$0xff] %v10082_v19 }
 0x214   :  { %v10084_v41 = vpop.f32.mrf.mxu0 }
 0x215   :  { %15632 = vst [vmem:[#allocation65_spill] sm:$0xff] %v10084_v41  ;;  %1817 = vmatmul.f32.gmra.mxu1 %v9593_v1 }
 0x217   :  { %1600 = vmatmul.f32.gmra.mxu0 %v9601_v9 }
 0x21a   :  { %v10088_v26 = vpop.f32.mrf.mxu1 }
 0x21b   :  { %15633 = vst [vmem:[#allocation66_spill] sm:$0xff] %v10088_v26 }
 0x21c   :  { %v10090_v49 = vpop.f32.mrf.mxu0 }
 0x21d   :  { %1821 = vmatmul.f32.gmra.mxu1 %v9601_v9 }
 0x21f   :  { %1604 = vmatmul.f32.gmra.mxu0 %v9609_v20 }
 0x222   :  { %v10094_v34 = vpop.f32.mrf.mxu1 }
 0x224   :  { %v10096_v57 = vpop.f32.mrf.mxu0 }
 0x225   :  { %1825 = vmatmul.f32.gmra.mxu1 %v9609_v20 }
 0x227   :  { %1608 = vmatmul.f32.gmra.mxu0 %v9617_v28 }
 0x22a   :  { %v10100_v41 = vpop.f32.mrf.mxu1 }
 0x22c   :  { %v10102_v1 = vpop.f32.mrf.mxu0 }
 0x22d   :  { %15634 = vst [vmem:[#allocation67_spill] sm:$0xff] %v10102_v1  ;;  %1829 = vmatmul.f32.gmra.mxu1 %v9617_v28  ;;  %v2074_v28 = vld [vmem:[%s15234_s3 + $0x28] sm:$0xff] }
 0x22e   :  { %v10120_v10 = vand.u32 4294901760, %v2074_v28 }
 0x22f   :  { %1612 = vmatmul.f32.gmra.mxu0 %v9625_v35 }
 0x230   :  { %2108 = vmatpush.msrb.mxu2 %v10120_v10 }
 0x232   :  { %v10106_v26 = vpop.f32.mrf.mxu1 }
 0x233   :  { %15635 = vst [vmem:[#allocation68_spill] sm:$0xff] %v10106_v26 }
 0x234   :  { %v10108_v9 = vpop.f32.mrf.mxu0 }
 0x235   :  { %15636 = vst [vmem:[#allocation69_spill] sm:$0xff] %v10108_v9  ;;  %1833 = vmatmul.f32.gmra.mxu1 %v9625_v35  ;;  %v10125_v35 = vsub.f32 %v2074_v28, %v10120_v10 }
 0x237   :  { %1616 = vmatmul.f32.gmra.mxu0 %v9639_v55  ;;  %15639 = vst [vmem:[#allocation72_spill] sm:$0xff] %v10125_v35  ;;  %v15253_v15 = vand.u32 4294901760, %v10125_v35 }
 0x23a   :  { %v10112_v19 = vpop.f32.mrf.mxu1 }
 0x23b   :  { %15637 = vst [vmem:[#allocation70_spill] sm:$0xff] %v10112_v19 }
 0x23c   :  { %v10114_v20 = vpop.f32.mrf.mxu0 }
 0x23d   :  { %15638 = vst [vmem:[#allocation71_spill] sm:$0xff] %v10114_v20  ;;  %1837 = vmatmul.f32.gmra.mxu1 %v9639_v55  ;;  %v2188_v55 = vsub.f32 %v10125_v35, %v15253_v15 }
 0x23f   :  { %1620 = vmatmul.f32.gmra.mxu0 %v9650_v6  ;;  %v2189_v5 = vand.u32 4294901760, %v2188_v55 }
 0x241   :  { %2190 = vmatpush.msrb.mxu3 %v2189_v5 }
 0x242   :  { %v10127_v3 = vpop.f32.mrf.mxu1 }
 0x243   :  { %15640 = vst [vmem:[#allocation73_spill] sm:$0xff] %v10127_v3 }
 0x244   :  { %v10130_v20 = vpop.f32.mrf.mxu0 }
 0x245   :  { %15641 = vst [vmem:[#allocation74_spill] sm:$0xff] %v10130_v20  ;;  %1841 = vmatmul.f32.gmra.mxu1 %v9650_v6 }
 0x247   :  { %1624 = vmatmul.f32.gmra.mxu0 %v9661_v37 }
 0x24a   :  { %v10137_v19 = vpop.f32.mrf.mxu1 }
 0x24b   :  { %15642 = vst [vmem:[#allocation75_spill] sm:$0xff] %v10137_v19 }
 0x24c   :  { %v10139_v28 = vpop.f32.mrf.mxu0 }
 0x24d   :  { %15643 = vst [vmem:[#allocation76_spill] sm:$0xff] %v10139_v28  ;;  %1845 = vmatmul.f32.gmra.mxu1 %v9661_v37  ;;  %v10234_v28 = vpop.f32.mrf.mxu2 }
 0x24f   :  { %1628 = vmatmul.f32.gmra.mxu0 %v9672_v51 }
 0x252   :  { %v10143_v3 = vpop.f32.mrf.mxu1 }
 0x253   :  { %15644 = vst [vmem:[#allocation77_spill] sm:$0xff] %v10143_v3 }
 0x254   :  { %v10145_v20 = vpop.f32.mrf.mxu0 }
 0x255   :  { %15645 = vst [vmem:[#allocation78_spill] sm:$0xff] %v10145_v20  ;;  %1849 = vmatmul.f32.gmra.mxu1 %v9672_v51 }
 0x257   :  { %1632 = vmatmul.f32.gmra.mxu0 %v9683_v21 }
 0x25a   :  { %v10149_v6 = vpop.f32.mrf.mxu1 }
 0x25b   :  { %15646 = vst [vmem:[#allocation79_spill] sm:$0xff] %v10149_v6 }
 0x25c   :  { %v10151_v55 = vpop.f32.mrf.mxu0 }
 0x25d   :  { %15647 = vst [vmem:[#allocation80_spill] sm:$0xff] %v10151_v55  ;;  %1853 = vmatmul.f32.gmra.mxu1 %v9683_v21 }
 0x25f   :  { %1636 = vmatmul.f32.gmra.mxu0 %v9694_v39 }
 0x262   :  { %v10155_v5 = vpop.f32.mrf.mxu1 }
 0x263   :  { %15648 = vst [vmem:[#allocation81_spill] sm:$0xff] %v10155_v5 }
 0x264   :  { %v10157_v37 = vpop.f32.mrf.mxu0 }
 0x265   :  { %15649 = vst [vmem:[#allocation82_spill] sm:$0xff] %v10157_v37  ;;  %1857 = vmatmul.f32.gmra.mxu1 %v9694_v39 }
 0x267   :  { %1640 = vmatmul.f32.gmra.mxu0 %v9705_v11 }
 0x26a   :  { %v10161_v15 = vpop.f32.mrf.mxu1 }
 0x26b   :  { %15650 = vst [vmem:[#allocation83_spill] sm:$0xff] %v10161_v15 }
 0x26c   :  { %v10163_v51 = vpop.f32.mrf.mxu0 }
 0x26d   :  { %15651 = vst [vmem:[#allocation84_spill] sm:$0xff] %v10163_v51  ;;  %1861 = vmatmul.f32.gmra.mxu1 %v9705_v11  ;;  %v2073_v11 = vld [vmem:[%s15234_s3 + $0x20] sm:$0xff] }
 0x26e   :  { %v10182_v51 = vand.u32 4294901760, %v2073_v11 }
 0x26f   :  { %1644 = vmatmul.f32.gmra.mxu0 %v9716_v31 }
 0x270   :  { %2110 = vmatpush.msrb.mxu2 %v10182_v51 }
 0x272   :  { %v10167_v55 = vpop.f32.mrf.mxu1 }
 0x273   :  { %15652 = vst [vmem:[#allocation85_spill] sm:$0xff] %v10167_v55 }
 0x274   :  { %v10169_v21 = vpop.f32.mrf.mxu0 }
 0x275   :  { %15653 = vst [vmem:[#allocation86_spill] sm:$0xff] %v10169_v21  ;;  %1865 = vmatmul.f32.gmra.mxu1 %v9716_v31  ;;  %v10188_v31 = vsub.f32 %v2073_v11, %v10182_v51 }
 0x277   :  { %1648 = vmatmul.f32.gmra.mxu0 %v9727_v13  ;;  %15655 = vst [vmem:[#allocation88_spill] sm:$0xff] %v10188_v31  ;;  %v15254_v21 = vand.u32 4294901760, %v10188_v31 }
 0x27a   :  { %v10173_v37 = vpop.f32.mrf.mxu1 }
 0x27b   :  { %15654 = vst [vmem:[#allocation87_spill] sm:$0xff] %v10173_v37 }
 0x27c   :  { %v10175_v39 = vpop.f32.mrf.mxu0 }
 0x27d   :  { %1869 = vmatmul.f32.gmra.mxu1 %v9727_v13  ;;  %v2194_v13 = vsub.f32 %v10188_v31, %v15254_v21 }
 0x27f   :  { %1652 = vmatmul.f32.gmra.mxu0 %v9738_v38  ;;  %v2195_v15 = vand.u32 4294901760, %v2194_v13 }
 0x281   :  { %2196 = vmatpush.msrb.mxu3 %v2195_v15 }
 0x282   :  { %v10184_v55 = vpop.f32.mrf.mxu1 }
 0x284   :  { %v10190_v37 = vpop.f32.mrf.mxu0 }
 0x285   :  { %1873 = vmatmul.f32.gmra.mxu1 %v9738_v38 }
 0x287   :  { %1656 = vmatmul.f32.gmra.mxu0 %v9749_v2 }
 0x28a   :  { %v10198_v5 = vpop.f32.mrf.mxu1 }
 0x28c   :  { %v10200_v6 = vpop.f32.mrf.mxu0 }
 0x28d   :  { %1877 = vmatmul.f32.gmra.mxu1 %v9749_v2 }
 0x28f   :  { %1660 = vmatmul.f32.gmra.mxu0 %v9760_v24 }
 0x292   :  { %v10204_v11 = vpop.f32.mrf.mxu1 }
 0x294   :  { %v10206_v20 = vpop.f32.mrf.mxu0 }
 0x295   :  { %15656 = vst [vmem:[#allocation89_spill] sm:$0xff] %v10206_v20  ;;  %1881 = vmatmul.f32.gmra.mxu1 %v9760_v24 }
 0x297   :  { %1664 = vmatmul.f32.gmra.mxu0 %v9771_v42 }
 0x29a   :  { %v10210_v38 = vpop.f32.mrf.mxu1 }
 0x29b   :  { %15657 = vst [vmem:[#allocation90_spill] sm:$0xff] %v10210_v38 }
 0x29c   :  { %v10212_v13 = vpop.f32.mrf.mxu0 }
 0x29d   :  { %15658 = vst [vmem:[#allocation91_spill] sm:$0xff] %v10212_v13  ;;  %1885 = vmatmul.f32.gmra.mxu1 %v9771_v42 }
 0x29f   :  { %1668 = vmatmul.f32.gmra.mxu0 %v9782_v52 }
 0x2a2   :  { %v10216_v15 = vpop.f32.mrf.mxu1 }
 0x2a3   :  { %15659 = vst [vmem:[#allocation92_spill] sm:$0xff] %v10216_v15 }
 0x2a4   :  { %v10218_v2 = vpop.f32.mrf.mxu0 }
 0x2a5   :  { %15660 = vst [vmem:[#allocation93_spill] sm:$0xff] %v10218_v2  ;;  %1889 = vmatmul.f32.gmra.mxu1 %v9782_v52 }
 0x2a7   :  { %1672 = vmatmul.f32.gmra.mxu0 %v9793_v18 }
 0x2aa   :  { %v10222_v21 = vpop.f32.mrf.mxu1 }
 0x2ab   :  { %15661 = vst [vmem:[#allocation94_spill] sm:$0xff] %v10222_v21  ;;  %v10252_v21 = vpop.f32.mrf.mxu2 }
 0x2ac   :  { %v10224_v24 = vpop.f32.mrf.mxu0 }
 0x2ad   :  { %15662 = vst [vmem:[#allocation95_spill] sm:$0xff] %v10224_v24  ;;  %1893 = vmatmul.f32.gmra.mxu1 %v9793_v18  ;;  %v10241_v24 = vpop.f32.mrf.mxu3  ;;  %v15667_v18 = vld [vmem:[#allocation22_spill] sm:$0xff] }
 0x2af   :  { %1676 = vmatmul.f32.gmra.mxu0 %v9804_v47 }
 0x2b2   :  { %v10228_v3 = vpop.f32.mrf.mxu1 }
 0x2b3   :  { %15663 = vst [vmem:[#allocation96_spill] sm:$0xff] %v10228_v3 }
 0x2b4   :  { %v10230_v42 = vpop.f32.mrf.mxu0 }
 0x2b5   :  { %15664 = vst [vmem:[#allocation97_spill] sm:$0xff] %v10230_v42  ;;  %1897 = vmatmul.f32.gmra.mxu1 %v9804_v47  ;;  %v2072_v42 = vld [vmem:[%s15234_s3 + $0x18] sm:$0xff]  ;;  %v10262_v15 = vpop.f32.mrf.mxu3 }
 0x2b6   :  { %v10247_v3 = vand.u32 4294901760, %v2072_v42 }
 0x2b7   :  { %1680 = vmatmul.f32.gmra.mxu0 %v9815_v48 }
 0x2b8   :  { %2112 = vmatpush.msrb.mxu2 %v10247_v3 }
 0x2ba   :  { %v10236_v52 = vpop.f32.mrf.mxu1 }
 0x2bb   :  { %15665 = vst [vmem:[#allocation98_spill] sm:$0xff] %v10236_v52 }
 0x2bc   :  { %v10238_v19 = vpop.f32.mrf.mxu0 }
 0x2bd   :  { %15666 = vst [vmem:[#allocation99_spill] sm:$0xff] %v10238_v19  ;;  %1901 = vmatmul.f32.gmra.mxu1 %v9815_v48  ;;  %v10258_v48 = vsub.f32 %v2072_v42, %v10247_v3  ;;  %v15670_v19 = vld [vmem:[#allocation24_spill] sm:$0xff]  ;;  %v15673_v42 = vld [vmem:[#allocation26_spill] sm:$0xff] }
 0x2bf   :  { %1684 = vmatmul.f32.gmra.mxu0 %v15667_v18  ;;  %v15255_v2 = vand.u32 4294901760, %v10258_v48 }
 0x2c2   :  { %v10249_v47 = vpop.f32.mrf.mxu1 }
 0x2c3   :  { %15668 = vst [vmem:[#allocation22_spill] sm:$0xff] %v10249_v47  ;;  %v2200_v47 = vsub.f32 %v10258_v48, %v15255_v2 }
 0x2c4   :  { %v10254_v52 = vpop.f32.mrf.mxu0 }
 0x2c5   :  { %15669 = vst [vmem:[#allocation100_spill] sm:$0xff] %v10254_v52  ;;  %1905 = vmatmul.f32.gmra.mxu1 %v15667_v18  ;;  %v2201_v13 = vand.u32 4294901760, %v2200_v47  ;;  %v10271_v52 = vpop.f32.mrf.mxu2  ;;  %v10275_v18 = vpop.f32.mrf.mxu3 }
 0x2c6   :  { %15674 = vst [vmem:[#allocation26_spill] sm:$0xff] %v10275_v18 }
 0x2c7   :  { %1688 = vmatmul.f32.gmra.mxu0 %v15670_v19  ;;  %2202 = vmatpush.msrb.mxu3 %v2201_v13  ;;  %v15680_v13 = vld [vmem:[#allocation29_spill] sm:$0xff] }
 0x2ca   :  { %v10267_v9 = vpop.f32.mrf.mxu1 }
 0x2cb   :  { %15671 = vst [vmem:[#allocation24_spill] sm:$0xff] %v10267_v9 }
 0x2cc   :  { %v10269_v62 = vpop.f32.mrf.mxu0 }
 0x2cd   :  { %15672 = vst [vmem:[#allocation101_spill] sm:$0xff] %v10269_v62  ;;  %1909 = vmatmul.f32.gmra.mxu1 %v15670_v19  ;;  %v10282_v2 = vpop.f32.mrf.mxu2  ;;  %v10287_v62 = vpop.f32.mrf.mxu3 }
 0x2ce   :  { %15678 = vst [vmem:[#allocation105_spill] sm:$0xff] %v10287_v62 }
 0x2cf   :  { %1692 = vmatmul.f32.gmra.mxu0 %v15673_v42 }
 0x2d2   :  { %v10277_v12 = vpop.f32.mrf.mxu1 }
 0x2d3   :  { %15675 = vst [vmem:[#allocation102_spill] sm:$0xff] %v10277_v12 }
 0x2d4   :  { %v10279_v26 = vpop.f32.mrf.mxu0 }
 0x2d5   :  { %15676 = vst [vmem:[#allocation103_spill] sm:$0xff] %v10279_v26  ;;  %1913 = vmatmul.f32.gmra.mxu1 %v15673_v42  ;;  %v10293_v9 = vpop.f32.mrf.mxu2  ;;  %v10298_v42 = vpop.f32.mrf.mxu3 }
 0x2d6   :  { %15681 = vst [vmem:[#allocation29_spill] sm:$0xff] %v10293_v9 }
 0x2d7   :  { %1696 = vmatmul.f32.gmra.mxu0 %v9859_v29  ;;  %15683 = vst [vmem:[#allocation108_spill] sm:$0xff] %v10298_v42 }
 0x2da   :  { %v10285_v47 = vpop.f32.mrf.mxu1 }
 0x2db   :  { %15677 = vst [vmem:[#allocation104_spill] sm:$0xff] %v10285_v47  ;;  %v15684_v47 = vld [vmem:[#allocation5_spill] sm:$0xff] }
 0x2dc   :  { %v10289_v19 = vpop.f32.mrf.mxu0  ;;  %v1542_v54 = vadd.f32 %v10090_v49, %v15684_v47 }
 0x2dd   :  { %15679 = vst [vmem:[#allocation106_spill] sm:$0xff] %v10289_v19  ;;  %1917 = vmatmul.f32.gmra.mxu1 %v9859_v29  ;;  %v10304_v29 = vpop.f32.mrf.mxu2  ;;  %v10317_v49 = vpop.f32.mrf.mxu3 }
 0x2de   :  { %15685 = vst [vmem:[#allocation5_spill] sm:$0xff] %v10304_v29  ;;  %v10307_v18 = vadd.f32 %v10094_v34, %v1542_v54 }
 0x2df   :  { %1700 = vmatmul.f32.gmra.mxu0 %v15680_v13  ;;  %15686 = vst [vmem:[#allocation109_spill] sm:$0xff] %v10317_v49 }
 0x2e2   :  { %v10295_v12 = vpop.f32.mrf.mxu1 }
 0x2e3   :  { %15682 = vst [vmem:[#allocation107_spill] sm:$0xff] %v10295_v12 }
 0x2e4   :  { %v1641_v26 = vpop.f32.mrf.mxu0 }
 0x2e5   :  { %1921 = vmatmul.f32.gmra.mxu1 %v15680_v13  ;;  %v1642_v19 = vadd.f32 %v1641_v26, %v9922_v0  ;;  %v10323_v47 = vpop.f32.mrf.mxu2  ;;  %v10327_v54 = vpop.f32.mrf.mxu3 }
 0x2e6   :  { %15688 = vst [vmem:[#allocation111_spill] sm:$0xff] %v10323_v47 }
 0x2e7   :  { %1704 = vmatmul.f32.gmra.mxu0 %v9881_v22  ;;  %15689 = vst [vmem:[#allocation112_spill] sm:$0xff] %v10327_v54 }
 0x2ea   :  { %v1862_v62 = vpop.f32.mrf.mxu1 }
 0x2eb   :  { %v10309_v9 = vadd.f32 %v1862_v62, %v1642_v19 }
 0x2ec   :  { %v10311_v12 = vpop.f32.mrf.mxu0 }
 0x2ed   :  { %1925 = vmatmul.f32.gmra.mxu1 %v9881_v22  ;;  %v10334_v22 = vpop.f32.mrf.mxu2  ;;  %v10339_v13 = vpop.f32.mrf.mxu3 }
 0x2ee   :  { %15692 = vst [vmem:[#allocation115_spill] sm:$0xff] %v10334_v22 }
 0x2ef   :  { %1708 = vmatmul.f32.gmra.mxu0 %v9892_v44  ;;  %15694 = vst [vmem:[#allocation117_spill] sm:$0xff] %v10339_v13 }
 0x2f2   :  { %v10319_v0 = vpop.f32.mrf.mxu1 }
 0x2f4   :  { %v10321_v26 = vpop.f32.mrf.mxu0 }
 0x2f5   :  { %15687 = vst [vmem:[#allocation110_spill] sm:$0xff] %v10321_v26  ;;  %1929 = vmatmul.f32.gmra.mxu1 %v9892_v44  ;;  %v2071_v44 = vld [vmem:[%s15234_s3 + $0x10] sm:$0xff]  ;;  %v10354_v22 = vpop.f32.mrf.mxu2  ;;  %v10365_v42 = vpop.f32.mrf.mxu3  ;;  %v9163_v26 = vld [vmem:[%s15234_s3 + $0x78] sm:$0xff] }
 0x2f6   :  { %v10347_v54 = vand.u32 4294901760, %v2071_v44  ;;  %15696 = vst [vmem:[#allocation119_spill] sm:$0xff] %v10354_v22 }
 0x2f7   :  { %1712 = vmatmul.f32.gmra.mxu0 %v9903_v27  ;;  %15699 = vst [vmem:[#allocation122_spill] sm:$0xff] %v10365_v42 }
 0x2f8   :  { %2114 = vmatpush.msrb.mxu2 %v10347_v54 }
 0x2fa   :  { %v10329_v62 = vpop.f32.mrf.mxu1 }
 0x2fb   :  { %15690 = vst [vmem:[#allocation113_spill] sm:$0xff] %v10329_v62  ;;  %v9164_v62 = vld [vmem:[%s15234_s3 + $0x80] sm:$0xff] }
 0x2fc   :  { %v10331_v34 = vpop.f32.mrf.mxu0 }
 0x2fd   :  { %15691 = vst [vmem:[#allocation114_spill] sm:$0xff] %v10331_v34  ;;  %1933 = vmatmul.f32.gmra.mxu1 %v9903_v27  ;;  %v10352_v27 = vsub.f32 %v2071_v44, %v10347_v54  ;;  %v10370_v22 = vpop.f32.mrf.mxu2 }
 0x2fe   :  { %15701 = vst [vmem:[#allocation124_spill] sm:$0xff] %v10370_v22 }
 0x2ff   :  { %1716 = vmatmul.f32.gmra.mxu0 %v9914_v7 }
 0x302   :  { %v10337_v19 = vpop.f32.mrf.mxu1 }
 0x303   :  { %15693 = vst [vmem:[#allocation116_spill] sm:$0xff] %v10337_v19 }
 0x304   :  { %v10341_v47 = vpop.f32.mrf.mxu0 }
 0x305   :  { %15695 = vst [vmem:[#allocation118_spill] sm:$0xff] %v10341_v47  ;;  %1937 = vmatmul.f32.gmra.mxu1 %v9914_v7  ;;  %v15256_v47 = vand.u32 4294901760, %v10352_v27 }
 0x307   :  { %1720 = vmatmul.f32.gmra.mxu0 %v9928_v40  ;;  %v2206_v49 = vsub.f32 %v10352_v27, %v15256_v47 }
 0x309   :  { %v2207_v19 = vand.u32 4294901760, %v2206_v49  ;;  %v10382_v49 = vpop.f32.mrf.mxu2 }
 0x30a   :  { %v10356_v13 = vpop.f32.mrf.mxu1  ;;  %15706 = vst [vmem:[#allocation129_spill] sm:$0xff] %v10382_v49 }
 0x30b   :  { %15697 = vst [vmem:[#allocation120_spill] sm:$0xff] %v10356_v13  ;;  %2208 = vmatpush.msrb.mxu3 %v2207_v19 }
 0x30c   :  { %v10359_v7 = vpop.f32.mrf.mxu0 }
 0x30d   :  { %15698 = vst [vmem:[#allocation121_spill] sm:$0xff] %v10359_v7  ;;  %1941 = vmatmul.f32.gmra.mxu1 %v9928_v40  ;;  %v10376_v7 = vpop.f32.mrf.mxu3 }
 0x30e   :  { %15703 = vst [vmem:[#allocation126_spill] sm:$0xff] %v10376_v7 }
 0x30f   :  { %1724 = vmatmul.f32.gmra.mxu0 %v9940_v63 }
 0x312   :  { %v10368_v44 = vpop.f32.mrf.mxu1 }
 0x313   :  { %15700 = vst [vmem:[#allocation123_spill] sm:$0xff] %v10368_v44 }
 0x314   :  { %v10372_v13 = vpop.f32.mrf.mxu0 }
 0x315   :  { %15702 = vst [vmem:[#allocation125_spill] sm:$0xff] %v10372_v13  ;;  %1945 = vmatmul.f32.gmra.mxu1 %v9940_v63  ;;  %v10386_v19 = vpop.f32.mrf.mxu3  ;;  %v1127_v63 = vpop.f32.mrf.mxu2 }
 0x316   :  { %15707 = vst [vmem:[#allocation130_spill] sm:$0xff] %v10386_v19 }
 0x317   :  { %1728 = vmatmul.f32.gmra.mxu0 %v9952_v4 }
 0x31a   :  { %v10378_v47 = vpop.f32.mrf.mxu1 }
 0x31b   :  { %15704 = vst [vmem:[#allocation127_spill] sm:$0xff] %v10378_v47 }
 0x31c   :  { %v10380_v40 = vpop.f32.mrf.mxu0 }
 0x31d   :  { %15705 = vst [vmem:[#allocation128_spill] sm:$0xff] %v10380_v40  ;;  %1949 = vmatmul.f32.gmra.mxu1 %v9952_v4  ;;  %v10396_v40 = vpop.f32.mrf.mxu3  ;;  %v10401_v4 = vpop.f32.mrf.mxu2 }
 0x31f   :  { %1732 = vmatmul.f32.gmra.mxu0 %v9964_v36 }
 0x322   :  { %v10388_v22 = vpop.f32.mrf.mxu1 }
 0x323   :  { %15708 = vst [vmem:[#allocation131_spill] sm:$0xff] %v10388_v22 }
 0x324   :  { %v10390_v42 = vpop.f32.mrf.mxu0 }
 0x325   :  { %15709 = vst [vmem:[#allocation132_spill] sm:$0xff] %v10390_v42  ;;  %1953 = vmatmul.f32.gmra.mxu1 %v9964_v36  ;;  %v10407_v42 = vpop.f32.mrf.mxu3  ;;  %v2070_v36 = vld [vmem:[%s15234_s3 + $0x8] sm:$0xff]  ;;  %v10416_v13 = vpop.f32.mrf.mxu2 }
 0x327   :  { %1736 = vmatmul.f32.gmra.mxu0 %v9976_v50 }
 0x32a   :  { %v10394_v7 = vpop.f32.mrf.mxu1 }
 0x32b   :  { %15710 = vst [vmem:[#allocation133_spill] sm:$0xff] %v10394_v7  ;;  %v10414_v7 = vand.u32 4294901760, %v2070_v36 }
 0x32c   :  { %v10398_v49 = vpop.f32.mrf.mxu0 }
 0x32d   :  { %15711 = vst [vmem:[#allocation134_spill] sm:$0xff] %v10398_v49  ;;  %1957 = vmatmul.f32.gmra.mxu1 %v9976_v50  ;;  %v2069_v50 = vld [vmem:[%s15234_s3] sm:$0xff]  ;;  %2116 = vmatpush.msrb.mxu2 %v10414_v7  ;;  %v10450_v44 = vpop.f32.mrf.mxu3 }
 0x332   :  { %v10403_v19 = vpop.f32.mrf.mxu1 }
 0x333   :  { %15712 = vst [vmem:[#allocation135_spill] sm:$0xff] %v10403_v19  ;;  %v10426_v19 = vand.u32 4294901760, %v2069_v50 }
 0x334   :  { %v10405_v22 = vpop.f32.mrf.mxu0 }
 0x335   :  { %15713 = vst [vmem:[#allocation136_spill] sm:$0xff] %v10405_v22  ;;  %v10424_v22 = vsub.f32 %v2070_v36, %v10414_v7  ;;  %v10436_v29 = vsub.f32 %v2069_v50, %v10426_v19  ;;  %2118 = vmatpush.msrb.mxu2 %v10426_v19  ;;  %v10442_v36 = vld [vmem:[%s15233_s2] ss:$0 sm:$0xff] }
 0x336   :  { %v588_v45 = vadd.f32 %v10442_v36, %v10018_v14 }
 0x337   :  { %2261 = vmatpush.msra.mxu2 %v10125_v35  ;;  %v15717_v50 = vand.u32 4294901760, %v10424_v22  ;;  %v15261_v60 = vand.u32 4294901760, %v10436_v29 }
 0x339   :  { %v2212_v1 = vsub.f32 %v10424_v22, %v15717_v50  ;;  %2264 = vmatpush.msra.mxu2 %v10188_v31  ;;  %v10479_v31 = vand.u32 4294901760, %v9163_v26 }
 0x33a   :  { %v10412_v47 = vpop.f32.mrf.mxu1 }
 0x33b   :  { %15714 = vst [vmem:[#allocation137_spill] sm:$0xff] %v10412_v47  ;;  %v9165_v47 = vld [vmem:[%s15234_s3 + $0x88] sm:$0xff]  ;;  %v2213_v61 = vand.u32 4294901760, %v2212_v1  ;;  %v9162_v1 = vld [vmem:[%s15234_s3 + $0x70] sm:$0xff]  ;;  %2267 = vmatpush.msra.mxu2 %v10258_v48  ;;  %v10493_v14 = vsub.f32 %v9163_v26, %v10479_v31  ;;  %v869_v26 = vadd.f32 %v10022_v43, %v588_v45  ;;  %v10524_v45 = vpop.f32.mrf.mxu3 }
 0x33c   :  { %v10421_v49 = vpop.f32.mrf.mxu0  ;;  %v10433_v34 = vand.u32 4294901760, %v9165_v47  ;;  %15722 = vst [vmem:[#allocation144_spill] sm:$0xff] %v10479_v31 }
 0x33d   :  { %15715 = vst [vmem:[#allocation138_spill] sm:$0xff] %v10421_v49  ;;  %v580_v49 = vadd.f32 %v10442_v36, %v10012_v59  ;;  %v10460_v59 = vand.u32 4294901760, %v9164_v62  ;;  %2214 = vmatpush.msrb.mxu3 %v2213_v61  ;;  %2270 = vmatpush.msra.mxu2 %v10352_v27 }
 0x33e   :  { %15716 = vst [vmem:[#allocation139_spill] sm:$0xff] %v10433_v34  ;;  %v10456_v38 = vsub.f32 %v9165_v47, %v10433_v34  ;;  %3287 = vmatpush.msra.mxu1 %v10433_v34  ;;  %v2218_v47 = vsub.f32 %v10436_v29, %v15261_v60 }
 0x33f   :  { %15719 = vst [vmem:[#allocation141_spill] sm:$0xff] %v10460_v59  ;;  %v10473_v34 = vsub.f32 %v9164_v62, %v10460_v59  ;;  %v865_v20 = vadd.f32 %v10016_v17, %v580_v49  ;;  %v10488_v17 = vand.u32 4294901760, %v9162_v1  ;;  %v10490_v49 = vpop.f32.mrf.mxu2  ;;  %2273 = vmatpush.msra.mxu2 %v10424_v22 }
 0x340   :  { %15718 = vst [vmem:[#allocation140_spill] sm:$0xff] %v10456_v38  ;;  %3289 = vmatpush.msra.mxu1 %v10460_v59  ;;  %v15723_v62 = vand.u32 4294901760, %v10456_v38  ;;  %v2219_v60 = vand.u32 4294901760, %v2218_v47  ;;  %v15269_v38 = vand.u32 4294901760, %v10493_v14 }
 0x341   :  { %15721 = vst [vmem:[#allocation143_spill] sm:$0xff] %v10473_v34  ;;  %v15268_v59 = vand.u32 4294901760, %v10473_v34  ;;  %v10503_v61 = vsub.f32 %v9162_v1, %v10488_v17  ;;  %2276 = vmatpush.msra.mxu2 %v10436_v29 }
 0x342   :  { %v10466_v35 = vpop.f32.mrf.mxu1  ;;  %3227 = vmatpush.msra.mxu0 %v15723_v62  ;;  %15724 = vst [vmem:[#allocation145_spill] sm:$0xff] %v10488_v17  ;;  %3291 = vmatpush.msra.mxu1 %v10479_v31  ;;  %v1128_v62 = vadd.f32 %v1127_v63, %v865_v20  ;;  %v9160_v31 = vld [vmem:[%s15234_s3 + $0x60] sm:$0xff] }
 0x343   :  { %15720 = vst [vmem:[#allocation142_spill] sm:$0xff] %v10466_v35  ;;  %v9161_v35 = vld [vmem:[%s15234_s3 + $0x68] sm:$0xff]  ;;  %2220 = vmatpush.msrb.mxu3 %v2219_v60  ;;  %v596_v60 = vadd.f32 %v10442_v36, %v10024_v16 }
 0x344   :  { %v1689_v50 = vpop.f32.mrf.mxu0  ;;  %15725 = vst [vmem:[#allocation146_spill] sm:$0xff] %v10493_v14  ;;  %3231 = vmatpush.msra.mxu0 %v15268_v59  ;;  %v10505_v47 = vand.u32 4294901760, %v9161_v35  ;;  %3293 = vmatpush.msra.mxu1 %v10488_v17  ;;  %v10518_v59 = vand.u32 4294901760, %v9160_v31  ;;  %v15731_v14 = vand.u32 4294901760, %v10503_v61 }
 0x345   :  { %15726 = vst [vmem:[#allocation147_spill] sm:$0xff] %v10503_v61  ;;  %2323 = vmatpush.msra.mxu3 %v10120_v10 }
 0x346   :  { %15727 = vst [vmem:[#allocation148_spill] sm:$0xff] %v10505_v47  ;;  %v10516_v1 = vsub.f32 %v9161_v35, %v10505_v47  ;;  %3235 = vmatpush.msra.mxu0 %v15269_v38  ;;  %3295 = vmatpush.msra.mxu1 %v10505_v47  ;;  %v10528_v63 = vsub.f32 %v9160_v31, %v10518_v59 }
 0x347   :  { %15729 = vst [vmem:[#allocation150_spill] sm:$0xff] %v10518_v59  ;;  %2325 = vmatpush.msra.mxu3 %v10182_v51  ;;  %v1437_v35 = vadd.f32 %v10396_v40, %v1128_v62  ;;  %v1133_v38 = vadd.f32 %v10401_v4, %v869_v26  ;;  %v492_v31 = vadd.f32 %v10442_v36, %v9916_v56  ;;  %v15733_v62 = vld [vmem:[#allocation17_spill] sm:$0xff] }
 0x348   :  { %15728 = vst [vmem:[#allocation149_spill] sm:$0xff] %v10516_v1  ;;  %3239 = vmatpush.msra.mxu0 %v15731_v14  ;;  %3297 = vmatpush.msra.mxu1 %v10518_v59  ;;  %v15276_v34 = vand.u32 4294901760, %v10528_v63  ;;  %v15732_v40 = vand.u32 4294901760, %v10516_v1  ;;  %v873_v4 = vadd.f32 %v10028_v23, %v596_v60  ;;  %v10548_v14 = vpop.f32.mrf.mxu2  ;;  %v1590_v56 = vadd.f32 %v10175_v39, %v15733_v62  ;;  %v15899_v59 = vld [vmem:[#allocation137_spill] sm:$0xff] }
 0x349   :  { %15730 = vst [vmem:[#allocation151_spill] sm:$0xff] %v10528_v63  ;;  %2327 = vmatpush.msra.mxu3 %v10247_v3  ;;  %v1690_v47 = vadd.f32 %v1689_v50, %v1437_v35  ;;  %v1443_v16 = vadd.f32 %v10407_v42, %v1133_v38  ;;  %v821_v50 = vadd.f32 %v9926_v30, %v492_v31  ;;  %v15734_v35 = vld [vmem:[#allocation34_spill] sm:$0xff] }
 0x34a   :  { %v1910_v43 = vpop.f32.mrf.mxu1  ;;  %3243 = vmatpush.msra.mxu0 %v15732_v40  ;;  %v500_v40 = vadd.f32 %v10442_v36, %v15734_v35  ;;  %v1811_v38 = vadd.f32 %v10184_v55, %v1590_v56  ;;  %v15735_v42 = vld [vmem:[#allocation18_spill] sm:$0xff]  ;;  %v604_v39 = vadd.f32 %v10442_v36, %v10030_v33  ;;  %v15737_v55 = vld [vmem:[#allocation35_spill] sm:$0xff] }
 0x34b   :  { %2329 = vmatpush.msra.mxu3 %v10347_v54  ;;  %v1911_v26 = vadd.f32 %v1910_v43, %v1690_v47  ;;  %v1594_v23 = vadd.f32 %v10190_v37, %v15735_v42  ;;  %v1138_v43 = vadd.f32 %v10416_v13, %v873_v4  ;;  %v1073_v35 = vadd.f32 %v10234_v28, %v821_v50  ;;  %v15739_v42 = vld [vmem:[#allocation38_spill] sm:$0xff] }
 0x34c   :  { %v1693_v20 = vpop.f32.mrf.mxu0  ;;  %3247 = vmatpush.msra.mxu0 %v15276_v34  ;;  %v825_v56 = vadd.f32 %v15737_v55, %v500_v40  ;;  %v10570_v34 = vpop.f32.mrf.mxu3  ;;  %v516_v63 = vadd.f32 %v10442_v36, %v15739_v42  ;;  %v877_v13 = vadd.f32 %v10034_v25, %v604_v39  ;;  %v15740_v40 = vld [vmem:[#allocation37_spill] sm:$0xff]  ;;  %v612_v25 = vadd.f32 %v10442_v36, %v10036_v46  ;;  %v15744_v55 = vld [vmem:[#allocation40_spill] sm:$0xff] }
 0x34d   :  { %2331 = vmatpush.msra.mxu3 %v10414_v7  ;;  %v1694_v60 = vadd.f32 %v1693_v20, %v1443_v16  ;;  %v1815_v30 = vadd.f32 %v10198_v5, %v1594_v23  ;;  %v10566_v31 = vmax.f32 %v1811_v38, %v1911_v26  ;;  %v15738_v20 = vld [vmem:[#allocation36_spill] sm:$0xff]  ;;  %v1449_v5 = vadd.f32 %v10450_v44, %v1138_v43  ;;  %v15742_v44 = vld [vmem:[#allocation39_spill] sm:$0xff] }
 0x34e   :  { %v508_v33 = vadd.f32 %v10442_v36, %v15738_v20  ;;  %v1371_v26 = vadd.f32 %v10241_v24, %v1073_v35  ;;  %v1078_v50 = vadd.f32 %v10252_v21, %v825_v56  ;;  %v833_v43 = vadd.f32 %v15742_v44, %v516_v63 }
 0x34f   :  { %2333 = vmatpush.msra.mxu3 %v10426_v19  ;;  %15736 = vst [vmem:[#allocation17_spill] sm:$0xff] %v10566_v31  ;;  %v2000_v4 = vrot.slane %v10566_v31, 4  ;;  %v15743_v21 = vmax.f32 %v10307_v18, %v10309_v9  ;;  %v524_v56 = vadd.f32 %v10442_v36, %v15744_v55  ;;  %v532_v63 = vadd.f32 %v10442_v36, %v9978_v32 }
 0x350   :  { %v829_v38 = vadd.f32 %v15740_v40, %v508_v33  ;;  %v10582_v23 = vpop.f32.mrf.mxu2  ;;  %v1646_v39 = vadd.f32 %v10311_v12, %v1371_v26  ;;  %v15745_v33 = vld [vmem:[#allocation6_spill] sm:$0xff]  ;;  %v881_v42 = vadd.f32 %v10040_v58, %v612_v25  ;;  %v15748_v40 = vld [vmem:[#allocation20_spill] sm:$0xff]  ;;  %v15752_v25 = vld [vmem:[#allocation53_spill] sm:$0xff] }
 0x351   :  { %v1546_v46 = vadd.f32 %v10096_v57, %v15745_v33  ;;  %v1088_v57 = vadd.f32 %v10282_v2, %v833_v43  ;;  %v15747_v58 = vld [vmem:[#allocation42_spill] sm:$0xff] }
 0x352   :  { %v1914_v47 = vpop.f32.mrf.mxu1  ;;  %v1867_v12 = vadd.f32 %v10319_v0, %v1646_v39  ;;  %v1083_v32 = vadd.f32 %v10271_v52, %v829_v38  ;;  %v1148_v2 = vadd.f32 %v10548_v14, %v881_v42  ;;  %v628_v39 = vadd.f32 %v10442_v36, %v15752_v25  ;;  %v15756_v14 = vld [vmem:[#allocation113_spill] sm:$0xff]  ;;  %v15767_v25 = vld [vmem:[#allocation55_spill] sm:$0xff] }
 0x353   :  { %v1915_v62 = vadd.f32 %v1914_v47, %v1694_v60  ;;  %v15741_v60 = vld [vmem:[#allocation19_spill] sm:$0xff] }
 0x354   :  { %v1697_v37 = vpop.f32.mrf.mxu0  ;;  %v1598_v47 = vadd.f32 %v10200_v6, %v15741_v60  ;;  %v1143_v6 = vadd.f32 %v10490_v49, %v877_v13  ;;  %v620_v49 = vadd.f32 %v10442_v36, %v10042_v53  ;;  %v540_v53 = vadd.f32 %v10442_v36, %v15747_v58  ;;  %v15749_v60 = vld [vmem:[#allocation89_spill] sm:$0xff]  ;;  %v15762_v58 = vld [vmem:[#allocation68_spill] sm:$0xff] }
 0x355   :  { %v1974_v16 = vmax.f32 %v1815_v30, %v1915_v62  ;;  %v1698_v62 = vadd.f32 %v1697_v37, %v1449_v5  ;;  %v1767_v5 = vadd.f32 %v10100_v41, %v1546_v46  ;;  %v15757_v46 = vld [vmem:[#allocation26_spill] sm:$0xff] }
 0x356   :  { %v1819_v20 = vadd.f32 %v10204_v11, %v1598_v47  ;;  %v10607_v11 = vpop.f32.mrf.mxu3  ;;  %v1455_v0 = vadd.f32 %v10524_v45, %v1143_v6  ;;  %v1602_v47 = vadd.f32 %v15749_v60, %v15748_v40  ;;  %v15750_v45 = vld [vmem:[#allocation52_spill] sm:$0xff]  ;;  %v15755_v6 = vld [vmem:[#allocation67_spill] sm:$0xff] }
 0x357   :  { %v2001_v28 = vrot.slane %v1974_v16, 4  ;;  %v1377_v16 = vadd.f32 %v10262_v15, %v1078_v50  ;;  %v841_v15 = vadd.f32 %v9982_v8, %v532_v63  ;;  %v1962_v50 = vmax.f32 %v1767_v5, %v1867_v12  ;;  %v15760_v5 = vld [vmem:[#allocation5_spill] sm:$0xff] }
 0x358   :  { %v1383_v12 = vadd.f32 %v15757_v46, %v1083_v32  ;;  %v15772_v46 = vld [vmem:[#allocation116_spill] sm:$0xff] }
 0x359   :  { %v2002_v30 = vsel %vm1999_vm2, %v2000_v4, %v2001_v28  ;;  %v15746_v4 = vld [vmem:[#allocation41_spill] sm:$0xff] }
 0x35a   :  { %v2038_v24 = vmax.f32 %v15743_v21, %v2002_v30  ;;  %v1918_v35 = vpop.f32.mrf.mxu1  ;;  %v837_v26 = vadd.f32 %v15746_v4, %v524_v56  ;;  %v885_v30 = vadd.f32 %v15750_v45, %v620_v49  ;;  %v1157_v21 = vpop.f32.mrf.mxu2  ;;  %v15754_v56 = vld [vmem:[#allocation7_spill] sm:$0xff]  ;;  %v15765_v45 = vld [vmem:[#allocation21_spill] sm:$0xff] }
 0x35b   :  { %v1919_v37 = vadd.f32 %v1918_v35, %v1698_v62  ;;  %v15751_v62 = vld [vmem:[#allocation110_spill] sm:$0xff]  ;;  %v15761_v4 = vld [vmem:[#allocation43_spill] sm:$0xff] }
 0x35c   :  { %9304 = vtanh.f32 %v2038_v24  ;;  %v1701_v9 = vpop.f32.mrf.mxu0  ;;  %v1650_v44 = vadd.f32 %v15751_v62, %v1377_v16  ;;  %v15753_v24 = vld [vmem:[#allocation90_spill] sm:$0xff]  ;;  %v15759_v16 = vld [vmem:[#allocation29_spill] sm:$0xff]  ;;  %v15766_v62 = vld [vmem:[#allocation91_spill] sm:$0xff] }
 0x35d   :  { %v1975_v18 = vmax.f32 %v1819_v20, %v1919_v37  ;;  %v1702_v52 = vadd.f32 %v1701_v9, %v1455_v0  ;;  %v1823_v35 = vadd.f32 %v15753_v24, %v1602_v47  ;;  %v1550_v20 = vadd.f32 %v15755_v6, %v15754_v56  ;;  %v15758_v9 = vld [vmem:[#allocation105_spill] sm:$0xff]  ;;  %v15763_v47 = vld [vmem:[#allocation44_spill] sm:$0xff] }
 0x35e   :  { %v1871_v37 = vadd.f32 %v15756_v14, %v1650_v44  ;;  %v1093_v42 = vadd.f32 %v15759_v16, %v837_v26  ;;  %v1098_v0 = vadd.f32 %v15760_v5, %v841_v15  ;;  %v548_v32 = vadd.f32 %v10442_v36, %v15763_v47  ;;  %v15764_v15 = vld [vmem:[#allocation54_spill] sm:$0xff]  ;;  %v15774_v5 = vld [vmem:[#allocation108_spill] sm:$0xff] }
 0x35f   :  { %v2003_v13 = vrot.slane %v1975_v18, 4  ;;  %v10637_v18 = vadd.f32 %v15758_v9, %v1088_v57  ;;  %v1771_v40 = vadd.f32 %v15762_v58, %v1550_v20  ;;  %v1461_v57 = vadd.f32 %v10570_v34, %v1148_v2  ;;  %v15769_v34 = vld [vmem:[#allocation69_spill] sm:$0xff] }
 0x360   :  { %v1606_v44 = vadd.f32 %v15766_v62, %v15765_v45  ;;  %v636_v24 = vadd.f32 %v10442_v36, %v15767_v25  ;;  %v15775_v58 = vld [vmem:[#allocation109_spill] sm:$0xff]  ;;  %v15777_v45 = vld [vmem:[#allocation70_spill] sm:$0xff] }
 0x361   :  { %v2004_v41 = vsel %vm1999_vm2, %v2001_v28, %v2003_v13 }
 0x362   :  { %v10620_v38 = vpop.eup %9304  ;;  %v2039_v8 = vmax.f32 %v1962_v50, %v2004_v41  ;;  %v1922_v43 = vpop.f32.mrf.mxu1  ;;  %v845_v50 = vadd.f32 %v15761_v4, %v540_v53  ;;  %v1153_v41 = vadd.f32 %v10582_v23, %v885_v30  ;;  %v10680_v4 = vadd.f32 %v15774_v5, %v1093_v42 }
 0x363   :  { %v1923_v55 = vadd.f32 %v1922_v43, %v1702_v52  ;;  %v2077_v28 = vsel %vm2075_vm3, %v10620_v38, 0  ;;  %v889_v52 = vadd.f32 %v15764_v15, %v628_v39  ;;  %v10653_v53 = vpop.f32.mrf.mxu3  ;;  %v15770_v39 = vld [vmem:[#allocation92_spill] sm:$0xff] }
 0x364   :  { %9306 = vtanh.f32 %v2039_v8  ;;  %v1705_v63 = vpop.f32.mrf.mxu0  ;;  %v10633_v33 = vand.u32 4294901760, %v2077_v28  ;;  %v1963_v8 = vmax.f32 %v1771_v40, %v1871_v37  ;;  %v2501_v37 = vrot.slane %v10620_v38, 4  ;;  %v1162_v40 = vpop.f32.mrf.mxu2 }
 0x365   :  { %v1976_v49 = vmax.f32 %v1823_v35, %v1923_v55  ;;  %v15768_v35 = vld [vmem:[#allocation8_spill] sm:$0xff]  ;;  %v1706_v30 = vadd.f32 %v1705_v63, %v1461_v57  ;;  %v1827_v55 = vadd.f32 %v15770_v39, %v1606_v44  ;;  %v10683_v38 = vadd.f32 %v15775_v58, %v1098_v0  ;;  %v15779_v0 = vld [vmem:[#allocation45_spill] sm:$0xff] }
 0x366   :  { %v10644_v60 = vsub.f32 %v2077_v28, %v10633_v33  ;;  %2222 = vmatmul.f32.vlgmr.msrb.gmra.mxu3 %v10633_v33  ;;  %v1554_v2 = vadd.f32 %v15769_v34, %v15768_v35  ;;  %v15771_v28 = vld [vmem:[#allocation114_spill] sm:$0xff]  ;;  %v10698_v44 = vadd.f32 %v15779_v0, %v548_v32  ;;  %v15781_v34 = vld [vmem:[#allocation57_spill] sm:$0xff]  ;;  %v15793_v58 = vld [vmem:[#allocation120_spill] sm:$0xff] }
 0x367   :  { %v2005_v26 = vrot.slane %v1976_v49, 4  ;;  %2449 = vmatpush.msrb.mxu3 %v10120_v10  ;;  %v1654_v56 = vadd.f32 %v15771_v28, %v1383_v12  ;;  %v15788_v39 = vld [vmem:[#allocation93_spill] sm:$0xff] }
 0x368   :  { %v15279_v43 = vand.u32 4294901760, %v10644_v60  ;;  %v1775_v62 = vadd.f32 %v15777_v45, %v1554_v2  ;;  %v644_v2 = vadd.f32 %v10442_v36, %v15781_v34 }
 0x369   :  { %v2006_v23 = vsel %vm1999_vm2, %v2003_v13, %v2005_v26  ;;  %2451 = vmatpush.msrb.mxu3 %v10182_v51  ;;  %v1875_v9 = vadd.f32 %v15772_v46, %v1654_v56 }
 0x36a   :  { %v10664_v10 = vpop.eup %9306  ;;  %v2040_v6 = vmax.f32 %v1963_v8, %v2006_v23  ;;  %v1926_v20 = vpop.f32.mrf.mxu1  ;;  %v2122_v14 = vsub.f32 %v10644_v60, %v15279_v43  ;;  %v1467_v8 = vadd.f32 %v10607_v11, %v1153_v41  ;;  %v15785_v11 = vld [vmem:[#allocation9_spill] sm:$0xff] }
 0x36b   :  { %v2080_v13 = vsel %vm2075_vm3, %v10664_v10, 0  ;;  %v2502_v63 = vrot.slane %v10664_v10, 4  ;;  %v1927_v51 = vadd.f32 %v1926_v20, %v1706_v30  ;;  %2453 = vmatpush.msrb.mxu3 %v10247_v3  ;;  %v15776_v3 = vld [vmem:[#allocation111_spill] sm:$0xff]  ;;  %v1964_v23 = vmax.f32 %v1775_v62, %v1875_v9  ;;  %v15783_v10 = vld [vmem:[#allocation72_spill] sm:$0xff]  ;;  %v15789_v20 = vld [vmem:[#allocation118_spill] sm:$0xff] }
 0x36c   :  { %v10677_v16 = vand.u32 4294901760, %v2080_v13  ;;  %9308 = vtanh.f32 %v2040_v6  ;;  %v1709_v12 = vpop.f32.mrf.mxu0  ;;  %v2123_v49 = vand.u32 4294901760, %v2122_v14  ;;  %v10690_v15 = vadd.f32 %v15776_v3, %v845_v50  ;;  %v15780_v50 = vld [vmem:[#allocation56_spill] sm:$0xff]  ;;  %v10719_v6 = vpop.f32.mrf.mxu3  ;;  %v15792_v9 = vld [vmem:[#allocation94_spill] sm:$0xff] }
 0x36d   :  { %v1977_v47 = vmax.f32 %v1827_v55, %v1927_v51  ;;  %2455 = vmatpush.msrb.mxu3 %v10347_v54  ;;  %v10687_v57 = vsel %vm1999_vm2, %v2501_v37, %v2502_v63  ;;  %v1158_v54 = vadd.f32 %v1157_v21, %v889_v52  ;;  %v893_v35 = vadd.f32 %v15780_v50, %v636_v24  ;;  %v15786_v21 = vld [vmem:[#allocation71_spill] sm:$0xff]  ;;  %v15790_v51 = vld [vmem:[#allocation88_spill] sm:$0xff] }
 0x36e   :  { %15773 = vst [vmem:[#allocation34_spill] sm:$0xff] %v10677_v16  ;;  %2124 = vmatmul.f32.vlgmr.msrb.gmra.mxu2 %v2123_v49  ;;  %2226 = vmatmul.f32.gmra.mxu3 %v10677_v16  ;;  %v10695_v42 = vsub.f32 %v2080_v13, %v10677_v16  ;;  %v15784_v32 = vand.u32 4294901760, %v15783_v10  ;;  %v1558_v41 = vadd.f32 %v15786_v21, %v15785_v11  ;;  %v15787_v52 = vld [vmem:[#allocation23_spill] sm:$0xff]  ;;  %v15791_v46 = vand.u32 4294901760, %v15790_v51  ;;  %v15798_v10 = vld [vmem:[#allocation73_spill] sm:$0xff]  ;;  %v15800_v11 = vld [vmem:[#allocation58_spill] sm:$0xff] }
 0x36f   :  { %v2007_v25 = vrot.slane %v1977_v47, 4  ;;  %3249 = vmatmul.f32.vlgmr.msra.gmra.mxu0 %v10677_v16  ;;  %3299 = vmatmul.f32.vlgmr.msra.gmra.mxu1 %v10677_v16  ;;  %v1610_v55 = vadd.f32 %v15788_v39, %v15787_v52  ;;  %v1710_v28 = vadd.f32 %v1709_v12, %v1467_v8  ;;  %v1658_v14 = vadd.f32 %v15789_v20, %v10637_v18  ;;  %v15801_v52 = vld [vmem:[#allocation59_spill] sm:$0xff] }
 0x370   :  { %15778 = vst [vmem:[#allocation18_spill] sm:$0xff] %v10695_v42  ;;  %v10707_v30 = vand.u32 4294901760, %v10695_v42  ;;  %2389 = vmatpush.msrb.mxu2 %v15784_v32  ;;  %2457 = vmatpush.msrb.mxu3 %v10414_v7  ;;  %v15796_v62 = vand.u32 4294901760, %v10258_v48  ;;  %v1473_v8 = vadd.f32 %v10653_v53, %v1158_v54  ;;  %v1779_v32 = vadd.f32 %v15798_v10, %v1558_v41  ;;  %v1167_v53 = vpop.f32.mrf.mxu2  ;;  %v15802_v54 = vld [vmem:[#allocation25_spill] sm:$0xff]  ;;  %v15805_v41 = vld [vmem:[#allocation74_spill] sm:$0xff] }
 0x371   :  { %v2008_v24 = vsel %vm1999_vm2, %v2005_v26, %v2007_v25  ;;  %v1831_v26 = vadd.f32 %v15792_v9, %v1610_v55  ;;  %v1879_v18 = vadd.f32 %v15793_v58, %v1658_v14  ;;  %v897_v21 = vadd.f32 %v15800_v11, %v644_v2  ;;  %v15803_v55 = vld [vmem:[#allocation95_spill] sm:$0xff]  ;;  %v9169_v10 = vld [vmem:[%s15234_s3 + $0xa8] sm:$0xff] }
 0x372   :  { %15782 = vst [vmem:[#allocation35_spill] sm:$0xff] %v10707_v30  ;;  %v10717_v56 = vpop.eup %9308  ;;  %v2041_v37 = vmax.f32 %v1964_v23, %v2008_v24  ;;  %v1930_v13 = vpop.f32.mrf.mxu1  ;;  %v2130_v7 = vsub.f32 %v10695_v42, %v10707_v30  ;;  %2393 = vmatpush.msrb.mxu2 %v15791_v46  ;;  %2459 = vmatpush.msrb.mxu3 %v10426_v19  ;;  %v15797_v19 = vld [vmem:[#allocation46_spill] sm:$0xff]  ;;  %v15808_v14 = vand.u32 4294901760, %v10352_v27 }
 0x373   :  { %v2083_v12 = vsel %vm2075_vm3, %v10717_v56, 0  ;;  %v2504_v49 = vrot.slane %v10717_v56, 4  ;;  %v1931_v5 = vadd.f32 %v1930_v13, %v1710_v28  ;;  %v10741_v0 = vadd.f32 %v10442_v36, %v15797_v19 }
 0x374   :  { %v10733_v47 = vand.u32 4294901760, %v2083_v12  ;;  %9310 = vtanh.f32 %v2041_v37  ;;  %v1713_v3 = vpop.f32.mrf.mxu0  ;;  %v10735_v45 = vand.u32 4294901760, %v2130_v7  ;;  %2397 = vmatpush.msrb.mxu2 %v15796_v62  ;;  %v1163_v23 = vadd.f32 %v1162_v40, %v893_v35  ;;  %v9171_v40 = vld [vmem:[%s15234_s3 + $0xb8] sm:$0xff]  ;;  %v15804_v35 = vld [vmem:[#allocation10_spill] sm:$0xff]  ;;  %v15810_v7 = vld [vmem:[#allocation121_spill] sm:$0xff] }
 0x375   :  { %v1978_v50 = vmax.f32 %v1831_v26, %v1931_v5  ;;  %v10745_v34 = vsel %vm1999_vm2, %v2502_v63, %v2504_v49  ;;  %v652_v39 = vadd.f32 %v10442_v36, %v15801_v52  ;;  %v1614_v63 = vadd.f32 %v15803_v55, %v15802_v54  ;;  %v15809_v37 = vld [vmem:[#allocation96_spill] sm:$0xff]  ;;  %v9170_v26 = vld [vmem:[%s15234_s3 + $0xb0] sm:$0xff] }
 0x376   :  { %15794 = vst [vmem:[#allocation36_spill] sm:$0xff] %v10733_v47  ;;  %2132 = vmatmul.f32.gmra.mxu2 %v10735_v45  ;;  %2230 = vmatmul.f32.gmra.mxu3 %v10733_v47  ;;  %v10751_v48 = vsub.f32 %v2083_v12, %v10733_v47  ;;  %v1562_v2 = vadd.f32 %v15805_v41, %v15804_v35  ;;  %v10770_v20 = vand.u32 4294901760, %v9171_v40  ;;  %v9168_v35 = vld [vmem:[%s15234_s3 + $0xa0] sm:$0xff] }
 0x377   :  { %15795 = vst [vmem:[#allocation38_spill] sm:$0xff] %v10735_v45  ;;  %v10758_v24 = vrot.slane %v1978_v50, 4  ;;  %3253 = vmatmul.f32.gmra.mxu0 %v10733_v47  ;;  %3303 = vmatmul.f32.gmra.mxu1 %v10733_v47  ;;  %v1965_v28 = vmax.f32 %v1779_v32, %v1879_v18  ;;  %v1835_v13 = vadd.f32 %v15809_v37, %v1614_v63  ;;  %v10801_v32 = vpop.f32.mrf.mxu3  ;;  %v15820_v37 = vld [vmem:[#allocation75_spill] sm:$0xff] }
 0x378   :  { %15799 = vst [vmem:[#allocation37_spill] sm:$0xff] %v10751_v48  ;;  %v10768_v56 = vand.u32 4294901760, %v10751_v48  ;;  %2401 = vmatpush.msrb.mxu2 %v15808_v14  ;;  %v1662_v51 = vadd.f32 %v15810_v7, %v10680_v4  ;;  %v1714_v9 = vadd.f32 %v1713_v3, %v1473_v8  ;;  %v10787_v18 = vsub.f32 %v9171_v40, %v10770_v20  ;;  %v15814_v3 = vld [vmem:[#allocation123_spill] sm:$0xff] }
 0x379   :  { %15807 = vst [vmem:[#allocation39_spill] sm:$0xff] %v10770_v20  ;;  %v2010_v46 = vsel %vm1999_vm2, %v2007_v25, %v10758_v24  ;;  %3576 = vmatpush.msrb.mxu1 %v10770_v20  ;;  %v10790_v4 = vand.u32 4294901760, %v9170_v26  ;;  %v15813_v25 = vand.u32 4294901760, %v10424_v22  ;;  %v1479_v55 = vadd.f32 %v10719_v6, %v1163_v23 }
 0x37a   :  { %15806 = vst [vmem:[#allocation19_spill] sm:$0xff] %v10768_v56  ;;  %v10782_v12 = vpop.eup %9310  ;;  %v2042_v5 = vmax.f32 %v1965_v28, %v2010_v46  ;;  %v1934_v58 = vpop.f32.mrf.mxu1  ;;  %v2138_v27 = vsub.f32 %v10751_v48, %v10768_v56  ;;  %v1883_v62 = vadd.f32 %v15814_v3, %v1662_v51  ;;  %3514 = vmatpush.msrb.mxu0 %v10787_v18  ;;  %v10813_v40 = vand.u32 4294901760, %v9169_v10  ;;  %v15824_v46 = vld [vmem:[#allocation27_spill] sm:$0xff] }
 0x37b   :  { %15811 = vst [vmem:[#allocation40_spill] sm:$0xff] %v10787_v18  ;;  %2405 = vmatpush.msrb.mxu2 %v15813_v25  ;;  %v2086_v19 = vsel %vm2075_vm3, %v10782_v12, 0  ;;  %v2506_v8 = vrot.slane %v10782_v12, 4  ;;  %v1935_v50 = vadd.f32 %v1934_v58, %v1714_v9  ;;  %v10809_v54 = vsub.f32 %v9170_v26, %v10790_v4  ;;  %3578 = vmatpush.msrb.mxu1 %v10790_v4  ;;  %v1172_v58 = vpop.f32.mrf.mxu2  ;;  %v15831_v25 = vld [vmem:[#allocation76_spill] sm:$0xff]  ;;  %v15845_v12 = vld [vmem:[#allocation47_spill] sm:$0xff] }
 0x37c   :  { %15812 = vst [vmem:[#allocation6_spill] sm:$0xff] %v10790_v4  ;;  %v10803_v11 = vand.u32 4294901760, %v2086_v19  ;;  %9312 = vtanh.f32 %v2042_v5  ;;  %v1717_v52 = vpop.f32.mrf.mxu0  ;;  %v10805_v22 = vand.u32 4294901760, %v2138_v27  ;;  %v15819_v28 = vand.u32 4294901760, %v10436_v29  ;;  %v15830_v27 = vld [vmem:[#allocation11_spill] sm:$0xff] }
 0x37d   :  { %15817 = vst [vmem:[#allocation20_spill] sm:$0xff] %v10809_v54  ;;  %v1979_v63 = vmax.f32 %v1835_v13, %v1935_v50  ;;  %v10821_v41 = vsel %vm1999_vm2, %v2504_v49, %v2506_v8  ;;  %v1168_v14 = vadd.f32 %v1167_v53, %v897_v21  ;;  %v1783_v7 = vadd.f32 %v15820_v37, %v1562_v2  ;;  %v15823_v13 = vld [vmem:[#allocation60_spill] sm:$0xff]  ;;  %v15825_v49 = vld [vmem:[#allocation97_spill] sm:$0xff] }
 0x37e   :  { %15815 = vst [vmem:[#allocation41_spill] sm:$0xff] %v10803_v11  ;;  %2409 = vmatpush.msrb.mxu2 %v15819_v28  ;;  %2234 = vmatmul.f32.gmra.mxu3 %v10803_v11  ;;  %v10829_v6 = vsub.f32 %v2086_v19, %v10803_v11  ;;  %v10831_v23 = vand.u32 4294901760, %v9168_v35  ;;  %v901_v51 = vadd.f32 %v15823_v13, %v652_v39  ;;  %v9167_v21 = vld [vmem:[%s15234_s3 + $0x98] sm:$0xff]  ;;  %v15832_v19 = vld [vmem:[#allocation125_spill] sm:$0xff] }
 0x37f   :  { %15816 = vst [vmem:[#allocation42_spill] sm:$0xff] %v10805_v22  ;;  %2140 = vmatmul.f32.gmra.mxu2 %v10805_v22  ;;  %v1618_v9 = vadd.f32 %v15825_v49, %v15824_v46  ;;  %v2011_v26 = vrot.slane %v1979_v63, 4  ;;  %3257 = vmatmul.f32.gmra.mxu0 %v10803_v11  ;;  %v10839_v29 = vsub.f32 %v9169_v10, %v10813_v40  ;;  %v10852_v5 = vand.u32 4294901760, %v9167_v21  ;;  %v9166_v63 = vld [vmem:[%s15234_s3 + $0x90] sm:$0xff]  ;;  %v15883_v22 = vld [vmem:[#allocation101_spill] sm:$0xff] }
 0x380   :  { %15818 = vst [vmem:[#allocation89_spill] sm:$0xff] %v10813_v40  ;;  %3307 = vmatmul.f32.gmra.mxu1 %v10803_v11  ;;  %v1966_v53 = vmax.f32 %v1783_v7, %v1883_v62  ;;  %v10845_v2 = vand.u32 4294901760, %v10829_v6  ;;  %3517 = vmatpush.msrb.mxu0 %v10809_v54  ;;  %v10850_v39 = vsub.f32 %v9168_v35, %v10831_v23  ;;  %v15833_v35 = vld [vmem:[#allocation98_spill] sm:$0xff] }
 0x381   :  { %15821 = vst [vmem:[#allocation52_spill] sm:$0xff] %v10829_v6  ;;  %3580 = vmatpush.msrb.mxu1 %v10813_v40  ;;  %v1566_v3 = vadd.f32 %v15831_v25, %v15830_v27  ;;  %v1666_v50 = vadd.f32 %v15832_v19, %v10683_v38  ;;  %v2012_v62 = vsel %vm1999_vm2, %v10758_v24, %v2011_v26  ;;  %v10870_v38 = vand.u32 4294901760, %v9166_v63  ;;  %v15835_v24 = vld [vmem:[#allocation127_spill] sm:$0xff]  ;;  %v15884_v40 = vld [vmem:[#allocation134_spill] sm:$0xff] }
 0x382   :  { %15822 = vst [vmem:[#allocation110_spill] sm:$0xff] %v10831_v23  ;;  %v1718_v10 = vadd.f32 %v1717_v52, %v1479_v55  ;;  %v10863_v28 = vpop.eup %9312  ;;  %v1839_v37 = vadd.f32 %v15833_v35, %v1618_v9  ;;  %v2043_v7 = vmax.f32 %v1966_v53, %v2012_v62  ;;  %v1938_v13 = vpop.f32.mrf.mxu1  ;;  %v2146_v46 = vsub.f32 %v10829_v6, %v10845_v2  ;;  %v15840_v35 = vld [vmem:[#allocation61_spill] sm:$0xff] }
 0x383   :  { %15826 = vst [vmem:[#allocation53_spill] sm:$0xff] %v10839_v29  ;;  %3520 = vmatpush.msrb.mxu0 %v10839_v29  ;;  %3582 = vmatpush.msrb.mxu1 %v10831_v23  ;;  %v1887_v52 = vadd.f32 %v15835_v24, %v1666_v50  ;;  %v2089_v55 = vsel %vm2075_vm3, %v10863_v28, 0  ;;  %v2508_v49 = vrot.slane %v10863_v28, 4  ;;  %v10882_v19 = vsub.f32 %v9167_v21, %v10852_v5  ;;  %v15839_v50 = vld [vmem:[#allocation112_spill] sm:$0xff] }
 0x384   :  { %15827 = vst [vmem:[#allocation90_spill] sm:$0xff] %v10845_v2  ;;  %v1939_v27 = vadd.f32 %v1938_v13, %v1718_v10  ;;  %v10876_v9 = vand.u32 4294901760, %v2089_v55  ;;  %9314 = vtanh.f32 %v2043_v7  ;;  %v1721_v53 = vpop.f32.mrf.mxu0  ;;  %v10878_v25 = vand.u32 4294901760, %v2146_v46  ;;  %v1490_v13 = vpop.f32.mrf.mxu3  ;;  %v15841_v46 = vld [vmem:[#allocation77_spill] sm:$0xff]  ;;  %v15869_v23 = vld [vmem:[#allocation132_spill] sm:$0xff] }
 0x385   :  { %15828 = vst [vmem:[#allocation7_spill] sm:$0xff] %v10850_v39  ;;  %3523 = vmatpush.msrb.mxu0 %v10850_v39  ;;  %3584 = vmatpush.msrb.mxu1 %v10852_v5  ;;  %v1407_v62 = vadd.f32 %v15839_v50, %v10690_v15  ;;  %v660_v28 = vadd.f32 %v10442_v36, %v15840_v35  ;;  %v15851_v39 = vld [vmem:[#allocation12_spill] sm:$0xff] }
 0x386   :  { %15829 = vst [vmem:[#allocation67_spill] sm:$0xff] %v10852_v5  ;;  %v1980_v10 = vmax.f32 %v1839_v37, %v1939_v27  ;;  %v10892_v7 = vsel %vm1999_vm2, %v2506_v8, %v2508_v49  ;;  %v1787_v24 = vadd.f32 %v15841_v46, %v1566_v3  ;;  %2238 = vmatmul.f32.gmra.mxu3 %v10876_v9  ;;  %v15844_v37 = vld [vmem:[#allocation115_spill] sm:$0xff]  ;;  %v15846_v3 = vld [vmem:[#allocation48_spill] sm:$0xff] }
 0x387   :  { %15834 = vst [vmem:[#allocation113_spill] sm:$0xff] %v10870_v38  ;;  %2148 = vmatmul.f32.gmra.mxu2 %v10878_v25  ;;  %v10898_v21 = vsub.f32 %v2089_v55, %v10876_v9  ;;  %v10901_v15 = vsub.f32 %v9166_v63, %v10870_v38  ;;  %v1108_v27 = vadd.f32 %v15844_v37, %v10698_v44  ;;  %v15848_v44 = vld [vmem:[#allocation62_spill] sm:$0xff] }
 0x388   :  { %15836 = vst [vmem:[#allocation26_spill] sm:$0xff] %v10876_v9  ;;  %v853_v8 = vadd.f32 %v15845_v12, %v10741_v0  ;;  %v1485_v50 = vadd.f32 %v10801_v32, %v1168_v14  ;;  %v2013_v35 = vrot.slane %v1980_v10, 4  ;;  %3261 = vmatmul.f32.gmra.mxu0 %v10876_v9  ;;  %3311 = vmatmul.f32.gmra.mxu1 %v10876_v9  ;;  %v15849_v32 = vld [vmem:[#allocation28_spill] sm:$0xff]  ;;  %v15850_v14 = vld [vmem:[#allocation99_spill] sm:$0xff] }
 0x389   :  { %15837 = vst [vmem:[#allocation105_spill] sm:$0xff] %v10878_v25  ;;  %v564_v55 = vadd.f32 %v10442_v36, %v15846_v3  ;;  %v1173_v46 = vadd.f32 %v1172_v58, %v901_v51  ;;  %v1967_v43 = vmax.f32 %v1787_v24, %v1887_v52  ;;  %v10913_v63 = vand.u32 4294901760, %v10898_v21  ;;  %3526 = vmatpush.msrb.mxu0 %v10882_v19  ;;  %v15852_v3 = vld [vmem:[#allocation78_spill] sm:$0xff]  ;;  %v15853_v58 = vld [vmem:[#allocation128_spill] sm:$0xff] }
 0x38a   :  { %15838 = vst [vmem:[#allocation29_spill] sm:$0xff] %v10882_v19  ;;  %3586 = vmatpush.msrb.mxu1 %v10870_v38  ;;  %v905_v0 = vadd.f32 %v15848_v44, %v660_v28  ;;  %v1622_v10 = vadd.f32 %v15850_v14, %v15849_v32  ;;  %v2014_v37 = vsel %vm1999_vm2, %v2011_v26, %v2013_v35  ;;  %v9315_v31 = vpop.eup %9314  ;;  %v1942_v29 = vpop.f32.mrf.mxu1  ;;  %v15854_v44 = vld [vmem:[#allocation22_spill] sm:$0xff] }
 0x38b   :  { %15842 = vst [vmem:[#allocation5_spill] sm:$0xff] %v10898_v21  ;;  %v1722_v12 = vadd.f32 %v1721_v53, %v1485_v50  ;;  %v1570_v51 = vadd.f32 %v15852_v3, %v15851_v39  ;;  %v1670_v52 = vadd.f32 %v15853_v58, %v1407_v62  ;;  %v2044_v24 = vmax.f32 %v1967_v43, %v2014_v37  ;;  %v1177_v28 = vpop.f32.mrf.mxu2  ;;  %v15855_v50 = vld [vmem:[#allocation131_spill] sm:$0xff]  ;;  %v15865_v38 = vld [vmem:[#allocation30_spill] sm:$0xff] }
 0x38c   :  { %15843 = vst [vmem:[#allocation43_spill] sm:$0xff] %v10901_v15  ;;  %v2154_v19 = vsub.f32 %v10898_v21, %v10913_v63  ;;  %3529 = vmatpush.msrb.mxu0 %v10901_v15  ;;  %v1843_v54 = vadd.f32 %v15854_v44, %v1622_v10  ;;  %v2092_v32 = vsel %vm2075_vm3, %v9315_v31, 0  ;;  %v2510_v26 = vrot.slane %v9315_v31, 4  ;;  %v1725_v39 = vpop.f32.mrf.mxu0  ;;  %v15857_v62 = vld [vmem:[#allocation63_spill] sm:$0xff] }
 0x38d   :  { %15847 = vst [vmem:[#allocation68_spill] sm:$0xff] %v10913_v63  ;;  %v1943_v53 = vadd.f32 %v1942_v29, %v1722_v12  ;;  %v1891_v14 = vadd.f32 %v15855_v50, %v1670_v52  ;;  %v10930_v18 = vand.u32 4294901760, %v2092_v32  ;;  %9316 = vtanh.f32 %v2044_v24  ;;  %v15858_v10 = vld [vmem:[#allocation79_spill] sm:$0xff]  ;;  %v15860_v29 = vld [vmem:[#allocation117_spill] sm:$0xff] }
 0x38e   :  { %v10932_v43 = vand.u32 4294901760, %v2154_v19  ;;  %v668_v37 = vadd.f32 %v10442_v36, %v15857_v62  ;;  %v10937_v58 = vsel %vm1999_vm2, %v2508_v49, %v2510_v26  ;;  %v1791_v44 = vadd.f32 %v15858_v10, %v1570_v51  ;;  %v15861_v19 = vld [vmem:[#allocation119_spill] sm:$0xff]  ;;  %v15864_v10 = vld [vmem:[#allocation64_spill] sm:$0xff] }
 0x38f   :  { %v1981_v3 = vmax.f32 %v1843_v54, %v1943_v53  ;;  %v10941_v31 = vsub.f32 %v2092_v32, %v10930_v18  ;;  %2241 = vmatmul.f32.gmra.mxu3 %v10930_v18  ;;  %v1413_v12 = vadd.f32 %v15860_v29, %v1108_v27  ;;  %v1113_v52 = vadd.f32 %v15861_v19, %v853_v8  ;;  %v15862_v54 = vld [vmem:[#allocation49_spill] sm:$0xff]  ;;  %v1496_v53 = vpop.f32.mrf.mxu3  ;;  %v15866_v27 = vld [vmem:[#allocation100_spill] sm:$0xff] }
 0x390   :  { %15856 = vst [vmem:[#allocation44_spill] sm:$0xff] %v10932_v43  ;;  %2156 = vmatmul.f32.gmra.mxu2 %v10932_v43  ;;  %v1491_v24 = vadd.f32 %v1490_v13, %v1173_v46  ;;  %3265 = vmatmul.f32.gmra.mxu0 %v10930_v18  ;;  %v857_v49 = vadd.f32 %v15862_v54, %v564_v55  ;;  %v15868_v19 = vld [vmem:[#allocation80_spill] sm:$0xff] }
 0x391   :  { %15859 = vst [vmem:[#allocation54_spill] sm:$0xff] %v10941_v31  ;;  %v2015_v50 = vrot.slane %v1981_v3, 4  ;;  %3315 = vmatmul.f32.gmra.mxu1 %v10930_v18  ;;  %v1178_v51 = vadd.f32 %v1177_v28, %v905_v0  ;;  %v1968_v32 = vmax.f32 %v1791_v44, %v1891_v14  ;;  %v10951_v62 = vand.u32 4294901760, %v10941_v31  ;;  %v15867_v3 = vld [vmem:[#allocation13_spill] sm:$0xff]  ;;  %v15870_v44 = vld [vmem:[#allocation24_spill] sm:$0xff] }
 0x392   :  { %v909_v15 = vadd.f32 %v15864_v10, %v668_v37  ;;  %v1626_v29 = vadd.f32 %v15866_v27, %v15865_v38  ;;  %v1726_v8 = vadd.f32 %v1725_v39, %v1491_v24  ;;  %v1574_v5 = vadd.f32 %v15868_v19, %v15867_v3  ;;  %v1946_v28 = vpop.f32.mrf.mxu1  ;;  %v15874_v19 = vld [vmem:[#allocation81_spill] sm:$0xff] }
 0x393   :  { %15863 = vst [vmem:[#allocation21_spill] sm:$0xff] %v10951_v62  ;;  %v2016_v13 = vsel %vm1999_vm2, %v2013_v35, %v2015_v50  ;;  %v9317_v46 = vpop.eup %9316  ;;  %v1674_v55 = vadd.f32 %v15869_v23, %v1413_v12  ;;  %v2161_v14 = vsub.f32 %v10941_v31, %v10951_v62  ;;  %v15872_v35 = vld [vmem:[#allocation133_spill] sm:$0xff]  ;;  %v1182_v23 = vpop.f32.mrf.mxu2 }
 0x394   :  { %v2045_v0 = vmax.f32 %v1968_v32, %v2016_v13  ;;  %v1847_v54 = vadd.f32 %v15870_v44, %v1626_v29  ;;  %v2095_v37 = vsel %vm2075_vm3, %v9317_v46, 0  ;;  %v10964_v10 = vrot.slane %v9317_v46, 4  ;;  %v1729_v27 = vpop.f32.mrf.mxu0  ;;  %v15873_v29 = vld [vmem:[#allocation122_spill] sm:$0xff] }
 0x395   :  { %v1947_v38 = vadd.f32 %v1946_v28, %v1726_v8  ;;  %v1895_v39 = vadd.f32 %v15872_v35, %v1674_v55  ;;  %v10967_v24 = vand.u32 4294901760, %v2095_v37  ;;  %v10969_v3 = vand.u32 4294901760, %v2161_v14  ;;  %v15876_v55 = vld [vmem:[#allocation50_spill] sm:$0xff]  ;;  %v15877_v28 = vld [vmem:[#allocation124_spill] sm:$0xff] }
 0x396   :  { %15871 = vst [vmem:[#allocation91_spill] sm:$0xff] %v10964_v10  ;;  %9318 = vtanh.f32 %v2045_v0  ;;  %v10973_v32 = vsel %vm1999_vm2, %v2510_v26, %v10964_v10  ;;  %v1419_v13 = vadd.f32 %v15873_v29, %v1113_v52  ;;  %v1795_v46 = vadd.f32 %v15874_v19, %v1574_v5  ;;  %v15878_v26 = vld [vmem:[#allocation65_spill] sm:$0xff]  ;;  %v15880_v35 = vld [vmem:[#allocation14_spill] sm:$0xff] }
 0x397   :  { %v1982_v12 = vmax.f32 %v1847_v54, %v1947_v38  ;;  %v10978_v8 = vsub.f32 %v2095_v37, %v10967_v24  ;;  %2245 = vmatmul.f32.gmra.mxu3 %v10967_v24  ;;  %v572_v0 = vadd.f32 %v10442_v36, %v15876_v55  ;;  %v1118_v14 = vadd.f32 %v15877_v28, %v857_v49  ;;  %v15881_v29 = vld [vmem:[#allocation82_spill] sm:$0xff]  ;;  %v15882_v55 = vld [vmem:[#allocation31_spill] sm:$0xff]  ;;  %v1502_v28 = vpop.f32.mrf.mxu3 }
 0x398   :  { %2163 = vmatmul.f32.gmra.mxu2 %v10969_v3  ;;  %v1497_v44 = vadd.f32 %v1496_v53, %v1178_v51  ;;  %3268 = vmatmul.f32.gmra.mxu0 %v10967_v24  ;;  %v676_v5 = vadd.f32 %v10442_v36, %v15878_v26  ;;  %v1183_v52 = vadd.f32 %v1182_v23, %v909_v15  ;;  %v15885_v23 = vld [vmem:[#allocation102_spill] sm:$0xff] }
 0x399   :  { %15875 = vst [vmem:[#allocation55_spill] sm:$0xff] %v10978_v8  ;;  %v2017_v54 = vrot.slane %v1982_v12, 4  ;;  %3318 = vmatmul.f32.gmra.mxu1 %v10967_v24  ;;  %v1969_v37 = vmax.f32 %v1795_v46, %v1895_v39  ;;  %v10990_v38 = vand.u32 4294901760, %v10978_v8  ;;  %v1578_v19 = vadd.f32 %v15881_v29, %v15880_v35 }
 0x39a   :  { %v1630_v49 = vadd.f32 %v15883_v22, %v15882_v55  ;;  %v1730_v53 = vadd.f32 %v1729_v27, %v1497_v44  ;;  %v1678_v4 = vadd.f32 %v15884_v40, %v1419_v13  ;;  %v1950_v36 = vpop.f32.mrf.mxu1  ;;  %v2518_v39 = vsel %vm2075_vm3, %v10821_v41, 0  ;;  %v15886_v27 = vld [vmem:[#allocation135_spill] sm:$0xff] }
 0x39b   :  { %15879 = vst [vmem:[#allocation8_spill] sm:$0xff] %v10990_v38  ;;  %v2018_v51 = vsel %vm1999_vm2, %v2015_v50, %v2017_v54  ;;  %v2169_v15 = vsub.f32 %v10978_v8, %v10990_v38  ;;  %v11012_v29 = vand.u32 4294901760, %v2518_v39  ;;  %v15887_v55 = vld [vmem:[#allocation51_spill] sm:$0xff] }
 0x39c   :  { %v9319_v12 = vpop.eup %9318  ;;  %v2046_v20 = vmax.f32 %v1969_v37, %v2018_v51  ;;  %v1851_v46 = vadd.f32 %v15885_v23, %v1630_v49  ;;  %v1951_v50 = vadd.f32 %v1950_v36, %v1730_v53  ;;  %v1899_v44 = vadd.f32 %v15886_v27, %v1678_v4  ;;  %v1733_v40 = vpop.f32.mrf.mxu0  ;;  %v15888_v51 = vld [vmem:[#allocation83_spill] sm:$0xff]  ;;  %v15891_v23 = vld [vmem:[#allocation126_spill] sm:$0xff] }
 0x39d   :  { %v11004_v26 = vsel %vm2075_vm3, %v9319_v12, 0  ;;  %v3340_v22 = vrot.slane %v9319_v12, 4  ;;  %v11010_v13 = vand.u32 4294901760, %v2169_v15  ;;  %v861_v49 = vadd.f32 %v15887_v55, %v572_v0  ;;  %v15890_v12 = vld [vmem:[#allocation66_spill] sm:$0xff]  ;;  %v15892_v0 = vld [vmem:[#allocation32_spill] sm:$0xff]  ;;  %v15893_v55 = vld [vmem:[#allocation103_spill] sm:$0xff] }
 0x39e   :  { %v11008_v35 = vand.u32 4294901760, %v11004_v26  ;;  %9320 = vtanh.f32 %v2046_v20  ;;  %v1983_v37 = vmax.f32 %v1851_v46, %v1951_v50  ;;  %v1799_v53 = vadd.f32 %v15888_v51, %v1578_v19  ;;  %v1187_v50 = vpop.f32.mrf.mxu2 }
 0x39f   :  { %v11016_v41 = vsel %vm1999_vm2, %v10964_v10, %v3340_v22  ;;  %v15889_v4 = vand.u32 4294901760, %v10644_v60  ;;  %v1503_v20 = vadd.f32 %v1502_v28, %v1183_v52  ;;  %v913_v36 = vadd.f32 %v15890_v12, %v676_v5  ;;  %v15894_v5 = vld [vmem:[#allocation129_spill] sm:$0xff] }
 0x3a0   :  { %2171 = vmatmul.f32.gmra.mxu2 %v11010_v13  ;;  %v2019_v15 = vrot.slane %v1983_v37, 4  ;;  %3272 = vmatmul.f32.gmra.mxu0 %v11008_v35  ;;  %v1425_v46 = vadd.f32 %v15891_v23, %v1118_v14  ;;  %v1970_v27 = vmax.f32 %v1799_v53, %v1899_v44  ;;  %v1634_v19 = vadd.f32 %v15893_v55, %v15892_v0  ;;  %v15895_v37 = vld [vmem:[#allocation136_spill] sm:$0xff] }
 0x3a1   :  { %2337 = vmatmul.f32.vlgmr.msra.gmra.mxu3 %v15889_v4  ;;  %3322 = vmatmul.f32.gmra.mxu1 %v11008_v35  ;;  %v1734_v45 = vadd.f32 %v1733_v40, %v1503_v20  ;;  %v11031_v4 = vsub.f32 %v2518_v39, %v11012_v29  ;;  %v1123_v28 = vadd.f32 %v15894_v5, %v861_v49  ;;  %v2520_v14 = vsel %vm2075_vm3, %v10892_v7, 0  ;;  %v15896_v53 = vld [vmem:[#allocation104_spill] sm:$0xff]  ;;  %v1508_v20 = vpop.f32.mrf.mxu3  ;;  %v15897_v39 = vld [vmem:[#allocation15_spill] sm:$0xff]  ;;  %v15903_v5 = vld [vmem:[#allocation86_spill] sm:$0xff] }
 0x3a2   :  { %v2020_v51 = vsel %vm1999_vm2, %v2017_v54, %v2019_v15  ;;  %v1682_v12 = vadd.f32 %v15895_v37, %v1425_v46  ;;  %v1954_v61 = vpop.f32.mrf.mxu1  ;;  %v1188_v44 = vadd.f32 %v1187_v50, %v913_v36  ;;  %v1855_v23 = vadd.f32 %v15896_v53, %v1634_v19  ;;  %v15898_v0 = vld [vmem:[#allocation84_spill] sm:$0xff]  ;;  %v15900_v36 = vld [vmem:[#allocation85_spill] sm:$0xff] }
 0x3a3   :  { %v2047_v1 = vmax.f32 %v1970_v27, %v2020_v51  ;;  %v1955_v40 = vadd.f32 %v1954_v61, %v1734_v45  ;;  %v1582_v55 = vadd.f32 %v15898_v0, %v15897_v39  ;;  %v11045_v46 = vand.u32 4294901760, %v11031_v4  ;;  %v15901_v61 = vld [vmem:[#allocation130_spill] sm:$0xff]  ;;  %v15902_v51 = vld [vmem:[#allocation16_spill] sm:$0xff] }
 0x3a4   :  { %v11033_v52 = vpop.eup %9320  ;;  %v1903_v17 = vadd.f32 %v15899_v59, %v1682_v12  ;;  %v11047_v27 = vand.u32 4294901760, %v2520_v14  ;;  %v1737_v19 = vpop.f32.mrf.mxu0  ;;  %v1431_v45 = vadd.f32 %v15901_v61, %v1123_v28  ;;  %v1509_v59 = vadd.f32 %v1508_v20, %v1188_v44  ;;  %v15905_v12 = vld [vmem:[#allocation106_spill] sm:$0xff] }
 0x3a5   :  { %v3342_v54 = vrot.slane %v11033_v52, 4  ;;  %9322 = vtanh.f32 %v2047_v1  ;;  %v1984_v49 = vmax.f32 %v1855_v23, %v1955_v40  ;;  %v1803_v50 = vadd.f32 %v15900_v36, %v1582_v55  ;;  %v15906_v40 = vld [vmem:[#allocation138_spill] sm:$0xff] }
 0x3a6   :  { %v1586_v37 = vadd.f32 %v15903_v5, %v15902_v51  ;;  %v1686_v39 = vadd.f32 %v15906_v40, %v1431_v45  ;;  %v1738_v44 = vadd.f32 %v1737_v19, %v1509_v59  ;;  %v11067_v20 = vsub.f32 %v2520_v14, %v11047_v27  ;;  %v9177_v0 = vld [vmem:[%s15234_s3 + $0xe8] sm:$0xff]  ;;  %v9176_v14 = vld [vmem:[%s15234_s3 + $0xe0] sm:$0xff]  ;;  %v15910_v5 = vld [vmem:[#allocation87_spill] sm:$0xff] }
 0x3a7   :  { %v11050_v7 = vsel %vm1999_vm2, %v3340_v22, %v3342_v54  ;;  %v2021_v1 = vrot.slane %v1984_v49, 4  ;;  %v15904_v22 = vld [vmem:[#allocation33_spill] sm:$0xff]  ;;  %v1971_v23 = vmax.f32 %v1803_v50, %v1903_v17  ;;  %v15907_v49 = vld [vmem:[#allocation107_spill] sm:$0xff]  ;;  %v11075_v61 = vand.u32 4294901760, %v9177_v0  ;;  %v15909_v45 = vld [vmem:[#allocation142_spill] sm:$0xff] }
 0x3a8   :  { %2279 = vmatmul.f32.vlgmr.msra.gmra.mxu2 %v10644_v60  ;;  %3532 = vmatmul.f32.vlgmr.msrb.gmra.mxu0 %v11031_v4  ;;  %v1638_v53 = vadd.f32 %v15905_v12, %v15904_v22  ;;  %v2522_v60 = vsel %vm2075_vm3, %v10937_v58, 0  ;;  %v3348_v58 = vsel %vm2075_vm3, %v3342_v54, 0  ;;  %v1807_v22 = vadd.f32 %v15910_v5, %v1586_v37 }
 0x3a9   :  { %2343 = vmatmul.f32.gmra.mxu3 %v10707_v30  ;;  %3590 = vmatmul.f32.vlgmr.msrb.gmra.mxu1 %v11045_v46  ;;  %v2022_v28 = vsel %vm1999_vm2, %v2019_v15, %v2021_v1  ;;  %15908 = vst [vmem:[#allocation69_spill] sm:$0xff] %v11075_v61  ;;  %v1907_v15 = vadd.f32 %v15909_v45, %v1686_v39  ;;  %v11079_v59 = vand.u32 4294901760, %v2522_v60  ;;  %v11095_v40 = vand.u32 4294901760, %v11067_v20  ;;  %v9174_v45 = vld [vmem:[%s15234_s3 + $0xd0] sm:$0xff] }
 0x3aa   :  { %v1859_v36 = vadd.f32 %v15907_v49, %v1638_v53  ;;  %v2048_v17 = vmax.f32 %v1971_v23, %v2022_v28  ;;  %v1958_v50 = vpop.f32.mrf.mxu1  ;;  %3770 = vmatpush.msra.mxu0 %v11075_v61  ;;  %v11090_v12 = vsub.f32 %v9177_v0, %v11075_v61  ;;  %v11092_v53 = vand.u32 4294901760, %v9176_v14  ;;  %v9175_v28 = vld [vmem:[%s15234_s3 + $0xd8] sm:$0xff] }
 0x3ab   :  { %v11072_v55 = vpop.eup %9322  ;;  %v1959_v19 = vadd.f32 %v1958_v50, %v1738_v44  ;;  %v11097_v39 = vand.u32 4294901760, %v3348_v58  ;;  %v11112_v49 = vand.u32 4294901760, %v9175_v28 }
 0x3ac   :  { %v11085_v51 = vrot.slane %v11072_v55, 4  ;;  %15911 = vst [vmem:[#allocation92_spill] sm:$0xff] %v11090_v12  ;;  %v3849_v44 = vand.u32 4294901760, %v11090_v12  ;;  %v11110_v0 = vsub.f32 %v9176_v14, %v11092_v53  ;;  %9324 = vtanh.f32 %v2048_v17  ;;  %3772 = vmatpush.msra.mxu0 %v11092_v53 }
 0x3ad   :  { %15912 = vst [vmem:[#allocation114_spill] sm:$0xff] %v11092_v53  ;;  %v1985_v23 = vmax.f32 %v1859_v36, %v1959_v19  ;;  %v1972_v36 = vmax.f32 %v1807_v22, %v1907_v15  ;;  %v11128_v17 = vsub.f32 %v9175_v28, %v11112_v49  ;;  %v11130_v14 = vand.u32 4294901760, %v9174_v45 }
 0x3ae   :  { %15913 = vst [vmem:[#allocation116_spill] sm:$0xff] %v11097_v39  ;;  %v11104_v37 = vsel %vm1999_vm2, %v3342_v54, %v11085_v51  ;;  %v11119_v54 = vsub.f32 %v2522_v60, %v11079_v59  ;;  %v3850_v19 = vsub.f32 %v11090_v12, %v3849_v44  ;;  %v3855_v15 = vand.u32 4294901760, %v11110_v0  ;;  %3774 = vmatpush.msra.mxu0 %v11112_v49 }
 0x3af   :  { %15914 = vst [vmem:[#allocation108_spill] sm:$0xff] %v11104_v37  ;;  %v11114_v50 = vrot.slane %v1985_v23, 4  ;;  %v2524_v60 = vsel %vm2075_vm3, %v10973_v32, 0  ;;  %v11137_v22 = vsub.f32 %v3348_v58, %v11097_v39  ;;  %v9173_v23 = vld [vmem:[%s15234_s3 + $0xc8] sm:$0xff]  ;;  %v11149_v32 = vsub.f32 %v9174_v45, %v11130_v14  ;;  %v9172_v39 = vld [vmem:[%s15234_s3 + $0xc0] sm:$0xff] }
 0x3b0   :  { %2284 = vmatmul.f32.gmra.mxu2 %v10695_v42  ;;  %15915 = vst [vmem:[#allocation109_spill] sm:$0xff] %v11110_v0  ;;  %3537 = vmatmul.f32.gmra.mxu0 %v11067_v20  ;;  %v3856_v28 = vsub.f32 %v11110_v0, %v3855_v15  ;;  %v3861_v42 = vand.u32 4294901760, %v11128_v17  ;;  %v11151_v58 = vand.u32 4294901760, %v9173_v23  ;;  %v11162_v0 = vand.u32 4294901760, %v2524_v60 }
 0x3b1   :  { %2349 = vmatmul.f32.gmra.mxu3 %v10768_v56  ;;  %15916 = vst [vmem:[#allocation111_spill] sm:$0xff] %v11112_v49  ;;  %3596 = vmatmul.f32.gmra.mxu1 %v11095_v40  ;;  %v2024_v5 = vsel %vm1999_vm2, %v2021_v1, %v11114_v50  ;;  %v3851_v56 = vand.u32 4294901760, %v3850_v19  ;;  %v11146_v1 = vand.u32 4294901760, %v11119_v54  ;;  %v3867_v30 = vand.u32 4294901760, %v11149_v32 }
 0x3b2   :  { %15917 = vst [vmem:[#allocation70_spill] sm:$0xff] %v11114_v50  ;;  %v2049_v12 = vmax.f32 %v1972_v36, %v2024_v5  ;;  %v3857_v36 = vand.u32 4294901760, %v3856_v28  ;;  %v3862_v19 = vsub.f32 %v11128_v17, %v3861_v42  ;;  %3776 = vmatpush.msra.mxu0 %v11130_v14  ;;  %v11158_v5 = vand.u32 4294901760, %v9172_v39  ;;  %v11160_v50 = vpop.eup %9324 }
 0x3b3   :  { %15918 = vst [vmem:[#allocation45_spill] sm:$0xff] %v11128_v17  ;;  %3852 = vmatpush.msra.mxu1 %v3851_v56  ;;  %v11167_v37 = vsub.f32 %v9173_v23, %v11151_v58  ;;  %v3868_v28 = vsub.f32 %v11149_v32, %v3867_v30  ;;  %v4983_v17 = vrot.slane %v11160_v50, 4 }
 0x3b4   :  { %15919 = vst [vmem:[#allocation56_spill] sm:$0xff] %v11130_v14  ;;  %9326 = vtanh.f32 %v2049_v12  ;;  %v3863_v56 = vand.u32 4294901760, %v3862_v19  ;;  %v11172_v12 = vsub.f32 %v9172_v39, %v11158_v5  ;;  %3778 = vmatpush.msra.mxu0 %v11151_v58  ;;  %v11182_v19 = vsub.f32 %v2524_v60, %v11162_v0 }
 0x3b5   :  { %15920 = vst [vmem:[#allocation57_spill] sm:$0xff] %v11149_v32  ;;  %v3873_v45 = vand.u32 4294901760, %v11167_v37  ;;  %3858 = vmatpush.msra.mxu1 %v3857_v36  ;;  %v3869_v39 = vand.u32 4294901760, %v3868_v28  ;;  %v3344_v36 = vsel %vm2075_vm3, %v11016_v41, 0  ;;  %v11198_v60 = vsel %vm1999_vm2, %v11085_v51, %v4983_v17 }
 0x3b6   :  { %15921 = vst [vmem:[#allocation72_spill] sm:$0xff] %v11151_v58  ;;  %v3879_v23 = vand.u32 4294901760, %v11172_v12  ;;  %3780 = vmatpush.msra.mxu0 %v11158_v5 }
 0x3b7   :  { %15922 = vst [vmem:[#allocation9_spill] sm:$0xff] %v11158_v5  ;;  %3864 = vmatpush.msra.mxu1 %v3863_v56 }
 0x3b8   :  { %15923 = vst [vmem:[#allocation71_spill] sm:$0xff] %v11160_v50  ;;  %2289 = vmatmul.f32.gmra.mxu2 %v10751_v48  ;;  %3542 = vmatmul.f32.gmra.mxu0 %v11119_v54  ;;  %v15926_v48 = vand.u32 4294901760, %v11137_v22  ;;  %v3880_v50 = vsub.f32 %v11172_v12, %v3879_v23 }
 0x3b9   :  { %15924 = vst [vmem:[#allocation23_spill] sm:$0xff] %v11167_v37  ;;  %2355 = vmatmul.f32.gmra.mxu3 %v10845_v2  ;;  %3602 = vmatmul.f32.gmra.mxu1 %v11146_v1  ;;  %v3874_v2 = vsub.f32 %v11167_v37, %v3873_v45  ;;  %v11204_v37 = vand.u32 4294901760, %v3344_v36 }
 0x3ba   :  { %15925 = vst [vmem:[#allocation93_spill] sm:$0xff] %v11172_v12  ;;  %v11188_v10 = vsub.f32 %v11137_v22, %v15926_v48  ;;  %v11190_v32 = vpop.eup %9326  ;;  %4051 = vmatpush.msrb.mxu0 %v3849_v44  ;;  %3870 = vmatpush.msra.mxu1 %v3869_v39  ;;  %v3881_v41 = vand.u32 4294901760, %v3880_v50  ;;  %v3346_v44 = vsel %vm2075_vm3, %v11050_v7, 0  ;;  %v15936_v7 = vand.u32 4294901760, %v11137_v22 }
 0x3bb   :  { %15928 = vst [vmem:[#allocation88_spill] sm:$0xff] %v11198_v60  ;;  %v3875_v28 = vand.u32 4294901760, %v3874_v2  ;;  %v15331_v48 = vrot.slane %v11190_v32, 4  ;;  %v11216_v2 = vsub.f32 %v3344_v36, %v11204_v37 }
 0x3bc   :  { %15927 = vst [vmem:[#allocation118_spill] sm:$0xff] %v11188_v10  ;;  %v11202_v10 = vand.u32 4294901760, %v11182_v19  ;;  %4055 = vmatpush.msrb.mxu0 %v3855_v15  ;;  %v11224_v15 = vand.u32 4294901760, %v3346_v44 }
 0x3bd   :  { %15929 = vst [vmem:[#allocation94_spill] sm:$0xff] %v11204_v37  ;;  %v11211_v56 = vsel %vm1999_vm2, %v4983_v17, %v15331_v48  ;;  %3876 = vmatpush.msra.mxu1 %v3875_v28  ;;  %v11222_v50 = vand.u32 4294901760, %v11216_v2  ;;  %v9159_v17 = vld [vmem:[%s15234_s3 + $0x58] sm:$0xff] }
 0x3be   :  { %15930 = vst [vmem:[#allocation120_spill] sm:$0xff] %v11211_v56  ;;  %4059 = vmatpush.msrb.mxu0 %v3861_v42  ;;  %v11233_v42 = vsub.f32 %v3346_v44, %v11224_v15 }
 0x3bf   :  { %15931 = vst [vmem:[#allocation46_spill] sm:$0xff] %v11216_v2  ;;  %3882 = vmatpush.msra.mxu1 %v3881_v41 }
 0x3c0   :  { %2294 = vmatmul.f32.gmra.mxu2 %v10829_v6  ;;  %3547 = vmatmul.f32.gmra.mxu0 %v11182_v19  ;;  %15932 = vst [vmem:[#allocation73_spill] sm:$0xff] %v11222_v50 }
 0x3c1   :  { %2361 = vmatmul.f32.gmra.mxu3 %v10913_v63  ;;  %3608 = vmatmul.f32.gmra.mxu1 %v11202_v10  ;;  %15933 = vst [vmem:[#allocation58_spill] sm:$0xff] %v11224_v15  ;;  %v9155_v15 = vld [vmem:[%s15234_s3 + $0x38] sm:$0xff] }
 0x3c2   :  { %4063 = vmatpush.msrb.mxu0 %v3867_v30  ;;  %4111 = vmatpush.msrb.mxu1 %v11075_v61  ;;  %15934 = vst [vmem:[#allocation59_spill] sm:$0xff] %v11233_v42  ;;  %v11238_v30 = vand.u32 4294901760, %v11233_v42 }
 0x3c4   :  { %4067 = vmatpush.msrb.mxu0 %v3873_v45  ;;  %4113 = vmatpush.msrb.mxu1 %v11092_v53  ;;  %15935 = vst [vmem:[#allocation25_spill] sm:$0xff] %v11238_v30  ;;  %v11253_v45 = vand.u32 4294901760, %v9159_v17 }
 0x3c6   :  { %4115 = vmatpush.msrb.mxu1 %v11112_v49  ;;  %4071 = vmatpush.msrb.mxu0 %v3879_v23  ;;  %v9158_v23 = vld [vmem:[%s15234_s3 + $0x50] sm:$0xff]  ;;  %v11259_v39 = vsub.f32 %v9159_v17, %v11253_v45 }
 0x3c7   :  { %v11261_v36 = vand.u32 4294901760, %v9158_v23  ;;  %2539 = vmatpush.msra.mxu2 %v11253_v45 }
 0x3c8   :  { %2299 = vmatmul.f32.gmra.mxu2 %v10898_v21  ;;  %3552 = vmatmul.f32.gmra.mxu0 %v11216_v2  ;;  %v15337_v28 = vand.u32 4294901760, %v11259_v39 }
 0x3c9   :  { %2366 = vmatmul.f32.gmra.mxu3 %v10951_v62  ;;  %3614 = vmatmul.f32.gmra.mxu1 %v11222_v50  ;;  %v11271_v41 = vsub.f32 %v9158_v23, %v11261_v36 }
 0x3ca   :  { %4117 = vmatpush.msrb.mxu1 %v11130_v14  ;;  %2541 = vmatpush.msra.mxu2 %v11261_v36 }
 0x3cb   :  { %v15341_v17 = vand.u32 4294901760, %v11271_v41 }
 0x3cc   :  { %4119 = vmatpush.msrb.mxu1 %v11151_v58  ;;  %v9154_v58 = vld [vmem:[%s15234_s3 + $0x30] sm:$0xff] }
 0x3cd   :  { %v2625_v12 = vsub.f32 %v11271_v41, %v15341_v17  ;;  %v11310_v49 = vand.u32 4294901760, %v9154_v58 }
 0x3ce   :  { %4121 = vmatpush.msrb.mxu1 %v11158_v5 }
 0x3cf   :  { %v2626_v14 = vand.u32 4294901760, %v2625_v12  ;;  %v11322_v12 = vsub.f32 %v9154_v58, %v11310_v49 }
 0x3d0   :  { %2303 = vmatmul.f32.gmra.mxu2 %v10941_v31  ;;  %3556 = vmatmul.f32.gmra.mxu0 %v11233_v42 }
 0x3d1   :  { %2372 = vmatmul.f32.gmra.mxu3 %v10990_v38  ;;  %3619 = vmatmul.f32.gmra.mxu1 %v11238_v30  ;;  %v15349_v61 = vand.u32 4294901760, %v11322_v12 }
 0x3d3   :  { %v2649_v58 = vsub.f32 %v11322_v12, %v15349_v61  ;;  %v11349_v61 = vsub.f32 %v11004_v26, %v11008_v35 }
 0x3d5   :  { %15939 = vst [vmem:[#allocation74_spill] sm:$0xff] %v11349_v61 }
 0x3d8   :  { %2308 = vmatmul.f32.gmra.mxu2 %v10978_v8  ;;  %3561 = vmatmul.f32.gmra.mxu0 %v11137_v22  ;;  %v9157_v22 = vld [vmem:[%s15234_s3 + $0x48] sm:$0xff] }
 0x3d9   :  { %2461 = vmatmul.f32.vlgmr.msrb.gmra.mxu3 %v10633_v33  ;;  %3625 = vmatmul.f32.gmra.mxu1 %v15936_v7  ;;  %v11273_v44 = vand.u32 4294901760, %v9157_v22  ;;  %v9156_v7 = vld [vmem:[%s15234_s3 + $0x40] sm:$0xff] }
 0x3da   :  { %v11287_v23 = vand.u32 4294901760, %v9156_v7 }
 0x3db   :  { %v11285_v48 = vsub.f32 %v9157_v22, %v11273_v44  ;;  %2543 = vmatpush.msra.mxu2 %v11273_v44  ;;  %v11301_v22 = vand.u32 4294901760, %v9155_v15 }
 0x3dc   :  { %v11298_v5 = vsub.f32 %v9156_v7, %v11287_v23 }
 0x3dd   :  { %2545 = vmatpush.msra.mxu2 %v11287_v23  ;;  %v11314_v7 = vsub.f32 %v9155_v15, %v11301_v22 }
 0x3de   :  { %v15346_v17 = vand.u32 4294901760, %v11298_v5 }
 0x3df   :  { %2547 = vmatpush.msra.mxu2 %v11301_v22 }
 0x3e0   :  { %2411 = vmatmul.f32.vlgmr.msrb.gmra.mxu2 %v10633_v33  ;;  %3786 = vmatmul.f32.vlgmr.msra.gmra.mxu0 %v10878_v25  ;;  %v2619_v33 = vsub.f32 %v11259_v39, %v15337_v28  ;;  %v15344_v28 = vand.u32 4294901760, %v11285_v48 }
 0x3e1   :  { %2465 = vmatmul.f32.gmra.mxu3 %v10677_v16  ;;  %3884 = vmatmul.f32.vlgmr.msra.gmra.mxu1 %v10803_v11 }
 0x3e2   :  { %v2620_v37 = vand.u32 4294901760, %v2619_v33  ;;  %v2631_v33 = vsub.f32 %v11285_v48, %v15344_v28  ;;  %v15350_v28 = vand.u32 4294901760, %v11314_v7  ;;  %2549 = vmatpush.msra.mxu2 %v11310_v49 }
 0x3e4   :  { %2621 = vmatpush.msra.mxu3 %v2620_v37  ;;  %v2632_v53 = vand.u32 4294901760, %v2631_v33  ;;  %v2637_v37 = vsub.f32 %v11298_v5, %v15346_v17  ;;  %v2643_v17 = vsub.f32 %v11314_v7, %v15350_v28  ;;  %2692 = vmatpush.msrb.mxu2 %v11259_v39  ;;  %v3754_v28 = vsel %vm2075_vm3, %v11033_v52, 0 }
 0x3e5   :  { %v11362_v26 = vand.u32 4294901760, %v3754_v28 }
 0x3e6   :  { %2627 = vmatpush.msra.mxu3 %v2626_v14  ;;  %v2638_v15 = vand.u32 4294901760, %v2637_v37  ;;  %v2644_v8 = vand.u32 4294901760, %v2643_v17  ;;  %2695 = vmatpush.msrb.mxu2 %v11271_v41 }
 0x3e8   :  { %2415 = vmatmul.f32.gmra.mxu2 %v10677_v16  ;;  %3794 = vmatmul.f32.gmra.mxu0 %v10932_v43 }
 0x3e9   :  { %2469 = vmatmul.f32.gmra.mxu3 %v10733_v47  ;;  %3888 = vmatmul.f32.gmra.mxu1 %v10876_v9  ;;  %v2223_v33 = vpop.f32.mrf.mxu3 }
 0x3ea   :  { %2633 = vmatpush.msra.mxu3 %v2632_v53  ;;  %v2650_v53 = vand.u32 4294901760, %v2649_v58  ;;  %2698 = vmatpush.msrb.mxu2 %v11285_v48 }
 0x3ec   :  { %v11337_v14 = vpop.f32.mrf.mxu0  ;;  %v11339_v37 = vpop.f32.mrf.mxu1  ;;  %2639 = vmatpush.msra.mxu3 %v2638_v15  ;;  %2701 = vmatpush.msrb.mxu2 %v11298_v5 }
 0x3ed   :  { %15937 = vst [vmem:[#allocation95_spill] sm:$0xff] %v11337_v14  ;;  %v11365_v14 = vand.u32 4294901760, %v11349_v61 }
 0x3ee   :  { %15938 = vst [vmem:[#allocation10_spill] sm:$0xff] %v11339_v37  ;;  %2645 = vmatpush.msra.mxu3 %v2644_v8  ;;  %2704 = vmatpush.msrb.mxu2 %v11314_v7 }
 0x3ef   :  { %15942 = vst [vmem:[#allocation123_spill] sm:$0xff] %v11365_v14 }
 0x3f0   :  { %2419 = vmatmul.f32.gmra.mxu2 %v10733_v47  ;;  %3802 = vmatmul.f32.gmra.mxu0 %v10969_v3 }
 0x3f1   :  { %2473 = vmatmul.f32.gmra.mxu3 %v10803_v11  ;;  %3892 = vmatmul.f32.gmra.mxu1 %v10930_v18  ;;  %v2125_v15 = vpop.f32.mrf.mxu2  ;;  %v2227_v17 = vpop.f32.mrf.mxu3 }
 0x3f2   :  { %v11353_v37 = vadd.f32 %v2223_v33, %v2125_v15  ;;  %2651 = vmatpush.msra.mxu3 %v2650_v53  ;;  %2707 = vmatpush.msrb.mxu2 %v11322_v12  ;;  %v3007_v53 = vsub.f32 %v11349_v61, %v11365_v14  ;;  %v11377_v15 = vsub.f32 %v3754_v28, %v11362_v26 }
 0x3f4   :  { %2754 = vmatpush.msrb.mxu3 %v11253_v45  ;;  %v11357_v58 = vpop.f32.mrf.mxu0  ;;  %v11359_v8 = vpop.f32.mrf.mxu1  ;;  %15943 = vst [vmem:[#allocation75_spill] sm:$0xff] %v11377_v15  ;;  %v11391_v62 = vand.u32 4294901760, %v3007_v53  ;;  %v11394_v28 = vand.u32 4294901760, %v11377_v15  ;;  %v2514_v53 = vsel %vm2075_vm3, %v10687_v57, 0 }
 0x3f5   :  { %15940 = vst [vmem:[#allocation96_spill] sm:$0xff] %v11357_v58  ;;  %v11414_v21 = vand.u32 4294901760, %v2514_v53 }
 0x3f6   :  { %15941 = vst [vmem:[#allocation121_spill] sm:$0xff] %v11359_v8  ;;  %2756 = vmatpush.msrb.mxu3 %v11261_v36  ;;  %v3757_v8 = vsel %vm2075_vm3, %v11072_v55, 0 }
 0x3f7   :  { %v11389_v56 = vand.u32 4294901760, %v3757_v8  ;;  %15946 = vst [vmem:[#allocation97_spill] sm:$0xff] %v11394_v28  ;;  %v11426_v57 = vsub.f32 %v2514_v53, %v11414_v21 }
 0x3f8   :  { %2423 = vmatmul.f32.gmra.mxu2 %v10803_v11  ;;  %3810 = vmatmul.f32.gmra.mxu0 %v11010_v13 }
 0x3f9   :  { %2477 = vmatmul.f32.gmra.mxu3 %v10876_v9  ;;  %3896 = vmatmul.f32.gmra.mxu1 %v10967_v24  ;;  %v2133_v52 = vpop.f32.mrf.mxu2  ;;  %v2231_v33 = vpop.f32.mrf.mxu3 }
 0x3fa   :  { %2758 = vmatpush.msrb.mxu3 %v11273_v44  ;;  %v11381_v58 = vadd.f32 %v2227_v17, %v2133_v52  ;;  %v3823_v52 = vsub.f32 %v11377_v15, %v11394_v28 }
 0x3fc   :  { %2760 = vmatpush.msrb.mxu3 %v11287_v23  ;;  %v11384_v38 = vpop.f32.mrf.mxu0  ;;  %v11416_v60 = vand.u32 4294901760, %v3823_v52  ;;  %v2516_v52 = vsel %vm2075_vm3, %v10745_v34, 0 }
 0x3fd   :  { %15944 = vst [vmem:[#allocation60_spill] sm:$0xff] %v11384_v38  ;;  %v11386_v31 = vpop.f32.mrf.mxu1  ;;  %v11435_v6 = vand.u32 4294901760, %v2516_v52 }
 0x3fe   :  { %15945 = vst [vmem:[#allocation27_spill] sm:$0xff] %v11386_v31  ;;  %2762 = vmatpush.msrb.mxu3 %v11301_v22  ;;  %v11406_v31 = vsub.f32 %v3757_v8, %v11389_v56 }
 0x400   :  { %2427 = vmatmul.f32.gmra.mxu2 %v10876_v9  ;;  %3818 = vmatmul.f32.gmra.mxu0 %v11391_v62  ;;  %15947 = vst [vmem:[#allocation11_spill] sm:$0xff] %v11406_v31  ;;  %v11419_v63 = vand.u32 4294901760, %v11406_v31 }
 0x401   :  { %2480 = vmatmul.f32.gmra.mxu3 %v10930_v18  ;;  %3900 = vmatmul.f32.gmra.mxu1 %v11008_v35  ;;  %v2235_v17 = vpop.f32.mrf.mxu3 }
 0x402   :  { %2764 = vmatpush.msrb.mxu3 %v11310_v49  ;;  %v2141_v55 = vpop.f32.mrf.mxu2  ;;  %15950 = vst [vmem:[#allocation98_spill] sm:$0xff] %v11419_v63 }
 0x403   :  { %v11408_v38 = vadd.f32 %v2231_v33, %v2141_v55  ;;  %v3831_v55 = vsub.f32 %v11406_v31, %v11419_v63 }
 0x405   :  { %v11410_v61 = vpop.f32.mrf.mxu0  ;;  %v11412_v14 = vpop.f32.mrf.mxu1  ;;  %v11437_v43 = vand.u32 4294901760, %v3831_v55 }
 0x406   :  { %15948 = vst [vmem:[#allocation76_spill] sm:$0xff] %v11410_v61  ;;  %v15372_v61 = vand.u32 4294901760, %v11426_v57 }
 0x407   :  { %15949 = vst [vmem:[#allocation125_spill] sm:$0xff] %v11412_v14 }
 0x408   :  { %2430 = vmatmul.f32.gmra.mxu2 %v10930_v18  ;;  %3825 = vmatmul.f32.gmra.mxu0 %v11416_v60  ;;  %v2553_v34 = vsub.f32 %v11426_v57, %v15372_v61 }
 0x409   :  { %2484 = vmatmul.f32.gmra.mxu3 %v10967_v24  ;;  %3903 = vmatmul.f32.gmra.mxu1 %v11362_v26  ;;  %v2239_v33 = vpop.f32.mrf.mxu3 }
 0x40a   :  { %v2149_v8 = vpop.f32.mrf.mxu2  ;;  %v2554_v33 = vand.u32 4294901760, %v2553_v34 }
 0x40b   :  { %v11432_v15 = vadd.f32 %v2235_v17, %v2149_v8 }
 0x40d   :  { %v3266_v28 = vpop.f32.mrf.mxu0 }
 0x40e   :  { %v3316_v14 = vpop.f32.mrf.mxu1 }
 0x40f   :  { %v11447_v14 = vsub.f32 %v2516_v52, %v11435_v6 }
 0x410   :  { %2434 = vmatmul.f32.gmra.mxu2 %v10967_v24  ;;  %3833 = vmatmul.f32.gmra.mxu0 %v11437_v43 }
 0x411   :  { %2653 = vmatmul.f32.vlgmr.msra.gmra.mxu3 %v11414_v21  ;;  %3907 = vmatmul.f32.gmra.mxu1 %v11389_v56  ;;  %v15375_v55 = vand.u32 4294901760, %v11447_v14 }
 0x412   :  { %2880 = vmatpush.msra.mxu3 %v11253_v45  ;;  %v2242_v17 = vpop.f32.mrf.mxu3 }
 0x413   :  { %v2157_v28 = vpop.f32.mrf.mxu2  ;;  %v2561_v45 = vsub.f32 %v11447_v14, %v15375_v55 }
 0x414   :  { %2882 = vmatpush.msra.mxu3 %v11261_v36  ;;  %v15953_v36 = vand.u32 4294901760, %v11259_v39  ;;  %v9183_v39 = vld [vmem:[%s15234_s3 + $0x118] sm:$0xff] }
 0x415   :  { %v11451_v53 = vpop.f32.mrf.mxu0  ;;  %v2562_v31 = vand.u32 4294901760, %v2561_v45 }
 0x416   :  { %15951 = vst [vmem:[#allocation127_spill] sm:$0xff] %v11451_v53  ;;  %v11453_v8 = vpop.f32.mrf.mxu1  ;;  %2884 = vmatpush.msra.mxu3 %v11273_v44  ;;  %v15954_v44 = vand.u32 4294901760, %v11271_v41  ;;  %v2569_v41 = vsub.f32 %v11031_v4, %v11045_v46 }
 0x417   :  { %15952 = vst [vmem:[#allocation112_spill] sm:$0xff] %v11453_v8 }
 0x418   :  { %2555 = vmatmul.f32.vlgmr.msra.gmra.mxu2 %v2554_v33  ;;  %4073 = vmatmul.f32.vlgmr.msrb.gmra.mxu0 %v10803_v11 }
 0x419   :  { %2657 = vmatmul.f32.gmra.mxu3 %v11435_v6  ;;  %4123 = vmatmul.f32.vlgmr.msrb.gmra.mxu1 %v10803_v11 }
 0x41a   :  { %2886 = vmatpush.msra.mxu3 %v11287_v23  ;;  %2820 = vmatpush.msra.mxu2 %v15953_v36  ;;  %v2246_v34 = vpop.f32.mrf.mxu3  ;;  %v15957_v23 = vand.u32 4294901760, %v11285_v48 }
 0x41b   :  { %v2164_v52 = vpop.f32.mrf.mxu2 }
 0x41c   :  { %v11466_v28 = vadd.f32 %v2242_v17, %v2164_v52  ;;  %2888 = vmatpush.msra.mxu3 %v11301_v22  ;;  %2824 = vmatpush.msra.mxu2 %v15954_v44  ;;  %v11486_v22 = vand.u32 4294901760, %v9183_v39  ;;  %v9182_v17 = vld [vmem:[%s15234_s3 + $0x110] sm:$0xff]  ;;  %v15962_v44 = vand.u32 4294901760, %v11314_v7  ;;  %v15968_v7 = vand.u32 4294901760, %v11322_v12 }
 0x41d   :  { %v11471_v33 = vpop.f32.mrf.mxu0  ;;  %v11499_v52 = vand.u32 4294901760, %v9182_v17  ;;  %v2577_v12 = vsub.f32 %v11067_v20, %v11095_v40 }
 0x41e   :  { %15955 = vst [vmem:[#allocation61_spill] sm:$0xff] %v11471_v33  ;;  %v11473_v61 = vpop.f32.mrf.mxu1  ;;  %2890 = vmatpush.msra.mxu3 %v11310_v49  ;;  %2828 = vmatpush.msra.mxu2 %v15957_v23  ;;  %v15959_v49 = vand.u32 4294901760, %v11298_v5  ;;  %v11496_v36 = vsub.f32 %v9183_v39, %v11486_v22  ;;  %v9181_v39 = vld [vmem:[%s15234_s3 + $0x108] sm:$0xff] }
 0x41f   :  { %15956 = vst [vmem:[#allocation77_spill] sm:$0xff] %v11473_v61  ;;  %4395 = vmatpush.msra.mxu1 %v11486_v22  ;;  %v9178_v61 = vld [vmem:[%s15234_s3 + $0xf0] sm:$0xff] }
 0x420   :  { %2563 = vmatmul.f32.gmra.mxu2 %v2562_v31  ;;  %4077 = vmatmul.f32.gmra.mxu0 %v10876_v9  ;;  %15958 = vst [vmem:[#allocation115_spill] sm:$0xff] %v11486_v22  ;;  %v11551_v33 = vand.u32 4294901760, %v9178_v61 }
 0x421   :  { %2661 = vmatmul.f32.gmra.mxu3 %v11012_v29  ;;  %4127 = vmatmul.f32.gmra.mxu1 %v10876_v9  ;;  %15960 = vst [vmem:[#allocation47_spill] sm:$0xff] %v11496_v36 }
 0x422   :  { %2832 = vmatpush.msra.mxu2 %v15959_v49  ;;  %15961 = vst [vmem:[#allocation48_spill] sm:$0xff] %v11499_v52  ;;  %v11507_v49 = vand.u32 4294901760, %v2569_v41  ;;  %4333 = vmatpush.msra.mxu0 %v11496_v36  ;;  %v9180_v41 = vld [vmem:[%s15234_s3 + $0x100] sm:$0xff] }
 0x423   :  { %v2172_v48 = vpop.f32.mrf.mxu2  ;;  %4397 = vmatpush.msra.mxu1 %v11499_v52  ;;  %15973 = vst [vmem:[#allocation79_spill] sm:$0xff] %v11551_v33 }
 0x424   :  { %v2338_v31 = vpop.f32.mrf.mxu3  ;;  %v11493_v45 = vadd.f32 %v2246_v34, %v2172_v48  ;;  %2836 = vmatpush.msra.mxu2 %v15962_v44  ;;  %15965 = vst [vmem:[#allocation99_spill] sm:$0xff] %v11507_v49  ;;  %v11511_v34 = vsub.f32 %v9182_v17, %v11499_v52  ;;  %v11517_v48 = vand.u32 4294901760, %v9181_v39  ;;  %v11531_v44 = vand.u32 4294901760, %v9180_v41 }
 0x425   :  { %v11503_v5 = vpop.f32.mrf.mxu0 }
 0x426   :  { %15963 = vst [vmem:[#allocation62_spill] sm:$0xff] %v11503_v5  ;;  %v11505_v23 = vpop.f32.mrf.mxu1  ;;  %2840 = vmatpush.msra.mxu2 %v15968_v7  ;;  %v11529_v17 = vsub.f32 %v9181_v39, %v11517_v48  ;;  %4336 = vmatpush.msra.mxu0 %v11511_v34  ;;  %v9179_v7 = vld [vmem:[%s15234_s3 + $0xf8] sm:$0xff]  ;;  %v11541_v5 = vsub.f32 %v9180_v41, %v11531_v44  ;;  %v11557_v41 = vand.u32 4294901760, %v2577_v12 }
 0x427   :  { %15964 = vst [vmem:[#allocation28_spill] sm:$0xff] %v11505_v23  ;;  %4399 = vmatpush.msra.mxu1 %v11517_v48  ;;  %v11543_v39 = vand.u32 4294901760, %v9179_v7  ;;  %v2585_v12 = vsub.f32 %v11119_v54, %v11146_v1 }
 0x428   :  { %15966 = vst [vmem:[#allocation12_spill] sm:$0xff] %v11511_v34  ;;  %2571 = vmatmul.f32.gmra.mxu2 %v11507_v49  ;;  %4081 = vmatmul.f32.gmra.mxu0 %v10930_v18 }
 0x429   :  { %15967 = vst [vmem:[#allocation78_spill] sm:$0xff] %v11517_v48  ;;  %2665 = vmatmul.f32.gmra.mxu3 %v11047_v27  ;;  %4131 = vmatmul.f32.gmra.mxu1 %v10930_v18  ;;  %v11585_v34 = vand.u32 4294901760, %v2585_v12 }
 0x42a   :  { %15969 = vst [vmem:[#allocation128_spill] sm:$0xff] %v11529_v17  ;;  %4339 = vmatpush.msra.mxu0 %v11529_v17  ;;  %4401 = vmatpush.msra.mxu1 %v11531_v44  ;;  %v11569_v17 = vsub.f32 %v9178_v61, %v11551_v33 }
 0x42b   :  { %15970 = vst [vmem:[#allocation22_spill] sm:$0xff] %v11531_v44  ;;  %v2280_v55 = vpop.f32.mrf.mxu2 }
 0x42c   :  { %v2344_v23 = vpop.f32.mrf.mxu3  ;;  %15971 = vst [vmem:[#allocation131_spill] sm:$0xff] %v11541_v5  ;;  %v2281_v63 = vadd.f32 %v2280_v55, %v11353_v37  ;;  %4342 = vmatpush.msra.mxu0 %v11541_v5  ;;  %v11561_v37 = vsub.f32 %v9179_v7, %v11543_v39  ;;  %4403 = vmatpush.msra.mxu1 %v11543_v39  ;;  %v15979_v7 = vld [vmem:[#allocation91_spill] sm:$0xff] }
 0x42d   :  { %15972 = vst [vmem:[#allocation63_spill] sm:$0xff] %v11543_v39  ;;  %v11553_v8 = vpop.f32.mrf.mxu0  ;;  %v15987_v39 = vand.u32 4294901760, %v11426_v57 }
 0x42e   :  { %15974 = vst [vmem:[#allocation117_spill] sm:$0xff] %v11553_v8  ;;  %v11555_v53 = vpop.f32.mrf.mxu1  ;;  %v11564_v55 = vadd.f32 %v2338_v31, %v2281_v63  ;;  %4345 = vmatpush.msra.mxu0 %v11561_v37  ;;  %4405 = vmatpush.msra.mxu1 %v11551_v33 }
 0x42f   :  { %15975 = vst [vmem:[#allocation119_spill] sm:$0xff] %v11555_v53  ;;  %v2526_v53 = vsel %vm2075_vm3, %v15979_v7, 0 }
 0x430   :  { %15976 = vst [vmem:[#allocation49_spill] sm:$0xff] %v11557_v41  ;;  %2579 = vmatmul.f32.gmra.mxu2 %v11557_v41  ;;  %4085 = vmatmul.f32.gmra.mxu0 %v10967_v24  ;;  %v11587_v36 = vand.u32 4294901760, %v2526_v53  ;;  %v16005_v41 = vld [vmem:[#allocation150_spill] sm:$0xff] }
 0x431   :  { %15977 = vst [vmem:[#allocation64_spill] sm:$0xff] %v11561_v37  ;;  %2669 = vmatmul.f32.gmra.mxu3 %v11079_v59  ;;  %4135 = vmatmul.f32.gmra.mxu1 %v10967_v24 }
 0x432   :  { %15978 = vst [vmem:[#allocation30_spill] sm:$0xff] %v11569_v17  ;;  %4348 = vmatpush.msra.mxu0 %v11569_v17 }
 0x433   :  { %v2285_v63 = vpop.f32.mrf.mxu2  ;;  %15982 = vst [vmem:[#allocation80_spill] sm:$0xff] %v11585_v34 }
 0x434   :  { %v2350_v31 = vpop.f32.mrf.mxu3  ;;  %v2286_v8 = vadd.f32 %v2285_v63, %v11381_v58  ;;  %15983 = vst [vmem:[#allocation132_spill] sm:$0xff] %v11587_v36  ;;  %v2592_v58 = vsub.f32 %v11182_v19, %v11202_v10  ;;  %v11598_v63 = vsub.f32 %v2526_v53, %v11587_v36 }
 0x435   :  { %v11581_v61 = vpop.f32.mrf.mxu0 }
 0x436   :  { %15980 = vst [vmem:[#allocation100_spill] sm:$0xff] %v11581_v61  ;;  %v11583_v5 = vpop.f32.mrf.mxu1  ;;  %v11589_v37 = vadd.f32 %v2344_v23, %v2286_v8  ;;  %v11605_v61 = vand.u32 4294901760, %v2592_v58  ;;  %v15398_v17 = vand.u32 4294901760, %v11598_v63 }
 0x437   :  { %15981 = vst [vmem:[#allocation13_spill] sm:$0xff] %v11583_v5 }
 0x438   :  { %2587 = vmatmul.f32.gmra.mxu2 %v11585_v34  ;;  %4089 = vmatmul.f32.gmra.mxu0 %v11008_v35  ;;  %15986 = vst [vmem:[#allocation122_spill] sm:$0xff] %v11605_v61 }
 0x439   :  { %2672 = vmatmul.f32.gmra.mxu3 %v11162_v0  ;;  %4139 = vmatmul.f32.gmra.mxu1 %v11008_v35 }
 0x43b   :  { %v2290_v12 = vpop.f32.mrf.mxu2 }
 0x43c   :  { %v2356_v7 = vpop.f32.mrf.mxu3  ;;  %v2291_v5 = vadd.f32 %v2290_v12, %v11408_v38  ;;  %v2600_v38 = vsub.f32 %v11598_v63, %v15398_v17 }
 0x43d   :  { %v11601_v8 = vpop.f32.mrf.mxu0 }
 0x43e   :  { %15984 = vst [vmem:[#allocation24_spill] sm:$0xff] %v11601_v8  ;;  %v11603_v23 = vpop.f32.mrf.mxu1  ;;  %v11608_v33 = vadd.f32 %v2350_v31, %v2291_v5  ;;  %v2601_v5 = vand.u32 4294901760, %v2600_v38 }
 0x43f   :  { %15985 = vst [vmem:[#allocation133_spill] sm:$0xff] %v11603_v23 }
 0x440   :  { %2594 = vmatmul.f32.gmra.mxu2 %v11605_v61  ;;  %4092 = vmatmul.f32.gmra.mxu0 %v11362_v26 }
 0x441   :  { %2676 = vmatmul.f32.gmra.mxu3 %v11587_v36  ;;  %4142 = vmatmul.f32.gmra.mxu1 %v11362_v26 }
 0x443   :  { %v2295_v53 = vpop.f32.mrf.mxu2 }
 0x444   :  { %v2362_v12 = vpop.f32.mrf.mxu3  ;;  %v2296_v58 = vadd.f32 %v2295_v53, %v11432_v15  ;;  %v15990_v15 = vand.u32 4294901760, %v11447_v14 }
 0x445   :  { %v3553_v23 = vpop.f32.mrf.mxu0 }
 0x446   :  { %v3615_v8 = vpop.f32.mrf.mxu1  ;;  %v11618_v31 = vadd.f32 %v2356_v7, %v2296_v58  ;;  %v15992_v23 = vld [vmem:[#allocation141_spill] sm:$0xff] }
 0x448   :  { %2602 = vmatmul.f32.gmra.mxu2 %v2601_v5  ;;  %4096 = vmatmul.f32.gmra.mxu0 %v11389_v56  ;;  %v15995_v5 = vld [vmem:[#allocation144_spill] sm:$0xff] }
 0x449   :  { %2768 = vmatmul.f32.vlgmr.msrb.gmra.mxu3 %v15987_v39  ;;  %4146 = vmatmul.f32.gmra.mxu1 %v11389_v56  ;;  %v15991_v39 = vld [vmem:[#allocation139_spill] sm:$0xff] }
 0x44b   :  { %v2300_v44 = vpop.f32.mrf.mxu2 }
 0x44c   :  { %v2367_v48 = vpop.f32.mrf.mxu3 }
 0x44d   :  { %v11624_v17 = vpop.f32.mrf.mxu0 }
 0x44e   :  { %15988 = vst [vmem:[#allocation81_spill] sm:$0xff] %v11624_v17  ;;  %v11626_v12 = vpop.f32.mrf.mxu1  ;;  %v16001_v17 = vld [vmem:[#allocation148_spill] sm:$0xff] }
 0x44f   :  { %15989 = vst [vmem:[#allocation50_spill] sm:$0xff] %v11626_v12 }
 0x450   :  { %2710 = vmatmul.f32.vlgmr.msrb.gmra.mxu2 %v11426_v57  ;;  %4351 = vmatmul.f32.vlgmr.msra.gmra.mxu0 %v11067_v20  ;;  %v9189_v57 = vld [vmem:[%s15234_s3 + $0x148] sm:$0xff] }
 0x451   :  { %2774 = vmatmul.f32.gmra.mxu3 %v15990_v15  ;;  %4409 = vmatmul.f32.vlgmr.msra.gmra.mxu1 %v11095_v40  ;;  %v11646_v15 = vand.u32 4294901760, %v9189_v57 }
 0x452   :  { %2946 = vmatpush.msrb.mxu2 %v15991_v39 }
 0x453   :  { %v2304_v7 = vpop.f32.mrf.mxu2  ;;  %15996 = vst [vmem:[#allocation14_spill] sm:$0xff] %v11646_v15  ;;  %4590 = vmatpush.msrb.mxu0 %v11646_v15 }
 0x454   :  { %v2373_v8 = vpop.f32.mrf.mxu3  ;;  %v2305_v44 = vadd.f32 %v2304_v7, %v11466_v28  ;;  %2948 = vmatpush.msrb.mxu2 %v15992_v23  ;;  %v9188_v28 = vld [vmem:[%s15234_s3 + $0x140] sm:$0xff]  ;;  %v11656_v7 = vsub.f32 %v9189_v57, %v11646_v15  ;;  %v9187_v57 = vld [vmem:[%s15234_s3 + $0x138] sm:$0xff] }
 0x455   :  { %v11636_v38 = vpop.f32.mrf.mxu0  ;;  %v11674_v61 = vand.u32 4294901760, %v9187_v57 }
 0x456   :  { %15993 = vst [vmem:[#allocation124_spill] sm:$0xff] %v11636_v38  ;;  %v11638_v53 = vpop.f32.mrf.mxu1  ;;  %v11643_v58 = vadd.f32 %v2367_v48, %v2305_v44  ;;  %2950 = vmatpush.msrb.mxu2 %v15995_v5  ;;  %v11658_v48 = vand.u32 4294901760, %v9188_v28  ;;  %v15999_v44 = vld [vmem:[#allocation145_spill] sm:$0xff] }
 0x457   :  { %15994 = vst [vmem:[#allocation65_spill] sm:$0xff] %v11638_v53 }
 0x458   :  { %2715 = vmatmul.f32.gmra.mxu2 %v11447_v14  ;;  %4356 = vmatmul.f32.gmra.mxu0 %v11119_v54  ;;  %15997 = vst [vmem:[#allocation82_spill] sm:$0xff] %v11656_v7  ;;  %v11664_v38 = vsub.f32 %v9188_v28, %v11658_v48 }
 0x459   :  { %2780 = vmatmul.f32.gmra.mxu3 %v11045_v46  ;;  %4415 = vmatmul.f32.gmra.mxu1 %v11146_v1  ;;  %15998 = vst [vmem:[#allocation31_spill] sm:$0xff] %v11658_v48  ;;  %v4669_v46 = vand.u32 4294901760, %v11656_v7 }
 0x45a   :  { %2952 = vmatpush.msrb.mxu2 %v15999_v44  ;;  %16000 = vst [vmem:[#allocation101_spill] sm:$0xff] %v11664_v38  ;;  %4592 = vmatpush.msrb.mxu0 %v11658_v48  ;;  %v4675_v22 = vand.u32 4294901760, %v11664_v38 }
 0x45b   :  { %v2309_v14 = vpop.f32.mrf.mxu2  ;;  %v4670_v52 = vsub.f32 %v11656_v7, %v4669_v46  ;;  %16002 = vst [vmem:[#allocation134_spill] sm:$0xff] %v11674_v61  ;;  %v11689_v7 = vsub.f32 %v9187_v57, %v11674_v61 }
 0x45c   :  { %v2462_v53 = vpop.f32.mrf.mxu3  ;;  %v2310_v12 = vadd.f32 %v2309_v14, %v11493_v45  ;;  %2954 = vmatpush.msrb.mxu2 %v16001_v17  ;;  %v9186_v45 = vld [vmem:[%s15234_s3 + $0x130] sm:$0xff]  ;;  %v4676_v9 = vsub.f32 %v11664_v38, %v4675_v22  ;;  %4594 = vmatpush.msrb.mxu0 %v11674_v61 }
 0x45d   :  { %v11676_v34 = vpop.f32.mrf.mxu0  ;;  %v4671_v49 = vand.u32 4294901760, %v4670_v52  ;;  %16006 = vst [vmem:[#allocation51_spill] sm:$0xff] %v11689_v7 }
 0x45e   :  { %16003 = vst [vmem:[#allocation102_spill] sm:$0xff] %v11676_v34  ;;  %v11678_v28 = vpop.f32.mrf.mxu1  ;;  %v11683_v14 = vadd.f32 %v2373_v8, %v2310_v12  ;;  %2956 = vmatpush.msrb.mxu2 %v16005_v41  ;;  %v9185_v12 = vld [vmem:[%s15234_s3 + $0x128] sm:$0xff]  ;;  %v4677_v52 = vand.u32 4294901760, %v4676_v9  ;;  %v4681_v8 = vand.u32 4294901760, %v11689_v7 }
 0x45f   :  { %16004 = vst [vmem:[#allocation135_spill] sm:$0xff] %v11678_v28  ;;  %v11693_v28 = vand.u32 4294901760, %v9186_v45  ;;  %v11701_v34 = vand.u32 4294901760, %v9185_v12  ;;  %4672 = vmatpush.msrb.mxu1 %v4671_v49 }
 0x460   :  { %2720 = vmatmul.f32.gmra.mxu2 %v11031_v4  ;;  %4361 = vmatmul.f32.gmra.mxu0 %v11182_v19  ;;  %v4682_v25 = vsub.f32 %v11689_v7, %v4681_v8 }
 0x461   :  { %2786 = vmatmul.f32.gmra.mxu3 %v11095_v40  ;;  %16007 = vst [vmem:[#allocation83_spill] sm:$0xff] %v11693_v28  ;;  %4421 = vmatmul.f32.gmra.mxu1 %v11202_v10  ;;  %v11705_v4 = vsub.f32 %v9186_v45, %v11693_v28  ;;  %v9184_v40 = vld [vmem:[%s15234_s3 + $0x120] sm:$0xff]  ;;  %v11712_v9 = vsub.f32 %v9185_v12, %v11701_v34 }
 0x462   :  { %16008 = vst [vmem:[#allocation66_spill] sm:$0xff] %v11701_v34  ;;  %4596 = vmatpush.msrb.mxu0 %v11693_v28  ;;  %v11714_v11 = vand.u32 4294901760, %v9184_v40  ;;  %4678 = vmatpush.msrb.mxu1 %v4677_v52  ;;  %v4683_v45 = vand.u32 4294901760, %v4682_v25 }
 0x463   :  { %16009 = vst [vmem:[#allocation126_spill] sm:$0xff] %v11705_v4  ;;  %v2412_v57 = vpop.f32.mrf.mxu2  ;;  %v4687_v47 = vand.u32 4294901760, %v11705_v4  ;;  %v4693_v16 = vand.u32 4294901760, %v11712_v9 }
 0x464   :  { %v2466_v38 = vpop.f32.mrf.mxu3  ;;  %16010 = vst [vmem:[#allocation32_spill] sm:$0xff] %v11712_v9  ;;  %v2413_v49 = vadd.f32 %v2412_v57, %v11564_v55  ;;  %4598 = vmatpush.msrb.mxu0 %v11701_v34  ;;  %v11721_v36 = vsub.f32 %v9184_v40, %v11714_v11  ;;  %4684 = vmatpush.msrb.mxu1 %v4683_v45 }
 0x465   :  { %16011 = vst [vmem:[#allocation103_spill] sm:$0xff] %v11714_v11  ;;  %v11725_v7 = vpop.f32.mrf.mxu0  ;;  %v4688_v17 = vsub.f32 %v11705_v4, %v4687_v47  ;;  %v4694_v55 = vsub.f32 %v11712_v9, %v4693_v16 }
 0x466   :  { %16012 = vst [vmem:[#allocation129_spill] sm:$0xff] %v11721_v36  ;;  %v11723_v41 = vadd.f32 %v2462_v53, %v2413_v49  ;;  %v11727_v12 = vpop.f32.mrf.mxu1  ;;  %4600 = vmatpush.msrb.mxu0 %v11714_v11  ;;  %v4699_v25 = vand.u32 4294901760, %v11721_v36 }
 0x467   :  { %16013 = vst [vmem:[#allocation136_spill] sm:$0xff] %v11725_v7  ;;  %v4689_v53 = vand.u32 4294901760, %v4688_v17  ;;  %v4695_v52 = vand.u32 4294901760, %v4694_v55 }
 0x468   :  { %16014 = vst [vmem:[#allocation104_spill] sm:$0xff] %v11727_v12  ;;  %4871 = vmatpush.msra.mxu0 %v4669_v46  ;;  %2725 = vmatmul.f32.gmra.mxu2 %v11067_v20  ;;  %v4700_v40 = vsub.f32 %v11721_v36, %v4699_v25  ;;  %v16015_v46 = vld [vmem:[#allocation108_spill] sm:$0xff]  ;;  %v9193_v36 = vld [vmem:[%s15234_s3 + $0x168] sm:$0xff] }
 0x469   :  { %2792 = vmatmul.f32.gmra.mxu3 %v11146_v1  ;;  %4366 = vmatmul.f32.gmra.mxu0 %v11216_v2  ;;  %v4165_v20 = vsel %vm2075_vm3, %v16015_v46, 0  ;;  %v11980_v9 = vand.u32 4294901760, %v9193_v36 }
 0x46a   :  { %4427 = vmatmul.f32.gmra.mxu1 %v11222_v50  ;;  %4875 = vmatpush.msra.mxu0 %v4675_v22  ;;  %v4701_v45 = vand.u32 4294901760, %v4700_v40  ;;  %v11747_v55 = vand.u32 4294901760, %v4165_v20 }
 0x46b   :  { %4690 = vmatpush.msrb.mxu1 %v4689_v53  ;;  %v2416_v57 = vpop.f32.mrf.mxu2 }
 0x46c   :  { %v2470_v49 = vpop.f32.mrf.mxu3  ;;  %v2417_v12 = vadd.f32 %v2416_v57, %v11589_v37  ;;  %4879 = vmatpush.msra.mxu0 %v4681_v8  ;;  %16018 = vst [vmem:[#allocation137_spill] sm:$0xff] %v11747_v55  ;;  %v4167_v8 = vsel %vm2075_vm3, %v11085_v51, 0 }
 0x46d   :  { %4696 = vmatpush.msrb.mxu1 %v4695_v52  ;;  %v11743_v17 = vpop.f32.mrf.mxu0  ;;  %v11775_v52 = vand.u32 4294901760, %v4167_v8 }
 0x46e   :  { %v11741_v1 = vadd.f32 %v2466_v38, %v2417_v12  ;;  %16016 = vst [vmem:[#allocation15_spill] sm:$0xff] %v11743_v17  ;;  %v11745_v7 = vpop.f32.mrf.mxu1  ;;  %4883 = vmatpush.msra.mxu0 %v4687_v47  ;;  %v11756_v38 = vsub.f32 %v4165_v20, %v11747_v55  ;;  %v16058_v17 = vld [vmem:[#allocation132_spill] sm:$0xff]  ;;  %v16080_v55 = vld [vmem:[#allocation26_spill] sm:$0xff] }
 0x46f   :  { %16017 = vst [vmem:[#allocation84_spill] sm:$0xff] %v11745_v7  ;;  %4702 = vmatpush.msrb.mxu1 %v4701_v45  ;;  %v16040_v7 = vld [vmem:[#allocation151_spill] sm:$0xff] }
 0x470   :  { %2730 = vmatmul.f32.gmra.mxu2 %v11119_v54  ;;  %4887 = vmatpush.msra.mxu0 %v4693_v16  ;;  %v11765_v54 = vld [vmem:[%s15235_s4] ss:$0 sm:$0xff]  ;;  %16021 = vst [vmem:[#allocation16_spill] sm:$0xff] %v11775_v52 }
 0x471   :  { %4931 = vmatpush.msra.mxu1 %v11646_v15  ;;  %2797 = vmatmul.f32.gmra.mxu3 %v11202_v10 }
 0x472   :  { %4371 = vmatmul.f32.gmra.mxu0 %v11233_v42  ;;  %4433 = vmatmul.f32.gmra.mxu1 %v11238_v30 }
 0x473   :  { %4933 = vmatpush.msra.mxu1 %v11658_v48  ;;  %v2420_v22 = vpop.f32.mrf.mxu2  ;;  %4891 = vmatpush.msra.mxu0 %v4699_v25  ;;  %v16022_v25 = vand.u32 4294901760, %v11598_v63 }
 0x474   :  { %v2474_v37 = vpop.f32.mrf.mxu3  ;;  %v2421_v47 = vadd.f32 %v2420_v22, %v11608_v33  ;;  %v11773_v33 = vand.u32 4294901760, %v11756_v38 }
 0x475   :  { %4935 = vmatpush.msra.mxu1 %v11674_v61  ;;  %v11767_v16 = vpop.f32.mrf.mxu0 }
 0x476   :  { %v2471_v12 = vadd.f32 %v2470_v49, %v2421_v47  ;;  %16019 = vst [vmem:[#allocation85_spill] sm:$0xff] %v11767_v16  ;;  %v11769_v53 = vpop.f32.mrf.mxu1  ;;  %v11787_v49 = vsub.f32 %v4167_v8, %v11775_v52  ;;  %v16032_v16 = vld [vmem:[#allocation146_spill] sm:$0xff] }
 0x477   :  { %16020 = vst [vmem:[#allocation130_spill] sm:$0xff] %v11769_v53  ;;  %4937 = vmatpush.msra.mxu1 %v11693_v28 }
 0x478   :  { %v11778_v51 = vadd.f32 %v11765_v54, %v2471_v12  ;;  %2734 = vmatmul.f32.gmra.mxu2 %v11182_v19  ;;  %16023 = vst [vmem:[#allocation86_spill] sm:$0xff] %v11787_v49  ;;  %v15420_v47 = vand.u32 4294901760, %v11787_v49 }
 0x479   :  { %2803 = vmatmul.f32.gmra.mxu3 %v16022_v25  ;;  %4939 = vmatpush.msra.mxu1 %v11701_v34 }
 0x47a   :  { %4375 = vmatmul.f32.gmra.mxu0 %v11756_v38  ;;  %4438 = vmatmul.f32.gmra.mxu1 %v11773_v33 }
 0x47b   :  { %v2424_v40 = vpop.f32.mrf.mxu2  ;;  %4941 = vmatpush.msra.mxu1 %v11714_v11 }
 0x47c   :  { %v2478_v57 = vpop.f32.mrf.mxu3  ;;  %v2425_v45 = vadd.f32 %v2424_v40, %v11618_v31 }
 0x47d   :  { %v3819_v20 = vpop.f32.mrf.mxu0 }
 0x47e   :  { %v2475_v46 = vadd.f32 %v2474_v37, %v2425_v45  ;;  %v3901_v22 = vpop.f32.mrf.mxu1 }
 0x47f   :  { %v16028_v22 = vld [vmem:[#allocation143_spill] sm:$0xff] }
 0x480   :  { %v11793_v12 = vadd.f32 %v11765_v54, %v2475_v46  ;;  %2739 = vmatmul.f32.gmra.mxu2 %v11598_v63  ;;  %v16026_v63 = vld [vmem:[#allocation140_spill] sm:$0xff] }
 0x481   :  { %2892 = vmatmul.f32.vlgmr.msra.gmra.mxu3 %v11414_v21  ;;  %v16027_v46 = vand.u32 4294901760, %v16026_v63 }
 0x482   :  { %4380 = vmatmul.f32.gmra.mxu0 %v11787_v49  ;;  %4444 = vmatmul.f32.gmra.mxu1 %v15420_v47  ;;  %v16076_v49 = vld [vmem:[#allocation113_spill] sm:$0xff] }
 0x483   :  { %v2428_v31 = vpop.f32.mrf.mxu2  ;;  %v3026_v20 = vsub.f32 %v16026_v63, %v16027_v46 }
 0x484   :  { %v2481_v8 = vpop.f32.mrf.mxu3 }
 0x485   :  { %v11800_v25 = vpop.f32.mrf.mxu0 }
 0x486   :  { %16024 = vst [vmem:[#allocation33_spill] sm:$0xff] %v11800_v25  ;;  %v11802_v37 = vpop.f32.mrf.mxu1  ;;  %v16031_v25 = vand.u32 4294901760, %v16028_v22 }
 0x487   :  { %16025 = vst [vmem:[#allocation106_spill] sm:$0xff] %v11802_v37  ;;  %v3027_v37 = vand.u32 4294901760, %v3026_v20 }
 0x488   :  { %2842 = vmatmul.f32.vlgmr.msra.gmra.mxu2 %v11414_v21  ;;  %v3032_v53 = vsub.f32 %v16028_v22, %v16031_v25  ;;  %v16034_v25 = vld [vmem:[#allocation147_spill] sm:$0xff] }
 0x489   :  { %2896 = vmatmul.f32.gmra.mxu3 %v11435_v6  ;;  %3099 = vmatpush.msra.mxu2 %v16026_v63 }
 0x48a   :  { %4606 = vmatmul.f32.vlgmr.msrb.gmra.mxu0 %v10969_v3  ;;  %4704 = vmatmul.f32.vlgmr.msrb.gmra.mxu1 %v10930_v18  ;;  %v3033_v63 = vand.u32 4294901760, %v3032_v53 }
 0x48b   :  { %v2431_v40 = vpop.f32.mrf.mxu2  ;;  %3102 = vmatpush.msra.mxu2 %v16028_v22  ;;  %3028 = vmatpush.msrb.mxu3 %v3027_v37 }
 0x48c   :  { %v2485_v57 = vpop.f32.mrf.mxu3  ;;  %v2432_v45 = vadd.f32 %v2431_v40, %v11643_v58 }
 0x48d   :  { %v11814_v21 = vpop.f32.mrf.mxu0  ;;  %3105 = vmatpush.msra.mxu2 %v16032_v16  ;;  %3034 = vmatpush.msrb.mxu3 %v3033_v63 }
 0x48e   :  { %v2482_v31 = vadd.f32 %v2481_v8, %v2432_v45  ;;  %16029 = vst [vmem:[#allocation138_spill] sm:$0xff] %v11814_v21  ;;  %v11816_v47 = vpop.f32.mrf.mxu1  ;;  %v16033_v8 = vand.u32 4294901760, %v16032_v16 }
 0x48f   :  { %16030 = vst [vmem:[#allocation107_spill] sm:$0xff] %v11816_v47  ;;  %3108 = vmatpush.msra.mxu2 %v16034_v25 }
 0x490   :  { %v11823_v58 = vadd.f32 %v11765_v54, %v2482_v31  ;;  %2846 = vmatmul.f32.gmra.mxu2 %v11435_v6  ;;  %v3038_v40 = vsub.f32 %v16032_v16, %v16033_v8  ;;  %v16035_v6 = vand.u32 4294901760, %v16034_v25  ;;  %v16036_v31 = vld [vmem:[#allocation149_spill] sm:$0xff] }
 0x491   :  { %2900 = vmatmul.f32.gmra.mxu3 %v11012_v29  ;;  %v16037_v47 = vand.u32 4294901760, %v16036_v31  ;;  %3111 = vmatpush.msra.mxu2 %v16036_v31 }
 0x492   :  { %4614 = vmatmul.f32.gmra.mxu0 %v11010_v13  ;;  %4708 = vmatmul.f32.gmra.mxu1 %v10967_v24  ;;  %v3039_v20 = vand.u32 4294901760, %v3038_v40  ;;  %v3044_v53 = vsub.f32 %v16034_v25, %v16035_v6  ;;  %v16042_v6 = vld [vmem:[#allocation71_spill] sm:$0xff] }
 0x493   :  { %v2435_v45 = vpop.f32.mrf.mxu2  ;;  %v3050_v21 = vsub.f32 %v16036_v31, %v16037_v47  ;;  %3114 = vmatpush.msra.mxu2 %v16040_v7 }
 0x494   :  { %v2654_v46 = vpop.f32.mrf.mxu3  ;;  %v2436_v22 = vadd.f32 %v2435_v45, %v11683_v14  ;;  %3040 = vmatpush.msrb.mxu3 %v3039_v20  ;;  %v3045_v40 = vand.u32 4294901760, %v3044_v53  ;;  %v16041_v14 = vand.u32 4294901760, %v16040_v7 }
 0x495   :  { %v11841_v37 = vpop.f32.mrf.mxu0  ;;  %v3051_v47 = vand.u32 4294901760, %v3050_v21 }
 0x496   :  { %v2486_v16 = vadd.f32 %v2485_v57, %v2436_v22  ;;  %16038 = vst [vmem:[#allocation142_spill] sm:$0xff] %v11841_v37  ;;  %v11843_v8 = vpop.f32.mrf.mxu1  ;;  %v3056_v63 = vsub.f32 %v16040_v7, %v16041_v14  ;;  %3046 = vmatpush.msrb.mxu3 %v3045_v40  ;;  %v4574_v7 = vsel %vm2075_vm3, %v16042_v6, 0  ;;  %v16073_v37 = vld [vmem:[#allocation67_spill] sm:$0xff] }
 0x497   :  { %16039 = vst [vmem:[#allocation87_spill] sm:$0xff] %v11843_v8  ;;  %v11864_v21 = vand.u32 4294901760, %v4574_v7 }
 0x498   :  { %v11850_v25 = vadd.f32 %v11765_v54, %v2486_v16  ;;  %2850 = vmatmul.f32.gmra.mxu2 %v11012_v29  ;;  %v3057_v57 = vand.u32 4294901760, %v3056_v63  ;;  %3052 = vmatpush.msrb.mxu3 %v3051_v47 }
 0x499   :  { %2904 = vmatmul.f32.gmra.mxu3 %v11047_v27  ;;  %16045 = vst [vmem:[#allocation141_spill] sm:$0xff] %v11864_v21  ;;  %v11873_v40 = vsub.f32 %v4574_v7, %v11864_v21 }
 0x49a   :  { %4622 = vmatmul.f32.gmra.mxu0 %v11391_v62  ;;  %4712 = vmatmul.f32.gmra.mxu1 %v11008_v35 }
 0x49b   :  { %v2556_v45 = vpop.f32.mrf.mxu2  ;;  %3058 = vmatpush.msrb.mxu3 %v3057_v57  ;;  %16046 = vst [vmem:[#allocation144_spill] sm:$0xff] %v11873_v40 }
 0x49c   :  { %v2658_v20 = vpop.f32.mrf.mxu3  ;;  %v11856_v22 = vadd.f32 %v2654_v46, %v2556_v45 }
 0x49d   :  { %v11860_v53 = vpop.f32.mrf.mxu0  ;;  %3161 = vmatpush.msra.mxu3 %v15991_v39  ;;  %v4577_v39 = vsel %vm2075_vm3, %v11190_v32, 0 }
 0x49e   :  { %16043 = vst [vmem:[#allocation91_spill] sm:$0xff] %v11860_v53  ;;  %v11862_v31 = vpop.f32.mrf.mxu1  ;;  %v11888_v57 = vand.u32 4294901760, %v4577_v39 }
 0x49f   :  { %16044 = vst [vmem:[#allocation139_spill] sm:$0xff] %v11862_v31  ;;  %3163 = vmatpush.msra.mxu3 %v15992_v23  ;;  %v11886_v23 = vand.u32 4294901760, %v11873_v40 }
 0x4a0   :  { %2854 = vmatmul.f32.gmra.mxu2 %v11047_v27  ;;  %16050 = vst [vmem:[#allocation143_spill] sm:$0xff] %v11888_v57  ;;  %v11898_v6 = vsub.f32 %v4577_v39, %v11888_v57 }
 0x4a1   :  { %2908 = vmatmul.f32.gmra.mxu3 %v11079_v59  ;;  %16049 = vst [vmem:[#allocation140_spill] sm:$0xff] %v11886_v23 }
 0x4a2   :  { %4630 = vmatmul.f32.gmra.mxu0 %v11416_v60  ;;  %4716 = vmatmul.f32.gmra.mxu1 %v11362_v26  ;;  %16052 = vst [vmem:[#allocation146_spill] sm:$0xff] %v11898_v6 }
 0x4a3   :  { %v2564_v46 = vpop.f32.mrf.mxu2  ;;  %3165 = vmatpush.msra.mxu3 %v15995_v5  ;;  %v16051_v5 = vld [vmem:[#allocation148_spill] sm:$0xff] }
 0x4a4   :  { %v2662_v16 = vpop.f32.mrf.mxu3  ;;  %v11875_v14 = vadd.f32 %v2658_v20, %v2564_v46  ;;  %v16053_v46 = vld [vmem:[#allocation150_spill] sm:$0xff] }
 0x4a5   :  { %v11880_v63 = vpop.f32.mrf.mxu0  ;;  %3167 = vmatpush.msra.mxu3 %v15999_v44  ;;  %v4643_v44 = vsub.f32 %v11873_v40, %v11886_v23 }
 0x4a6   :  { %16047 = vst [vmem:[#allocation145_spill] sm:$0xff] %v11880_v63  ;;  %v11882_v47 = vpop.f32.mrf.mxu1 }
 0x4a7   :  { %16048 = vst [vmem:[#allocation108_spill] sm:$0xff] %v11882_v47  ;;  %3169 = vmatpush.msra.mxu3 %v16051_v5  ;;  %v11907_v31 = vand.u32 4294901760, %v4643_v44  ;;  %v11910_v5 = vand.u32 4294901760, %v11898_v6 }
 0x4a8   :  { %2858 = vmatmul.f32.gmra.mxu2 %v11079_v59 }
 0x4a9   :  { %2911 = vmatmul.f32.gmra.mxu3 %v11162_v0  ;;  %16056 = vst [vmem:[#allocation151_spill] sm:$0xff] %v11907_v31 }
 0x4aa   :  { %4638 = vmatmul.f32.gmra.mxu0 %v11437_v43  ;;  %4720 = vmatmul.f32.gmra.mxu1 %v11389_v56  ;;  %16057 = vst [vmem:[#allocation71_spill] sm:$0xff] %v11910_v5 }
 0x4ab   :  { %v2572_v45 = vpop.f32.mrf.mxu2  ;;  %3171 = vmatpush.msra.mxu3 %v16053_v46 }
 0x4ac   :  { %v2666_v20 = vpop.f32.mrf.mxu3  ;;  %v11900_v7 = vadd.f32 %v2662_v16, %v2572_v45  ;;  %v4651_v45 = vsub.f32 %v11898_v6, %v11910_v5  ;;  %v16069_v5 = vld [vmem:[#allocation89_spill] sm:$0xff] }
 0x4ad   :  { %v11903_v47 = vpop.f32.mrf.mxu0 }
 0x4ae   :  { %16054 = vst [vmem:[#allocation147_spill] sm:$0xff] %v11903_v47  ;;  %v11905_v63 = vpop.f32.mrf.mxu1  ;;  %v11920_v23 = vand.u32 4294901760, %v4651_v45 }
 0x4af   :  { %16055 = vst [vmem:[#allocation149_spill] sm:$0xff] %v11905_v63  ;;  %v16060_v63 = vld [vmem:[#allocation34_spill] sm:$0xff] }
 0x4b0   :  { %2861 = vmatmul.f32.gmra.mxu2 %v11162_v0  ;;  %16059 = vst [vmem:[#allocation148_spill] sm:$0xff] %v11920_v23 }
 0x4b1   :  { %2915 = vmatmul.f32.gmra.mxu3 %v16058_v17 }
 0x4b2   :  { %4645 = vmatmul.f32.gmra.mxu0 %v11907_v31  ;;  %4723 = vmatmul.f32.gmra.mxu1 %v11864_v21 }
 0x4b3   :  { %v2580_v16 = vpop.f32.mrf.mxu2 }
 0x4b4   :  { %v2670_v39 = vpop.f32.mrf.mxu3  ;;  %v11918_v46 = vadd.f32 %v2666_v20, %v2580_v16  ;;  %v16063_v20 = vld [vmem:[#allocation38_spill] sm:$0xff]  ;;  %v16064_v16 = vld [vmem:[#allocation36_spill] sm:$0xff] }
 0x4b5   :  { %v4090_v44 = vpop.f32.mrf.mxu0 }
 0x4b6   :  { %v4140_v40 = vpop.f32.mrf.mxu1 }
 0x4b8   :  { %2865 = vmatmul.f32.gmra.mxu2 %v16058_v17  ;;  %v16065_v17 = vld [vmem:[#allocation39_spill] sm:$0xff] }
 0x4b9   :  { %3060 = vmatmul.f32.vlgmr.msrb.gmra.mxu3 %v16060_v63 }
 0x4ba   :  { %4653 = vmatmul.f32.gmra.mxu0 %v11920_v23  ;;  %4727 = vmatmul.f32.gmra.mxu1 %v11888_v57 }
 0x4bb   :  { %v2588_v47 = vpop.f32.mrf.mxu2 }
 0x4bc   :  { %v2673_v53 = vpop.f32.mrf.mxu3  ;;  %v16066_v47 = vld [vmem:[#allocation6_spill] sm:$0xff] }
 0x4bd   :  { %v11926_v39 = vpop.f32.mrf.mxu0 }
 0x4be   :  { %16061 = vst [vmem:[#allocation150_spill] sm:$0xff] %v11926_v39  ;;  %v11928_v8 = vpop.f32.mrf.mxu1 }
 0x4bf   :  { %16062 = vst [vmem:[#allocation132_spill] sm:$0xff] %v11928_v8  ;;  %v16072_v8 = vld [vmem:[#allocation110_spill] sm:$0xff] }
 0x4c0   :  { %2962 = vmatmul.f32.vlgmr.msrb.gmra.mxu2 %v16063_v20  ;;  %v16070_v20 = vld [vmem:[#allocation42_spill] sm:$0xff]  ;;  %16083 = vst [vmem:[#allocation110_spill] sm:$0xff] %v11980_v9 }
 0x4c1   :  { %3064 = vmatmul.f32.gmra.mxu3 %v16064_v16  ;;  %3361 = vmatpush.msrb.mxu2 %v16065_v17  ;;  %v16071_v16 = vld [vmem:[#allocation41_spill] sm:$0xff] }
 0x4c2   :  { %4893 = vmatmul.f32.vlgmr.msra.gmra.mxu0 %v10930_v18  ;;  %4943 = vmatmul.f32.vlgmr.msra.gmra.mxu1 %v10930_v18 }
 0x4c3   :  { %v2595_v40 = vpop.f32.mrf.mxu2  ;;  %3363 = vmatpush.msrb.mxu2 %v16066_v47 }
 0x4c4   :  { %v2677_v63 = vpop.f32.mrf.mxu3  ;;  %v11935_v45 = vadd.f32 %v2673_v53, %v2595_v40 }
 0x4c5   :  { %v11938_v44 = vpop.f32.mrf.mxu0  ;;  %3365 = vmatpush.msrb.mxu2 %v16069_v5 }
 0x4c6   :  { %16067 = vst [vmem:[#allocation34_spill] sm:$0xff] %v11938_v44  ;;  %v11940_v6 = vpop.f32.mrf.mxu1 }
 0x4c7   :  { %16068 = vst [vmem:[#allocation38_spill] sm:$0xff] %v11940_v6  ;;  %3367 = vmatpush.msrb.mxu2 %v16072_v8 }
 0x4c8   :  { %2970 = vmatmul.f32.gmra.mxu2 %v16070_v20  ;;  %v9195_v20 = vld [vmem:[%s15234_s3 + $0x178] sm:$0xff] }
 0x4c9   :  { %3068 = vmatmul.f32.gmra.mxu3 %v16071_v16  ;;  %3369 = vmatpush.msrb.mxu2 %v16073_v37  ;;  %v9194_v16 = vld [vmem:[%s15234_s3 + $0x170] sm:$0xff]  ;;  %v11962_v52 = vand.u32 4294901760, %v9195_v20 }
 0x4ca   :  { %4897 = vmatmul.f32.gmra.mxu0 %v10967_v24  ;;  %4947 = vmatmul.f32.gmra.mxu1 %v10967_v24 }
 0x4cb   :  { %v2603_v53 = vpop.f32.mrf.mxu2  ;;  %3371 = vmatpush.msrb.mxu2 %v16076_v49  ;;  %16077 = vst [vmem:[#allocation6_spill] sm:$0xff] %v11962_v52  ;;  %5219 = vmatpush.msrb.mxu1 %v11962_v52 }
 0x4cc   :  { %v2769_v40 = vpop.f32.mrf.mxu3  ;;  %v11948_v39 = vadd.f32 %v2677_v63, %v2603_v53  ;;  %v11964_v63 = vand.u32 4294901760, %v9194_v16  ;;  %v16079_v53 = vld [vmem:[#allocation105_spill] sm:$0xff] }
 0x4cd   :  { %v11951_v44 = vpop.f32.mrf.mxu0 }
 0x4ce   :  { %16074 = vst [vmem:[#allocation36_spill] sm:$0xff] %v11951_v44  ;;  %v11953_v6 = vpop.f32.mrf.mxu1  ;;  %v11974_v44 = vsub.f32 %v9194_v16, %v11964_v63  ;;  %5221 = vmatpush.msrb.mxu1 %v11964_v63  ;;  %v11989_v16 = vsub.f32 %v9193_v36, %v11980_v9  ;;  %v9190_v36 = vld [vmem:[%s15234_s3 + $0x150] sm:$0xff] }
 0x4cf   :  { %16075 = vst [vmem:[#allocation39_spill] sm:$0xff] %v11953_v6  ;;  %v11971_v6 = vsub.f32 %v9195_v20, %v11962_v52  ;;  %v9192_v20 = vld [vmem:[%s15234_s3 + $0x160] sm:$0xff] }
 0x4d0   :  { %16078 = vst [vmem:[#allocation89_spill] sm:$0xff] %v11964_v63  ;;  %2978 = vmatmul.f32.gmra.mxu2 %v16079_v53  ;;  %v11991_v11 = vand.u32 4294901760, %v9192_v20  ;;  %5223 = vmatpush.msrb.mxu1 %v11980_v9 }
 0x4d1   :  { %3072 = vmatmul.f32.gmra.mxu3 %v16080_v55  ;;  %16081 = vst [vmem:[#allocation42_spill] sm:$0xff] %v11971_v6  ;;  %5157 = vmatpush.msrb.mxu0 %v11971_v6 }
 0x4d2   :  { %4901 = vmatmul.f32.gmra.mxu0 %v11008_v35  ;;  %4951 = vmatmul.f32.gmra.mxu1 %v11008_v35  ;;  %16082 = vst [vmem:[#allocation41_spill] sm:$0xff] %v11974_v44  ;;  %v12000_v6 = vsub.f32 %v9192_v20, %v11991_v11 }
 0x4d3   :  { %v2711_v53 = vpop.f32.mrf.mxu2  ;;  %16084 = vst [vmem:[#allocation67_spill] sm:$0xff] %v11989_v16  ;;  %5160 = vmatpush.msrb.mxu0 %v11974_v44  ;;  %v16091_v44 = vld [vmem:[#allocation44_spill] sm:$0xff]  ;;  %5225 = vmatpush.msrb.mxu1 %v11991_v11 }
 0x4d4   :  { %v2775_v55 = vpop.f32.mrf.mxu3  ;;  %v2712_v4 = vadd.f32 %v2711_v53, %v11856_v22  ;;  %16085 = vst [vmem:[#allocation113_spill] sm:$0xff] %v11991_v11  ;;  %v9191_v22 = vld [vmem:[%s15234_s3 + $0x158] sm:$0xff] }
 0x4d5   :  { %v11994_v52 = vpop.f32.mrf.mxu0  ;;  %16088 = vst [vmem:[#allocation152_spill] sm:$0xff] %v12000_v6  ;;  %5163 = vmatpush.msrb.mxu0 %v11989_v16  ;;  %v16110_v11 = vld [vmem:[#allocation7_spill] sm:$0xff] }
 0x4d6   :  { %16086 = vst [vmem:[#allocation105_spill] sm:$0xff] %v11994_v52  ;;  %v11996_v34 = vpop.f32.mrf.mxu1  ;;  %v12008_v53 = vadd.f32 %v2769_v40, %v2712_v4  ;;  %v12011_v52 = vand.u32 4294901760, %v9191_v22 }
 0x4d7   :  { %16087 = vst [vmem:[#allocation26_spill] sm:$0xff] %v11996_v34  ;;  %v12013_v34 = vand.u32 4294901760, %v9190_v36  ;;  %5166 = vmatpush.msrb.mxu0 %v12000_v6 }
 0x4d8   :  { %16089 = vst [vmem:[#allocation153_spill] sm:$0xff] %v12011_v52  ;;  %2986 = vmatmul.f32.gmra.mxu2 %v16091_v44  ;;  %v12020_v20 = vsub.f32 %v9191_v22, %v12011_v52  ;;  %5227 = vmatpush.msrb.mxu1 %v12011_v52 }
 0x4d9   :  { %16090 = vst [vmem:[#allocation154_spill] sm:$0xff] %v12013_v34  ;;  %3076 = vmatmul.f32.gmra.mxu3 %v10930_v18  ;;  %v12025_v4 = vsub.f32 %v9190_v36, %v12013_v34 }
 0x4da   :  { %4905 = vmatmul.f32.gmra.mxu0 %v11362_v26  ;;  %4955 = vmatmul.f32.gmra.mxu1 %v11362_v26  ;;  %16092 = vst [vmem:[#allocation44_spill] sm:$0xff] %v12020_v20 }
 0x4db   :  { %16093 = vst [vmem:[#allocation155_spill] sm:$0xff] %v12025_v4  ;;  %v2716_v40 = vpop.f32.mrf.mxu2  ;;  %5169 = vmatpush.msrb.mxu0 %v12020_v20  ;;  %5229 = vmatpush.msrb.mxu1 %v12013_v34 }
 0x4dc   :  { %v2781_v16 = vpop.f32.mrf.mxu3  ;;  %v2717_v44 = vadd.f32 %v2716_v40, %v11875_v14 }
 0x4dd   :  { %v12030_v18 = vpop.f32.mrf.mxu0  ;;  %5172 = vmatpush.msrb.mxu0 %v12025_v4 }
 0x4de   :  { %16094 = vst [vmem:[#allocation156_spill] sm:$0xff] %v12030_v18  ;;  %v12032_v9 = vpop.f32.mrf.mxu1  ;;  %v12036_v22 = vadd.f32 %v2775_v55, %v2717_v44 }
 0x4df   :  { %16095 = vst [vmem:[#allocation157_spill] sm:$0xff] %v12032_v9 }
 0x4e0   :  { %2994 = vmatmul.f32.gmra.mxu2 %v10969_v3 }
 0x4e1   :  { %3079 = vmatmul.f32.gmra.mxu3 %v10967_v24 }
 0x4e2   :  { %4909 = vmatmul.f32.gmra.mxu0 %v11389_v56  ;;  %4959 = vmatmul.f32.gmra.mxu1 %v11389_v56 }
 0x4e3   :  { %v2721_v14 = vpop.f32.mrf.mxu2 }
 0x4e4   :  { %v2787_v36 = vpop.f32.mrf.mxu3  ;;  %v2722_v40 = vadd.f32 %v2721_v14, %v11900_v7 }
 0x4e6   :  { %v12043_v18 = vpop.f32.mrf.mxu0  ;;  %v12047_v4 = vadd.f32 %v2781_v16, %v2722_v40  ;;  %v16098_v16 = vld [vmem:[#allocation35_spill] sm:$0xff] }
 0x4e7   :  { %16096 = vst [vmem:[#allocation158_spill] sm:$0xff] %v12043_v18  ;;  %v12045_v9 = vpop.f32.mrf.mxu1 }
 0x4e8   :  { %16097 = vst [vmem:[#allocation159_spill] sm:$0xff] %v12045_v9  ;;  %3001 = vmatmul.f32.gmra.mxu2 %v11010_v13 }
 0x4e9   :  { %3083 = vmatmul.f32.gmra.mxu3 %v11008_v35 }
 0x4ea   :  { %4912 = vmatmul.f32.gmra.mxu0 %v11864_v21  ;;  %4962 = vmatmul.f32.gmra.mxu1 %v11864_v21 }
 0x4eb   :  { %v2726_v3 = vpop.f32.mrf.mxu2 }
 0x4ec   :  { %v2793_v55 = vpop.f32.mrf.mxu3  ;;  %v2727_v44 = vadd.f32 %v2726_v3, %v11918_v46  ;;  %v16102_v46 = vld [vmem:[#allocation19_spill] sm:$0xff] }
 0x4ed   :  { %v16101_v55 = vld [vmem:[#allocation18_spill] sm:$0xff] }
 0x4ee   :  { %v12054_v14 = vadd.f32 %v2787_v36, %v2727_v44  ;;  %v16103_v44 = vld [vmem:[#allocation40_spill] sm:$0xff] }
 0x4ef   :  { %v4372_v20 = vpop.f32.mrf.mxu0  ;;  %v4434_v7 = vpop.f32.mrf.mxu1 }
 0x4f0   :  { %3009 = vmatmul.f32.gmra.mxu2 %v11391_v62  ;;  %v3440_v7 = vand.u32 4294901760, %v16103_v44 }
 0x4f1   :  { %3175 = vmatmul.f32.vlgmr.msra.gmra.mxu3 %v16098_v16 }
 0x4f2   :  { %4916 = vmatmul.f32.gmra.mxu0 %v11888_v57  ;;  %4966 = vmatmul.f32.gmra.mxu1 %v11888_v57 }
 0x4f3   :  { %v2731_v40 = vpop.f32.mrf.mxu2 }
 0x4f4   :  { %v2798_v9 = vpop.f32.mrf.mxu3 }
 0x4f7   :  { %v12060_v18 = vpop.f32.mrf.mxu0  ;;  %v12062_v6 = vpop.f32.mrf.mxu1 }
 0x4f8   :  { %16099 = vst [vmem:[#allocation35_spill] sm:$0xff] %v12060_v18  ;;  %3117 = vmatmul.f32.vlgmr.msra.gmra.mxu2 %v16101_v55  ;;  %v3441_v55 = vsub.f32 %v16103_v44, %v3440_v7 }
 0x4f9   :  { %16100 = vst [vmem:[#allocation160_spill] sm:$0xff] %v12062_v6  ;;  %3181 = vmatmul.f32.gmra.mxu3 %v16102_v46  ;;  %v16106_v6 = vld [vmem:[#allocation20_spill] sm:$0xff]  ;;  %3642 = vmatpush.msra.mxu2 %v3440_v7 }
 0x4fa   :  { %5175 = vmatmul.f32.vlgmr.msrb.gmra.mxu0 %v11182_v19  ;;  %5233 = vmatmul.f32.vlgmr.msrb.gmra.mxu1 %v11202_v10  ;;  %v3446_v46 = vand.u32 4294901760, %v16106_v6  ;;  %v16107_v19 = vld [vmem:[#allocation37_spill] sm:$0xff]  ;;  %v16108_v10 = vld [vmem:[#allocation90_spill] sm:$0xff] }
 0x4fb   :  { %v2735_v20 = vpop.f32.mrf.mxu2  ;;  %v9200_v7 = vld [vmem:[%s15234_s3 + $0x1a0] sm:$0xff] }
 0x4fc   :  { %v2804_v36 = vpop.f32.mrf.mxu3  ;;  %v2736_v3 = vadd.f32 %v2735_v20, %v11935_v45  ;;  %v9201_v45 = vld [vmem:[%s15234_s3 + $0x1a8] sm:$0xff]  ;;  %v3442_v20 = vand.u32 4294901760, %v3441_v55  ;;  %3646 = vmatpush.msra.mxu2 %v3446_v46  ;;  %v3458_v55 = vand.u32 4294901760, %v16110_v11  ;;  %v12101_v28 = vand.u32 4294901760, %v9200_v7 }
 0x4fe   :  { %v12074_v18 = vadd.f32 %v2798_v9, %v2736_v3  ;;  %v3447_v9 = vsub.f32 %v16106_v6, %v3446_v46  ;;  %v16109_v3 = vld [vmem:[#allocation53_spill] sm:$0xff]  ;;  %3443 = vmatpush.msrb.mxu3 %v3442_v20  ;;  %v9199_v46 = vld [vmem:[%s15234_s3 + $0x198] sm:$0xff] }
 0x4ff   :  { %v12070_v16 = vpop.f32.mrf.mxu0  ;;  %v12072_v40 = vpop.f32.mrf.mxu1  ;;  %v3452_v44 = vand.u32 4294901760, %v16109_v3 }
 0x500   :  { %16104 = vst [vmem:[#allocation18_spill] sm:$0xff] %v12070_v16  ;;  %3122 = vmatmul.f32.gmra.mxu2 %v16107_v19  ;;  %v3448_v34 = vand.u32 4294901760, %v3447_v9  ;;  %v3459_v9 = vsub.f32 %v16110_v11, %v3458_v55 }
 0x501   :  { %16105 = vst [vmem:[#allocation19_spill] sm:$0xff] %v12072_v40  ;;  %3187 = vmatmul.f32.gmra.mxu3 %v16108_v10  ;;  %v12087_v40 = vand.u32 4294901760, %v9201_v45  ;;  %v3453_v52 = vsub.f32 %v16109_v3, %v3452_v44  ;;  %3650 = vmatpush.msra.mxu2 %v3452_v44  ;;  %v16111_v3 = vld [vmem:[#allocation29_spill] sm:$0xff]  ;;  %v16116_v10 = vld [vmem:[#allocation43_spill] sm:$0xff] }
 0x502   :  { %5180 = vmatmul.f32.gmra.mxu0 %v11216_v2  ;;  %5239 = vmatmul.f32.gmra.mxu1 %v11222_v50  ;;  %v3464_v61 = vand.u32 4294901760, %v16111_v3  ;;  %v3470_v57 = vand.u32 4294901760, %v16116_v10 }
 0x503   :  { %v2740_v19 = vpop.f32.mrf.mxu2  ;;  %5411 = vmatpush.msra.mxu0 %v12087_v40  ;;  %v12098_v6 = vsub.f32 %v9201_v45, %v12087_v40  ;;  %3449 = vmatpush.msrb.mxu3 %v3448_v34  ;;  %v3454_v20 = vand.u32 4294901760, %v3453_v52  ;;  %v9198_v34 = vld [vmem:[%s15234_s3 + $0x190] sm:$0xff]  ;;  %v3460_v52 = vand.u32 4294901760, %v3459_v9 }
 0x504   :  { %v12092_v16 = vpop.f32.mrf.mxu3  ;;  %v2741_v63 = vadd.f32 %v2740_v19, %v11948_v39  ;;  %v12115_v39 = vsub.f32 %v9200_v7, %v12101_v28  ;;  %v12117_v19 = vand.u32 4294901760, %v9199_v46  ;;  %3654 = vmatpush.msra.mxu2 %v3458_v55  ;;  %v3465_v44 = vsub.f32 %v16111_v3, %v3464_v61  ;;  %v16115_v7 = vld [vmem:[#allocation68_spill] sm:$0xff]  ;;  %v9197_v55 = vld [vmem:[%s15234_s3 + $0x188] sm:$0xff] }
 0x505   :  { %v15471_v48 = vand.u32 4294901760, %v12098_v6  ;;  %5413 = vmatpush.msra.mxu0 %v12101_v28  ;;  %3455 = vmatpush.msrb.mxu3 %v3454_v20  ;;  %v12142_v3 = vand.u32 4294901760, %v9197_v55 }
 0x506   :  { %v12122_v11 = vadd.f32 %v2804_v36, %v2741_v63  ;;  %v15474_v23 = vand.u32 4294901760, %v12115_v39  ;;  %v12133_v63 = vsub.f32 %v9199_v46, %v12117_v19  ;;  %v12135_v36 = vand.u32 4294901760, %v9198_v34  ;;  %3658 = vmatpush.msra.mxu2 %v3464_v61 }
 0x507   :  { %v12109_v15 = vpop.f32.mrf.mxu0  ;;  %v12111_v45 = vpop.f32.mrf.mxu1  ;;  %v3466_v20 = vand.u32 4294901760, %v3465_v44  ;;  %3461 = vmatpush.msrb.mxu3 %v3460_v52  ;;  %5415 = vmatpush.msra.mxu0 %v12117_v19  ;;  %v16118_v52 = vld [vmem:[#allocation88_spill] sm:$0xff]  ;;  %v2488_v61 = vadd.f32 %v11765_v54, %v11723_v41 }
 0x508   :  { %16112 = vst [vmem:[#allocation40_spill] sm:$0xff] %v12109_v15  ;;  %v16114_v15 = vld [vmem:[#allocation52_spill] sm:$0xff]  ;;  %v5497_v46 = vsub.f32 %v12115_v39, %v15474_v23  ;;  %3662 = vmatpush.msra.mxu2 %v3470_v57 }
 0x509   :  { %16113 = vst [vmem:[#allocation20_spill] sm:$0xff] %v12111_v45  ;;  %v5491_v45 = vsub.f32 %v12098_v6, %v15471_v48  ;;  %3127 = vmatmul.f32.gmra.mxu2 %v16114_v15  ;;  %3193 = vmatmul.f32.gmra.mxu3 %v16115_v7  ;;  %v3471_v48 = vsub.f32 %v16116_v10, %v3470_v57  ;;  %v5502_v7 = vand.u32 4294901760, %v12133_v63  ;;  %v4987_v10 = vsel %vm2075_vm3, %v16118_v52, 0 }
 0x50a   :  { %5185 = vmatmul.f32.gmra.mxu0 %v11233_v42  ;;  %5245 = vmatmul.f32.gmra.mxu1 %v11238_v30  ;;  %v12151_v15 = vsub.f32 %v9198_v34, %v12135_v36  ;;  %v12159_v30 = vsub.f32 %v9197_v55, %v12142_v3  ;;  %v5498_v31 = vand.u32 4294901760, %v5497_v46  ;;  %v12178_v46 = vand.u32 4294901760, %v4987_v10 }
 0x50b   :  { %v5492_v9 = vand.u32 4294901760, %v5491_v45  ;;  %v9196_v45 = vld [vmem:[%s15234_s3 + $0x180] sm:$0xff]  ;;  %v2843_v44 = vpop.f32.mrf.mxu2  ;;  %3467 = vmatpush.msrb.mxu3 %v3466_v20  ;;  %v3472_v34 = vand.u32 4294901760, %v3471_v48  ;;  %v5503_v2 = vsub.f32 %v12133_v63, %v5502_v7  ;;  %5417 = vmatpush.msra.mxu0 %v12135_v36 }
 0x50c   :  { %16117 = vst [vmem:[#allocation37_spill] sm:$0xff] %v12151_v15  ;;  %v2897_v42 = vpop.f32.mrf.mxu3  ;;  %v12161_v23 = vand.u32 4294901760, %v9196_v45  ;;  %v2844_v21 = vadd.f32 %v2843_v44, %v12008_v53  ;;  %v5508_v50 = vand.u32 4294901760, %v12151_v15  ;;  %v5514_v52 = vand.u32 4294901760, %v12159_v30 }
 0x50d   :  { %5493 = vmatpush.msra.mxu1 %v5492_v9  ;;  %16119 = vst [vmem:[#allocation53_spill] sm:$0xff] %v12159_v30  ;;  %3473 = vmatpush.msrb.mxu3 %v3472_v34  ;;  %v5504_v20 = vand.u32 4294901760, %v5503_v2 }
 0x50e   :  { %v12169_v9 = vsub.f32 %v9196_v45, %v12161_v23  ;;  %v2894_v53 = vadd.f32 %v12092_v16, %v2844_v21  ;;  %16123 = vst [vmem:[#allocation88_spill] sm:$0xff] %v12178_v46  ;;  %v5509_v44 = vsub.f32 %v12151_v15, %v5508_v50  ;;  %5419 = vmatpush.msra.mxu0 %v12142_v3  ;;  %v16124_v21 = vld [vmem:[#allocation5_spill] sm:$0xff] }
 0x50f   :  { %v12174_v55 = vpop.f32.mrf.mxu0  ;;  %v12176_v48 = vpop.f32.mrf.mxu1  ;;  %5499 = vmatpush.msra.mxu1 %v5498_v31  ;;  %v5515_v57 = vsub.f32 %v12159_v30, %v5514_v52  ;;  %3702 = vmatpush.msra.mxu3 %v16065_v17  ;;  %v16125_v16 = vld [vmem:[#allocation21_spill] sm:$0xff]  ;;  %v12194_v17 = vsub.f32 %v4987_v10, %v12178_v46  ;;  %v16128_v30 = vld [vmem:[#allocation120_spill] sm:$0xff]  ;;  %v2489_v10 = vadd.f32 %v11765_v54, %v11741_v1 }
 0x510   :  { %16120 = vst [vmem:[#allocation7_spill] sm:$0xff] %v12169_v9  ;;  %v5520_v45 = vand.u32 4294901760, %v12169_v9  ;;  %v12185_v41 = vadd.f32 %v2894_v53, %v2488_v61  ;;  %v5510_v2 = vand.u32 4294901760, %v5509_v44  ;;  %5421 = vmatpush.msra.mxu0 %v12161_v23  ;;  %v16127_v61 = vand.u32 4294901760, %v12098_v6 }
 0x511   :  { %16121 = vst [vmem:[#allocation29_spill] sm:$0xff] %v12174_v55  ;;  %3132 = vmatmul.f32.gmra.mxu2 %v16124_v21  ;;  %3199 = vmatmul.f32.gmra.mxu3 %v16125_v16  ;;  %v5516_v31 = vand.u32 4294901760, %v5515_v57  ;;  %v16129_v44 = vand.u32 4294901760, %v12115_v39 }
 0x512   :  { %16122 = vst [vmem:[#allocation43_spill] sm:$0xff] %v12176_v48  ;;  %5190 = vmatmul.f32.gmra.mxu0 %v11756_v38  ;;  %5251 = vmatmul.f32.gmra.mxu1 %v11773_v33  ;;  %v5521_v34 = vsub.f32 %v12169_v9, %v5520_v45 }
 0x513   :  { %5505 = vmatpush.msra.mxu1 %v5504_v20  ;;  %v2847_v48 = vpop.f32.mrf.mxu2  ;;  %16126 = vst [vmem:[#allocation5_spill] sm:$0xff] %v12194_v17  ;;  %3704 = vmatpush.msra.mxu3 %v16066_v47  ;;  %v4989_v20 = vsel %vm2075_vm3, %v16128_v30, 0 }
 0x514   :  { %v2901_v55 = vpop.f32.mrf.mxu3  ;;  %5692 = vmatpush.msrb.mxu0 %v16127_v61  ;;  %v2848_v53 = vadd.f32 %v2847_v48, %v12036_v22  ;;  %v5522_v61 = vand.u32 4294901760, %v5521_v34  ;;  %v15485_v22 = vand.u32 4294901760, %v12194_v17  ;;  %v12212_v48 = vand.u32 4294901760, %v4989_v20 }
 0x515   :  { %5511 = vmatpush.msra.mxu1 %v5510_v2  ;;  %3706 = vmatpush.msra.mxu3 %v16069_v5  ;;  %v16133_v5 = vld [vmem:[#allocation54_spill] sm:$0xff]  ;;  %v16134_v2 = vld [vmem:[#allocation8_spill] sm:$0xff] }
 0x516   :  { %5696 = vmatpush.msrb.mxu0 %v16129_v44  ;;  %v2898_v57 = vadd.f32 %v2897_v42, %v2848_v53  ;;  %16132 = vst [vmem:[#allocation161_spill] sm:$0xff] %v12212_v48  ;;  %v12224_v54 = vsub.f32 %v4989_v20, %v12212_v48 }
 0x517   :  { %v12207_v46 = vpop.f32.mrf.mxu0  ;;  %v12209_v47 = vpop.f32.mrf.mxu1  ;;  %5517 = vmatpush.msra.mxu1 %v5516_v31  ;;  %3708 = vmatpush.msra.mxu3 %v16072_v8 }
 0x518   :  { %16130 = vst [vmem:[#allocation21_spill] sm:$0xff] %v12207_v46  ;;  %5700 = vmatpush.msrb.mxu0 %v5502_v7  ;;  %v12215_v30 = vadd.f32 %v2898_v57, %v2489_v10  ;;  %v16136_v7 = vrot.slane %v11190_v32, 4  ;;  %v15484_v20 = vand.u32 4294901760, %v12224_v54 }
 0x519   :  { %16131 = vst [vmem:[#allocation120_spill] sm:$0xff] %v12209_v47  ;;  %3137 = vmatmul.f32.gmra.mxu2 %v16133_v5  ;;  %3204 = vmatmul.f32.gmra.mxu3 %v16134_v2 }
 0x51a   :  { %5195 = vmatmul.f32.gmra.mxu0 %v12194_v17  ;;  %5257 = vmatmul.f32.gmra.mxu1 %v15485_v22  ;;  %16135 = vst [vmem:[#allocation54_spill] sm:$0xff] %v12224_v54  ;;  %v4991_v31 = vsel %vm2075_vm3, %v16136_v7, 0  ;;  %v16165_v22 = vld [vmem:[#allocation17_spill] sm:$0xff] }
 0x51b   :  { %5523 = vmatpush.msra.mxu1 %v5522_v61  ;;  %3710 = vmatpush.msra.mxu3 %v16073_v37  ;;  %v2851_v42 = vpop.f32.mrf.mxu2  ;;  %v12238_v44 = vand.u32 4294901760, %v4991_v31 }
 0x51c   :  { %v2905_v1 = vpop.f32.mrf.mxu3  ;;  %5704 = vmatpush.msrb.mxu0 %v5508_v50  ;;  %v2852_v8 = vadd.f32 %v2851_v42, %v12047_v4  ;;  %v16140_v50 = vld [vmem:[#allocation55_spill] sm:$0xff] }
 0x51d   :  { %5752 = vmatpush.msrb.mxu1 %v12087_v40  ;;  %3712 = vmatpush.msra.mxu3 %v16076_v49  ;;  %16139 = vst [vmem:[#allocation163_spill] sm:$0xff] %v12238_v44  ;;  %v16141_v49 = vld [vmem:[#allocation123_spill] sm:$0xff] }
 0x51e   :  { %5708 = vmatpush.msrb.mxu0 %v5514_v52  ;;  %v2902_v37 = vadd.f32 %v2901_v55, %v2852_v8  ;;  %v12251_v55 = vsub.f32 %v4991_v31, %v12238_v44  ;;  %v16143_v8 = vld [vmem:[#allocation74_spill] sm:$0xff] }
 0x51f   :  { %5754 = vmatpush.msrb.mxu1 %v12101_v28  ;;  %v12233_v34 = vpop.f32.mrf.mxu0  ;;  %v12235_v53 = vpop.f32.mrf.mxu1  ;;  %v16145_v31 = vld [vmem:[#allocation114_spill] sm:$0xff] }
 0x520   :  { %16137 = vst [vmem:[#allocation8_spill] sm:$0xff] %v12233_v34  ;;  %5712 = vmatpush.msrb.mxu0 %v5520_v45  ;;  %v12242_v32 = vadd.f32 %v2902_v37, %v11778_v51  ;;  %v15483_v61 = vand.u32 4294901760, %v12251_v55 }
 0x521   :  { %16138 = vst [vmem:[#allocation162_spill] sm:$0xff] %v12235_v53  ;;  %5756 = vmatpush.msrb.mxu1 %v12117_v19  ;;  %3141 = vmatmul.f32.gmra.mxu2 %v16140_v50 }
 0x522   :  { %3210 = vmatmul.f32.gmra.mxu3 %v16141_v49  ;;  %5199 = vmatmul.f32.gmra.mxu0 %v12224_v54  ;;  %16142 = vst [vmem:[#allocation55_spill] sm:$0xff] %v12251_v55 }
 0x523   :  { %5262 = vmatmul.f32.gmra.mxu1 %v15484_v20  ;;  %v2855_v4 = vpop.f32.mrf.mxu2  ;;  %v16157_v20 = vld [vmem:[#allocation45_spill] sm:$0xff] }
 0x524   :  { %5758 = vmatpush.msrb.mxu1 %v12135_v36  ;;  %v2909_v52 = vpop.f32.mrf.mxu3  ;;  %v2856_v45 = vadd.f32 %v2855_v4, %v12054_v14  ;;  %v16144_v14 = vld [vmem:[#allocation69_spill] sm:$0xff] }
 0x525   :  { %v16149_v52 = vld [vmem:[#allocation99_spill] sm:$0xff] }
 0x526   :  { %5760 = vmatpush.msrb.mxu1 %v12142_v3  ;;  %v2906_v51 = vadd.f32 %v2905_v1, %v2856_v45  ;;  %v16150_v45 = vld [vmem:[#allocation56_spill] sm:$0xff] }
 0x527   :  { %v4639_v10 = vpop.f32.mrf.mxu0  ;;  %v4721_v57 = vpop.f32.mrf.mxu1 }
 0x528   :  { %5762 = vmatpush.msrb.mxu1 %v12161_v23  ;;  %v12258_v42 = vadd.f32 %v2906_v51, %v11793_v12  ;;  %v16148_v12 = vld [vmem:[#allocation111_spill] sm:$0xff]  ;;  %v16151_v51 = vld [vmem:[#allocation92_spill] sm:$0xff] }
 0x529   :  { %3146 = vmatmul.f32.gmra.mxu2 %v16143_v8 }
 0x52a   :  { %3475 = vmatmul.f32.vlgmr.msrb.gmra.mxu3 %v11012_v29  ;;  %5204 = vmatmul.f32.gmra.mxu0 %v12251_v55 }
 0x52b   :  { %5268 = vmatmul.f32.gmra.mxu1 %v15483_v61  ;;  %3985 = vmatpush.msrb.mxu3 %v16144_v14  ;;  %v2859_v1 = vpop.f32.mrf.mxu2 }
 0x52c   :  { %v2912_v7 = vpop.f32.mrf.mxu3  ;;  %v16152_v1 = vld [vmem:[#allocation72_spill] sm:$0xff] }
 0x52d   :  { %3987 = vmatpush.msrb.mxu3 %v16145_v31  ;;  %v16153_v31 = vld [vmem:[#allocation109_spill] sm:$0xff] }
 0x52f   :  { %v12267_v37 = vpop.f32.mrf.mxu0  ;;  %v12269_v4 = vpop.f32.mrf.mxu1  ;;  %3989 = vmatpush.msrb.mxu3 %v16148_v12 }
 0x530   :  { %16146 = vst [vmem:[#allocation123_spill] sm:$0xff] %v12267_v37 }
 0x531   :  { %16147 = vst [vmem:[#allocation74_spill] sm:$0xff] %v12269_v4  ;;  %3377 = vmatmul.f32.vlgmr.msrb.gmra.mxu2 %v16149_v52  ;;  %3991 = vmatpush.msrb.mxu3 %v16150_v45 }
 0x532   :  { %3479 = vmatmul.f32.gmra.mxu3 %v11047_v27  ;;  %5427 = vmatmul.f32.vlgmr.msra.gmra.mxu0 %v11010_v13  ;;  %v16156_v13 = vld [vmem:[#allocation9_spill] sm:$0xff] }
 0x533   :  { %5525 = vmatmul.f32.vlgmr.msra.gmra.mxu1 %v10967_v24  ;;  %3923 = vmatpush.msrb.mxu2 %v16151_v51  ;;  %v2862_v10 = vpop.f32.mrf.mxu2  ;;  %v16158_v51 = vld [vmem:[#allocation49_spill] sm:$0xff] }
 0x534   :  { %v2916_v57 = vpop.f32.mrf.mxu3  ;;  %v2863_v14 = vadd.f32 %v2862_v10, %v12074_v18  ;;  %3993 = vmatpush.msrb.mxu3 %v16152_v1  ;;  %v16159_v18 = vld [vmem:[#allocation57_spill] sm:$0xff]  ;;  %v16160_v1 = vld [vmem:[#allocation23_spill] sm:$0xff] }
 0x535   :  { %3926 = vmatpush.msrb.mxu2 %v16153_v31 }
 0x536   :  { %v2913_v12 = vadd.f32 %v2912_v7, %v2863_v14  ;;  %3995 = vmatpush.msrb.mxu3 %v16156_v13  ;;  %v16164_v13 = vld [vmem:[#allocation70_spill] sm:$0xff] }
 0x537   :  { %v12281_v52 = vpop.f32.mrf.mxu0  ;;  %v12283_v61 = vpop.f32.mrf.mxu1  ;;  %3929 = vmatpush.msrb.mxu2 %v16157_v20 }
 0x538   :  { %16154 = vst [vmem:[#allocation69_spill] sm:$0xff] %v12281_v52  ;;  %v12288_v45 = vadd.f32 %v2913_v12, %v11823_v58  ;;  %v16163_v12 = vld [vmem:[#allocation93_spill] sm:$0xff] }
 0x539   :  { %16155 = vst [vmem:[#allocation114_spill] sm:$0xff] %v12283_v61  ;;  %3385 = vmatmul.f32.gmra.mxu2 %v16158_v51 }
 0x53a   :  { %3483 = vmatmul.f32.gmra.mxu3 %v11079_v59  ;;  %5435 = vmatmul.f32.gmra.mxu0 %v11391_v62  ;;  %v2050_v62 = vmax.f32 %v16165_v22, %v16164_v13  ;;  %v16169_v22 = vld [vmem:[#allocation122_spill] sm:$0xff] }
 0x53b   :  { %5529 = vmatmul.f32.gmra.mxu1 %v11008_v35  ;;  %3932 = vmatpush.msrb.mxu2 %v16159_v18  ;;  %v2866_v7 = vpop.f32.mrf.mxu2  ;;  %v16166_v18 = vld [vmem:[#allocation80_spill] sm:$0xff] }
 0x53c   :  { %v3061_v10 = vpop.f32.mrf.mxu3  ;;  %v2867_v14 = vadd.f32 %v2866_v7, %v12122_v11  ;;  %9328 = vtanh.f32 %v2050_v62 }
 0x53d   :  { %3935 = vmatpush.msrb.mxu2 %v16160_v1 }
 0x53e   :  { %v2917_v20 = vadd.f32 %v2916_v57, %v2867_v14 }
 0x53f   :  { %v12297_v31 = vpop.f32.mrf.mxu0  ;;  %v12299_v58 = vpop.f32.mrf.mxu1  ;;  %3938 = vmatpush.msrb.mxu2 %v16163_v12  ;;  %v16172_v12 = vld [vmem:[#allocation46_spill] sm:$0xff] }
 0x540   :  { %16161 = vst [vmem:[#allocation111_spill] sm:$0xff] %v12297_v31  ;;  %v12305_v61 = vadd.f32 %v2917_v20, %v11850_v25  ;;  %v16170_v25 = vld [vmem:[#allocation94_spill] sm:$0xff] }
 0x541   :  { %16162 = vst [vmem:[#allocation99_spill] sm:$0xff] %v12299_v58  ;;  %3393 = vmatmul.f32.gmra.mxu2 %v16166_v18  ;;  %v16183_v58 = vld [vmem:[#allocation116_spill] sm:$0xff] }
 0x542   :  { %3487 = vmatmul.f32.gmra.mxu3 %v11162_v0  ;;  %5443 = vmatmul.f32.gmra.mxu0 %v11416_v60  ;;  %v9329_v20 = vpop.eup %9328  ;;  %v16171_v60 = vld [vmem:[#allocation73_spill] sm:$0xff] }
 0x543   :  { %5533 = vmatmul.f32.gmra.mxu1 %v11362_v26  ;;  %v2963_v11 = vpop.f32.mrf.mxu2  ;;  %v3407_v13 = vsub.f32 %v16172_v12, %v16171_v60  ;;  %v16177_v60 = vld [vmem:[#allocation141_spill] sm:$0xff]  ;;  %v16179_v12 = vld [vmem:[#allocation59_spill] sm:$0xff] }
 0x544   :  { %v3065_v57 = vpop.f32.mrf.mxu3  ;;  %v12311_v7 = vadd.f32 %v3061_v10, %v2963_v11  ;;  %v5398_v11 = vsel %vm2075_vm3, %v9329_v20, 0 }
 0x545   :  { %v12330_v53 = vand.u32 4294901760, %v3407_v13  ;;  %v12332_v34 = vand.u32 4294901760, %v5398_v11 }
 0x547   :  { %v12313_v14 = vpop.f32.mrf.mxu0  ;;  %v12315_v1 = vpop.f32.mrf.mxu1 }
 0x548   :  { %16167 = vst [vmem:[#allocation56_spill] sm:$0xff] %v12313_v14 }
 0x549   :  { %16168 = vst [vmem:[#allocation92_spill] sm:$0xff] %v12315_v1  ;;  %3401 = vmatmul.f32.gmra.mxu2 %v16169_v22  ;;  %v16176_v1 = vld [vmem:[#allocation151_spill] sm:$0xff] }
 0x54a   :  { %3491 = vmatmul.f32.gmra.mxu3 %v16170_v25  ;;  %5451 = vmatmul.f32.gmra.mxu0 %v11437_v43  ;;  %v16175_v43 = vld [vmem:[#allocation58_spill] sm:$0xff] }
 0x54b   :  { %5537 = vmatmul.f32.gmra.mxu1 %v11389_v56  ;;  %v2971_v62 = vpop.f32.mrf.mxu2 }
 0x54c   :  { %v3069_v52 = vpop.f32.mrf.mxu3  ;;  %v12323_v10 = vadd.f32 %v3065_v57, %v2971_v62  ;;  %v16178_v57 = vld [vmem:[#allocation25_spill] sm:$0xff] }
 0x54d   :  { %v3414_v62 = vsub.f32 %v16179_v12, %v16178_v57  ;;  %v16184_v57 = vld [vmem:[#allocation148_spill] sm:$0xff]  ;;  %v16185_v12 = vld [vmem:[#allocation143_spill] sm:$0xff] }
 0x54f   :  { %v12326_v4 = vpop.f32.mrf.mxu0  ;;  %v12328_v37 = vpop.f32.mrf.mxu1  ;;  %v12349_v14 = vand.u32 4294901760, %v3414_v62 }
 0x550   :  { %16173 = vst [vmem:[#allocation72_spill] sm:$0xff] %v12326_v4  ;;  %v12341_v4 = vsub.f32 %v5398_v11, %v12332_v34 }
 0x551   :  { %16174 = vst [vmem:[#allocation109_spill] sm:$0xff] %v12328_v37  ;;  %3409 = vmatmul.f32.gmra.mxu2 %v12330_v53 }
 0x552   :  { %3494 = vmatmul.f32.gmra.mxu3 %v16175_v43  ;;  %5459 = vmatmul.f32.gmra.mxu0 %v16176_v1  ;;  %16180 = vst [vmem:[#allocation9_spill] sm:$0xff] %v12341_v4  ;;  %v15494_v1 = vand.u32 4294901760, %v12341_v4 }
 0x553   :  { %5541 = vmatmul.f32.gmra.mxu1 %v16177_v60  ;;  %v2979_v20 = vpop.f32.mrf.mxu2 }
 0x554   :  { %v3073_v47 = vpop.f32.mrf.mxu3  ;;  %v12343_v13 = vadd.f32 %v3069_v52, %v2979_v20  ;;  %v5472_v52 = vsub.f32 %v12341_v4, %v15494_v1 }
 0x556   :  { %v5473_v44 = vand.u32 4294901760, %v5472_v52 }
 0x557   :  { %v12345_v37 = vpop.f32.mrf.mxu0  ;;  %v12347_v46 = vpop.f32.mrf.mxu1 }
 0x558   :  { %16181 = vst [vmem:[#allocation45_spill] sm:$0xff] %v12345_v37  ;;  %v16186_v37 = vld [vmem:[#allocation118_spill] sm:$0xff] }
 0x559   :  { %16182 = vst [vmem:[#allocation49_spill] sm:$0xff] %v12347_v46  ;;  %3416 = vmatmul.f32.gmra.mxu2 %v12349_v14  ;;  %v3423_v55 = vand.u32 4294901760, %v16186_v37  ;;  %v16190_v37 = vld [vmem:[#allocation48_spill] sm:$0xff] }
 0x55a   :  { %3498 = vmatmul.f32.gmra.mxu3 %v16183_v58  ;;  %5466 = vmatmul.f32.gmra.mxu0 %v16184_v57 }
 0x55b   :  { %5544 = vmatmul.f32.gmra.mxu1 %v16185_v12  ;;  %v2987_v11 = vpop.f32.mrf.mxu2 }
 0x55c   :  { %v3077_v31 = vpop.f32.mrf.mxu3  ;;  %v12359_v20 = vadd.f32 %v3073_v47, %v2987_v11 }
 0x55f   :  { %v4910_v62 = vpop.f32.mrf.mxu0  ;;  %v4960_v46 = vpop.f32.mrf.mxu1 }
 0x560   :  { %v16189_v46 = vld [vmem:[#allocation115_spill] sm:$0xff]  ;;  %v16193_v62 = vld [vmem:[#allocation78_spill] sm:$0xff] }
 0x561   :  { %3424 = vmatmul.f32.gmra.mxu2 %v3423_v55 }
 0x562   :  { %3714 = vmatmul.f32.vlgmr.msra.gmra.mxu3 %v11012_v29  ;;  %5474 = vmatmul.f32.gmra.mxu0 %v5473_v44 }
 0x563   :  { %5548 = vmatmul.f32.gmra.mxu1 %v12332_v34  ;;  %v2995_v57 = vpop.f32.mrf.mxu2 }
 0x564   :  { %v3080_v54 = vpop.f32.mrf.mxu3 }
 0x567   :  { %v12364_v31 = vpop.f32.mrf.mxu0  ;;  %v12366_v48 = vpop.f32.mrf.mxu1 }
 0x568   :  { %16187 = vst [vmem:[#allocation57_spill] sm:$0xff] %v12364_v31 }
 0x569   :  { %16188 = vst [vmem:[#allocation23_spill] sm:$0xff] %v12366_v48  ;;  %3664 = vmatmul.f32.vlgmr.msra.gmra.mxu2 %v11012_v29 }
 0x56a   :  { %3718 = vmatmul.f32.gmra.mxu3 %v11047_v27  ;;  %5714 = vmatmul.f32.vlgmr.msrb.gmra.mxu0 %v10967_v24 }
 0x56b   :  { %5764 = vmatmul.f32.vlgmr.msrb.gmra.mxu1 %v10967_v24  ;;  %4180 = vmatpush.msra.mxu2 %v16189_v46  ;;  %v3002_v47 = vpop.f32.mrf.mxu2  ;;  %v16194_v24 = vld [vmem:[#allocation22_spill] sm:$0xff] }
 0x56c   :  { %v3084_v44 = vpop.f32.mrf.mxu3  ;;  %v12373_v55 = vadd.f32 %v3080_v54, %v3002_v47  ;;  %v16195_v47 = vld [vmem:[#allocation63_spill] sm:$0xff] }
 0x56d   :  { %4182 = vmatpush.msra.mxu2 %v16190_v37 }
 0x56f   :  { %v12376_v11 = vpop.f32.mrf.mxu0  ;;  %v12378_v52 = vpop.f32.mrf.mxu1  ;;  %4184 = vmatpush.msra.mxu2 %v16193_v62 }
 0x570   :  { %16191 = vst [vmem:[#allocation93_spill] sm:$0xff] %v12376_v11  ;;  %v16198_v11 = vld [vmem:[#allocation79_spill] sm:$0xff] }
 0x571   :  { %16192 = vst [vmem:[#allocation70_spill] sm:$0xff] %v12378_v52  ;;  %3668 = vmatmul.f32.gmra.mxu2 %v11047_v27 }
 0x572   :  { %3722 = vmatmul.f32.gmra.mxu3 %v11079_v59  ;;  %5718 = vmatmul.f32.gmra.mxu0 %v11008_v35 }
 0x573   :  { %5768 = vmatmul.f32.gmra.mxu1 %v11008_v35  ;;  %4186 = vmatpush.msra.mxu2 %v16194_v24  ;;  %v3010_v29 = vpop.f32.mrf.mxu2 }
 0x574   :  { %v3176_v54 = vpop.f32.mrf.mxu3  ;;  %v12386_v57 = vadd.f32 %v3084_v44, %v3010_v29 }
 0x575   :  { %4188 = vmatpush.msra.mxu2 %v16195_v47 }
 0x577   :  { %v12389_v1 = vpop.f32.mrf.mxu0  ;;  %v12391_v52 = vpop.f32.mrf.mxu1  ;;  %4190 = vmatpush.msra.mxu2 %v16198_v11 }
 0x578   :  { %16196 = vst [vmem:[#allocation17_spill] sm:$0xff] %v12389_v1 }
 0x579   :  { %16197 = vst [vmem:[#allocation80_spill] sm:$0xff] %v12391_v52  ;;  %3672 = vmatmul.f32.gmra.mxu2 %v11079_v59  ;;  %v16201_v52 = vld [vmem:[#allocation95_spill] sm:$0xff] }
 0x57a   :  { %3726 = vmatmul.f32.gmra.mxu3 %v11162_v0  ;;  %5722 = vmatmul.f32.gmra.mxu0 %v11362_v26 }
 0x57b   :  { %5772 = vmatmul.f32.gmra.mxu1 %v11362_v26  ;;  %v3118_v35 = vpop.f32.mrf.mxu2  ;;  %v16202_v26 = vld [vmem:[#allocation10_spill] sm:$0xff] }
 0x57c   :  { %v3182_v48 = vpop.f32.mrf.mxu3  ;;  %v3119_v44 = vadd.f32 %v3118_v35, %v12311_v7 }
 0x57e   :  { %v3177_v29 = vadd.f32 %v3176_v54, %v3119_v44 }
 0x57f   :  { %v12399_v31 = vpop.f32.mrf.mxu0  ;;  %v12401_v1 = vpop.f32.mrf.mxu1 }
 0x580   :  { %16199 = vst [vmem:[#allocation122_spill] sm:$0xff] %v12399_v31  ;;  %v3251_v4 = vadd.f32 %v16201_v52, %v3177_v29  ;;  %v16204_v29 = vld [vmem:[#allocation96_spill] sm:$0xff]  ;;  %v16211_v31 = vld [vmem:[#allocation90_spill] sm:$0xff] }
 0x581   :  { %16200 = vst [vmem:[#allocation94_spill] sm:$0xff] %v12401_v1  ;;  %3676 = vmatmul.f32.gmra.mxu2 %v11162_v0 }
 0x582   :  { %3730 = vmatmul.f32.gmra.mxu3 %v16170_v25  ;;  %5726 = vmatmul.f32.gmra.mxu0 %v11389_v56  ;;  %v3301_v17 = vadd.f32 %v16202_v26, %v3251_v4 }
 0x583   :  { %5776 = vmatmul.f32.gmra.mxu1 %v11389_v56  ;;  %v3123_v9 = vpop.f32.mrf.mxu2  ;;  %v16205_v56 = vld [vmem:[#allocation121_spill] sm:$0xff] }
 0x584   :  { %v3188_v15 = vpop.f32.mrf.mxu3  ;;  %v3124_v7 = vadd.f32 %v3123_v9, %v12323_v10  ;;  %v12411_v54 = vadd.f32 %v3301_v17, %v12185_v41 }
 0x586   :  { %v3183_v35 = vadd.f32 %v3182_v48, %v3124_v7 }
 0x587   :  { %v12413_v44 = vpop.f32.mrf.mxu0  ;;  %v12415_v52 = vpop.f32.mrf.mxu1 }
 0x588   :  { %16203 = vst [vmem:[#allocation73_spill] sm:$0xff] %v12415_v52  ;;  %v3255_v1 = vadd.f32 %v16204_v29, %v3183_v35  ;;  %v16208_v35 = vld [vmem:[#allocation60_spill] sm:$0xff] }
 0x589   :  { %3680 = vmatmul.f32.gmra.mxu2 %v16170_v25 }
 0x58a   :  { %3733 = vmatmul.f32.gmra.mxu3 %v16175_v43  ;;  %5730 = vmatmul.f32.gmra.mxu0 %v16177_v60  ;;  %v3305_v9 = vadd.f32 %v16205_v56, %v3255_v1 }
 0x58b   :  { %5780 = vmatmul.f32.gmra.mxu1 %v16177_v60  ;;  %v16209_v60 = vld [vmem:[#allocation27_spill] sm:$0xff] }
 0x58c   :  { %v3128_v4 = vpop.f32.mrf.mxu2  ;;  %v3194_v41 = vpop.f32.mrf.mxu3  ;;  %v12425_v48 = vadd.f32 %v3305_v9, %v12215_v30 }
 0x58d   :  { %v3129_v17 = vadd.f32 %v3128_v4, %v12343_v13 }
 0x58f   :  { %v3189_v10 = vadd.f32 %v3188_v15, %v3129_v17  ;;  %v12427_v26 = vpop.f32.mrf.mxu0  ;;  %v12429_v7 = vpop.f32.mrf.mxu1 }
 0x590   :  { %16206 = vst [vmem:[#allocation46_spill] sm:$0xff] %v12427_v26 }
 0x591   :  { %16207 = vst [vmem:[#allocation58_spill] sm:$0xff] %v12429_v7  ;;  %v3259_v29 = vadd.f32 %v16208_v35, %v3189_v10  ;;  %3683 = vmatmul.f32.gmra.mxu2 %v16175_v43  ;;  %v16210_v10 = vld [vmem:[#allocation76_spill] sm:$0xff]  ;;  %v16227_v7 = vld [vmem:[#allocation61_spill] sm:$0xff] }
 0x592   :  { %3737 = vmatmul.f32.gmra.mxu3 %v16183_v58  ;;  %5733 = vmatmul.f32.gmra.mxu0 %v16185_v12 }
 0x593   :  { %5783 = vmatmul.f32.gmra.mxu1 %v16185_v12  ;;  %v3309_v13 = vadd.f32 %v16209_v60, %v3259_v29  ;;  %v16212_v12 = vld [vmem:[#allocation125_spill] sm:$0xff] }
 0x594   :  { %v3133_v1 = vpop.f32.mrf.mxu2  ;;  %v3200_v30 = vpop.f32.mrf.mxu3 }
 0x595   :  { %v3134_v15 = vadd.f32 %v3133_v1, %v12359_v20  ;;  %v12439_v56 = vadd.f32 %v3309_v13, %v12242_v32  ;;  %v16215_v1 = vld [vmem:[#allocation52_spill] sm:$0xff] }
 0x597   :  { %v3195_v9 = vadd.f32 %v3194_v41, %v3134_v15  ;;  %v5196_v4 = vpop.f32.mrf.mxu0  ;;  %v5258_v17 = vpop.f32.mrf.mxu1 }
 0x598   :  { %v16219_v17 = vld [vmem:[#allocation47_spill] sm:$0xff] }
 0x599   :  { %v3263_v35 = vadd.f32 %v16210_v10, %v3195_v9  ;;  %3687 = vmatmul.f32.gmra.mxu2 %v16183_v58  ;;  %v16216_v58 = vld [vmem:[#allocation68_spill] sm:$0xff] }
 0x59a   :  { %3999 = vmatmul.f32.vlgmr.msrb.gmra.mxu3 %v16211_v31  ;;  %5737 = vmatmul.f32.gmra.mxu0 %v12332_v34  ;;  %v16220_v10 = vld [vmem:[#allocation12_spill] sm:$0xff] }
 0x59b   :  { %5787 = vmatmul.f32.gmra.mxu1 %v12332_v34  ;;  %v3313_v29 = vadd.f32 %v16212_v12, %v3263_v35  ;;  %v4265_v35 = vand.u32 4294901760, %v16220_v10  ;;  %v16221_v12 = vld [vmem:[#allocation127_spill] sm:$0xff] }
 0x59c   :  { %v3138_v60 = vpop.f32.mrf.mxu2  ;;  %v3205_v20 = vpop.f32.mrf.mxu3 }
 0x59d   :  { %v12448_v32 = vadd.f32 %v3313_v29, %v12258_v42  ;;  %v4259_v42 = vand.u32 4294901760, %v16219_v17 }
 0x59f   :  { %v12450_v41 = vpop.f32.mrf.mxu0  ;;  %v4260_v60 = vsub.f32 %v16219_v17, %v4259_v42 }
 0x5a0   :  { %16213 = vst [vmem:[#allocation151_spill] sm:$0xff] %v12450_v41  ;;  %v12452_v13 = vpop.f32.mrf.mxu1 }
 0x5a1   :  { %16214 = vst [vmem:[#allocation141_spill] sm:$0xff] %v12452_v13  ;;  %3941 = vmatmul.f32.vlgmr.msrb.gmra.mxu2 %v16215_v1  ;;  %v16222_v1 = vld [vmem:[#allocation128_spill] sm:$0xff] }
 0x5a2   :  { %4005 = vmatmul.f32.gmra.mxu3 %v16216_v58  ;;  %v4271_v58 = vand.u32 4294901760, %v16222_v1  ;;  %4461 = vmatpush.msrb.mxu2 %v4259_v42 }
 0x5a4   :  { %v3142_v31 = vpop.f32.mrf.mxu2  ;;  %4465 = vmatpush.msrb.mxu2 %v4265_v35 }
 0x5a5   :  { %v3211_v30 = vpop.f32.mrf.mxu3  ;;  %v3143_v15 = vadd.f32 %v3142_v31, %v12373_v55  ;;  %v4266_v55 = vsub.f32 %v16220_v10, %v4265_v35 }
 0x5a6   :  { %4469 = vmatpush.msrb.mxu2 %v4271_v58 }
 0x5a7   :  { %v3206_v34 = vadd.f32 %v3205_v20, %v3143_v15  ;;  %v12457_v9 = vpop.f32.mrf.mxu0  ;;  %v16223_v20 = vld [vmem:[#allocation112_spill] sm:$0xff]  ;;  %v4261_v15 = vand.u32 4294901760, %v4260_v60  ;;  %v4267_v41 = vand.u32 4294901760, %v4266_v55  ;;  %v16226_v55 = vld [vmem:[#allocation30_spill] sm:$0xff] }
 0x5a8   :  { %16217 = vst [vmem:[#allocation25_spill] sm:$0xff] %v12457_v9  ;;  %v12459_v4 = vpop.f32.mrf.mxu1  ;;  %v4289_v35 = vand.u32 4294901760, %v16226_v55 }
 0x5a9   :  { %16218 = vst [vmem:[#allocation59_spill] sm:$0xff] %v12459_v4  ;;  %v3270_v29 = vadd.f32 %v16221_v12, %v3206_v34  ;;  %3946 = vmatmul.f32.gmra.mxu2 %v16124_v21  ;;  %v4272_v4 = vsub.f32 %v16222_v1, %v4271_v58  ;;  %4262 = vmatpush.msra.mxu3 %v4261_v15  ;;  %v16225_v1 = vld [vmem:[#allocation64_spill] sm:$0xff] }
 0x5aa   :  { %4011 = vmatmul.f32.gmra.mxu3 %v16125_v16 }
 0x5ab   :  { %v3320_v31 = vadd.f32 %v16223_v20, %v3270_v29  ;;  %v4273_v17 = vand.u32 4294901760, %v4272_v4  ;;  %4268 = vmatpush.msra.mxu3 %v4267_v41  ;;  %v16224_v29 = vld [vmem:[#allocation131_spill] sm:$0xff]  ;;  %v4283_v20 = vand.u32 4294901760, %v16225_v1  ;;  %v16228_v41 = vld [vmem:[#allocation77_spill] sm:$0xff] }
 0x5ac   :  { %v3147_v9 = vpop.f32.mrf.mxu2  ;;  %v4277_v60 = vand.u32 4294901760, %v16224_v29 }
 0x5ad   :  { %v3476_v13 = vpop.f32.mrf.mxu3  ;;  %v3148_v21 = vadd.f32 %v3147_v9, %v12386_v57  ;;  %v12473_v34 = vadd.f32 %v3320_v31, %v12288_v45  ;;  %4274 = vmatpush.msra.mxu3 %v4273_v17  ;;  %v4290_v9 = vsub.f32 %v16226_v55, %v4289_v35 }
 0x5ae   :  { %v4278_v45 = vsub.f32 %v16224_v29, %v4277_v60  ;;  %4473 = vmatpush.msrb.mxu2 %v4277_v60 }
 0x5af   :  { %v3212_v12 = vadd.f32 %v3211_v30, %v3148_v21  ;;  %v12475_v10 = vpop.f32.mrf.mxu0  ;;  %v4284_v30 = vsub.f32 %v16225_v1, %v4283_v20  ;;  %v4291_v29 = vand.u32 4294901760, %v4290_v9  ;;  %v16236_v9 = vld [vmem:[#allocation75_spill] sm:$0xff] }
 0x5b0   :  { %v12477_v42 = vpop.f32.mrf.mxu1  ;;  %v4279_v58 = vand.u32 4294901760, %v4278_v45  ;;  %4477 = vmatpush.msrb.mxu2 %v4283_v20 }
 0x5b1   :  { %v3274_v57 = vadd.f32 %v16227_v7, %v3212_v12  ;;  %3951 = vmatmul.f32.gmra.mxu2 %v16133_v5  ;;  %v4285_v31 = vand.u32 4294901760, %v4284_v30 }
 0x5b2   :  { %4017 = vmatmul.f32.gmra.mxu3 %v16134_v2  ;;  %4481 = vmatpush.msrb.mxu2 %v4289_v35  ;;  %v16233_v35 = vld [vmem:[#allocation97_spill] sm:$0xff] }
 0x5b3   :  { %v3324_v4 = vadd.f32 %v16228_v41, %v3274_v57  ;;  %4280 = vmatpush.msra.mxu3 %v4279_v58 }
 0x5b4   :  { %v3378_v15 = vpop.f32.mrf.mxu2 }
 0x5b5   :  { %v3480_v21 = vpop.f32.mrf.mxu3  ;;  %v12489_v7 = vadd.f32 %v3476_v13, %v3378_v15  ;;  %v12492_v12 = vadd.f32 %v3324_v4, %v12305_v61  ;;  %4286 = vmatpush.msra.mxu3 %v4285_v31  ;;  %v16238_v15 = vld [vmem:[#allocation11_spill] sm:$0xff] }
 0x5b7   :  { %v12494_v1 = vpop.f32.mrf.mxu0  ;;  %4292 = vmatpush.msra.mxu3 %v4291_v29  ;;  %v16240_v29 = vld [vmem:[#allocation31_spill] sm:$0xff] }
 0x5b8   :  { %16229 = vst [vmem:[#allocation116_spill] sm:$0xff] %v12494_v1  ;;  %v12496_v17 = vpop.f32.mrf.mxu1  ;;  %v16257_v1 = vld [vmem:[#allocation117_spill] sm:$0xff] }
 0x5b9   :  { %16230 = vst [vmem:[#allocation148_spill] sm:$0xff] %v12496_v17  ;;  %3956 = vmatmul.f32.gmra.mxu2 %v16140_v50  ;;  %4521 = vmatpush.msrb.mxu3 %v16189_v46 }
 0x5ba   :  { %4023 = vmatmul.f32.gmra.mxu3 %v16141_v49 }
 0x5bb   :  { %4523 = vmatpush.msrb.mxu3 %v16190_v37 }
 0x5bc   :  { %v3386_v13 = vpop.f32.mrf.mxu2 }
 0x5bd   :  { %v3484_v60 = vpop.f32.mrf.mxu3  ;;  %v3481_v20 = vadd.f32 %v3480_v21, %v3386_v13  ;;  %4525 = vmatpush.msrb.mxu3 %v16193_v62  ;;  %v16237_v62 = vld [vmem:[#allocation98_spill] sm:$0xff] }
 0x5be   :  { %v16241_v13 = vld [vmem:[#allocation134_spill] sm:$0xff] }
 0x5bf   :  { %v12502_v61 = vpop.f32.mrf.mxu0  ;;  %4527 = vmatpush.msrb.mxu3 %v16194_v24 }
 0x5c0   :  { %16231 = vst [vmem:[#allocation143_spill] sm:$0xff] %v12502_v61  ;;  %v12504_v55 = vpop.f32.mrf.mxu1 }
 0x5c1   :  { %16232 = vst [vmem:[#allocation118_spill] sm:$0xff] %v12504_v55  ;;  %3961 = vmatmul.f32.gmra.mxu2 %v16143_v8  ;;  %4529 = vmatpush.msrb.mxu3 %v16195_v47  ;;  %v16239_v47 = vld [vmem:[#allocation14_spill] sm:$0xff] }
 0x5c2   :  { %4028 = vmatmul.f32.gmra.mxu3 %v16233_v35 }
 0x5c3   :  { %4531 = vmatpush.msrb.mxu3 %v16198_v11 }
 0x5c4   :  { %v3394_v57 = vpop.f32.mrf.mxu2 }
 0x5c5   :  { %v3488_v45 = vpop.f32.mrf.mxu3  ;;  %v3485_v46 = vadd.f32 %v3484_v60, %v3394_v57 }
 0x5c7   :  { %v12512_v37 = vpop.f32.mrf.mxu0 }
 0x5c8   :  { %16234 = vst [vmem:[#allocation115_spill] sm:$0xff] %v12512_v37  ;;  %v12514_v30 = vpop.f32.mrf.mxu1 }
 0x5c9   :  { %16235 = vst [vmem:[#allocation48_spill] sm:$0xff] %v12514_v30  ;;  %3965 = vmatmul.f32.gmra.mxu2 %v16236_v9 }
 0x5ca   :  { %4034 = vmatmul.f32.gmra.mxu3 %v16237_v62 }
 0x5cc   :  { %v3402_v41 = vpop.f32.mrf.mxu2 }
 0x5cd   :  { %v3492_v4 = vpop.f32.mrf.mxu3  ;;  %v12518_v58 = vadd.f32 %v3488_v45, %v3402_v41  ;;  %v16244_v45 = vld [vmem:[#allocation83_spill] sm:$0xff]  ;;  %v16245_v41 = vld [vmem:[#allocation82_spill] sm:$0xff] }
 0x5ce   :  { %v16246_v4 = vld [vmem:[#allocation66_spill] sm:$0xff] }
 0x5cf   :  { %v5460_v24 = vpop.f32.mrf.mxu0 }
 0x5d0   :  { %v5542_v31 = vpop.f32.mrf.mxu1 }
 0x5d1   :  { %3970 = vmatmul.f32.gmra.mxu2 %v16238_v15 }
 0x5d2   :  { %4294 = vmatmul.f32.vlgmr.msra.gmra.mxu3 %v11047_v27 }
 0x5d3   :  { %4805 = vmatpush.msra.mxu3 %v16239_v47  ;;  %v16247_v47 = vld [vmem:[#allocation101_spill] sm:$0xff] }
 0x5d4   :  { %v3410_v11 = vpop.f32.mrf.mxu2 }
 0x5d5   :  { %v3495_v21 = vpop.f32.mrf.mxu3  ;;  %4807 = vmatpush.msra.mxu3 %v16240_v29  ;;  %v16248_v11 = vld [vmem:[#allocation103_spill] sm:$0xff] }
 0x5d7   :  { %4809 = vmatpush.msra.mxu3 %v16241_v13  ;;  %v12525_v60 = vpop.f32.mrf.mxu0  ;;  %v16249_v13 = vld [vmem:[#allocation51_spill] sm:$0xff] }
 0x5d8   :  { %16242 = vst [vmem:[#allocation78_spill] sm:$0xff] %v12525_v60  ;;  %v12527_v57 = vpop.f32.mrf.mxu1  ;;  %v16254_v60 = vld [vmem:[#allocation129_spill] sm:$0xff] }
 0x5d9   :  { %16243 = vst [vmem:[#allocation22_spill] sm:$0xff] %v12527_v57  ;;  %4811 = vmatpush.msra.mxu3 %v16244_v45  ;;  %4196 = vmatmul.f32.vlgmr.msra.gmra.mxu2 %v16158_v51  ;;  %v16252_v51 = vld [vmem:[#allocation126_spill] sm:$0xff] }
 0x5da   :  { %4298 = vmatmul.f32.gmra.mxu3 %v11079_v59  ;;  %4743 = vmatpush.msra.mxu2 %v16245_v41  ;;  %v16253_v41 = vld [vmem:[#allocation32_spill] sm:$0xff] }
 0x5db   :  { %4813 = vmatpush.msra.mxu3 %v16246_v4 }
 0x5dc   :  { %v3417_v24 = vpop.f32.mrf.mxu2  ;;  %4746 = vmatpush.msra.mxu2 %v16247_v47 }
 0x5dd   :  { %v3499_v31 = vpop.f32.mrf.mxu3  ;;  %4815 = vmatpush.msra.mxu3 %v16248_v11  ;;  %v12536_v29 = vadd.f32 %v3495_v21, %v3417_v24  ;;  %v16255_v24 = vld [vmem:[#allocation62_spill] sm:$0xff] }
 0x5de   :  { %4749 = vmatpush.msra.mxu2 %v16249_v13  ;;  %v3534_v11 = vadd.f32 %v16255_v24, %v12489_v7  ;;  %v16260_v24 = vld [vmem:[#allocation119_spill] sm:$0xff] }
 0x5df   :  { %v12539_v57 = vpop.f32.mrf.mxu0 }
 0x5e0   :  { %16250 = vst [vmem:[#allocation63_spill] sm:$0xff] %v12539_v57  ;;  %v12541_v45 = vpop.f32.mrf.mxu1  ;;  %4752 = vmatpush.msra.mxu2 %v16252_v51 }
 0x5e1   :  { %16251 = vst [vmem:[#allocation79_spill] sm:$0xff] %v12541_v45  ;;  %4204 = vmatmul.f32.gmra.mxu2 %v16166_v18  ;;  %v16256_v18 = vld [vmem:[#allocation28_spill] sm:$0xff] }
 0x5e2   :  { %4302 = vmatmul.f32.gmra.mxu3 %v11162_v0  ;;  %4755 = vmatpush.msra.mxu2 %v16253_v41  ;;  %v3592_v51 = vadd.f32 %v16256_v18, %v3534_v11 }
 0x5e4   :  { %v3425_v4 = vpop.f32.mrf.mxu2  ;;  %4758 = vmatpush.msra.mxu2 %v16254_v60  ;;  %v3539_v60 = vadd.f32 %v16257_v1, %v3481_v20 }
 0x5e5   :  { %v3715_v47 = vpop.f32.mrf.mxu3  ;;  %v12548_v21 = vadd.f32 %v3499_v31, %v3425_v4 }
 0x5e6   :  { %v3598_v37 = vadd.f32 %v16260_v24, %v3539_v60  ;;  %v4233_v60 = vsub.f32 %v11756_v38, %v11773_v33  ;;  %v16270_v38 = vld [vmem:[#allocation133_spill] sm:$0xff] }
 0x5e7   :  { %v12552_v13 = vpop.f32.mrf.mxu0 }
 0x5e8   :  { %v12554_v45 = vpop.f32.mrf.mxu1 }
 0x5e9   :  { %4212 = vmatmul.f32.gmra.mxu2 %v16169_v22 }
 0x5ea   :  { %4306 = vmatmul.f32.gmra.mxu3 %v16170_v25 }
 0x5ec   :  { %v3665_v41 = vpop.f32.mrf.mxu2 }
 0x5ed   :  { %v3719_v57 = vpop.f32.mrf.mxu3  ;;  %v3666_v17 = vadd.f32 %v3665_v41, %v3592_v51  ;;  %v16261_v51 = vld [vmem:[#allocation100_spill] sm:$0xff] }
 0x5ee   :  { %v3544_v41 = vadd.f32 %v16261_v51, %v3485_v46 }
 0x5ef   :  { %v3716_v31 = vadd.f32 %v3715_v47, %v3666_v17  ;;  %v12560_v4 = vpop.f32.mrf.mxu0 }
 0x5f0   :  { %16258 = vst [vmem:[#allocation95_spill] sm:$0xff] %v12560_v4  ;;  %v12562_v30 = vpop.f32.mrf.mxu1 }
 0x5f1   :  { %16259 = vst [vmem:[#allocation10_spill] sm:$0xff] %v12562_v30  ;;  %v12565_v7 = vadd.f32 %v3716_v31, %v12411_v54  ;;  %4220 = vmatmul.f32.gmra.mxu2 %v12330_v53  ;;  %v16264_v54 = vld [vmem:[#allocation137_spill] sm:$0xff] }
 0x5f2   :  { %4310 = vmatmul.f32.gmra.mxu3 %v16175_v43  ;;  %v16265_v31 = vld [vmem:[#allocation13_spill] sm:$0xff] }
 0x5f3   :  { %v3604_v30 = vadd.f32 %v16265_v31, %v3544_v41  ;;  %v16269_v41 = vld [vmem:[#allocation16_spill] sm:$0xff] }
 0x5f4   :  { %v3669_v11 = vpop.f32.mrf.mxu2 }
 0x5f5   :  { %v3723_v18 = vpop.f32.mrf.mxu3  ;;  %v3670_v26 = vadd.f32 %v3669_v11, %v3598_v37 }
 0x5f7   :  { %v3720_v1 = vadd.f32 %v3719_v57, %v3670_v26  ;;  %v12571_v17 = vpop.f32.mrf.mxu0  ;;  %v16266_v26 = vld [vmem:[#allocation24_spill] sm:$0xff] }
 0x5f8   :  { %16262 = vst [vmem:[#allocation96_spill] sm:$0xff] %v12571_v17  ;;  %v12573_v20 = vpop.f32.mrf.mxu1  ;;  %v3549_v57 = vadd.f32 %v16266_v26, %v12518_v58 }
 0x5f9   :  { %16263 = vst [vmem:[#allocation121_spill] sm:$0xff] %v12573_v20  ;;  %v12576_v47 = vadd.f32 %v3720_v1, %v12425_v48  ;;  %4228 = vmatmul.f32.gmra.mxu2 %v12349_v14  ;;  %v12589_v1 = vand.u32 4294901760, %v4233_v60 }
 0x5fa   :  { %4313 = vmatmul.f32.gmra.mxu3 %v16264_v54  ;;  %v3610_v33 = vadd.f32 %v16270_v38, %v3549_v57  ;;  %v16273_v57 = vld [vmem:[#allocation81_spill] sm:$0xff] }
 0x5fb   :  { %v3558_v38 = vadd.f32 %v16273_v57, %v12536_v29  ;;  %v16279_v29 = vld [vmem:[#allocation113_spill] sm:$0xff] }
 0x5fc   :  { %v3673_v37 = vpop.f32.mrf.mxu2 }
 0x5fd   :  { %v3727_v24 = vpop.f32.mrf.mxu3  ;;  %v3674_v46 = vadd.f32 %v3673_v37, %v3604_v30  ;;  %v16271_v30 = vld [vmem:[#allocation86_spill] sm:$0xff] }
 0x5fe   :  { %v16272_v31 = vand.u32 4294901760, %v16271_v30 }
 0x5ff   :  { %v3724_v11 = vadd.f32 %v3723_v18, %v3674_v46  ;;  %v12585_v51 = vpop.f32.mrf.mxu0 }
 0x600   :  { %16267 = vst [vmem:[#allocation60_spill] sm:$0xff] %v12585_v51  ;;  %v12587_v48 = vpop.f32.mrf.mxu1  ;;  %v4241_v58 = vsub.f32 %v16271_v30, %v16272_v31 }
 0x601   :  { %16268 = vst [vmem:[#allocation27_spill] sm:$0xff] %v12587_v48  ;;  %v12592_v4 = vadd.f32 %v3724_v11, %v12439_v56  ;;  %4235 = vmatmul.f32.gmra.mxu2 %v12589_v1 }
 0x602   :  { %4317 = vmatmul.f32.gmra.mxu3 %v16269_v41  ;;  %v4242_v51 = vand.u32 4294901760, %v4241_v58  ;;  %v16277_v58 = vld [vmem:[#allocation110_spill] sm:$0xff] }
 0x604   :  { %v3677_v18 = vpop.f32.mrf.mxu2 }
 0x605   :  { %v3731_v37 = vpop.f32.mrf.mxu3  ;;  %v3678_v46 = vadd.f32 %v3677_v18, %v3610_v33  ;;  %v16274_v33 = vld [vmem:[#allocation6_spill] sm:$0xff]  ;;  %v16278_v18 = vld [vmem:[#allocation124_spill] sm:$0xff] }
 0x606   :  { %v3563_v37 = vadd.f32 %v16278_v18, %v12548_v21 }
 0x607   :  { %v3728_v26 = vadd.f32 %v3727_v24, %v3678_v46  ;;  %v5731_v48 = vpop.f32.mrf.mxu0  ;;  %v16275_v24 = vld [vmem:[#allocation50_spill] sm:$0xff] }
 0x608   :  { %v5781_v60 = vpop.f32.mrf.mxu1  ;;  %v3621_v48 = vadd.f32 %v16275_v24, %v3558_v38  ;;  %v16282_v24 = vld [vmem:[#allocation154_spill] sm:$0xff] }
 0x609   :  { %v12601_v56 = vadd.f32 %v3728_v26, %v12448_v32  ;;  %4243 = vmatmul.f32.gmra.mxu2 %v4242_v51  ;;  %v16276_v32 = vld [vmem:[#allocation89_spill] sm:$0xff] }
 0x60a   :  { %4533 = vmatmul.f32.vlgmr.msrb.gmra.mxu3 %v11047_v27  ;;  %v16280_v26 = vld [vmem:[#allocation153_spill] sm:$0xff] }
 0x60b   :  { %v16281_v60 = vld [vmem:[#allocation65_spill] sm:$0xff] }
 0x60c   :  { %v3681_v11 = vpop.f32.mrf.mxu2 }
 0x60d   :  { %v3734_v20 = vpop.f32.mrf.mxu3  ;;  %v3627_v11 = vadd.f32 %v16281_v60, %v3563_v37  ;;  %v16285_v60 = vld [vmem:[#allocation142_spill] sm:$0xff] }
 0x611   :  { %4483 = vmatmul.f32.vlgmr.msrb.gmra.mxu2 %v11047_v27 }
 0x612   :  { %4537 = vmatmul.f32.gmra.mxu3 %v11079_v59  ;;  %5004 = vmatpush.msrb.mxu2 %v16274_v33 }
 0x614   :  { %v3684_v30 = vpop.f32.mrf.mxu2  ;;  %5006 = vmatpush.msrb.mxu2 %v16276_v32 }
 0x615   :  { %v3738_v31 = vpop.f32.mrf.mxu3  ;;  %v3685_v51 = vadd.f32 %v3684_v30, %v3621_v48 }
 0x616   :  { %5008 = vmatpush.msrb.mxu2 %v16277_v58 }
 0x617   :  { %v3735_v46 = vadd.f32 %v3734_v20, %v3685_v51 }
 0x618   :  { %5010 = vmatpush.msrb.mxu2 %v16279_v29 }
 0x619   :  { %v12616_v27 = vadd.f32 %v3735_v46, %v12473_v34  ;;  %4487 = vmatmul.f32.gmra.mxu2 %v11079_v59  ;;  %v16283_v59 = vld [vmem:[#allocation102_spill] sm:$0xff]  ;;  %v16284_v34 = vld [vmem:[#allocation135_spill] sm:$0xff] }
 0x61a   :  { %4541 = vmatmul.f32.gmra.mxu3 %v11162_v0  ;;  %5012 = vmatpush.msrb.mxu2 %v16280_v26  ;;  %v3886_v30 = vadd.f32 %v16284_v34, %v16283_v59 }
 0x61c   :  { %v3688_v57 = vpop.f32.mrf.mxu2  ;;  %5014 = vmatpush.msrb.mxu2 %v16282_v24 }
 0x61d   :  { %v4000_v38 = vpop.f32.mrf.mxu3  ;;  %v3689_v48 = vadd.f32 %v3688_v57, %v3627_v11  ;;  %v16288_v57 = vld [vmem:[#allocation87_spill] sm:$0xff] }
 0x61f   :  { %v3739_v21 = vadd.f32 %v3738_v31, %v3689_v48  ;;  %v16286_v31 = vld [vmem:[#allocation136_spill] sm:$0xff] }
 0x621   :  { %v12624_v20 = vadd.f32 %v3739_v21, %v12492_v12  ;;  %4491 = vmatmul.f32.gmra.mxu2 %v11162_v0  ;;  %v16287_v12 = vld [vmem:[#allocation104_spill] sm:$0xff] }
 0x622   :  { %4545 = vmatmul.f32.gmra.mxu3 %v16170_v25  ;;  %v3890_v11 = vadd.f32 %v16287_v12, %v16286_v31 }
 0x624   :  { %v3942_v51 = vpop.f32.mrf.mxu2 }
 0x625   :  { %v4006_v18 = vpop.f32.mrf.mxu3  ;;  %v3943_v46 = vadd.f32 %v3942_v51, %v3886_v30  ;;  %v16289_v30 = vld [vmem:[#allocation91_spill] sm:$0xff] }
 0x626   :  { %v16290_v51 = vld [vmem:[#allocation15_spill] sm:$0xff] }
 0x627   :  { %v4001_v37 = vadd.f32 %v4000_v38, %v3943_v46  ;;  %v16291_v46 = vld [vmem:[#allocation84_spill] sm:$0xff] }
 0x629   :  { %v4075_v17 = vadd.f32 %v16285_v60, %v4001_v37  ;;  %4495 = vmatmul.f32.gmra.mxu2 %v16170_v25  ;;  %v3894_v37 = vadd.f32 %v16291_v46, %v16290_v51  ;;  %v16292_v60 = vld [vmem:[#allocation139_spill] sm:$0xff] }
 0x62a   :  { %4549 = vmatmul.f32.gmra.mxu3 %v16175_v43 }
 0x62b   :  { %v4125_v48 = vadd.f32 %v16288_v57, %v4075_v17 }
 0x62c   :  { %v3947_v21 = vpop.f32.mrf.mxu2 }
 0x62d   :  { %v4012_v55 = vpop.f32.mrf.mxu3  ;;  %v3948_v61 = vadd.f32 %v3947_v21, %v3890_v11  ;;  %v12637_v59 = vadd.f32 %v4125_v48, %v12565_v7  ;;  %v16293_v48 = vld [vmem:[#allocation145_spill] sm:$0xff]  ;;  %v16295_v21 = vld [vmem:[#allocation130_spill] sm:$0xff] }
 0x62f   :  { %v4007_v34 = vadd.f32 %v4006_v18, %v3948_v61  ;;  %v16294_v18 = vld [vmem:[#allocation85_spill] sm:$0xff] }
 0x631   :  { %v4079_v38 = vadd.f32 %v16289_v30, %v4007_v34  ;;  %4499 = vmatmul.f32.gmra.mxu2 %v16175_v43  ;;  %v3898_v34 = vadd.f32 %v16295_v21, %v16294_v18  ;;  %v16296_v30 = vld [vmem:[#allocation108_spill] sm:$0xff] }
 0x632   :  { %4552 = vmatmul.f32.gmra.mxu3 %v16264_v54 }
 0x633   :  { %v4129_v31 = vadd.f32 %v16292_v60, %v4079_v38 }
 0x634   :  { %v3952_v12 = vpop.f32.mrf.mxu2 }
 0x635   :  { %v4018_v17 = vpop.f32.mrf.mxu3  ;;  %v3953_v57 = vadd.f32 %v3952_v12, %v3894_v37  ;;  %v12646_v11 = vadd.f32 %v4129_v31, %v12576_v47  ;;  %v16297_v31 = vld [vmem:[#allocation147_spill] sm:$0xff]  ;;  %v16298_v12 = vld [vmem:[#allocation149_spill] sm:$0xff] }
 0x637   :  { %v4013_v7 = vadd.f32 %v4012_v55, %v3953_v57 }
 0x639   :  { %v4083_v61 = vadd.f32 %v16293_v48, %v4013_v7  ;;  %4502 = vmatmul.f32.gmra.mxu2 %v16264_v54 }
 0x63a   :  { %4556 = vmatmul.f32.gmra.mxu3 %v16269_v41 }
 0x63b   :  { %v4133_v51 = vadd.f32 %v16296_v30, %v4083_v61  ;;  %v16300_v61 = vld [vmem:[#allocation106_spill] sm:$0xff] }
 0x63c   :  { %v3957_v46 = vpop.f32.mrf.mxu2 }
 0x63d   :  { %v4024_v38 = vpop.f32.mrf.mxu3  ;;  %v3958_v60 = vadd.f32 %v3957_v46, %v3898_v34  ;;  %v12655_v37 = vadd.f32 %v4133_v51, %v12592_v4  ;;  %v16299_v4 = vld [vmem:[#allocation33_spill] sm:$0xff]  ;;  %v16301_v51 = vld [vmem:[#allocation42_spill] sm:$0xff] }
 0x63e   :  { %v16302_v46 = vld [vmem:[#allocation41_spill] sm:$0xff] }
 0x63f   :  { %v4019_v47 = vadd.f32 %v4018_v17, %v3958_v60  ;;  %v3905_v17 = vadd.f32 %v16300_v61, %v16299_v4  ;;  %v5089_v38 = vand.u32 4294901760, %v16302_v46  ;;  %v16303_v60 = vld [vmem:[#allocation150_spill] sm:$0xff] }
 0x641   :  { %v4087_v55 = vadd.f32 %v16297_v31, %v4019_v47  ;;  %4506 = vmatmul.f32.gmra.mxu2 %v16269_v41  ;;  %v16304_v31 = vld [vmem:[#allocation67_spill] sm:$0xff] }
 0x642   :  { %4819 = vmatmul.f32.vlgmr.msra.gmra.mxu3 %v16125_v16  ;;  %v5083_v16 = vand.u32 4294901760, %v16301_v51 }
 0x643   :  { %v4137_v57 = vadd.f32 %v16298_v12, %v4087_v55  ;;  %v5095_v55 = vand.u32 4294901760, %v16304_v31  ;;  %v16305_v12 = vld [vmem:[#allocation138_spill] sm:$0xff] }
 0x644   :  { %v3962_v7 = vpop.f32.mrf.mxu2 }
 0x645   :  { %v4029_v48 = vpop.f32.mrf.mxu3  ;;  %v12662_v18 = vadd.f32 %v4137_v57, %v12601_v56  ;;  %v5090_v56 = vsub.f32 %v16302_v46, %v5089_v38  ;;  %v16306_v57 = vld [vmem:[#allocation107_spill] sm:$0xff] }
 0x646   :  { %v3909_v7 = vadd.f32 %v16306_v57, %v16305_v12  ;;  %v16308_v12 = vld [vmem:[#allocation152_spill] sm:$0xff] }
 0x647   :  { %v16309_v57 = vld [vmem:[#allocation44_spill] sm:$0xff] }
 0x649   :  { %4761 = vmatmul.f32.vlgmr.msra.gmra.mxu2 %v16133_v5  ;;  %v5084_v5 = vsub.f32 %v16301_v51, %v5083_v16 }
 0x64a   :  { %4825 = vmatmul.f32.gmra.mxu3 %v16134_v2  ;;  %5285 = vmatpush.msra.mxu2 %v5083_v16  ;;  %v5101_v16 = vand.u32 4294901760, %v16308_v12 }
 0x64b   :  { %v5085_v61 = vand.u32 4294901760, %v5084_v5  ;;  %v16310_v5 = vld [vmem:[#allocation155_spill] sm:$0xff] }
 0x64c   :  { %v3966_v21 = vpop.f32.mrf.mxu2  ;;  %5289 = vmatpush.msra.mxu2 %v5089_v38  ;;  %v5102_v38 = vsub.f32 %v16308_v12, %v5101_v16 }
 0x64d   :  { %v4035_v34 = vpop.f32.mrf.mxu3  ;;  %v3967_v30 = vadd.f32 %v3966_v21, %v3905_v17  ;;  %v5091_v17 = vand.u32 4294901760, %v5090_v56  ;;  %v5096_v21 = vsub.f32 %v16304_v31, %v5095_v55  ;;  %5086 = vmatpush.msrb.mxu3 %v5085_v61  ;;  %v5113_v56 = vand.u32 4294901760, %v16310_v5 }
 0x64e   :  { %5293 = vmatpush.msra.mxu2 %v5095_v55  ;;  %v16312_v55 = vld [vmem:[#allocation38_spill] sm:$0xff] }
 0x64f   :  { %v4030_v41 = vadd.f32 %v4029_v48, %v3967_v30  ;;  %v16307_v48 = vld [vmem:[#allocation132_spill] sm:$0xff]  ;;  %v5097_v46 = vand.u32 4294901760, %v5096_v21  ;;  %5092 = vmatpush.msrb.mxu3 %v5091_v17 }
 0x650   :  { %5297 = vmatpush.msra.mxu2 %v5101_v16 }
 0x651   :  { %v4094_v47 = vadd.f32 %v16303_v60, %v4030_v41  ;;  %4766 = vmatmul.f32.gmra.mxu2 %v16140_v50  ;;  %5098 = vmatpush.msrb.mxu3 %v5097_v46 }
 0x652   :  { %4831 = vmatmul.f32.gmra.mxu3 %v16141_v49 }
 0x653   :  { %v4144_v4 = vadd.f32 %v16307_v48, %v4094_v47  ;;  %v5107_v47 = vand.u32 4294901760, %v16309_v57  ;;  %v16311_v48 = vld [vmem:[#allocation34_spill] sm:$0xff] }
 0x654   :  { %v3971_v30 = vpop.f32.mrf.mxu2 }
 0x655   :  { %v4295_v41 = vpop.f32.mrf.mxu3  ;;  %v3972_v60 = vadd.f32 %v3971_v30, %v3909_v7  ;;  %v12681_v51 = vadd.f32 %v4144_v4, %v12616_v27  ;;  %v5108_v27 = vsub.f32 %v16309_v57, %v5107_v47  ;;  %v5103_v4 = vand.u32 4294901760, %v5102_v38  ;;  %5301 = vmatpush.msra.mxu2 %v5107_v47  ;;  %v16320_v38 = vld [vmem:[#allocation36_spill] sm:$0xff] }
 0x657   :  { %v4036_v52 = vadd.f32 %v4035_v34, %v3972_v60  ;;  %v5114_v34 = vsub.f32 %v16310_v5, %v5113_v56  ;;  %v5109_v61 = vand.u32 4294901760, %v5108_v27  ;;  %5104 = vmatpush.msrb.mxu3 %v5103_v4  ;;  %5305 = vmatpush.msra.mxu2 %v5113_v56  ;;  %v16315_v5 = vld [vmem:[#allocation71_spill] sm:$0xff] }
 0x659   :  { %v4098_v31 = vadd.f32 %v16311_v48, %v4036_v52  ;;  %4771 = vmatmul.f32.gmra.mxu2 %v16143_v8  ;;  %v5115_v60 = vand.u32 4294901760, %v5114_v34  ;;  %5110 = vmatpush.msrb.mxu3 %v5109_v61  ;;  %v16316_v48 = vld [vmem:[#allocation146_spill] sm:$0xff] }
 0x65a   :  { %4837 = vmatmul.f32.gmra.mxu3 %v16233_v35 }
 0x65b   :  { %v4148_v7 = vadd.f32 %v16312_v55, %v4098_v31  ;;  %5116 = vmatpush.msrb.mxu3 %v5115_v60  ;;  %v16322_v55 = vld [vmem:[#allocation105_spill] sm:$0xff] }
 0x65c   :  { %v4197_v17 = vpop.f32.mrf.mxu2 }
 0x65d   :  { %v4299_v21 = vpop.f32.mrf.mxu3  ;;  %v4296_v52 = vadd.f32 %v4295_v41, %v4197_v17  ;;  %v12694_v30 = vadd.f32 %v4148_v7, %v12624_v20  ;;  %5345 = vmatpush.msra.mxu3 %v16274_v33  ;;  %v16313_v20 = vld [vmem:[#allocation140_spill] sm:$0xff] }
 0x65e   :  { %v16314_v33 = vld [vmem:[#allocation144_spill] sm:$0xff] }
 0x65f   :  { %5347 = vmatpush.msra.mxu3 %v16276_v32  ;;  %v16323_v17 = vld [vmem:[#allocation88_spill] sm:$0xff] }
 0x661   :  { %4776 = vmatmul.f32.gmra.mxu2 %v16236_v9  ;;  %5349 = vmatpush.msra.mxu3 %v16277_v58 }
 0x662   :  { %4843 = vmatmul.f32.gmra.mxu3 %v16237_v62 }
 0x663   :  { %5351 = vmatpush.msra.mxu3 %v16279_v29 }
 0x664   :  { %v4205_v46 = vpop.f32.mrf.mxu2 }
 0x665   :  { %v4303_v12 = vpop.f32.mrf.mxu3  ;;  %v4300_v16 = vadd.f32 %v4299_v21, %v4205_v46  ;;  %5353 = vmatpush.msra.mxu3 %v16280_v26  ;;  %v16324_v21 = vld [vmem:[#allocation26_spill] sm:$0xff] }
 0x667   :  { %5355 = vmatpush.msra.mxu3 %v16282_v24  ;;  %v4358_v7 = vadd.f32 %v16322_v55, %v4300_v16 }
 0x669   :  { %4781 = vmatmul.f32.gmra.mxu2 %v16238_v15 }
 0x66a   :  { %4848 = vmatmul.f32.gmra.mxu3 %v16313_v20 }
 0x66c   :  { %v4213_v41 = vpop.f32.mrf.mxu2 }
 0x66d   :  { %v4307_v57 = vpop.f32.mrf.mxu3  ;;  %v4304_v47 = vadd.f32 %v4303_v12, %v4213_v41 }
 0x671   :  { %4785 = vmatmul.f32.gmra.mxu2 %v16314_v33 }
 0x672   :  { %4854 = vmatmul.f32.gmra.mxu3 %v16315_v5 }
 0x674   :  { %v4221_v32 = vpop.f32.mrf.mxu2 }
 0x675   :  { %v4311_v56 = vpop.f32.mrf.mxu3  ;;  %v4308_v58 = vadd.f32 %v4307_v57, %v4221_v32  ;;  %v16327_v32 = vld [vmem:[#allocation156_spill] sm:$0xff] }
 0x676   :  { %v4363_v56 = vadd.f32 %v16327_v32, %v4304_v47 }
 0x679   :  { %4790 = vmatmul.f32.gmra.mxu2 %v16316_v48 }
 0x67a   :  { %5118 = vmatmul.f32.vlgmr.msrb.gmra.mxu3 %v11162_v0 }
 0x67b   :  { %5626 = vmatpush.msrb.mxu3 %v12087_v40 }
 0x67c   :  { %v4229_v29 = vpop.f32.mrf.mxu2 }
 0x67d   :  { %v4314_v31 = vpop.f32.mrf.mxu3  ;;  %5628 = vmatpush.msrb.mxu3 %v12101_v28  ;;  %v16317_v28 = vld [vmem:[#allocation37_spill] sm:$0xff] }
 0x67f   :  { %5630 = vmatpush.msrb.mxu3 %v12117_v19  ;;  %v16318_v19 = vld [vmem:[#allocation53_spill] sm:$0xff] }
 0x681   :  { %5632 = vmatpush.msrb.mxu3 %v12135_v36  ;;  %5020 = vmatmul.f32.vlgmr.msrb.gmra.mxu2 %v16169_v22 }
 0x682   :  { %5122 = vmatmul.f32.gmra.mxu3 %v16170_v25  ;;  %5564 = vmatpush.msrb.mxu2 %v12098_v6 }
 0x683   :  { %5634 = vmatpush.msrb.mxu3 %v12142_v3  ;;  %v16319_v3 = vld [vmem:[#allocation7_spill] sm:$0xff] }
 0x684   :  { %v4236_v26 = vpop.f32.mrf.mxu2  ;;  %5567 = vmatpush.msrb.mxu2 %v12115_v39  ;;  %v4353_v39 = vadd.f32 %v16320_v38, %v4296_v52  ;;  %v4417_v52 = vadd.f32 %v16324_v21, %v4358_v7  ;;  %v16332_v38 = vld [vmem:[#allocation158_spill] sm:$0xff] }
 0x685   :  { %v4318_v24 = vpop.f32.mrf.mxu3  ;;  %5636 = vmatpush.msrb.mxu3 %v12161_v23  ;;  %v4315_v40 = vadd.f32 %v4314_v31, %v4236_v26  ;;  %v16321_v23 = vld [vmem:[#allocation39_spill] sm:$0xff]  ;;  %v16329_v31 = vld [vmem:[#allocation157_spill] sm:$0xff] }
 0x686   :  { %5570 = vmatpush.msrb.mxu2 %v12133_v63  ;;  %v4411_v63 = vadd.f32 %v16321_v23, %v4353_v39  ;;  %v4423_v26 = vadd.f32 %v16329_v31, %v4363_v56  ;;  %v4368_v39 = vadd.f32 %v16332_v38, %v4308_v58  ;;  %v16339_v31 = vld [vmem:[#allocation18_spill] sm:$0xff] }
 0x688   :  { %5573 = vmatpush.msrb.mxu2 %v16317_v28 }
 0x689   :  { %5028 = vmatmul.f32.gmra.mxu2 %v12330_v53 }
 0x68a   :  { %5126 = vmatmul.f32.gmra.mxu3 %v16175_v43  ;;  %5576 = vmatpush.msrb.mxu2 %v16318_v19 }
 0x68c   :  { %v4244_v6 = vpop.f32.mrf.mxu2  ;;  %5579 = vmatpush.msrb.mxu2 %v16319_v3 }
 0x68d   :  { %v4534_v36 = vpop.f32.mrf.mxu3  ;;  %v4319_v22 = vadd.f32 %v4318_v24, %v4244_v6  ;;  %v16330_v24 = vld [vmem:[#allocation54_spill] sm:$0xff] }
 0x68e   :  { %v16331_v28 = vand.u32 4294901760, %v16330_v24 }
 0x690   :  { %v5057_v19 = vsub.f32 %v16330_v24, %v16331_v28 }
 0x691   :  { %5036 = vmatmul.f32.gmra.mxu2 %v12349_v14  ;;  %v16325_v14 = vld [vmem:[#allocation5_spill] sm:$0xff] }
 0x692   :  { %5130 = vmatmul.f32.gmra.mxu3 %v16264_v54  ;;  %v16326_v60 = vand.u32 4294901760, %v16325_v14  ;;  %v5058_v23 = vand.u32 4294901760, %v5057_v19 }
 0x694   :  { %v4484_v27 = vpop.f32.mrf.mxu2  ;;  %v5050_v46 = vsub.f32 %v16325_v14, %v16326_v60 }
 0x695   :  { %v4538_v34 = vpop.f32.mrf.mxu3  ;;  %v4485_v53 = vadd.f32 %v4484_v27, %v4411_v63  ;;  %v16334_v27 = vld [vmem:[#allocation159_spill] sm:$0xff] }
 0x696   :  { %v5051_v29 = vand.u32 4294901760, %v5050_v46 }
 0x697   :  { %v4535_v4 = vadd.f32 %v4534_v36, %v4485_v53  ;;  %v16335_v53 = vld [vmem:[#allocation55_spill] sm:$0xff] }
 0x698   :  { %v16336_v55 = vand.u32 4294901760, %v16335_v53 }
 0x699   :  { %v12732_v61 = vadd.f32 %v4535_v4, %v12637_v59  ;;  %5044 = vmatmul.f32.gmra.mxu2 %v12589_v1  ;;  %v16328_v1 = vld [vmem:[#allocation161_spill] sm:$0xff] }
 0x69a   :  { %5134 = vmatmul.f32.gmra.mxu3 %v16323_v17  ;;  %v5065_v7 = vsub.f32 %v16335_v53, %v16336_v55  ;;  %v16346_v53 = vld [vmem:[#allocation29_spill] sm:$0xff] }
 0x69c   :  { %v4488_v12 = vpop.f32.mrf.mxu2  ;;  %v5066_v60 = vand.u32 4294901760, %v5065_v7  ;;  %v16348_v7 = vld [vmem:[#allocation99_spill] sm:$0xff] }
 0x69d   :  { %v4542_v41 = vpop.f32.mrf.mxu3  ;;  %v4489_v57 = vadd.f32 %v4488_v12, %v4417_v52  ;;  %v16337_v12 = vld [vmem:[#allocation35_spill] sm:$0xff] }
 0x69f   :  { %v4539_v16 = vadd.f32 %v4538_v34, %v4489_v57  ;;  %v4429_v34 = vadd.f32 %v16334_v27, %v4368_v39  ;;  %v16338_v57 = vld [vmem:[#allocation160_spill] sm:$0xff]  ;;  %v16345_v27 = vld [vmem:[#allocation111_spill] sm:$0xff] }
 0x6a1   :  { %v12742_v59 = vadd.f32 %v4539_v16, %v12646_v11  ;;  %5052 = vmatmul.f32.gmra.mxu2 %v5051_v29  ;;  %v16333_v11 = vld [vmem:[#allocation163_spill] sm:$0xff] }
 0x6a2   :  { %5137 = vmatmul.f32.gmra.mxu3 %v16328_v1 }
 0x6a4   :  { %v4492_v6 = vpop.f32.mrf.mxu2 }
 0x6a5   :  { %v4546_v36 = vpop.f32.mrf.mxu3  ;;  %v4493_v3 = vadd.f32 %v4492_v6, %v4423_v26  ;;  %v4382_v26 = vadd.f32 %v16339_v31, %v4319_v22  ;;  %v16343_v22 = vld [vmem:[#allocation40_spill] sm:$0xff] }
 0x6a7   :  { %v4543_v47 = vadd.f32 %v4542_v41, %v4493_v3  ;;  %v4377_v41 = vadd.f32 %v16337_v12, %v4315_v40  ;;  %v16341_v40 = vld [vmem:[#allocation19_spill] sm:$0xff]  ;;  %v16351_v12 = vld [vmem:[#allocation120_spill] sm:$0xff] }
 0x6a8   :  { %v4446_v28 = vadd.f32 %v16341_v40, %v4382_v26  ;;  %v16354_v26 = vld [vmem:[#allocation72_spill] sm:$0xff]  ;;  %v16356_v40 = vld [vmem:[#allocation162_spill] sm:$0xff] }
 0x6a9   :  { %v12751_v63 = vadd.f32 %v4543_v47, %v12655_v37  ;;  %5059 = vmatmul.f32.gmra.mxu2 %v5058_v23  ;;  %v4440_v32 = vadd.f32 %v16338_v57, %v4377_v41  ;;  %v16352_v57 = vld [vmem:[#allocation92_spill] sm:$0xff] }
 0x6aa   :  { %5141 = vmatmul.f32.gmra.mxu3 %v16333_v11 }
 0x6ac   :  { %v4496_v4 = vpop.f32.mrf.mxu2 }
 0x6ad   :  { %v4550_v21 = vpop.f32.mrf.mxu3  ;;  %v4497_v52 = vadd.f32 %v4496_v4, %v4429_v34 }
 0x6af   :  { %v4547_v14 = vadd.f32 %v4546_v36, %v4497_v52 }
 0x6b1   :  { %v12759_v58 = vadd.f32 %v4547_v14, %v12662_v18  ;;  %5067 = vmatmul.f32.gmra.mxu2 %v5066_v60 }
 0x6b2   :  { %5357 = vmatmul.f32.vlgmr.msra.gmra.mxu3 %v11162_v0 }
 0x6b4   :  { %v4500_v37 = vpop.f32.mrf.mxu2 }
 0x6b5   :  { %v4553_v46 = vpop.f32.mrf.mxu3  ;;  %v16349_v37 = vld [vmem:[#allocation56_spill] sm:$0xff] }
 0x6b9   :  { %5307 = vmatmul.f32.vlgmr.msra.gmra.mxu2 %v11162_v0 }
 0x6ba   :  { %5361 = vmatmul.f32.gmra.mxu3 %v16170_v25 }
 0x6bc   :  { %v4503_v56 = vpop.f32.mrf.mxu2 }
 0x6bd   :  { %v4557_v16 = vpop.f32.mrf.mxu3  ;;  %v4504_v29 = vadd.f32 %v4503_v56, %v4440_v32 }
 0x6bf   :  { %v4554_v18 = vadd.f32 %v4553_v46, %v4504_v29 }
 0x6c1   :  { %v12768_v24 = vadd.f32 %v4554_v18, %v12681_v51  ;;  %5311 = vmatmul.f32.gmra.mxu2 %v16170_v25  ;;  %v16344_v51 = vld [vmem:[#allocation20_spill] sm:$0xff] }
 0x6c2   :  { %5365 = vmatmul.f32.gmra.mxu3 %v16175_v43  ;;  %v4706_v38 = vadd.f32 %v16344_v51, %v16343_v22 }
 0x6c3   :  { %16340 = vst [vmem:[#allocation76_spill] sm:$0xff] %v12768_v24 }
 0x6c4   :  { %v4507_v0 = vpop.f32.mrf.mxu2 }
 0x6c5   :  { %v4820_v19 = vpop.f32.mrf.mxu3  ;;  %v4508_v6 = vadd.f32 %v4507_v0, %v4446_v28  ;;  %v16357_v0 = vld [vmem:[#allocation109_spill] sm:$0xff] }
 0x6c7   :  { %v4558_v36 = vadd.f32 %v4557_v16, %v4508_v6 }
 0x6c9   :  { %v12774_v3 = vadd.f32 %v4558_v36, %v12694_v30  ;;  %5315 = vmatmul.f32.gmra.mxu2 %v16175_v43  ;;  %v16347_v30 = vld [vmem:[#allocation43_spill] sm:$0xff] }
 0x6ca   :  { %5369 = vmatmul.f32.gmra.mxu3 %v16264_v54  ;;  %v4710_v55 = vadd.f32 %v16347_v30, %v16346_v53 }
 0x6cb   :  { %16342 = vst [vmem:[#allocation90_spill] sm:$0xff] %v12774_v3 }
 0x6cc   :  { %v4762_v39 = vpop.f32.mrf.mxu2 }
 0x6cd   :  { %v4826_v25 = vpop.f32.mrf.mxu3  ;;  %v4763_v47 = vadd.f32 %v4762_v39, %v4706_v38  ;;  %v16358_v38 = vld [vmem:[#allocation45_spill] sm:$0xff] }
 0x6cf   :  { %v4821_v23 = vadd.f32 %v4820_v19, %v4763_v47 }
 0x6d1   :  { %v4895_v34 = vadd.f32 %v16345_v27, %v4821_v23  ;;  %5319 = vmatmul.f32.gmra.mxu2 %v16264_v54  ;;  %v16350_v54 = vld [vmem:[#allocation21_spill] sm:$0xff] }
 0x6d2   :  { %5373 = vmatmul.f32.gmra.mxu3 %v16323_v17  ;;  %v4714_v41 = vadd.f32 %v16351_v12, %v16350_v54  ;;  %v5816_v54 = vld [vmem:[%s15236_s5 + $0x40] sm:$0xff] }
 0x6d3   :  { %v4945_v43 = vadd.f32 %v16348_v7, %v4895_v34 }
 0x6d4   :  { %v4767_v4 = vpop.f32.mrf.mxu2 }
 0x6d5   :  { %v4832_v21 = vpop.f32.mrf.mxu3  ;;  %v4768_v52 = vadd.f32 %v4767_v4, %v4710_v55  ;;  %v12787_v14 = vadd.f32 %v4945_v43, %v12732_v61 }
 0x6d7   :  { %v4827_v60 = vadd.f32 %v4826_v25, %v4768_v52 }
 0x6d9   :  { %v4899_v46 = vadd.f32 %v16349_v37, %v4827_v60  ;;  %5323 = vmatmul.f32.gmra.mxu2 %v16323_v17  ;;  %v16355_v17 = vld [vmem:[#allocation8_spill] sm:$0xff]  ;;  %v5818_v37 = vld [vmem:[%s15236_s5 + $0x50] sm:$0xff] }
 0x6da   :  { %5376 = vmatmul.f32.gmra.mxu3 %v16328_v1  ;;  %v4718_v28 = vadd.f32 %v16356_v40, %v16355_v17  ;;  %v12885_v12 = vand.u32 4294901760, %v5818_v37 }
 0x6db   :  { %v4949_v32 = vadd.f32 %v16352_v57, %v4899_v46  ;;  %v5817_v46 = vld [vmem:[%s15236_s5 + $0x48] sm:$0xff]  ;;  %v12889_v57 = vand.u32 4294901760, %v5816_v54 }
 0x6dc   :  { %v4772_v56 = vpop.f32.mrf.mxu2 }
 0x6dd   :  { %v4838_v16 = vpop.f32.mrf.mxu3  ;;  %v4773_v29 = vadd.f32 %v4772_v56, %v4714_v41  ;;  %v12796_v31 = vadd.f32 %v4949_v32, %v12742_v59  ;;  %v12887_v41 = vand.u32 4294901760, %v5817_v46  ;;  %v5815_v32 = vld [vmem:[%s15236_s5 + $0x38] sm:$0xff] }
 0x6df   :  { %16353 = vst [vmem:[#allocation125_spill] sm:$0xff] %v12796_v31  ;;  %v4833_v61 = vadd.f32 %v4832_v21, %v4773_v29  ;;  %v12899_v29 = vsub.f32 %v5818_v37, %v12885_v12 }
 0x6e1   :  { %v4903_v18 = vadd.f32 %v16354_v26, %v4833_v61  ;;  %5326 = vmatmul.f32.gmra.mxu2 %v16328_v1  ;;  %v16359_v1 = vld [vmem:[#allocation49_spill] sm:$0xff]  ;;  %v12902_v61 = vsub.f32 %v5817_v46, %v12887_v41  ;;  %v12905_v26 = vsub.f32 %v5816_v54, %v12889_v57  ;;  %v15507_v40 = vand.u32 4294901760, %v12899_v29 }
 0x6e2   :  { %5380 = vmatmul.f32.gmra.mxu3 %v16333_v11 }
 0x6e3   :  { %v4953_v19 = vadd.f32 %v16357_v0, %v4903_v18  ;;  %v15504_v0 = vand.u32 4294901760, %v12905_v26 }
 0x6e4   :  { %v4777_v6 = vpop.f32.mrf.mxu2 }
 0x6e5   :  { %v4844_v36 = vpop.f32.mrf.mxu3  ;;  %v4778_v22 = vadd.f32 %v4777_v6, %v4718_v28  ;;  %v12805_v51 = vadd.f32 %v4953_v19, %v12751_v63  ;;  %v15506_v28 = vand.u32 4294901760, %v12902_v61 }
 0x6e6   :  { %v5874_v36 = vsub.f32 %v12899_v29, %v15507_v40 }
 0x6e7   :  { %v4839_v59 = vadd.f32 %v4838_v16, %v4778_v22  ;;  %v12896_v16 = vand.u32 4294901760, %v5815_v32  ;;  %v5880_v22 = vsub.f32 %v12902_v61, %v15506_v28 }
 0x6e9   :  { %v4907_v39 = vadd.f32 %v16358_v38, %v4839_v59  ;;  %5330 = vmatmul.f32.gmra.mxu2 %v16333_v11  ;;  %v12912_v17 = vsub.f32 %v5815_v32, %v12896_v16  ;;  %v5886_v59 = vsub.f32 %v12905_v26, %v15504_v0  ;;  %v5811_v32 = vld [vmem:[%s15236_s5 + $0x18] sm:$0xff] }
 0x6ea   :  { %5640 = vmatmul.f32.vlgmr.msrb.gmra.mxu3 %v16134_v2 }
 0x6eb   :  { %v4957_v25 = vadd.f32 %v16359_v1, %v4907_v39  ;;  %v15501_v6 = vand.u32 4294901760, %v12912_v17  ;;  %v5875_v1 = vand.u32 4294901760, %v5874_v36 }
 0x6ec   :  { %v4782_v47 = vpop.f32.mrf.mxu2 }
 0x6ed   :  { %v12811_v23 = vpop.f32.mrf.mxu3  ;;  %v12814_v27 = vadd.f32 %v4957_v25, %v12759_v58  ;;  %v5881_v25 = vand.u32 4294901760, %v5880_v22  ;;  %v5892_v47 = vsub.f32 %v12912_v17, %v15501_v6  ;;  %v5810_v6 = vld [vmem:[%s15236_s5 + $0x10] sm:$0xff] }
 0x6ee   :  { %v13015_v40 = vand.u32 4294901760, %v5810_v6 }
 0x6ef   :  { %16360 = vst [vmem:[#allocation52_spill] sm:$0xff] %v12814_v27 }
 0x6f1   :  { %5582 = vmatmul.f32.vlgmr.msrb.gmra.mxu2 %v16140_v50 }
 0x6f2   :  { %5646 = vmatmul.f32.gmra.mxu3 %v16141_v49 }
 0x6f4   :  { %v12818_v63 = vpop.f32.mrf.mxu2 }
 0x6f5   :  { %v12820_v34 = vpop.f32.mrf.mxu3 }
 0x6f6   :  { %16361 = vst [vmem:[#allocation68_spill] sm:$0xff] %v12820_v34  ;;  %v16370_v34 = vand.u32 4294901760, %v12899_v29 }
 0x6f9   :  { %5587 = vmatmul.f32.gmra.mxu2 %v16143_v8 }
 0x6fa   :  { %5652 = vmatmul.f32.gmra.mxu3 %v16233_v35 }
 0x6fc   :  { %v12824_v2 = vpop.f32.mrf.mxu2 }
 0x6fd   :  { %v12826_v11 = vpop.f32.mrf.mxu3 }
 0x701   :  { %5592 = vmatmul.f32.gmra.mxu2 %v16236_v9 }
 0x702   :  { %5658 = vmatmul.f32.gmra.mxu3 %v16237_v62  ;;  %v16362_v62 = vld [vmem:[#allocation9_spill] sm:$0xff] }
 0x703   :  { %v16363_v53 = vand.u32 4294901760, %v16362_v62 }
 0x704   :  { %v12830_v58 = vpop.f32.mrf.mxu2 }
 0x705   :  { %v12832_v50 = vpop.f32.mrf.mxu3 }
 0x709   :  { %5597 = vmatmul.f32.gmra.mxu2 %v16238_v15 }
 0x70a   :  { %5664 = vmatmul.f32.gmra.mxu3 %v16313_v20 }
 0x70c   :  { %v12836_v49 = vpop.f32.mrf.mxu2 }
 0x70d   :  { %v12838_v8 = vpop.f32.mrf.mxu3 }
 0x711   :  { %5602 = vmatmul.f32.gmra.mxu2 %v16314_v33 }
 0x712   :  { %5669 = vmatmul.f32.gmra.mxu3 %v16315_v5 }
 0x714   :  { %v12842_v35 = vpop.f32.mrf.mxu2 }
 0x715   :  { %v12844_v9 = vpop.f32.mrf.mxu3 }
 0x719   :  { %5606 = vmatmul.f32.gmra.mxu2 %v16316_v48  ;;  %v5819_v48 = vld [vmem:[%s15236_s5 + $0x58] sm:$0xff] }
 0x71a   :  { %5675 = vmatmul.f32.gmra.mxu3 %v16363_v53  ;;  %v12865_v4 = vand.u32 4294901760, %v5819_v48  ;;  %v5893_v53 = vand.u32 4294901760, %v5892_v47 }
 0x71c   :  { %v12849_v15 = vpop.f32.mrf.mxu2  ;;  %v12872_v60 = vsub.f32 %v5819_v48, %v12865_v4  ;;  %5993 = vmatpush.msra.mxu1 %v12865_v4  ;;  %5829 = vmatpush.msra.mxu2 %v12865_v4  ;;  %v5812_v48 = vld [vmem:[%s15236_s5 + $0x20] sm:$0xff] }
 0x71d   :  { %v5135_v20 = vpop.f32.mrf.mxu3  ;;  %v12958_v54 = vand.u32 4294901760, %v5812_v48 }
 0x71e   :  { %v15508_v56 = vand.u32 4294901760, %v12872_v60  ;;  %5948 = vmatpush.msra.mxu0 %v12872_v60  ;;  %5995 = vmatpush.msra.mxu1 %v12885_v12  ;;  %v5814_v20 = vld [vmem:[%s15236_s5 + $0x30] sm:$0xff] }
 0x71f   :  { %5831 = vmatpush.msra.mxu2 %v12885_v12  ;;  %v12954_v37 = vand.u32 4294901760, %v5814_v20 }
 0x720   :  { %v5868_v18 = vsub.f32 %v12872_v60, %v15508_v56  ;;  %5951 = vmatpush.msra.mxu0 %v12899_v29  ;;  %5997 = vmatpush.msra.mxu1 %v12887_v41 }
 0x721   :  { %5611 = vmatmul.f32.gmra.mxu2 %v16362_v62  ;;  %v5887_v62 = vand.u32 4294901760, %v5886_v59  ;;  %v12970_v22 = vsub.f32 %v5814_v20, %v12954_v37 }
 0x722   :  { %v5869_v19 = vand.u32 4294901760, %v5868_v18  ;;  %5833 = vmatpush.msra.mxu2 %v12887_v41  ;;  %5954 = vmatpush.msra.mxu0 %v12902_v61  ;;  %v12963_v18 = vand.u32 4294901760, %v5811_v32 }
 0x723   :  { %5999 = vmatpush.msra.mxu1 %v12889_v57  ;;  %v15502_v47 = vand.u32 4294901760, %v12970_v22 }
 0x724   :  { %v5053_v30 = vpop.f32.mrf.mxu2  ;;  %5870 = vmatpush.msra.mxu3 %v5869_v19  ;;  %5835 = vmatpush.msra.mxu2 %v12889_v57 }
 0x725   :  { %v12852_v55 = vpop.f32.mrf.mxu3  ;;  %5957 = vmatpush.msra.mxu0 %v12905_v26  ;;  %6001 = vmatpush.msra.mxu1 %v12896_v16  ;;  %v5813_v30 = vld [vmem:[%s15236_s5 + $0x28] sm:$0xff] }
 0x726   :  { %5837 = vmatpush.msra.mxu2 %v12896_v16  ;;  %5876 = vmatpush.msra.mxu3 %v5875_v1  ;;  %v12956_v46 = vand.u32 4294901760, %v5813_v30  ;;  %v12976_v1 = vsub.f32 %v5812_v48, %v12958_v54 }
 0x727   :  { %5960 = vmatpush.msra.mxu0 %v12912_v17  ;;  %6003 = vmatpush.msra.mxu1 %v12954_v37 }
 0x728   :  { %5882 = vmatpush.msra.mxu3 %v5881_v25  ;;  %v12973_v59 = vsub.f32 %v5813_v30, %v12956_v46  ;;  %5839 = vmatpush.msra.mxu2 %v12954_v37  ;;  %v12981_v25 = vsub.f32 %v5811_v32, %v12963_v18  ;;  %v15505_v20 = vand.u32 4294901760, %v12976_v1 }
 0x729   :  { %5963 = vmatpush.msra.mxu0 %v12970_v22  ;;  %6005 = vmatpush.msra.mxu1 %v12956_v46 }
 0x72a   :  { %5888 = vmatpush.msra.mxu3 %v5887_v62  ;;  %v15503_v62 = vand.u32 4294901760, %v12973_v59  ;;  %v15509_v30 = vand.u32 4294901760, %v12981_v25  ;;  %5841 = vmatpush.msra.mxu2 %v12956_v46  ;;  %v5910_v32 = vsub.f32 %v12976_v1, %v15505_v20 }
 0x72b   :  { %5966 = vmatpush.msra.mxu0 %v12973_v59  ;;  %6007 = vmatpush.msra.mxu1 %v12958_v54 }
 0x72c   :  { %v12854_v33 = vpop.f32.mrf.mxu2  ;;  %5894 = vmatpush.msra.mxu3 %v5893_v53  ;;  %v5898_v53 = vsub.f32 %v12970_v22, %v15502_v47  ;;  %v5904_v48 = vsub.f32 %v12973_v59, %v15503_v62  ;;  %v5809_v47 = vld [vmem:[%s15236_s5 + $0x8] sm:$0xff]  ;;  %5843 = vmatpush.msra.mxu2 %v12958_v54  ;;  %v5808_v62 = vld [vmem:[%s15236_s5] sm:$0xff]  ;;  %v5916_v28 = vsub.f32 %v12981_v25, %v15509_v30 }
 0x72d   :  { %v12856_v5 = vpop.f32.mrf.mxu3  ;;  %5969 = vmatpush.msra.mxu0 %v12976_v1  ;;  %6009 = vmatpush.msra.mxu1 %v12963_v18  ;;  %v13018_v56 = vand.u32 4294901760, %v5809_v47  ;;  %v13020_v3 = vand.u32 4294901760, %v5808_v62 }
 0x72e   :  { %16364 = vst [vmem:[#allocation47_spill] sm:$0xff] %v12856_v5  ;;  %v5899_v0 = vand.u32 4294901760, %v5898_v53  ;;  %v5905_v20 = vand.u32 4294901760, %v5904_v48  ;;  %5845 = vmatpush.msra.mxu2 %v12963_v18  ;;  %v5911_v48 = vand.u32 4294901760, %v5910_v32 }
 0x72f   :  { %5972 = vmatpush.msra.mxu0 %v12981_v25  ;;  %v13030_v30 = vsub.f32 %v5809_v47, %v13018_v56  ;;  %v13033_v24 = vsub.f32 %v5808_v62, %v13020_v3  ;;  %6011 = vmatpush.msra.mxu1 %v13015_v40 }
 0x730   :  { %5900 = vmatpush.msra.mxu3 %v5899_v0  ;;  %5847 = vmatpush.msra.mxu2 %v13015_v40 }
 0x731   :  { %v15512_v32 = vand.u32 4294901760, %v13033_v24  ;;  %6013 = vmatpush.msra.mxu1 %v13018_v56 }
 0x732   :  { %5906 = vmatpush.msra.mxu3 %v5905_v20  ;;  %5849 = vmatpush.msra.mxu2 %v13018_v56 }
 0x733   :  { %v5934_v62 = vsub.f32 %v13033_v24, %v15512_v32  ;;  %6015 = vmatpush.msra.mxu1 %v13020_v3 }
 0x734   :  { %v12858_v7 = vpop.f32.mrf.mxu2  ;;  %5912 = vmatpush.msra.mxu3 %v5911_v48  ;;  %5851 = vmatpush.msra.mxu2 %v13020_v3 }
 0x735   :  { %16365 = vst [vmem:[#allocation12_spill] sm:$0xff] %v12858_v7  ;;  %v12860_v43 = vpop.f32.mrf.mxu3  ;;  %v5935_v7 = vand.u32 4294901760, %v5934_v62 }
 0x73c   :  { %v12867_v21 = vpop.f32.mrf.mxu2 }
 0x73d   :  { %v12869_v52 = vpop.f32.mrf.mxu3 }
 0x73e   :  { %16366 = vst [vmem:[#allocation127_spill] sm:$0xff] %v12869_v52  ;;  %v13026_v52 = vsub.f32 %v5810_v6, %v13015_v40  ;;  %v15511_v6 = vand.u32 4294901760, %v13030_v30 }
 0x740   :  { %v15510_v0 = vand.u32 4294901760, %v13026_v52  ;;  %5975 = vmatpush.msra.mxu0 %v13026_v52 }
 0x742   :  { %v5922_v47 = vsub.f32 %v13026_v52, %v15510_v0  ;;  %5978 = vmatpush.msra.mxu0 %v13030_v30 }
 0x744   :  { %v12933_v38 = vpop.f32.mrf.mxu2  ;;  %v5923_v20 = vand.u32 4294901760, %v5922_v47  ;;  %5981 = vmatpush.msra.mxu0 %v13033_v24 }
 0x745   :  { %16367 = vst [vmem:[#allocation128_spill] sm:$0xff] %v12933_v38  ;;  %v12935_v39 = vpop.f32.mrf.mxu3  ;;  %v5917_v38 = vand.u32 4294901760, %v5916_v28  ;;  %v5928_v28 = vsub.f32 %v13030_v30, %v15511_v6  ;;  %v16368_v6 = vand.u32 4294901760, %v12872_v60 }
 0x747   :  { %5918 = vmatpush.msra.mxu3 %v5917_v38  ;;  %v5929_v48 = vand.u32 4294901760, %v5928_v28  ;;  %6030 = vmatpush.msrb.mxu2 %v16368_v6  ;;  %v9212_v38 = vld [vmem:[%s15236_s5 + $0xb0] sm:$0xff] }
 0x748   :  { %v13072_v28 = vand.u32 4294901760, %v9212_v38 }
 0x749   :  { %5924 = vmatpush.msra.mxu3 %v5923_v20  ;;  %6034 = vmatpush.msrb.mxu2 %v16370_v34  ;;  %v16371_v20 = vand.u32 4294901760, %v12902_v61  ;;  %v9210_v34 = vld [vmem:[%s15236_s5 + $0xa0] sm:$0xff] }
 0x74a   :  { %v13084_v62 = vsub.f32 %v9212_v38, %v13072_v28  ;;  %v16372_v38 = vand.u32 4294901760, %v12905_v26 }
 0x74b   :  { %5930 = vmatpush.msra.mxu3 %v5929_v48  ;;  %6038 = vmatpush.msrb.mxu2 %v16371_v20  ;;  %v13097_v48 = vand.u32 4294901760, %v9210_v34 }
 0x74c   :  { %v12965_v19 = vpop.f32.mrf.mxu2 }
 0x74d   :  { %v12967_v36 = vpop.f32.mrf.mxu3  ;;  %5936 = vmatpush.msra.mxu3 %v5935_v7  ;;  %v9209_v7 = vld [vmem:[%s15236_s5 + $0x98] sm:$0xff]  ;;  %6042 = vmatpush.msrb.mxu2 %v16372_v38  ;;  %v13120_v26 = vsub.f32 %v9210_v34, %v13097_v48 }
 0x74f   :  { %6085 = vmatpush.msrb.mxu3 %v12865_v4  ;;  %v15516_v34 = vand.u32 4294901760, %v13120_v26 }
 0x751   :  { %6087 = vmatpush.msrb.mxu3 %v12885_v12  ;;  %v9208_v12 = vld [vmem:[%s15236_s5 + $0x90] sm:$0xff] }
 0x753   :  { %6089 = vmatpush.msrb.mxu3 %v12887_v41  ;;  %v16377_v41 = vand.u32 4294901760, %v12970_v22 }
 0x754   :  { %v13023_v31 = vpop.f32.mrf.mxu2 }
 0x755   :  { %v5374_v53 = vpop.f32.mrf.mxu3  ;;  %6091 = vmatpush.msrb.mxu3 %v12889_v57 }
 0x756   :  { %v9213_v53 = vld [vmem:[%s15236_s5 + $0xb8] sm:$0xff] }
 0x757   :  { %v13059_v0 = vand.u32 4294901760, %v9213_v53  ;;  %6093 = vmatpush.msrb.mxu3 %v12896_v16 }
 0x759   :  { %6135 = vmatpush.msrb.mxu0 %v13059_v0  ;;  %v13070_v47 = vsub.f32 %v9213_v53, %v13059_v0  ;;  %v15514_v53 = vand.u32 4294901760, %v13084_v62  ;;  %6095 = vmatpush.msrb.mxu3 %v12954_v37  ;;  %v9204_v37 = vld [vmem:[%s15236_s5 + $0x70] sm:$0xff] }
 0x75b   :  { %6137 = vmatpush.msrb.mxu0 %v13072_v28  ;;  %v15513_v60 = vand.u32 4294901760, %v13070_v47  ;;  %v6180_v20 = vsub.f32 %v13084_v62, %v15514_v53  ;;  %6097 = vmatpush.msrb.mxu3 %v12956_v46  ;;  %v9203_v46 = vld [vmem:[%s15236_s5 + $0x68] sm:$0xff] }
 0x75c   :  { %v5324_v5 = vpop.f32.mrf.mxu2 }
 0x75d   :  { %v13063_v32 = vpop.f32.mrf.mxu3  ;;  %v9211_v5 = vld [vmem:[%s15236_s5 + $0xa8] sm:$0xff]  ;;  %v6174_v29 = vsub.f32 %v13070_v47, %v15513_v60  ;;  %v6181_v38 = vand.u32 4294901760, %v6180_v20  ;;  %6099 = vmatpush.msrb.mxu3 %v12958_v54  ;;  %v9202_v54 = vld [vmem:[%s15236_s5 + $0x60] sm:$0xff] }
 0x75e   :  { %16369 = vst [vmem:[#allocation112_spill] sm:$0xff] %v13063_v32  ;;  %v13081_v6 = vand.u32 4294901760, %v9211_v5 }
 0x75f   :  { %v6175_v4 = vand.u32 4294901760, %v6174_v29  ;;  %v16375_v29 = vand.u32 4294901760, %v12912_v17  ;;  %v9207_v17 = vld [vmem:[%s15236_s5 + $0x88] sm:$0xff]  ;;  %6101 = vmatpush.msrb.mxu3 %v12963_v18  ;;  %v5527_v18 = vadd.f32 %v12477_v42, %v12475_v10 }
 0x760   :  { %6139 = vmatpush.msrb.mxu0 %v13081_v6  ;;  %v13100_v61 = vsub.f32 %v9211_v5, %v13081_v6  ;;  %v13113_v5 = vand.u32 4294901760, %v9209_v7  ;;  %v13144_v20 = vand.u32 4294901760, %v9207_v17 }
 0x761   :  { %6046 = vmatpush.msrb.mxu2 %v16375_v29  ;;  %6176 = vmatpush.msrb.mxu1 %v6175_v4 }
 0x762   :  { %6141 = vmatpush.msrb.mxu0 %v13097_v48  ;;  %v15515_v60 = vand.u32 4294901760, %v13100_v61  ;;  %6103 = vmatpush.msrb.mxu3 %v13015_v40 }
 0x763   :  { %6050 = vmatpush.msrb.mxu2 %v16377_v41  ;;  %6182 = vmatpush.msrb.mxu1 %v6181_v38  ;;  %v13166_v41 = vsub.f32 %v9207_v17, %v13144_v20 }
 0x764   :  { %v13115_v32 = vpop.f32.mrf.mxu2  ;;  %v6186_v53 = vsub.f32 %v13100_v61, %v15515_v60  ;;  %6143 = vmatpush.msrb.mxu0 %v13113_v5  ;;  %v6192_v60 = vsub.f32 %v13120_v26, %v15516_v34  ;;  %6105 = vmatpush.msrb.mxu3 %v13018_v56  ;;  %v5128_v56 = vadd.f32 %v12838_v8, %v12842_v35  ;;  %v16388_v8 = vld [vmem:[#allocation73_spill] sm:$0xff] }
 0x765   :  { %16373 = vst [vmem:[#allocation131_spill] sm:$0xff] %v13115_v32  ;;  %v13117_v27 = vpop.f32.mrf.mxu3  ;;  %v13131_v32 = vand.u32 4294901760, %v9208_v12  ;;  %v15524_v16 = vand.u32 4294901760, %v13166_v41 }
 0x766   :  { %16374 = vst [vmem:[#allocation64_spill] sm:$0xff] %v13117_v27  ;;  %v13136_v27 = vsub.f32 %v9209_v7, %v13113_v5  ;;  %v6187_v4 = vand.u32 4294901760, %v6186_v53  ;;  %v9206_v7 = vld [vmem:[%s15236_s5 + $0x80] sm:$0xff]  ;;  %v16379_v53 = vand.u32 4294901760, %v12973_v59  ;;  %v6193_v34 = vand.u32 4294901760, %v6192_v60  ;;  %v9205_v59 = vld [vmem:[%s15236_s5 + $0x78] sm:$0xff]  ;;  %6107 = vmatpush.msrb.mxu3 %v13020_v3 }
 0x767   :  { %16376 = vst [vmem:[#allocation30_spill] sm:$0xff] %v13131_v32  ;;  %v13147_v29 = vsub.f32 %v9208_v12, %v13131_v32  ;;  %6145 = vmatpush.msrb.mxu0 %v13131_v32  ;;  %v13157_v57 = vand.u32 4294901760, %v9206_v7  ;;  %v5120_v12 = vadd.f32 %v12826_v11, %v12830_v58  ;;  %v16380_v11 = vand.u32 4294901760, %v12976_v1  ;;  %v16382_v1 = vld [vmem:[#allocation17_spill] sm:$0xff] }
 0x768   :  { %v15519_v22 = vand.u32 4294901760, %v13136_v27  ;;  %6054 = vmatpush.msrb.mxu2 %v16379_v53  ;;  %6188 = vmatpush.msrb.mxu1 %v6187_v4  ;;  %v13182_v60 = vand.u32 4294901760, %v9205_v59 }
 0x769   :  { %16378 = vst [vmem:[#allocation61_spill] sm:$0xff] %v13157_v57  ;;  %v15520_v38 = vand.u32 4294901760, %v13147_v29  ;;  %6147 = vmatpush.msrb.mxu0 %v13144_v20  ;;  %v13185_v17 = vsub.f32 %v9206_v7, %v13157_v57  ;;  %v6210_v7 = vsub.f32 %v13166_v41, %v15524_v16 }
 0x76a   :  { %v6198_v32 = vsub.f32 %v13136_v27, %v15519_v22  ;;  %6058 = vmatpush.msrb.mxu2 %v16380_v11  ;;  %6194 = vmatpush.msrb.mxu1 %v6193_v34  ;;  %v5177_v11 = vadd.f32 %v16382_v1, %v5120_v12  ;;  %v16383_v34 = vand.u32 4294901760, %v12981_v25 }
 0x76b   :  { %v6204_v58 = vsub.f32 %v13147_v29, %v15520_v38  ;;  %6149 = vmatpush.msrb.mxu0 %v13157_v57  ;;  %v13205_v57 = vsub.f32 %v9205_v59, %v13182_v60  ;;  %v6211_v12 = vand.u32 4294901760, %v6210_v7  ;;  %v16385_v7 = vld [vmem:[#allocation80_spill] sm:$0xff] }
 0x76c   :  { %v13187_v4 = vpop.f32.mrf.mxu2  ;;  %v6199_v22 = vand.u32 4294901760, %v6198_v32  ;;  %6062 = vmatpush.msrb.mxu2 %v16383_v34  ;;  %v13202_v32 = vand.u32 4294901760, %v9204_v37  ;;  %v5235_v34 = vadd.f32 %v16385_v7, %v5177_v11 }
 0x76d   :  { %16381 = vst [vmem:[#allocation77_spill] sm:$0xff] %v13187_v4  ;;  %v5641_v53 = vpop.f32.mrf.mxu3  ;;  %v6205_v38 = vand.u32 4294901760, %v6204_v58  ;;  %v15523_v4 = vand.u32 4294901760, %v13185_v17  ;;  %6151 = vmatpush.msrb.mxu0 %v13182_v60  ;;  %v6221_v59 = vand.u32 4294901760, %v13205_v57  ;;  %v13218_v58 = vand.u32 4294901760, %v9203_v46 }
 0x76e   :  { %6200 = vmatpush.msrb.mxu1 %v6199_v22  ;;  %v16384_v22 = vand.u32 4294901760, %v13026_v52  ;;  %v13221_v1 = vsub.f32 %v9204_v37, %v13202_v32  ;;  %v5309_v11 = vadd.f32 %v12867_v21, %v5235_v34 }
 0x76f   :  { %v6216_v25 = vsub.f32 %v13185_v17, %v15523_v4  ;;  %6153 = vmatpush.msrb.mxu0 %v13202_v32  ;;  %v6222_v37 = vsub.f32 %v13205_v57, %v6221_v59  ;;  %v13238_v16 = vsub.f32 %v9203_v46, %v13218_v58 }
 0x770   :  { %6066 = vmatpush.msrb.mxu2 %v16384_v22  ;;  %6206 = vmatpush.msrb.mxu1 %v6205_v38  ;;  %v13228_v22 = vand.u32 4294901760, %v9202_v54  ;;  %v16386_v38 = vand.u32 4294901760, %v13030_v30  ;;  %v6227_v4 = vand.u32 4294901760, %v13221_v1 }
 0x771   :  { %v6217_v52 = vand.u32 4294901760, %v6216_v25  ;;  %6155 = vmatpush.msrb.mxu0 %v13218_v58  ;;  %v6233_v10 = vand.u32 4294901760, %v13238_v16 }
 0x772   :  { %6070 = vmatpush.msrb.mxu2 %v16386_v38  ;;  %6212 = vmatpush.msrb.mxu1 %v6211_v12  ;;  %v13245_v30 = vsub.f32 %v9202_v54, %v13228_v22  ;;  %v16387_v12 = vand.u32 4294901760, %v13033_v24  ;;  %v6223_v38 = vand.u32 4294901760, %v6222_v37  ;;  %v6228_v46 = vsub.f32 %v13221_v1, %v6227_v4 }
 0x773   :  { %6157 = vmatpush.msrb.mxu0 %v13228_v22  ;;  %v6234_v40 = vsub.f32 %v13238_v16, %v6233_v10  ;;  %v5359_v54 = vadd.f32 %v12860_v43, %v5309_v11  ;;  %v5187_v11 = vadd.f32 %v12413_v44, %v5128_v56 }
 0x774   :  { %6074 = vmatpush.msrb.mxu2 %v16387_v12  ;;  %v5583_v25 = vpop.f32.mrf.mxu2  ;;  %6218 = vmatpush.msrb.mxu1 %v6217_v52  ;;  %v6239_v21 = vand.u32 4294901760, %v13245_v30  ;;  %v6229_v24 = vand.u32 4294901760, %v6228_v46  ;;  %v5132_v46 = vadd.f32 %v12844_v9, %v12849_v15 }
 0x775   :  { %v13249_v7 = vpop.f32.mrf.mxu3  ;;  %v5584_v42 = vadd.f32 %v5583_v25, %v5527_v18  ;;  %v6235_v37 = vand.u32 4294901760, %v6234_v40  ;;  %v5384_v25 = vadd.f32 %v5359_v54, %v12787_v14  ;;  %v5247_v35 = vadd.f32 %v16388_v8, %v5187_v11  ;;  %v16394_v8 = vld [vmem:[#allocation123_spill] sm:$0xff] }
 0x776   :  { %6224 = vmatpush.msrb.mxu1 %v6223_v38  ;;  %v6240_v52 = vsub.f32 %v13245_v30, %v6239_v21 }
 0x777   :  { %v5642_v34 = vadd.f32 %v5641_v53, %v5584_v42  ;;  %v16390_v42 = vld [vmem:[#allocation118_spill] sm:$0xff]  ;;  %v5317_v14 = vadd.f32 %v12965_v19, %v5247_v35  ;;  %v16393_v19 = vld [vmem:[#allocation96_spill] sm:$0xff] }
 0x778   :  { %6230 = vmatpush.msrb.mxu1 %v6229_v24  ;;  %v6241_v12 = vand.u32 4294901760, %v6240_v52  ;;  %v16395_v35 = vld [vmem:[#allocation74_spill] sm:$0xff] }
 0x779   :  { %v5716_v18 = vadd.f32 %v12552_v13, %v5642_v34  ;;  %v16389_v13 = vld [vmem:[#allocation143_spill] sm:$0xff] }
 0x77a   :  { %6236 = vmatpush.msrb.mxu1 %v6235_v37  ;;  %v5535_v24 = vadd.f32 %v16390_v42, %v16389_v13  ;;  %v4725_v13 = vadd.f32 %v16395_v35, %v16394_v8  ;;  %v16396_v42 = vld [vmem:[#allocation115_spill] sm:$0xff]  ;;  %v16402_v8 = vand.u32 4294901760, %v13084_v62 }
 0x77b   :  { %v5766_v43 = vadd.f32 %v12554_v45, %v5716_v18  ;;  %v16391_v45 = vld [vmem:[#allocation46_spill] sm:$0xff]  ;;  %v5367_v18 = vadd.f32 %v12935_v39, %v5317_v14  ;;  %v16397_v39 = vld [vmem:[#allocation48_spill] sm:$0xff] }
 0x77c   :  { %v13271_v53 = vpop.f32.mrf.mxu2  ;;  %6242 = vmatpush.msrb.mxu1 %v6241_v12  ;;  %v5192_v40 = vadd.f32 %v16391_v45, %v5132_v46  ;;  %v16392_v12 = vld [vmem:[#allocation58_spill] sm:$0xff]  ;;  %v16398_v45 = vld [vmem:[#allocation121_spill] sm:$0xff]  ;;  %v9225_v35 = vld [vmem:[%s15236_s5 + $0x118] sm:$0xff] }
 0x77d   :  { %v5653_v3 = vpop.f32.mrf.mxu3  ;;  %v5791_v38 = vadd.f32 %v5766_v43, %v5384_v25  ;;  %v5386_v14 = vadd.f32 %v5367_v18, %v12805_v51 }
 0x77e   :  { %v5253_v25 = vadd.f32 %v16392_v12, %v5192_v40 }
 0x77f   :  { %9330 = vtanh.f32 %v5791_v38 }
 0x784   :  { %v5593_v54 = vpop.f32.mrf.mxu2 }
 0x785   :  { %v5659_v34 = vpop.f32.mrf.mxu3  ;;  %v9331_v52 = vpop.eup %9330  ;;  %v5594_v37 = vadd.f32 %v5593_v54, %v5535_v24  ;;  %v5321_v24 = vadd.f32 %v13023_v31, %v5253_v25  ;;  %v16400_v25 = vld [vmem:[#allocation69_spill] sm:$0xff] }
 0x786   :  { %v6127_v44 = vrot.slane %v9331_v52, 4  ;;  %v5822_v56 = vsel %vm5820_vm4, %v9331_v52, 0 }
 0x787   :  { %v5654_v9 = vadd.f32 %v5653_v3, %v5594_v37  ;;  %v13283_v15 = vand.u32 4294901760, %v5822_v56  ;;  %v5539_v3 = vadd.f32 %v16397_v39, %v16396_v42  ;;  %v4787_v37 = vadd.f32 %v12818_v63, %v4725_v13  ;;  %v16404_v39 = vld [vmem:[#allocation60_spill] sm:$0xff] }
 0x788   :  { %v6128_v43 = vsel %vm5820_vm4, %v6127_v44, 0  ;;  %v16399_v44 = vand.u32 4294901760, %v13070_v47  ;;  %v5371_v63 = vadd.f32 %v12967_v36, %v5321_v24  ;;  %v16403_v42 = vand.u32 4294901760, %v13100_v61 }
 0x789   :  { %v5724_v11 = vadd.f32 %v16393_v19, %v5654_v9  ;;  %5938 = vmatmul.f32.vlgmr.msra.gmra.mxu3 %v13283_v15  ;;  %v5853_v38 = vsub.f32 %v5822_v56, %v13283_v15  ;;  %v13290_v46 = vand.u32 4294901760, %v6128_v43  ;;  %v16401_v19 = vld [vmem:[#allocation114_spill] sm:$0xff]  ;;  %v13335_v24 = vand.u32 4294901760, %v9225_v35 }
 0x78a   :  { %6299 = vmatpush.msra.mxu3 %v13059_v0 }
 0x78b   :  { %v5774_v40 = vadd.f32 %v16398_v45, %v5724_v11  ;;  %5984 = vmatmul.f32.vlgmr.msra.gmra.mxu0 %v5853_v38  ;;  %v5854_v54 = vand.u32 4294901760, %v5853_v38  ;;  %v13301_v52 = vsub.f32 %v6128_v43, %v13290_v46  ;;  %v4729_v11 = vadd.f32 %v16401_v19, %v16400_v25  ;;  %v9223_v45 = vld [vmem:[%s15236_s5 + $0x108] sm:$0xff]  ;;  %v9222_v19 = vld [vmem:[%s15236_s5 + $0x100] sm:$0xff] }
 0x78c   :  { %6301 = vmatpush.msra.mxu3 %v13072_v28  ;;  %6336 = vmatpush.msra.mxu0 %v16399_v44  ;;  %v5598_v56 = vpop.f32.mrf.mxu2  ;;  %v5139_v43 = vadd.f32 %v12852_v55, %v12854_v33  ;;  %v4850_v33 = vadd.f32 %v12811_v23, %v4787_v37  ;;  %v16409_v44 = vld [vmem:[#allocation116_spill] sm:$0xff] }
 0x78d   :  { %v5665_v31 = vpop.f32.mrf.mxu3  ;;  %v5793_v9 = vadd.f32 %v5774_v40, %v5386_v14  ;;  %v5599_v12 = vadd.f32 %v5598_v56, %v5539_v3  ;;  %6019 = vmatmul.f32.vlgmr.msra.gmra.mxu1 %v5854_v54  ;;  %v5855_v51 = vsub.f32 %v5853_v38, %v5854_v54  ;;  %v6160_v18 = vand.u32 4294901760, %v13301_v52  ;;  %v16406_v40 = vld [vmem:[#allocation52_spill] sm:$0xff] }
 0x78e   :  { %6303 = vmatpush.msra.mxu3 %v13081_v6  ;;  %6340 = vmatpush.msra.mxu0 %v16402_v8  ;;  %v4792_v36 = vadd.f32 %v12824_v2, %v4729_v11  ;;  %v16405_v2 = vld [vmem:[#allocation151_spill] sm:$0xff]  ;;  %v16410_v56 = vld [vmem:[#allocation148_spill] sm:$0xff] }
 0x78f   :  { %9332 = vtanh.f32 %v5793_v9  ;;  %v5660_v38 = vadd.f32 %v5659_v34, %v5599_v12  ;;  %6391 = vmatpush.msra.mxu1 %v13059_v0  ;;  %v5856_v13 = vand.u32 4294901760, %v5855_v51  ;;  %v6161_v55 = vsub.f32 %v13301_v52, %v6160_v18  ;;  %v9224_v34 = vld [vmem:[%s15236_s5 + $0x110] sm:$0xff]  ;;  %v16411_v9 = vld [vmem:[#allocation57_spill] sm:$0xff]  ;;  %v16412_v12 = vld [vmem:[#allocation68_spill] sm:$0xff] }
 0x790   :  { %6305 = vmatpush.msra.mxu3 %v13097_v48  ;;  %6344 = vmatpush.msra.mxu0 %v16403_v42  ;;  %v5124_v0 = vadd.f32 %v12832_v50, %v12836_v49  ;;  %v5201_v14 = vadd.f32 %v16405_v2, %v5139_v43  ;;  %v5387_v50 = vadd.f32 %v5371_v63, %v16406_v40  ;;  %v16407_v49 = vld [vmem:[#allocation27_spill] sm:$0xff]  ;;  %v13348_v37 = vand.u32 4294901760, %v9224_v34  ;;  %v16413_v43 = vld [vmem:[#allocation122_spill] sm:$0xff]  ;;  %v16417_v42 = vld [vmem:[#allocation141_spill] sm:$0xff] }
 0x791   :  { %v5728_v3 = vadd.f32 %v16404_v39, %v5660_v38  ;;  %6393 = vmatpush.msra.mxu1 %v13072_v28  ;;  %5857 = vmatmul.f32.vlgmr.msra.gmra.mxu2 %v5856_v13  ;;  %v6162_v23 = vand.u32 4294901760, %v6161_v55  ;;  %v16408_v28 = vand.u32 4294901760, %v13120_v26  ;;  %v5531_v31 = vadd.f32 %v16410_v56, %v16409_v44  ;;  %v16414_v38 = vld [vmem:[#allocation30_spill] sm:$0xff]  ;;  %v16420_v40 = vld [vmem:[#allocation93_spill] sm:$0xff] }
 0x792   :  { %6109 = vmatmul.f32.vlgmr.msrb.gmra.mxu3 %v13283_v15  ;;  %6254 = vmatpush.msra.mxu2 %v13070_v47  ;;  %v4914_v47 = vadd.f32 %v16411_v9, %v4850_v33  ;;  %v4856_v51 = vadd.f32 %v16412_v12, %v4792_v36  ;;  %v5182_v63 = vadd.f32 %v16413_v43, %v5124_v0  ;;  %v13364_v55 = vand.u32 4294901760, %v9223_v45  ;;  %v16416_v33 = vld [vmem:[#allocation47_spill] sm:$0xff]  ;;  %v16425_v12 = vld [vmem:[#allocation22_spill] sm:$0xff]  ;;  %v16427_v43 = vld [vmem:[#allocation61_spill] sm:$0xff] }
 0x793   :  { %v5778_v54 = vadd.f32 %v16407_v49, %v5728_v3  ;;  %6307 = vmatpush.msra.mxu3 %v13113_v5  ;;  %6348 = vmatpush.msra.mxu0 %v16408_v28  ;;  %v13362_v13 = vsub.f32 %v9225_v35, %v13335_v24  ;;  %v5264_v39 = vadd.f32 %v16417_v42, %v5201_v14  ;;  %v16418_v0 = vand.u32 4294901760, %v13136_v27  ;;  %v16421_v49 = vld [vmem:[#allocation131_spill] sm:$0xff] }
 0x794   :  { %6395 = vmatpush.msra.mxu1 %v13081_v6  ;;  %6163 = vmatmul.f32.vlgmr.msrb.gmra.mxu0 %v6162_v23  ;;  %v5603_v25 = vpop.f32.mrf.mxu2  ;;  %v16415_v6 = vld [vmem:[#allocation12_spill] sm:$0xff]  ;;  %v5589_v3 = vadd.f32 %v13271_v53, %v5531_v31  ;;  %v13379_v35 = vsub.f32 %v9224_v34, %v13348_v37  ;;  %v13381_v2 = vand.u32 4294901760, %v9222_v19  ;;  %v16419_v53 = vld [vmem:[#allocation23_spill] sm:$0xff]  ;;  %v16422_v28 = vand.u32 4294901760, %v13147_v29 }
 0x795   :  { %v9333_v11 = vpop.eup %9332  ;;  %v5794_v8 = vadd.f32 %v5778_v54, %v5387_v50  ;;  %6257 = vmatpush.msra.mxu2 %v13084_v62  ;;  %6309 = vmatpush.msra.mxu3 %v16414_v38  ;;  %v5143_v36 = vadd.f32 %v16416_v33, %v16415_v6  ;;  %v9221_v62 = vld [vmem:[%s15236_s5 + $0xf8] sm:$0xff]  ;;  %v4964_v14 = vadd.f32 %v16419_v53, %v4914_v47  ;;  %v6479_v34 = vand.u32 4294901760, %v13362_v13  ;;  %v9220_v9 = vld [vmem:[%s15236_s5 + $0xf0] sm:$0xff]  ;;  %v16426_v25 = vld [vmem:[#allocation25_spill] sm:$0xff] }
 0x796   :  { %v6740_v23 = vrot.slane %v9333_v11, 4  ;;  %6352 = vmatpush.msra.mxu0 %v16418_v0  ;;  %6397 = vmatpush.msra.mxu1 %v13097_v48  ;;  %v4918_v50 = vadd.f32 %v16420_v40, %v4856_v51  ;;  %v5328_v48 = vadd.f32 %v16421_v49, %v5264_v39  ;;  %v13397_v56 = vsub.f32 %v9223_v45, %v13364_v55  ;;  %v16424_v47 = vld [vmem:[#allocation78_spill] sm:$0xff]  ;;  %v16429_v45 = vld [vmem:[#allocation63_spill] sm:$0xff]  ;;  %v16431_v6 = vld [vmem:[#allocation128_spill] sm:$0xff]  ;;  %v5670_v49 = vpop.f32.mrf.mxu3 }
 0x797   :  { %9334 = vtanh.f32 %v5794_v8  ;;  %6244 = vmatmul.f32.vlgmr.msrb.gmra.mxu1 %v13290_v46  ;;  %6260 = vmatpush.msra.mxu2 %v13100_v61  ;;  %v16423_v61 = vld [vmem:[#allocation94_spill] sm:$0xff]  ;;  %v13399_v31 = vand.u32 4294901760, %v9221_v62  ;;  %v5546_v51 = vadd.f32 %v16425_v12, %v16424_v47  ;;  %v5206_v11 = vadd.f32 %v16426_v25, %v5143_v36  ;;  %v16434_v53 = vld [vmem:[#allocation112_spill] sm:$0xff]  ;;  %v16436_v47 = vld [vmem:[#allocation59_spill] sm:$0xff] }
 0x798   :  { %v13387_v54 = vsel %vm5820_vm4, %v6740_v23, 0  ;;  %6311 = vmatpush.msra.mxu3 %v13144_v20  ;;  %6356 = vmatpush.msra.mxu0 %v16422_v28  ;;  %v5241_v44 = vadd.f32 %v16423_v61, %v5182_v63  ;;  %v16430_v63 = vld [vmem:[#allocation79_spill] sm:$0xff]  ;;  %v15540_v42 = vand.u32 4294901760, %v13379_v35  ;;  %v13420_v36 = vsub.f32 %v9222_v19, %v13381_v2  ;;  %v16432_v39 = vld [vmem:[#allocation70_spill] sm:$0xff]  ;;  %v16433_v23 = vld [vmem:[#allocation76_spill] sm:$0xff] }
 0x799   :  { %6399 = vmatpush.msra.mxu1 %v13113_v5  ;;  %6263 = vmatpush.msra.mxu2 %v13120_v26  ;;  %v5648_v5 = vadd.f32 %v13249_v7, %v5589_v3  ;;  %v16428_v26 = vand.u32 4294901760, %v13166_v41  ;;  %v13413_v8 = vadd.f32 %v16430_v63, %v16429_v45  ;;  %v9219_v7 = vld [vmem:[%s15236_s5 + $0xe8] sm:$0xff]  ;;  %v13426_v3 = vadd.f32 %v16432_v39, %v4918_v50  ;;  %v9218_v61 = vld [vmem:[%s15236_s5 + $0xe0] sm:$0xff]  ;;  %v16437_v25 = vld [vmem:[#allocation95_spill] sm:$0xff] }
 0x79a   :  { %6313 = vmatpush.msra.mxu3 %v16427_v43  ;;  %v5313_v33 = vadd.f32 %v16431_v6, %v5241_v44  ;;  %6076 = vmatmul.f32.vlgmr.msrb.gmra.mxu2 %v13283_v15  ;;  %v4974_v0 = vadd.f32 %v4964_v14, %v16433_v23  ;;  %v5378_v40 = vadd.f32 %v16434_v53, %v5328_v48  ;;  %v16435_v28 = vand.u32 4294901760, %v13185_v17  ;;  %v5734_v44 = vpop.f32.mrf.mxu0  ;;  %v16438_v45 = vld [vmem:[#allocation127_spill] sm:$0xff]  ;;  %v5784_v6 = vpop.f32.mrf.mxu1 }
 0x79b   :  { %6360 = vmatpush.msra.mxu0 %v16428_v26  ;;  %6401 = vmatpush.msra.mxu1 %v16414_v38  ;;  %v13432_v38 = vand.u32 4294901760, %v9220_v9  ;;  %v6480_v14 = vsub.f32 %v13362_v13, %v6479_v34  ;;  %v15537_v48 = vand.u32 4294901760, %v13397_v56  ;;  %v5270_v12 = vadd.f32 %v16436_v47, %v5206_v11 }
 0x79c   :  { %6266 = vmatpush.msra.mxu2 %v13136_v27  ;;  %6315 = vmatpush.msra.mxu3 %v13182_v60  ;;  %v5607_v15 = vpop.f32.mrf.mxu2  ;;  %v13442_v27 = vsub.f32 %v9221_v62, %v13399_v31  ;;  %v5720_v26 = vadd.f32 %v16437_v25, %v5648_v5  ;;  %v5363_v63 = vadd.f32 %v16438_v45, %v5313_v33  ;;  %v15536_v5 = vand.u32 4294901760, %v13420_v36 }
 0x79d   :  { %v9335_v19 = vpop.eup %9334  ;;  %6364 = vmatpush.msra.mxu0 %v16435_v28  ;;  %6403 = vmatpush.msra.mxu1 %v13144_v20  ;;  %v5608_v50 = vadd.f32 %v5607_v15, %v5546_v51  ;;  %v13451_v51 = vand.u32 4294901760, %v9219_v7  ;;  %v6486_v11 = vsub.f32 %v13379_v35, %v15540_v42  ;;  %v5388_v39 = vadd.f32 %v5378_v40, %v4974_v0  ;;  %v16439_v40 = vld [vmem:[#allocation10_spill] sm:$0xff] }
 0x79e   :  { %v7352_v20 = vrot.slane %v9335_v19, 4  ;;  %6269 = vmatpush.msra.mxu2 %v13147_v29  ;;  %6317 = vmatpush.msra.mxu3 %v13202_v32  ;;  %v9217_v29 = vld [vmem:[%s15236_s5 + $0xd8] sm:$0xff]  ;;  %v13472_v33 = vsel %vm5820_vm4, %v9335_v19, 0  ;;  %v6481_v53 = vand.u32 4294901760, %v6480_v14  ;;  %v15534_v0 = vand.u32 4294901760, %v13442_v27  ;;  %v16440_v19 = vld [vmem:[#allocation77_spill] sm:$0xff] }
 0x79f   :  { %6368 = vmatpush.msra.mxu0 %v6221_v59  ;;  %6405 = vmatpush.msra.mxu1 %v16427_v43  ;;  %v5671_v62 = vadd.f32 %v5670_v49, %v5608_v50  ;;  %v13467_v59 = vsub.f32 %v9220_v9, %v13432_v38  ;;  %v13469_v43 = vand.u32 4294901760, %v9218_v61  ;;  %v9216_v9 = vld [vmem:[%s15236_s5 + $0xd0] sm:$0xff]  ;;  %v5770_v49 = vadd.f32 %v16439_v40, %v5720_v26 }
 0x7a0   :  { %6272 = vmatpush.msra.mxu2 %v13166_v41  ;;  %6319 = vmatpush.msra.mxu3 %v13218_v58  ;;  %v6492_v41 = vsub.f32 %v13397_v56, %v15537_v48  ;;  %v13493_v15 = vsel %vm5820_vm4, %v7352_v20, 0  ;;  %v5332_v28 = vadd.f32 %v16440_v19, %v5270_v12  ;;  %v6487_v14 = vand.u32 4294901760, %v6486_v11  ;;  %v16442_v11 = vld [vmem:[#allocation64_spill] sm:$0xff]  ;;  %v9227_v48 = vld [vmem:[%s15236_s5 + $0x128] sm:$0xff] }
 0x7a1   :  { %v5735_v23 = vadd.f32 %v5734_v44, %v5671_v62  ;;  %6372 = vmatpush.msra.mxu0 %v6227_v4  ;;  %6407 = vmatpush.msra.mxu1 %v13182_v60  ;;  %v13488_v4 = vsub.f32 %v9219_v7, %v13451_v51  ;;  %v13490_v60 = vand.u32 4294901760, %v9217_v29  ;;  %v9215_v7 = vld [vmem:[%s15236_s5 + $0xc8] sm:$0xff]  ;;  %v13513_v25 = vand.u32 4294901760, %v9216_v9 }
 0x7a2   :  { %6275 = vmatpush.msra.mxu2 %v13185_v17  ;;  %6321 = vmatpush.msra.mxu3 %v13228_v22  ;;  %v6498_v17 = vsub.f32 %v13420_v36, %v15536_v5  ;;  %v16441_v44 = vld [vmem:[#allocation125_spill] sm:$0xff]  ;;  %v6493_v45 = vand.u32 4294901760, %v6492_v41  ;;  %v13751_v42 = vand.u32 4294901760, %v13387_v54 }
 0x7a3   :  { %v5785_v50 = vadd.f32 %v5784_v6, %v5735_v23  ;;  %6376 = vmatpush.msra.mxu0 %v6233_v10  ;;  %6409 = vmatpush.msra.mxu1 %v13202_v32  ;;  %v5385_v47 = vadd.f32 %v5363_v63, %v16441_v44  ;;  %v15533_v10 = vand.u32 4294901760, %v13467_v59  ;;  %v13511_v32 = vsub.f32 %v9218_v61, %v13469_v43  ;;  %v5676_v63 = vpop.f32.mrf.mxu3 }
 0x7a4   :  { %6325 = vmatmul.f32.vlgmr.msra.gmra.mxu3 %v6160_v18  ;;  %6278 = vmatpush.msra.mxu2 %v13205_v57  ;;  %v5612_v12 = vpop.f32.mrf.mxu2  ;;  %v6504_v57 = vsub.f32 %v13442_v27, %v15534_v0  ;;  %v9214_v18 = vld [vmem:[%s15236_s5 + $0xc0] sm:$0xff]  ;;  %v15532_v62 = vand.u32 4294901760, %v13488_v4  ;;  %v5382_v6 = vadd.f32 %v16442_v11, %v5332_v28  ;;  %v6499_v23 = vand.u32 4294901760, %v6498_v17 }
 0x7a5   :  { %v5795_v26 = vadd.f32 %v5785_v50, %v5388_v39  ;;  %6482 = vmatpush.msrb.mxu3 %v6481_v53  ;;  %6380 = vmatpush.msra.mxu0 %v6239_v21  ;;  %v5613_v20 = vadd.f32 %v5612_v12, %v13413_v8  ;;  %v5792_v61 = vadd.f32 %v5770_v49, %v5385_v47  ;;  %v13530_v8 = vand.u32 4294901760, %v9215_v7  ;;  %v5738_v53 = vpop.f32.mrf.mxu0  ;;  %v16443_v49 = vld [vmem:[#allocation90_spill] sm:$0xff] }
 0x7a6   :  { %6411 = vmatpush.msra.mxu1 %v13218_v58  ;;  %6382 = vmatmul.f32.vlgmr.msra.gmra.mxu0 %v13290_v46  ;;  %v13528_v21 = vsub.f32 %v9217_v29, %v13490_v60  ;;  %v6510_v58 = vsub.f32 %v13467_v59, %v15533_v10  ;;  %v15530_v29 = vand.u32 4294901760, %v13511_v32  ;;  %v13541_v41 = vsub.f32 %v9216_v9, %v13513_v25 }
 0x7a7   :  { %9336 = vtanh.f32 %v5795_v26  ;;  %6488 = vmatpush.msrb.mxu3 %v6487_v14  ;;  %6560 = vmatpush.msrb.mxu0 %v13362_v13  ;;  %v5677_v39 = vadd.f32 %v5676_v63, %v5613_v20  ;;  %v13543_v40 = vand.u32 4294901760, %v9214_v18  ;;  %v4975_v19 = vadd.f32 %v13426_v3, %v16443_v49 }
 0x7a8   :  { %6281 = vmatpush.msra.mxu2 %v13221_v1  ;;  %6413 = vmatpush.msra.mxu1 %v13228_v22  ;;  %v6505_v1 = vand.u32 4294901760, %v6504_v57  ;;  %v5788_v22 = vpop.f32.mrf.mxu1  ;;  %9338 = vtanh.f32 %v5792_v61  ;;  %v6516_v9 = vsub.f32 %v13488_v4, %v15532_v62  ;;  %v15529_v50 = vand.u32 4294901760, %v13528_v21 }
 0x7a9   :  { %v5739_v28 = vadd.f32 %v5738_v53, %v5677_v39  ;;  %6415 = vmatmul.f32.vlgmr.msra.gmra.mxu1 %v13290_v46  ;;  %6494 = vmatpush.msrb.mxu3 %v6493_v45  ;;  %v13555_v14 = vsub.f32 %v9215_v7, %v13530_v8  ;;  %v5389_v3 = vadd.f32 %v5382_v6, %v4975_v19  ;;  %v6511_v46 = vand.u32 4294901760, %v6510_v58  ;;  %v9235_v19 = vld [vmem:[%s15236_s5 + $0x168] sm:$0xff] }
 0x7aa   :  { %6563 = vmatpush.msrb.mxu0 %v13379_v35  ;;  %6605 = vmatpush.msrb.mxu1 %v13335_v24  ;;  %v6522_v44 = vsub.f32 %v13511_v32, %v15530_v29  ;;  %v15527_v47 = vand.u32 4294901760, %v13541_v41  ;;  %v13565_v12 = vsub.f32 %v9214_v18, %v13543_v40  ;;  %v6517_v45 = vand.u32 4294901760, %v6516_v9 }
 0x7ab   :  { %v5789_v17 = vadd.f32 %v5788_v22, %v5739_v28  ;;  %6284 = vmatpush.msra.mxu2 %v13238_v16  ;;  %6500 = vmatpush.msrb.mxu3 %v6499_v23  ;;  %v9237_v16 = vld [vmem:[%s15236_s5 + $0x178] sm:$0xff]  ;;  %v6528_v57 = vsub.f32 %v13528_v21, %v15529_v50  ;;  %v15526_v18 = vand.u32 4294901760, %v13555_v14 }
 0x7ac   :  { %6566 = vmatpush.msrb.mxu0 %v13397_v56  ;;  %6607 = vmatpush.msrb.mxu1 %v13348_v37  ;;  %v6523_v63 = vand.u32 4294901760, %v6522_v44  ;;  %v6534_v11 = vsub.f32 %v13541_v41, %v15527_v47  ;;  %v15525_v6 = vand.u32 4294901760, %v13565_v12  ;;  %v13590_v39 = vand.u32 4294901760, %v9237_v16  ;;  %v9229_v47 = vld [vmem:[%s15236_s5 + $0x138] sm:$0xff] }
 0x7ad   :  { %v9337_v7 = vpop.eup %9336  ;;  %v5796_v26 = vadd.f32 %v5789_v17, %v5389_v3  ;;  %6287 = vmatpush.msra.mxu2 %v13245_v30  ;;  %6506 = vmatpush.msrb.mxu3 %v6505_v1  ;;  %v9236_v30 = vld [vmem:[%s15236_s5 + $0x170] sm:$0xff]  ;;  %v6529_v53 = vand.u32 4294901760, %v6528_v57  ;;  %v6540_v58 = vsub.f32 %v13555_v14, %v15526_v18  ;;  %v9234_v3 = vld [vmem:[%s15236_s5 + $0x160] sm:$0xff]  ;;  %v13708_v10 = vand.u32 4294901760, %v9229_v47 }
 0x7ae   :  { %v7964_v20 = vrot.slane %v9337_v7, 4  ;;  %6290 = vmatmul.f32.vlgmr.msra.gmra.mxu2 %v13301_v52  ;;  %6569 = vmatpush.msrb.mxu0 %v13420_v36  ;;  %v13583_v52 = vsel %vm5820_vm4, %v9337_v7, 0  ;;  %v9339_v61 = vpop.eup %9338  ;;  %v13601_v49 = vand.u32 4294901760, %v9236_v30  ;;  %v6535_v1 = vand.u32 4294901760, %v6534_v11 }
 0x7af   :  { %9340 = vtanh.f32 %v5796_v26  ;;  %6441 = vmatpush.msrb.mxu2 %v13335_v24  ;;  %6609 = vmatpush.msrb.mxu1 %v13364_v55  ;;  %v6434_v28 = vsel %vm5820_vm4, %v9339_v61, 0  ;;  %v6546_v22 = vsub.f32 %v13565_v12, %v15525_v6  ;;  %v13614_v9 = vsub.f32 %v9237_v16, %v13590_v39  ;;  %v9233_v16 = vld [vmem:[%s15236_s5 + $0x158] sm:$0xff] }
 0x7b0   :  { %6512 = vmatpush.msrb.mxu3 %v6511_v46  ;;  %6572 = vmatpush.msrb.mxu0 %v13442_v27  ;;  %v13595_v23 = vsel %vm5820_vm4, %v7964_v20, 0  ;;  %v13621_v46 = vand.u32 4294901760, %v9235_v19  ;;  %v6541_v44 = vand.u32 4294901760, %v6540_v58  ;;  %v13624_v7 = vand.u32 4294901760, %v6434_v28 }
 0x7b1   :  { %6443 = vmatpush.msrb.mxu2 %v13348_v37  ;;  %6611 = vmatpush.msrb.mxu1 %v13381_v2  ;;  %16444 = vst [vmem:[#allocation97_spill] sm:$0xff] %v13595_v23  ;;  %v13627_v26 = vsub.f32 %v9236_v30, %v13601_v49  ;;  %v13634_v20 = vand.u32 4294901760, %v9234_v3  ;;  %v15528_v57 = vand.u32 4294901760, %v13614_v9  ;;  %v9232_v30 = vld [vmem:[%s15236_s5 + $0x150] sm:$0xff]  ;;  %v13649_v11 = vand.u32 4294901760, %v9233_v16 }
 0x7b2   :  { %6518 = vmatpush.msrb.mxu3 %v6517_v45  ;;  %6575 = vmatpush.msrb.mxu0 %v13467_v59  ;;  %v6547_v45 = vand.u32 4294901760, %v6546_v22  ;;  %v13662_v22 = vand.u32 4294901760, %v9232_v30 }
 0x7b3   :  { %6445 = vmatpush.msrb.mxu2 %v13364_v55  ;;  %6613 = vmatpush.msrb.mxu1 %v13399_v31  ;;  %v15531_v58 = vand.u32 4294901760, %v13627_v26 }
 0x7b4   :  { %6524 = vmatpush.msrb.mxu3 %v6523_v63  ;;  %6578 = vmatpush.msrb.mxu0 %v13488_v4  ;;  %v13647_v63 = vsub.f32 %v9235_v19, %v13621_v46  ;;  %v13660_v19 = vsub.f32 %v9234_v3, %v13634_v20 }
 0x7b5   :  { %v9341_v17 = vpop.eup %9340  ;;  %6447 = vmatpush.msrb.mxu2 %v13381_v2  ;;  %6615 = vmatpush.msrb.mxu1 %v13432_v38  ;;  %v6793_v18 = vsub.f32 %v13627_v26, %v15531_v58  ;;  %v9228_v58 = vld [vmem:[%s15236_s5 + $0x130] sm:$0xff] }
 0x7b6   :  { %6530 = vmatpush.msrb.mxu3 %v6529_v53  ;;  %6581 = vmatpush.msrb.mxu0 %v13511_v32  ;;  %v13642_v61 = vsel %vm5820_vm4, %v9341_v17, 0  ;;  %v6465_v53 = vsub.f32 %v6434_v28, %v13624_v7  ;;  %v6787_v28 = vsub.f32 %v13614_v9, %v15528_v57  ;;  %v9230_v17 = vld [vmem:[%s15236_s5 + $0x140] sm:$0xff]  ;;  %v15535_v3 = vand.u32 4294901760, %v13647_v63 }
 0x7b7   :  { %6449 = vmatpush.msrb.mxu2 %v13399_v31  ;;  %6617 = vmatpush.msrb.mxu1 %v13451_v51  ;;  %16445 = vst [vmem:[#allocation75_spill] sm:$0xff] %v13642_v61  ;;  %v13691_v57 = vsub.f32 %v9232_v30, %v13662_v22  ;;  %v13693_v50 = vand.u32 4294901760, %v9230_v17  ;;  %v13720_v5 = vand.u32 4294901760, %v9228_v58 }
 0x7b8   :  { %6536 = vmatpush.msrb.mxu3 %v6535_v1  ;;  %6584 = vmatpush.msrb.mxu0 %v13528_v21  ;;  %v9231_v1 = vld [vmem:[%s15236_s5 + $0x148] sm:$0xff]  ;;  %v6466_v6 = vand.u32 4294901760, %v6465_v53  ;;  %v6788_v29 = vand.u32 4294901760, %v6787_v28  ;;  %v6794_v28 = vand.u32 4294901760, %v6793_v18 }
 0x7b9   :  { %6451 = vmatpush.msrb.mxu2 %v13432_v38  ;;  %6619 = vmatpush.msrb.mxu1 %v13469_v43 }
 0x7ba   :  { %6542 = vmatpush.msrb.mxu3 %v6541_v44  ;;  %6587 = vmatpush.msrb.mxu0 %v13541_v41  ;;  %v13675_v44 = vsub.f32 %v9233_v16, %v13649_v11  ;;  %v15538_v16 = vand.u32 4294901760, %v13660_v19  ;;  %v6467_v0 = vsub.f32 %v6465_v53, %v6466_v6 }
 0x7bb   :  { %6453 = vmatpush.msrb.mxu2 %v13451_v51  ;;  %6621 = vmatpush.msrb.mxu1 %v13490_v60 }
 0x7bc   :  { %6548 = vmatpush.msrb.mxu3 %v6547_v45  ;;  %6590 = vmatpush.msrb.mxu0 %v13555_v14  ;;  %v13677_v45 = vand.u32 4294901760, %v9231_v1  ;;  %v15539_v30 = vand.u32 4294901760, %v13675_v44 }
 0x7bd   :  { %6455 = vmatpush.msrb.mxu2 %v13469_v43  ;;  %6623 = vmatpush.msrb.mxu1 %v13513_v25 }
 0x7be   :  { %6550 = vmatmul.f32.vlgmr.msrb.gmra.mxu3 %v13624_v7  ;;  %6593 = vmatpush.msrb.mxu0 %v13565_v12  ;;  %v13706_v62 = vsub.f32 %v9231_v1, %v13677_v45  ;;  %v13718_v1 = vsub.f32 %v9230_v17, %v13693_v50  ;;  %v6811_v18 = vsub.f32 %v13675_v44, %v15539_v30  ;;  %v9226_v17 = vld [vmem:[%s15236_s5 + $0x120] sm:$0xff] }
 0x7bf   :  { %6697 = vmatpush.msra.mxu3 %v13335_v24  ;;  %6457 = vmatpush.msrb.mxu2 %v13490_v60  ;;  %v6799_v24 = vsub.f32 %v13647_v63, %v15535_v3  ;;  %v6816_v3 = vand.u32 4294901760, %v13691_v57  ;;  %v13748_v30 = vsub.f32 %v9228_v58, %v13720_v5 }
 0x7c0   :  { %6625 = vmatpush.msrb.mxu1 %v13530_v8  ;;  %6596 = vmatmul.f32.vlgmr.msrb.gmra.mxu0 %v6465_v53  ;;  %v13733_v53 = vsub.f32 %v9229_v47, %v13708_v10 }
 0x7c1   :  { %6699 = vmatpush.msra.mxu3 %v13348_v37  ;;  %6748 = vmatpush.msra.mxu0 %v13590_v39  ;;  %v6805_v37 = vsub.f32 %v13660_v19, %v15538_v16  ;;  %v13739_v16 = vand.u32 4294901760, %v9227_v48  ;;  %v6817_v47 = vsub.f32 %v13691_v57, %v6816_v3 }
 0x7c2   :  { %6459 = vmatpush.msrb.mxu2 %v13513_v25  ;;  %6627 = vmatpush.msrb.mxu1 %v13543_v40  ;;  %v6834_v58 = vand.u32 4294901760, %v13733_v53 }
 0x7c3   :  { %6631 = vmatmul.f32.vlgmr.msrb.gmra.mxu1 %v6466_v6  ;;  %6701 = vmatpush.msra.mxu3 %v13364_v55  ;;  %v6800_v55 = vand.u32 4294901760, %v6799_v24  ;;  %v6822_v6 = vand.u32 4294901760, %v13706_v62  ;;  %v6828_v24 = vand.u32 4294901760, %v13718_v1  ;;  %v6818_v13 = vand.u32 4294901760, %v6817_v47 }
 0x7c4   :  { %6750 = vmatpush.msra.mxu0 %v13601_v49  ;;  %6789 = vmatpush.msra.mxu1 %v6788_v29  ;;  %v6468_v29 = vand.u32 4294901760, %v6467_v0  ;;  %v13754_v0 = vand.u32 4294901760, %v9226_v17 }
 0x7c5   :  { %6461 = vmatpush.msrb.mxu2 %v13530_v8  ;;  %6703 = vmatpush.msra.mxu3 %v13381_v2  ;;  %v6806_v2 = vand.u32 4294901760, %v6805_v37  ;;  %v13765_v37 = vsub.f32 %v9227_v48, %v13739_v16 }
 0x7c6   :  { %6752 = vmatpush.msra.mxu0 %v13621_v46  ;;  %6795 = vmatpush.msra.mxu1 %v6794_v28  ;;  %v6823_v28 = vsub.f32 %v13706_v62, %v6822_v6 }
 0x7c7   :  { %6463 = vmatpush.msrb.mxu2 %v13543_v40  ;;  %6705 = vmatpush.msra.mxu3 %v13399_v31  ;;  %v6812_v31 = vand.u32 4294901760, %v6811_v18  ;;  %v13775_v18 = vsub.f32 %v13387_v54, %v13751_v42  ;;  %v6846_v54 = vand.u32 4294901760, %v13765_v37 }
 0x7c8   :  { %6469 = vmatmul.f32.vlgmr.msrb.gmra.mxu2 %v6468_v29  ;;  %6754 = vmatpush.msra.mxu0 %v13634_v20  ;;  %v16446_v29 = vand.u32 4294901760, %v13379_v35  ;;  %v16447_v35 = vand.u32 4294901760, %v13397_v56  ;;  %v6824_v48 = vand.u32 4294901760, %v6823_v28 }
 0x7c9   :  { %6642 = vmatpush.msra.mxu2 %v6479_v34  ;;  %6801 = vmatpush.msra.mxu1 %v6800_v55  ;;  %v6829_v34 = vsub.f32 %v13718_v1, %v6828_v24  ;;  %v6840_v55 = vand.u32 4294901760, %v13748_v30  ;;  %v6773_v47 = vand.u32 4294901760, %v13775_v18  ;;  %v6847_v28 = vsub.f32 %v13765_v37, %v6846_v54 }
 0x7ca   :  { %6707 = vmatpush.msra.mxu3 %v13432_v38  ;;  %6756 = vmatpush.msra.mxu0 %v13649_v11  ;;  %v13780_v38 = vsub.f32 %v9226_v17, %v13754_v0 }
 0x7cb   :  { %6646 = vmatpush.msra.mxu2 %v16446_v29  ;;  %6807 = vmatpush.msra.mxu1 %v6806_v2  ;;  %v6835_v2 = vsub.f32 %v13733_v53, %v6834_v58  ;;  %v6830_v17 = vand.u32 4294901760, %v6829_v34  ;;  %v6841_v56 = vsub.f32 %v13748_v30, %v6840_v55 }
 0x7cc   :  { %6709 = vmatpush.msra.mxu3 %v13451_v51  ;;  %6758 = vmatpush.msra.mxu0 %v13662_v22  ;;  %v16448_v51 = vand.u32 4294901760, %v13420_v36 }
 0x7cd   :  { %6650 = vmatpush.msra.mxu2 %v16447_v35  ;;  %6813 = vmatpush.msra.mxu1 %v6812_v31  ;;  %v16449_v31 = vand.u32 4294901760, %v13442_v27  ;;  %v6836_v36 = vand.u32 4294901760, %v6835_v2  ;;  %v6842_v29 = vand.u32 4294901760, %v6841_v56  ;;  %v6774_v27 = vsub.f32 %v13775_v18, %v6773_v47  ;;  %v9248_v2 = vld [vmem:[%s15236_s5 + $0x1d0] sm:$0xff] }
 0x7ce   :  { %6711 = vmatpush.msra.mxu3 %v13469_v43  ;;  %6760 = vmatpush.msra.mxu0 %v13677_v45  ;;  %v6852_v43 = vand.u32 4294901760, %v13780_v38  ;;  %v16459_v56 = vand.u32 4294901760, %v13565_v12 }
 0x7cf   :  { %6654 = vmatpush.msra.mxu2 %v16448_v51  ;;  %6819 = vmatpush.msra.mxu1 %v6818_v13  ;;  %v16451_v13 = vand.u32 4294901760, %v13488_v4  ;;  %v6775_v34 = vand.u32 4294901760, %v6774_v27  ;;  %v16453_v4 = vand.u32 4294901760, %v13528_v21  ;;  %v16456_v21 = vand.u32 4294901760, %v13627_v26 }
 0x7d0   :  { %6713 = vmatpush.msra.mxu3 %v13490_v60  ;;  %6762 = vmatpush.msra.mxu0 %v13693_v50  ;;  %v16450_v60 = vand.u32 4294901760, %v13467_v59  ;;  %v6848_v59 = vand.u32 4294901760, %v6847_v28  ;;  %v9245_v28 = vld [vmem:[%s15236_s5 + $0x1b8] sm:$0xff] }
 0x7d1   :  { %6658 = vmatpush.msra.mxu2 %v16449_v31  ;;  %6825 = vmatpush.msra.mxu1 %v6824_v48  ;;  %v9249_v48 = vld [vmem:[%s15236_s5 + $0x1d8] sm:$0xff]  ;;  %v16460_v31 = vand.u32 4294901760, %v13660_v19 }
 0x7d2   :  { %6715 = vmatpush.msra.mxu3 %v13513_v25  ;;  %6764 = vmatpush.msra.mxu0 %v13708_v10  ;;  %v6853_v25 = vsub.f32 %v13780_v38, %v6852_v43  ;;  %v13846_v51 = vand.u32 4294901760, %v9249_v48 }
 0x7d3   :  { %6662 = vmatpush.msra.mxu2 %v16450_v60  ;;  %6831 = vmatpush.msra.mxu1 %v6830_v17  ;;  %v16458_v17 = vand.u32 4294901760, %v13647_v63 }
 0x7d4   :  { %6717 = vmatpush.msra.mxu3 %v13530_v8  ;;  %6766 = vmatpush.msra.mxu0 %v13720_v5  ;;  %v16452_v8 = vand.u32 4294901760, %v13511_v32  ;;  %v6854_v35 = vand.u32 4294901760, %v6853_v25  ;;  %v16455_v32 = vand.u32 4294901760, %v13541_v41  ;;  %v16457_v41 = vand.u32 4294901760, %v13555_v14  ;;  %v9242_v25 = vld [vmem:[%s15236_s5 + $0x1a0] sm:$0xff] }
 0x7d5   :  { %6666 = vmatpush.msra.mxu2 %v16451_v13  ;;  %6837 = vmatpush.msra.mxu1 %v6836_v36  ;;  %v13857_v14 = vand.u32 4294901760, %v9248_v2  ;;  %v13868_v12 = vsub.f32 %v9249_v48, %v13846_v51  ;;  %v9241_v13 = vld [vmem:[%s15236_s5 + $0x198] sm:$0xff] }
 0x7d6   :  { %6719 = vmatpush.msra.mxu3 %v13543_v40  ;;  %6768 = vmatpush.msra.mxu0 %v13739_v16  ;;  %v16454_v40 = vand.u32 4294901760, %v13614_v9 }
 0x7d7   :  { %6670 = vmatpush.msra.mxu2 %v16452_v8  ;;  %6843 = vmatpush.msra.mxu1 %v6842_v29  ;;  %v15557_v60 = vand.u32 4294901760, %v13868_v12  ;;  %v9244_v29 = vld [vmem:[%s15236_s5 + $0x1b0] sm:$0xff]  ;;  %v16462_v23 = vand.u32 4294901760, %v13868_v12 }
 0x7d8   :  { %6721 = vmatmul.f32.vlgmr.msra.gmra.mxu3 %v13624_v7  ;;  %6770 = vmatpush.msra.mxu0 %v13754_v0  ;;  %v13914_v27 = vand.u32 4294901760, %v9244_v29 }
 0x7d9   :  { %6912 = vmatpush.msrb.mxu3 %v13590_v39  ;;  %6674 = vmatpush.msra.mxu2 %v16453_v4  ;;  %v9239_v4 = vld [vmem:[%s15236_s5 + $0x188] sm:$0xff] }
 0x7da   :  { %6849 = vmatpush.msra.mxu1 %v6848_v59  ;;  %6776 = vmatmul.f32.vlgmr.msra.gmra.mxu0 %v6775_v34 }
 0x7db   :  { %6914 = vmatpush.msrb.mxu3 %v13601_v49  ;;  %6949 = vmatpush.msrb.mxu0 %v16454_v40 }
 0x7dc   :  { %6678 = vmatpush.msra.mxu2 %v16455_v32  ;;  %6855 = vmatpush.msra.mxu1 %v6854_v35 }
 0x7dd   :  { %6857 = vmatmul.f32.vlgmr.msra.gmra.mxu1 %v13751_v42  ;;  %6916 = vmatpush.msrb.mxu3 %v13621_v46 }
 0x7de   :  { %6953 = vmatpush.msrb.mxu0 %v16456_v21  ;;  %7004 = vmatpush.msrb.mxu1 %v13590_v39  ;;  %v9247_v39 = vld [vmem:[%s15236_s5 + $0x1c8] sm:$0xff]  ;;  %v13998_v21 = vand.u32 4294901760, %v9239_v4 }
 0x7df   :  { %6682 = vmatpush.msra.mxu2 %v16457_v41  ;;  %6918 = vmatpush.msrb.mxu3 %v13634_v20  ;;  %v13870_v36 = vand.u32 4294901760, %v9247_v39 }
 0x7e0   :  { %6957 = vmatpush.msrb.mxu0 %v16458_v17  ;;  %7006 = vmatpush.msrb.mxu1 %v13601_v49  ;;  %v9246_v49 = vld [vmem:[%s15236_s5 + $0x1c0] sm:$0xff] }
 0x7e1   :  { %6686 = vmatpush.msra.mxu2 %v16459_v56  ;;  %6920 = vmatpush.msrb.mxu3 %v13649_v11  ;;  %v14020_v56 = vsub.f32 %v9239_v4, %v13998_v21 }
 0x7e2   :  { %6688 = vmatmul.f32.vlgmr.msra.gmra.mxu2 %v13624_v7  ;;  %6961 = vmatpush.msrb.mxu0 %v16460_v31  ;;  %v16461_v7 = vand.u32 4294901760, %v13675_v44 }
 0x7e3   :  { %6867 = vmatpush.msrb.mxu2 %v13614_v9  ;;  %7008 = vmatpush.msrb.mxu1 %v13621_v46  ;;  %v13881_v9 = vsub.f32 %v9248_v2, %v13857_v14  ;;  %v13883_v46 = vand.u32 4294901760, %v9246_v49 }
 0x7e4   :  { %6922 = vmatpush.msrb.mxu3 %v13662_v22  ;;  %6965 = vmatpush.msrb.mxu0 %v16461_v7 }
 0x7e5   :  { %6870 = vmatpush.msrb.mxu2 %v13627_v26  ;;  %7010 = vmatpush.msrb.mxu1 %v13634_v20  ;;  %v13892_v26 = vsub.f32 %v9247_v39, %v13870_v36  ;;  %v13894_v20 = vand.u32 4294901760, %v9245_v28 }
 0x7e6   :  { %6924 = vmatpush.msrb.mxu3 %v13677_v45  ;;  %6969 = vmatpush.msrb.mxu0 %v6816_v3  ;;  %v9243_v3 = vld [vmem:[%s15236_s5 + $0x1a8] sm:$0xff] }
 0x7e7   :  { %6873 = vmatpush.msrb.mxu2 %v13647_v63  ;;  %7012 = vmatpush.msrb.mxu1 %v13649_v11  ;;  %v15556_v63 = vand.u32 4294901760, %v13881_v9  ;;  %v13906_v11 = vsub.f32 %v9246_v49, %v13883_v46 }
 0x7e8   :  { %6926 = vmatpush.msrb.mxu3 %v13693_v50  ;;  %6973 = vmatpush.msrb.mxu0 %v6822_v6  ;;  %v13923_v6 = vsub.f32 %v9245_v28, %v13894_v20 }
 0x7e9   :  { %6876 = vmatpush.msrb.mxu2 %v13660_v19  ;;  %7014 = vmatpush.msrb.mxu1 %v13662_v22  ;;  %v7093_v19 = vsub.f32 %v13868_v12, %v15557_v60  ;;  %v15553_v22 = vand.u32 4294901760, %v13892_v26 }
 0x7ea   :  { %6928 = vmatpush.msrb.mxu3 %v13708_v10  ;;  %6977 = vmatpush.msrb.mxu0 %v6828_v24  ;;  %v15551_v24 = vand.u32 4294901760, %v13906_v11  ;;  %v15550_v8 = vand.u32 4294901760, %v13923_v6 }
 0x7eb   :  { %6879 = vmatpush.msrb.mxu2 %v13675_v44  ;;  %7016 = vmatpush.msrb.mxu1 %v13677_v45  ;;  %v13931_v44 = vand.u32 4294901760, %v9243_v3  ;;  %v7099_v45 = vsub.f32 %v13881_v9, %v15556_v63  ;;  %v7105_v59 = vsub.f32 %v13892_v26, %v15553_v22  ;;  %v9251_v22 = vld [vmem:[%s15236_s5 + $0x1e8] sm:$0xff] }
 0x7ec   :  { %6930 = vmatpush.msrb.mxu3 %v13720_v5  ;;  %6981 = vmatpush.msrb.mxu0 %v6834_v58  ;;  %v13946_v58 = vsub.f32 %v9244_v29, %v13914_v27  ;;  %v7111_v35 = vsub.f32 %v13906_v11, %v15551_v24  ;;  %v7117_v32 = vsub.f32 %v13923_v6, %v15550_v8  ;;  %v14203_v60 = vand.u32 4294901760, %v9251_v22 }
 0x7ed   :  { %6882 = vmatpush.msrb.mxu2 %v13691_v57  ;;  %7018 = vmatpush.msrb.mxu1 %v13693_v50  ;;  %v13948_v57 = vand.u32 4294901760, %v9242_v25  ;;  %v7094_v50 = vand.u32 4294901760, %v7093_v19  ;;  %v7100_v34 = vand.u32 4294901760, %v7099_v45  ;;  %v7106_v40 = vand.u32 4294901760, %v7105_v59 }
 0x7ee   :  { %6932 = vmatpush.msrb.mxu3 %v13739_v16  ;;  %6985 = vmatpush.msrb.mxu0 %v6840_v55  ;;  %v9240_v55 = vld [vmem:[%s15236_s5 + $0x190] sm:$0xff]  ;;  %v7118_v39 = vand.u32 4294901760, %v7117_v32 }
 0x7ef   :  { %6885 = vmatpush.msrb.mxu2 %v13706_v62  ;;  %7020 = vmatpush.msrb.mxu1 %v13708_v10  ;;  %v13963_v62 = vsub.f32 %v9243_v3, %v13931_v44  ;;  %v13965_v10 = vand.u32 4294901760, %v9241_v13  ;;  %v15542_v3 = vand.u32 4294901760, %v14020_v56 }
 0x7f0   :  { %6934 = vmatpush.msrb.mxu3 %v13754_v0  ;;  %6989 = vmatpush.msrb.mxu0 %v6846_v54  ;;  %v15549_v54 = vand.u32 4294901760, %v13946_v58 }
 0x7f1   :  { %6888 = vmatpush.msrb.mxu2 %v13718_v1  ;;  %7022 = vmatpush.msrb.mxu1 %v13720_v5  ;;  %v13981_v1 = vsub.f32 %v9242_v25, %v13948_v57  ;;  %v13983_v5 = vand.u32 4294901760, %v9240_v55  ;;  %v13996_v48 = vsub.f32 %v9241_v13, %v13965_v10 }
 0x7f2   :  { %6938 = vmatmul.f32.vlgmr.msrb.gmra.mxu3 %v6773_v47  ;;  %6993 = vmatpush.msrb.mxu0 %v6852_v43  ;;  %v9238_v47 = vld [vmem:[%s15236_s5 + $0x180] sm:$0xff]  ;;  %v15548_v43 = vand.u32 4294901760, %v13963_v62 }
 0x7f3   :  { %7095 = vmatpush.msra.mxu3 %v7094_v50  ;;  %6891 = vmatpush.msrb.mxu2 %v13733_v53  ;;  %v7112_v53 = vand.u32 4294901760, %v7111_v35  ;;  %v15546_v2 = vand.u32 4294901760, %v13981_v1  ;;  %v14008_v41 = vsub.f32 %v9240_v55, %v13983_v5  ;;  %v14010_v17 = vand.u32 4294901760, %v9238_v47  ;;  %v9259_v55 = vld [vmem:[%s15236_s5 + $0x228] sm:$0xff] }
 0x7f4   :  { %7024 = vmatpush.msrb.mxu1 %v13739_v16  ;;  %6995 = vmatmul.f32.vlgmr.msrb.gmra.mxu0 %v13751_v42  ;;  %v7123_v16 = vsub.f32 %v13946_v58, %v15549_v54  ;;  %v7153_v50 = vsub.f32 %v14020_v56, %v15542_v3  ;;  %v14079_v32 = vand.u32 4294901760, %v9259_v55 }
 0x7f5   :  { %7101 = vmatpush.msra.mxu3 %v7100_v34  ;;  %7173 = vmatpush.msra.mxu0 %v13868_v12  ;;  %v7135_v31 = vsub.f32 %v13981_v1, %v15546_v2  ;;  %v15543_v49 = vand.u32 4294901760, %v14008_v41  ;;  %v14030_v7 = vsub.f32 %v9238_v47, %v14010_v17  ;;  %v9258_v34 = vld [vmem:[%s15236_s5 + $0x220] sm:$0xff]  ;;  %v16464_v12 = vand.u32 4294901760, %v13881_v9 }
 0x7f6   :  { %6894 = vmatpush.msrb.mxu2 %v13748_v30  ;;  %7026 = vmatpush.msrb.mxu1 %v13754_v0  ;;  %v7129_v30 = vsub.f32 %v13963_v62, %v15548_v43  ;;  %v15545_v0 = vand.u32 4294901760, %v13996_v48  ;;  %v7154_v47 = vand.u32 4294901760, %v7153_v50  ;;  %v9255_v50 = vld [vmem:[%s15236_s5 + $0x208] sm:$0xff] }
 0x7f7   :  { %7028 = vmatmul.f32.vlgmr.msrb.gmra.mxu1 %v13751_v42  ;;  %7107 = vmatpush.msra.mxu3 %v7106_v40  ;;  %v7124_v42 = vand.u32 4294901760, %v7123_v16  ;;  %v7147_v19 = vsub.f32 %v14008_v41, %v15543_v49  ;;  %v15541_v25 = vand.u32 4294901760, %v14030_v7 }
 0x7f8   :  { %7176 = vmatpush.msra.mxu0 %v13881_v9  ;;  %7218 = vmatpush.msra.mxu1 %v13846_v51  ;;  %v7130_v28 = vand.u32 4294901760, %v7129_v30  ;;  %v7141_v29 = vsub.f32 %v13996_v48, %v15545_v0  ;;  %v9257_v30 = vld [vmem:[%s15236_s5 + $0x218] sm:$0xff] }
 0x7f9   :  { %6897 = vmatpush.msrb.mxu2 %v13765_v37  ;;  %7113 = vmatpush.msra.mxu3 %v7112_v53  ;;  %v9261_v37 = vld [vmem:[%s15236_s5 + $0x238] sm:$0xff]  ;;  %v7148_v35 = vand.u32 4294901760, %v7147_v19  ;;  %v7159_v4 = vsub.f32 %v14030_v7, %v15541_v25  ;;  %v14083_v53 = vand.u32 4294901760, %v13472_v33 }
 0x7fa   :  { %7179 = vmatpush.msra.mxu0 %v13892_v26  ;;  %7220 = vmatpush.msra.mxu1 %v13857_v14  ;;  %v14052_v45 = vand.u32 4294901760, %v9261_v37  ;;  %v7142_v13 = vand.u32 4294901760, %v7141_v29  ;;  %v14105_v29 = vand.u32 4294901760, %v9257_v30 }
 0x7fb   :  { %6900 = vmatpush.msrb.mxu2 %v13780_v38  ;;  %7119 = vmatpush.msra.mxu3 %v7118_v39  ;;  %v9260_v38 = vld [vmem:[%s15236_s5 + $0x230] sm:$0xff]  ;;  %v14088_v39 = vand.u32 4294901760, %v9258_v34 }
 0x7fc   :  { %6903 = vmatmul.f32.vlgmr.msrb.gmra.mxu2 %v13775_v18  ;;  %7182 = vmatpush.msra.mxu0 %v13906_v11  ;;  %v7136_v18 = vand.u32 4294901760, %v7135_v31  ;;  %v14060_v59 = vand.u32 4294901760, %v9260_v38  ;;  %v14075_v40 = vsub.f32 %v9261_v37, %v14052_v45  ;;  %v7160_v31 = vand.u32 4294901760, %v7159_v4 }
 0x7fd   :  { %7054 = vmatpush.msra.mxu2 %v13846_v51  ;;  %7222 = vmatpush.msra.mxu1 %v13870_v36  ;;  %v14112_v19 = vsub.f32 %v9258_v34, %v14088_v39 }
 0x7fe   :  { %7125 = vmatpush.msra.mxu3 %v7124_v42  ;;  %7185 = vmatpush.msra.mxu0 %v13923_v6  ;;  %v14086_v16 = vsub.f32 %v9260_v38, %v14060_v59  ;;  %v9256_v42 = vld [vmem:[%s15236_s5 + $0x210] sm:$0xff]  ;;  %v15544_v37 = vand.u32 4294901760, %v14075_v40  ;;  %v7078_v38 = vsub.f32 %v13472_v33, %v14083_v53 }
 0x7ff   :  { %7056 = vmatpush.msra.mxu2 %v13857_v14  ;;  %7224 = vmatpush.msra.mxu1 %v13883_v46  ;;  %v15554_v49 = vand.u32 4294901760, %v14112_v19 }
 0x800   :  { %7131 = vmatpush.msra.mxu3 %v7130_v28  ;;  %7188 = vmatpush.msra.mxu0 %v13946_v58  ;;  %v14103_v28 = vsub.f32 %v9259_v55, %v14079_v32  ;;  %v7399_v33 = vsub.f32 %v14075_v40, %v15544_v37  ;;  %v7079_v25 = vand.u32 4294901760, %v7078_v38 }
 0x801   :  { %7058 = vmatpush.msra.mxu2 %v13870_v36  ;;  %7226 = vmatpush.msra.mxu1 %v13894_v20 }
 0x802   :  { %7137 = vmatpush.msra.mxu3 %v7136_v18  ;;  %7191 = vmatpush.msra.mxu0 %v13963_v62  ;;  %v15547_v18 = vand.u32 4294901760, %v14086_v16  ;;  %v15552_v4 = vand.u32 4294901760, %v14103_v28  ;;  %v7400_v2 = vand.u32 4294901760, %v7399_v33  ;;  %v7080_v8 = vsub.f32 %v7078_v38, %v7079_v25 }
 0x803   :  { %7060 = vmatpush.msra.mxu2 %v13883_v46  ;;  %7228 = vmatpush.msra.mxu1 %v13914_v27 }
 0x804   :  { %7143 = vmatpush.msra.mxu3 %v7142_v13  ;;  %7194 = vmatpush.msra.mxu0 %v13981_v1  ;;  %v14114_v13 = vand.u32 4294901760, %v9256_v42  ;;  %v7405_v3 = vsub.f32 %v14086_v16, %v15547_v18  ;;  %v9252_v18 = vld [vmem:[%s15236_s5 + $0x1f0] sm:$0xff] }
 0x805   :  { %7062 = vmatpush.msra.mxu2 %v13894_v20  ;;  %7230 = vmatpush.msra.mxu1 %v13931_v44 }
 0x806   :  { %7149 = vmatpush.msra.mxu3 %v7148_v35  ;;  %7197 = vmatpush.msra.mxu0 %v13996_v48  ;;  %v9254_v35 = vld [vmem:[%s15236_s5 + $0x200] sm:$0xff]  ;;  %v14147_v37 = vsub.f32 %v9256_v42, %v14114_v13  ;;  %v7406_v33 = vand.u32 4294901760, %v7405_v3 }
 0x807   :  { %7064 = vmatpush.msra.mxu2 %v13914_v27  ;;  %7232 = vmatpush.msra.mxu1 %v13948_v57  ;;  %v14154_v0 = vand.u32 4294901760, %v9254_v35 }
 0x808   :  { %7155 = vmatpush.msra.mxu3 %v7154_v47  ;;  %7200 = vmatpush.msra.mxu0 %v14008_v41  ;;  %v14121_v55 = vpop.f32.mrf.mxu0  ;;  %v14136_v47 = vsub.f32 %v9257_v30, %v14105_v29  ;;  %v9253_v30 = vld [vmem:[%s15236_s5 + $0x1f8] sm:$0xff]  ;;  %v15559_v24 = vand.u32 4294901760, %v14147_v37 }
 0x809   :  { %7066 = vmatpush.msra.mxu2 %v13931_v44  ;;  %7234 = vmatpush.msra.mxu1 %v13965_v10  ;;  %v14169_v54 = vand.u32 4294901760, %v9253_v30 }
 0x80a   :  { %7161 = vmatpush.msra.mxu3 %v7160_v31  ;;  %7203 = vmatpush.msra.mxu0 %v14020_v56  ;;  %v14127_v34 = vpop.f32.mrf.mxu1  ;;  %v14138_v31 = vand.u32 4294901760, %v9255_v50  ;;  %v15555_v42 = vand.u32 4294901760, %v14136_v47 }
 0x80b   :  { %7068 = vmatpush.msra.mxu2 %v13948_v57  ;;  %7236 = vmatpush.msra.mxu1 %v13983_v5 }
 0x80c   :  { %7163 = vmatmul.f32.vlgmr.msra.gmra.mxu3 %v14083_v53  ;;  %7206 = vmatpush.msra.mxu0 %v14030_v7  ;;  %v14167_v43 = vsub.f32 %v9255_v50, %v14138_v31  ;;  %v14179_v50 = vsub.f32 %v9254_v35, %v14154_v0 }
 0x80d   :  { %7310 = vmatpush.msrb.mxu3 %v13846_v51  ;;  %7070 = vmatpush.msra.mxu2 %v13965_v10  ;;  %v7411_v51 = vsub.f32 %v14103_v28, %v15552_v4  ;;  %v14181_v4 = vand.u32 4294901760, %v9252_v18 }
 0x80e   :  { %7238 = vmatpush.msra.mxu1 %v13998_v21  ;;  %7209 = vmatmul.f32.vlgmr.msra.gmra.mxu0 %v7078_v38 }
 0x80f   :  { %7312 = vmatpush.msrb.mxu3 %v13857_v14  ;;  %7360 = vmatpush.msrb.mxu0 %v14052_v45  ;;  %v7417_v14 = vsub.f32 %v14112_v19, %v15554_v49  ;;  %v7412_v3 = vand.u32 4294901760, %v7411_v51  ;;  %v14194_v49 = vsub.f32 %v9253_v30, %v14169_v54  ;;  %v7440_v30 = vand.u32 4294901760, %v14179_v50 }
 0x810   :  { %7072 = vmatpush.msra.mxu2 %v13983_v5  ;;  %7240 = vmatpush.msra.mxu1 %v14010_v17 }
 0x811   :  { %7244 = vmatmul.f32.vlgmr.msra.gmra.mxu1 %v7079_v25  ;;  %7314 = vmatpush.msrb.mxu3 %v13870_v36  ;;  %v7423_v36 = vsub.f32 %v14136_v47, %v15555_v42  ;;  %v5939_v25 = vpop.f32.mrf.mxu3  ;;  %v6164_v35 = vpop.f32.mrf.mxu0  ;;  %v7418_v51 = vand.u32 4294901760, %v7417_v14  ;;  %v7429_v42 = vsub.f32 %v14147_v37, %v15559_v24  ;;  %v14217_v24 = vand.u32 4294901760, %v13493_v15 }
 0x812   :  { %7362 = vmatpush.msrb.mxu0 %v14060_v59  ;;  %7401 = vmatpush.msrb.mxu1 %v7400_v2  ;;  %v9250_v2 = vld [vmem:[%s15236_s5 + $0x1e0] sm:$0xff] }
 0x813   :  { %7074 = vmatpush.msra.mxu2 %v13998_v21  ;;  %7316 = vmatpush.msrb.mxu3 %v13883_v46  ;;  %v7081_v46 = vand.u32 4294901760, %v7080_v8  ;;  %v14214_v14 = vand.u32 4294901760, %v9250_v2 }
 0x814   :  { %7364 = vmatpush.msrb.mxu0 %v14079_v32  ;;  %7407 = vmatpush.msrb.mxu1 %v7406_v33  ;;  %v6245_v63 = vpop.f32.mrf.mxu1  ;;  %v5858_v38 = vpop.f32.mrf.mxu2  ;;  %v14211_v33 = vsub.f32 %v9252_v18, %v14181_v4  ;;  %v7446_v18 = vand.u32 4294901760, %v14194_v49 }
 0x815   :  { %7076 = vmatpush.msra.mxu2 %v14010_v17  ;;  %7318 = vmatpush.msrb.mxu3 %v13894_v20  ;;  %v14208_v61 = vadd.f32 %v6245_v63, %v6164_v35  ;;  %v5940_v8 = vadd.f32 %v5939_v25, %v5858_v38  ;;  %v7424_v20 = vand.u32 4294901760, %v7423_v36  ;;  %v16463_v63 = vand.u32 4294901760, %v14167_v43 }
 0x816   :  { %7082 = vmatmul.f32.vlgmr.msra.gmra.mxu2 %v7081_v46  ;;  %7366 = vmatpush.msrb.mxu0 %v14088_v39  ;;  %v14229_v38 = vsub.f32 %v9251_v22, %v14203_v60  ;;  %v7452_v36 = vand.u32 4294901760, %v14211_v33  ;;  %v14245_v9 = vsub.f32 %v9250_v2, %v14214_v14  ;;  %v16465_v22 = vand.u32 4294901760, %v13892_v26 }
 0x817   :  { %7255 = vmatpush.msrb.mxu2 %v16462_v23  ;;  %7413 = vmatpush.msrb.mxu1 %v7412_v3  ;;  %v7435_v35 = vsub.f32 %v14167_v43, %v16463_v63  ;;  %v5986_v25 = vadd.f32 %v14121_v55, %v5940_v8  ;;  %v7430_v23 = vand.u32 4294901760, %v7429_v42  ;;  %v7441_v3 = vsub.f32 %v14179_v50, %v7440_v30 }
 0x818   :  { %7320 = vmatpush.msrb.mxu3 %v13914_v27  ;;  %7368 = vmatpush.msrb.mxu0 %v14105_v29  ;;  %v14242_v27 = vsub.f32 %v13493_v15, %v14217_v24  ;;  %v16466_v15 = vand.u32 4294901760, %v13906_v11  ;;  %v7453_v26 = vsub.f32 %v14211_v33, %v7452_v36  ;;  %v16467_v8 = vand.u32 4294901760, %v13923_v6 }
 0x819   :  { %7259 = vmatpush.msrb.mxu2 %v16464_v12  ;;  %7419 = vmatpush.msrb.mxu1 %v7418_v51  ;;  %v6021_v55 = vadd.f32 %v14127_v34, %v5986_v25  ;;  %v7436_v42 = vand.u32 4294901760, %v7435_v35  ;;  %v7447_v34 = vsub.f32 %v14194_v49, %v7446_v18  ;;  %v7442_v2 = vand.u32 4294901760, %v7441_v3  ;;  %v6110_v63 = vpop.f32.mrf.mxu3 }
 0x81a   :  { %7322 = vmatpush.msrb.mxu3 %v13931_v44  ;;  %7370 = vmatpush.msrb.mxu0 %v14114_v13  ;;  %v7458_v44 = vand.u32 4294901760, %v14229_v38  ;;  %v7385_v46 = vand.u32 4294901760, %v14242_v27  ;;  %v16468_v35 = vand.u32 4294901760, %v13946_v58  ;;  %v7454_v25 = vand.u32 4294901760, %v7453_v26 }
 0x81b   :  { %7263 = vmatpush.msrb.mxu2 %v16465_v22  ;;  %7425 = vmatpush.msrb.mxu1 %v7424_v20  ;;  %v7448_v11 = vand.u32 4294901760, %v7447_v34  ;;  %v9273_v22 = vld [vmem:[%s15236_s5 + $0x298] sm:$0xff]  ;;  %v16478_v26 = vand.u32 4294901760, %v14112_v19 }
 0x81c   :  { %7324 = vmatpush.msrb.mxu3 %v13948_v57  ;;  %7372 = vmatpush.msrb.mxu0 %v14138_v31  ;;  %v7464_v57 = vand.u32 4294901760, %v14245_v9  ;;  %v7386_v6 = vsub.f32 %v14242_v27, %v7385_v46  ;;  %v14313_v34 = vand.u32 4294901760, %v9273_v22 }
 0x81d   :  { %7267 = vmatpush.msrb.mxu2 %v16466_v15  ;;  %7431 = vmatpush.msrb.mxu1 %v7430_v23  ;;  %v6077_v51 = vpop.f32.mrf.mxu2  ;;  %v16469_v23 = vand.u32 4294901760, %v13963_v62  ;;  %v16471_v62 = vand.u32 4294901760, %v13996_v48  ;;  %v16474_v48 = vand.u32 4294901760, %v14086_v16  ;;  %v16476_v15 = vand.u32 4294901760, %v14103_v28 }
 0x81e   :  { %7326 = vmatpush.msrb.mxu3 %v13965_v10  ;;  %7374 = vmatpush.msrb.mxu0 %v14154_v0  ;;  %v6078_v20 = vadd.f32 %v6077_v51, %v6021_v55  ;;  %v7459_v10 = vsub.f32 %v14229_v38, %v7458_v44  ;;  %v7387_v3 = vand.u32 4294901760, %v7386_v6 }
 0x81f   :  { %7271 = vmatpush.msrb.mxu2 %v16467_v8  ;;  %7437 = vmatpush.msrb.mxu1 %v7436_v42  ;;  %v9272_v42 = vld [vmem:[%s15236_s5 + $0x290] sm:$0xff] }
 0x820   :  { %7328 = vmatpush.msrb.mxu3 %v13983_v5  ;;  %7376 = vmatpush.msrb.mxu0 %v14169_v54  ;;  %v14273_v12 = vadd.f32 %v6110_v63, %v6078_v20  ;;  %v7465_v5 = vsub.f32 %v14245_v9, %v7464_v57  ;;  %v7460_v58 = vand.u32 4294901760, %v7459_v10  ;;  %v9269_v20 = vld [vmem:[%s15236_s5 + $0x278] sm:$0xff]  ;;  %v9301_v10 = vld [vmem:[%s15237_s6] ss:$0 sm:$0xff] }
 0x821   :  { %7275 = vmatpush.msrb.mxu2 %v16468_v35  ;;  %7443 = vmatpush.msrb.mxu1 %v7442_v2  ;;  %v16477_v2 = vand.u32 4294901760, %v14030_v7  ;;  %v14335_v7 = vsub.f32 %v9273_v22, %v14313_v34  ;;  %v14365_v6 = vand.u32 4294901760, %v9269_v20 }
 0x822   :  { %7330 = vmatpush.msrb.mxu3 %v13998_v21  ;;  %7378 = vmatpush.msrb.mxu0 %v14181_v4  ;;  %v16470_v21 = vand.u32 4294901760, %v13981_v1  ;;  %v7466_v55 = vand.u32 4294901760, %v7465_v5  ;;  %v16473_v1 = vand.u32 4294901760, %v14008_v41  ;;  %v16475_v41 = vand.u32 4294901760, %v14020_v56  ;;  %v9268_v5 = vld [vmem:[%s15236_s5 + $0x270] sm:$0xff] }
 0x823   :  { %7279 = vmatpush.msrb.mxu2 %v16469_v23  ;;  %7449 = vmatpush.msrb.mxu1 %v7448_v11  ;;  %v14324_v56 = vand.u32 4294901760, %v9272_v42  ;;  %v16481_v23 = vand.u32 4294901760, %v14167_v43 }
 0x824   :  { %7332 = vmatpush.msrb.mxu3 %v14010_v17  ;;  %7380 = vmatpush.msrb.mxu0 %v14203_v60  ;;  %v16472_v17 = vand.u32 4294901760, %v14075_v40 }
 0x825   :  { %7283 = vmatpush.msrb.mxu2 %v16470_v21  ;;  %7455 = vmatpush.msrb.mxu1 %v7454_v25  ;;  %v6383_v25 = vpop.f32.mrf.mxu0 }
 0x826   :  { %7334 = vmatmul.f32.vlgmr.msrb.gmra.mxu3 %v14083_v53  ;;  %7382 = vmatpush.msrb.mxu0 %v14214_v14 }
 0x827   :  { %7524 = vmatpush.msra.mxu3 %v14052_v45  ;;  %7287 = vmatpush.msrb.mxu2 %v16471_v62 }
 0x828   :  { %7461 = vmatpush.msrb.mxu1 %v7460_v58  ;;  %7388 = vmatmul.f32.vlgmr.msrb.gmra.mxu0 %v7387_v3  ;;  %v9267_v3 = vld [vmem:[%s15236_s5 + $0x268] sm:$0xff] }
 0x829   :  { %7526 = vmatpush.msra.mxu3 %v14060_v59  ;;  %7561 = vmatpush.msra.mxu0 %v16472_v17 }
 0x82a   :  { %7291 = vmatpush.msrb.mxu2 %v16473_v1  ;;  %7467 = vmatpush.msrb.mxu1 %v7466_v55  ;;  %v6113_v55 = vadd.f32 %v9301_v10, %v14273_v12  ;;  %v14395_v12 = vsub.f32 %v9269_v20, %v14365_v6 }
 0x82b   :  { %7469 = vmatmul.f32.vlgmr.msrb.gmra.mxu1 %v14217_v24  ;;  %7528 = vmatpush.msra.mxu3 %v14079_v32 }
 0x82c   :  { %7565 = vmatpush.msra.mxu0 %v16474_v48  ;;  %7616 = vmatpush.msra.mxu1 %v14052_v45  ;;  %v9271_v45 = vld [vmem:[%s15236_s5 + $0x288] sm:$0xff]  ;;  %v9265_v48 = vld [vmem:[%s15236_s5 + $0x258] sm:$0xff] }
 0x82d   :  { %7295 = vmatpush.msrb.mxu2 %v16475_v41  ;;  %7530 = vmatpush.msra.mxu3 %v14088_v39  ;;  %v14337_v8 = vand.u32 4294901760, %v9271_v45  ;;  %v7728_v41 = vand.u32 4294901760, %v14395_v12 }
 0x82e   :  { %7569 = vmatpush.msra.mxu0 %v16476_v15  ;;  %7618 = vmatpush.msra.mxu1 %v14060_v59  ;;  %v9270_v59 = vld [vmem:[%s15236_s5 + $0x280] sm:$0xff] }
 0x82f   :  { %7299 = vmatpush.msrb.mxu2 %v16477_v2  ;;  %7532 = vmatpush.msra.mxu3 %v14105_v29  ;;  %v14351_v63 = vand.u32 4294901760, %v9270_v59  ;;  %v9263_v2 = vld [vmem:[%s15236_s5 + $0x248] sm:$0xff] }
 0x830   :  { %7301 = vmatmul.f32.vlgmr.msrb.gmra.mxu2 %v14083_v53  ;;  %7573 = vmatpush.msra.mxu0 %v16478_v26  ;;  %v16479_v53 = vand.u32 4294901760, %v14136_v47 }
 0x831   :  { %7479 = vmatpush.msra.mxu2 %v14075_v40  ;;  %7620 = vmatpush.msra.mxu1 %v14079_v32  ;;  %v6291_v51 = vpop.f32.mrf.mxu2  ;;  %v6326_v40 = vpop.f32.mrf.mxu3  ;;  %v14349_v32 = vsub.f32 %v9272_v42, %v14324_v56  ;;  %v14377_v21 = vsub.f32 %v9270_v59, %v14351_v63  ;;  %v7729_v59 = vsub.f32 %v14395_v12, %v7728_v41 }
 0x832   :  { %7534 = vmatpush.msra.mxu3 %v14114_v13  ;;  %7577 = vmatpush.msra.mxu0 %v16479_v53  ;;  %v6292_v11 = vadd.f32 %v6291_v51, %v14208_v61  ;;  %v16480_v61 = vand.u32 4294901760, %v14147_v37  ;;  %v14472_v53 = vand.u32 4294901760, %v9263_v2 }
 0x833   :  { %7482 = vmatpush.msra.mxu2 %v14086_v16  ;;  %7622 = vmatpush.msra.mxu1 %v14088_v39  ;;  %v7704_v16 = vand.u32 4294901760, %v14335_v7  ;;  %v14363_v39 = vsub.f32 %v9271_v45, %v14337_v8  ;;  %v7722_v22 = vand.u32 4294901760, %v14377_v21  ;;  %v7730_v10 = vand.u32 4294901760, %v7729_v59 }
 0x834   :  { %7536 = vmatpush.msra.mxu3 %v14138_v31  ;;  %7581 = vmatpush.msra.mxu0 %v16480_v61  ;;  %v6327_v35 = vadd.f32 %v6326_v40, %v6292_v11  ;;  %v14494_v61 = vsub.f32 %v9263_v2, %v14472_v53 }
 0x835   :  { %7485 = vmatpush.msra.mxu2 %v14103_v28  ;;  %7624 = vmatpush.msra.mxu1 %v14105_v29  ;;  %v6416_v28 = vpop.f32.mrf.mxu1  ;;  %v7710_v29 = vand.u32 4294901760, %v14349_v32  ;;  %v7716_v17 = vand.u32 4294901760, %v14363_v39  ;;  %v7723_v45 = vsub.f32 %v14377_v21, %v7722_v22 }
 0x836   :  { %7538 = vmatpush.msra.mxu3 %v14154_v0  ;;  %7585 = vmatpush.msra.mxu0 %v16481_v23  ;;  %v6384_v58 = vadd.f32 %v6383_v25, %v6327_v35 }
 0x837   :  { %7488 = vmatpush.msra.mxu2 %v14112_v19  ;;  %7626 = vmatpush.msra.mxu1 %v14114_v13  ;;  %v14386_v19 = vand.u32 4294901760, %v9268_v5  ;;  %v7705_v13 = vsub.f32 %v14335_v7, %v7704_v16  ;;  %v7711_v1 = vsub.f32 %v14349_v32, %v7710_v29  ;;  %v7717_v42 = vsub.f32 %v14363_v39, %v7716_v17 }
 0x838   :  { %7540 = vmatpush.msra.mxu3 %v14169_v54  ;;  %7589 = vmatpush.msra.mxu0 %v7440_v30  ;;  %v6417_v62 = vadd.f32 %v6416_v28, %v6384_v58  ;;  %v9266_v30 = vld [vmem:[%s15236_s5 + $0x260] sm:$0xff]  ;;  %v15562_v28 = vand.u32 4294901760, %v14494_v61 }
 0x839   :  { %7491 = vmatpush.msra.mxu2 %v14136_v47  ;;  %7628 = vmatpush.msra.mxu1 %v14138_v31  ;;  %v14403_v47 = vand.u32 4294901760, %v9267_v3  ;;  %v7712_v15 = vand.u32 4294901760, %v7711_v1  ;;  %v7718_v26 = vand.u32 4294901760, %v7717_v42 }
 0x83a   :  { %7542 = vmatpush.msra.mxu3 %v14181_v4  ;;  %7593 = vmatpush.msra.mxu0 %v7446_v18  ;;  %v14405_v31 = vadd.f32 %v6417_v62, %v6113_v55  ;;  %v14420_v18 = vsub.f32 %v9268_v5, %v14386_v19 }
 0x83b   :  { %7494 = vmatpush.msra.mxu2 %v14147_v37  ;;  %7630 = vmatpush.msra.mxu1 %v14154_v0  ;;  %v14422_v37 = vand.u32 4294901760, %v9266_v30  ;;  %v7706_v0 = vand.u32 4294901760, %v7705_v13 }
 0x83c   :  { %7544 = vmatpush.msra.mxu3 %v14203_v60  ;;  %7597 = vmatpush.msra.mxu0 %v7452_v36  ;;  %v9264_v36 = vld [vmem:[%s15236_s5 + $0x250] sm:$0xff] }
 0x83d   :  { %7497 = vmatpush.msra.mxu2 %v14167_v43  ;;  %7632 = vmatpush.msra.mxu1 %v14169_v54  ;;  %v14437_v43 = vsub.f32 %v9267_v3, %v14403_v47  ;;  %v14439_v54 = vand.u32 4294901760, %v9265_v48 }
 0x83e   :  { %7546 = vmatpush.msra.mxu3 %v14214_v14  ;;  %7601 = vmatpush.msra.mxu0 %v7458_v44  ;;  %v7734_v44 = vand.u32 4294901760, %v14420_v18 }
 0x83f   :  { %7500 = vmatpush.msra.mxu2 %v14179_v50  ;;  %7634 = vmatpush.msra.mxu1 %v14181_v4  ;;  %v14455_v50 = vsub.f32 %v9266_v30, %v14422_v37  ;;  %v14457_v4 = vand.u32 4294901760, %v9264_v36  ;;  %v14470_v51 = vsub.f32 %v9265_v48, %v14439_v54  ;;  %v7765_v30 = vsub.f32 %v14494_v61, %v15562_v28  ;;  %v9283_v48 = vld [vmem:[%s15236_s5 + $0x2e8] sm:$0xff]  ;;  %v9276_v28 = vld [vmem:[%s15236_s5 + $0x2b0] sm:$0xff] }
 0x840   :  { %7550 = vmatmul.f32.vlgmr.msra.gmra.mxu3 %v7385_v46  ;;  %7605 = vmatpush.msra.mxu0 %v7464_v57  ;;  %v9262_v46 = vld [vmem:[%s15236_s5 + $0x240] sm:$0xff]  ;;  %v15571_v57 = vand.u32 4294901760, %v14437_v43 }
 0x841   :  { %7707 = vmatpush.msrb.mxu3 %v7706_v0  ;;  %7503 = vmatpush.msra.mxu2 %v14194_v49  ;;  %v7724_v49 = vand.u32 4294901760, %v7723_v45  ;;  %v15568_v11 = vand.u32 4294901760, %v14455_v50  ;;  %v14482_v20 = vsub.f32 %v9264_v36, %v14457_v4  ;;  %v14484_v40 = vand.u32 4294901760, %v9262_v46 }
 0x842   :  { %7636 = vmatpush.msra.mxu1 %v14203_v60  ;;  %7607 = vmatmul.f32.vlgmr.msra.gmra.mxu0 %v14217_v24  ;;  %v7735_v60 = vsub.f32 %v14420_v18, %v7734_v44  ;;  %v14553_v45 = vand.u32 4294901760, %v9283_v48  ;;  %v7766_v2 = vand.u32 4294901760, %v7765_v30 }
 0x843   :  { %7713 = vmatpush.msrb.mxu3 %v7712_v15  ;;  %7785 = vmatpush.msrb.mxu0 %v14335_v7  ;;  %v7747_v35 = vsub.f32 %v14455_v50, %v15568_v11  ;;  %v15564_v25 = vand.u32 4294901760, %v14482_v20  ;;  %v14504_v5 = vsub.f32 %v9262_v46, %v14484_v40  ;;  %v9282_v15 = vld [vmem:[%s15236_s5 + $0x2e0] sm:$0xff]  ;;  %v9281_v46 = vld [vmem:[%s15236_s5 + $0x2d8] sm:$0xff]  ;;  %v9275_v11 = vld [vmem:[%s15236_s5 + $0x2a8] sm:$0xff] }
 0x844   :  { %7506 = vmatpush.msra.mxu2 %v14211_v33  ;;  %7638 = vmatpush.msra.mxu1 %v14214_v14  ;;  %v7741_v33 = vsub.f32 %v14437_v43, %v15571_v57  ;;  %v15567_v14 = vand.u32 4294901760, %v14470_v51 }
 0x845   :  { %7640 = vmatmul.f32.vlgmr.msra.gmra.mxu1 %v14217_v24  ;;  %7719 = vmatpush.msrb.mxu3 %v7718_v26  ;;  %v7736_v24 = vand.u32 4294901760, %v7735_v60  ;;  %v7759_v3 = vsub.f32 %v14482_v20, %v15564_v25  ;;  %v15561_v55 = vand.u32 4294901760, %v14504_v5  ;;  %v14557_v26 = vand.u32 4294901760, %v13583_v52 }
 0x846   :  { %7788 = vmatpush.msrb.mxu0 %v14349_v32  ;;  %7830 = vmatpush.msrb.mxu1 %v14313_v34  ;;  %v7742_v23 = vand.u32 4294901760, %v7741_v33  ;;  %v7753_v58 = vsub.f32 %v14470_v51, %v15567_v14  ;;  %v9280_v33 = vld [vmem:[%s15236_s5 + $0x2d0] sm:$0xff]  ;;  %v14651_v14 = vand.u32 4294901760, %v9276_v28 }
 0x847   :  { %7509 = vmatpush.msra.mxu2 %v14229_v38  ;;  %7725 = vmatpush.msrb.mxu3 %v7724_v49  ;;  %v9285_v38 = vld [vmem:[%s15236_s5 + $0x2f8] sm:$0xff]  ;;  %v7760_v0 = vand.u32 4294901760, %v7759_v3  ;;  %v7771_v42 = vsub.f32 %v14504_v5, %v15561_v55  ;;  %v14567_v49 = vand.u32 4294901760, %v9282_v15  ;;  %v9278_v3 = vld [vmem:[%s15236_s5 + $0x2c0] sm:$0xff] }
 0x848   :  { %7791 = vmatpush.msrb.mxu0 %v14363_v39  ;;  %7832 = vmatpush.msrb.mxu1 %v14324_v56  ;;  %v14526_v62 = vand.u32 4294901760, %v9285_v38  ;;  %v7754_v13 = vand.u32 4294901760, %v7753_v58  ;;  %v9279_v58 = vld [vmem:[%s15236_s5 + $0x2c8] sm:$0xff] }
 0x849   :  { %7512 = vmatpush.msra.mxu2 %v14245_v9  ;;  %7731 = vmatpush.msrb.mxu3 %v7730_v10  ;;  %v9284_v9 = vld [vmem:[%s15236_s5 + $0x2f0] sm:$0xff]  ;;  %v7772_v60 = vand.u32 4294901760, %v7771_v42 }
 0x84a   :  { %7515 = vmatmul.f32.vlgmr.msra.gmra.mxu2 %v14242_v27  ;;  %7794 = vmatpush.msrb.mxu0 %v14377_v21  ;;  %v7748_v27 = vand.u32 4294901760, %v7747_v35  ;;  %v14534_v1 = vand.u32 4294901760, %v9284_v9  ;;  %v14546_v36 = vsub.f32 %v9285_v38, %v14526_v62  ;;  %v14579_v35 = vand.u32 4294901760, %v9281_v46 }
 0x84b   :  { %7666 = vmatpush.msrb.mxu2 %v14313_v34  ;;  %7834 = vmatpush.msrb.mxu1 %v14337_v8  ;;  %v7690_v38 = vsub.f32 %v13583_v52, %v14557_v26 }
 0x84c   :  { %7737 = vmatpush.msrb.mxu3 %v7736_v24  ;;  %7797 = vmatpush.msrb.mxu0 %v14395_v12  ;;  %v14560_v59 = vsub.f32 %v9284_v9, %v14534_v1  ;;  %v15565_v10 = vand.u32 4294901760, %v14546_v36  ;;  %v14577_v24 = vsub.f32 %v9283_v48, %v14553_v45  ;;  %v14591_v9 = vsub.f32 %v9282_v15, %v14567_v49  ;;  %v9277_v15 = vld [vmem:[%s15236_s5 + $0x2b8] sm:$0xff] }
 0x84d   :  { %7668 = vmatpush.msrb.mxu2 %v14324_v56  ;;  %7836 = vmatpush.msrb.mxu1 %v14351_v63  ;;  %v14606_v30 = vsub.f32 %v9281_v46, %v14579_v35  ;;  %v14608_v48 = vand.u32 4294901760, %v9279_v58  ;;  %v14639_v25 = vand.u32 4294901760, %v9277_v15 }
 0x84e   :  { %7743 = vmatpush.msrb.mxu3 %v7742_v23  ;;  %7800 = vmatpush.msrb.mxu0 %v14420_v18  ;;  %v15563_v23 = vand.u32 4294901760, %v14560_v59  ;;  %v8011_v52 = vsub.f32 %v14546_v36, %v15565_v10 }
 0x84f   :  { %7670 = vmatpush.msrb.mxu2 %v14337_v8  ;;  %7838 = vmatpush.msrb.mxu1 %v14365_v6 }
 0x850   :  { %7749 = vmatpush.msrb.mxu3 %v7748_v27  ;;  %7803 = vmatpush.msrb.mxu0 %v14437_v43  ;;  %v14593_v27 = vand.u32 4294901760, %v9280_v33  ;;  %v8017_v42 = vsub.f32 %v14560_v59, %v15563_v23  ;;  %v8012_v55 = vand.u32 4294901760, %v8011_v52  ;;  %v14637_v23 = vsub.f32 %v9279_v58, %v14608_v48 }
 0x851   :  { %7672 = vmatpush.msrb.mxu2 %v14351_v63  ;;  %7840 = vmatpush.msrb.mxu1 %v14386_v19 }
 0x852   :  { %7755 = vmatpush.msrb.mxu3 %v7754_v13  ;;  %7806 = vmatpush.msrb.mxu0 %v14455_v50  ;;  %v15566_v13 = vand.u32 4294901760, %v14577_v24  ;;  %v14622_v46 = vsub.f32 %v9280_v33, %v14593_v27  ;;  %v15570_v33 = vand.u32 4294901760, %v14606_v30  ;;  %v8018_v52 = vand.u32 4294901760, %v8017_v42  ;;  %v9274_v42 = vld [vmem:[%s15236_s5 + $0x2a0] sm:$0xff] }
 0x853   :  { %7674 = vmatpush.msrb.mxu2 %v14365_v6  ;;  %7842 = vmatpush.msrb.mxu1 %v14403_v47 }
 0x854   :  { %7761 = vmatpush.msrb.mxu3 %v7760_v0  ;;  %7809 = vmatpush.msrb.mxu0 %v14470_v51  ;;  %v7691_v0 = vand.u32 4294901760, %v7690_v38 }
 0x855   :  { %7676 = vmatpush.msrb.mxu2 %v14386_v19  ;;  %7844 = vmatpush.msrb.mxu1 %v14422_v37 }
 0x856   :  { %7767 = vmatpush.msrb.mxu3 %v7766_v2  ;;  %7812 = vmatpush.msrb.mxu0 %v14482_v20  ;;  %v15569_v2 = vand.u32 4294901760, %v14591_v9  ;;  %v7692_v10 = vsub.f32 %v7690_v38, %v7691_v0 }
 0x857   :  { %7678 = vmatpush.msrb.mxu2 %v14403_v47  ;;  %7846 = vmatpush.msrb.mxu1 %v14439_v54 }
 0x858   :  { %7773 = vmatpush.msrb.mxu3 %v7772_v60  ;;  %7815 = vmatpush.msrb.mxu0 %v14494_v61  ;;  %v14624_v60 = vand.u32 4294901760, %v9278_v3 }
 0x859   :  { %7680 = vmatpush.msrb.mxu2 %v14422_v37  ;;  %7848 = vmatpush.msrb.mxu1 %v14457_v4 }
 0x85a   :  { %7775 = vmatmul.f32.vlgmr.msrb.gmra.mxu3 %v14557_v26  ;;  %7818 = vmatpush.msrb.mxu0 %v14504_v5  ;;  %v14649_v58 = vsub.f32 %v9278_v3, %v14624_v60  ;;  %v8046_v3 = vand.u32 4294901760, %v14637_v23 }
 0x85b   :  { %7922 = vmatpush.msra.mxu3 %v14313_v34  ;;  %7682 = vmatpush.msrb.mxu2 %v14439_v54  ;;  %v8023_v34 = vsub.f32 %v14577_v24, %v15566_v13  ;;  %v8040_v13 = vand.u32 4294901760, %v14622_v46 }
 0x85c   :  { %7850 = vmatpush.msrb.mxu1 %v14472_v53  ;;  %7821 = vmatmul.f32.vlgmr.msrb.gmra.mxu0 %v7690_v38  ;;  %v8035_v38 = vsub.f32 %v14606_v30, %v15570_v33  ;;  %v14679_v33 = vsub.f32 %v9276_v28, %v14651_v14 }
 0x85d   :  { %7924 = vmatpush.msra.mxu3 %v14324_v56  ;;  %7972 = vmatpush.msra.mxu0 %v14526_v62  ;;  %v8029_v56 = vsub.f32 %v14591_v9, %v15569_v2  ;;  %v14670_v2 = vand.u32 4294901760, %v9275_v11 }
 0x85e   :  { %7684 = vmatpush.msrb.mxu2 %v14457_v4  ;;  %7852 = vmatpush.msrb.mxu1 %v14484_v40 }
 0x85f   :  { %7856 = vmatmul.f32.vlgmr.msrb.gmra.mxu1 %v7691_v0  ;;  %7926 = vmatpush.msra.mxu3 %v14337_v8  ;;  %v8024_v8 = vand.u32 4294901760, %v8023_v34  ;;  %v14664_v0 = vsub.f32 %v9277_v15, %v14639_v25  ;;  %v8041_v15 = vsub.f32 %v14622_v46, %v8040_v13  ;;  %v8052_v34 = vand.u32 4294901760, %v14649_v58 }
 0x860   :  { %7974 = vmatpush.msra.mxu0 %v14534_v1  ;;  %8013 = vmatpush.msra.mxu1 %v8012_v55  ;;  %v7693_v55 = vand.u32 4294901760, %v7692_v10  ;;  %v14682_v10 = vand.u32 4294901760, %v9274_v42 }
 0x861   :  { %7686 = vmatpush.msrb.mxu2 %v14472_v53  ;;  %7928 = vmatpush.msra.mxu3 %v14351_v63  ;;  %v8030_v63 = vand.u32 4294901760, %v8029_v56  ;;  %v8047_v56 = vsub.f32 %v14637_v23, %v8046_v3  ;;  %v8058_v28 = vand.u32 4294901760, %v14664_v0  ;;  %v8042_v7 = vand.u32 4294901760, %v8041_v15  ;;  %v9296_v15 = vld [vmem:[%s15236_s5 + $0x350] sm:$0xff] }
 0x862   :  { %7976 = vmatpush.msra.mxu0 %v14553_v45  ;;  %8019 = vmatpush.msra.mxu1 %v8018_v52  ;;  %v16482_v52 = vld [vmem:[#allocation97_spill] sm:$0xff] }
 0x863   :  { %7688 = vmatpush.msrb.mxu2 %v14484_v40  ;;  %7930 = vmatpush.msra.mxu3 %v14365_v6  ;;  %v14685_v57 = vand.u32 4294901760, %v16482_v52  ;;  %v8036_v6 = vand.u32 4294901760, %v8035_v38  ;;  %v8048_v32 = vand.u32 4294901760, %v8047_v56  ;;  %v16491_v56 = vand.u32 4294901760, %v14504_v5 }
 0x864   :  { %7694 = vmatmul.f32.vlgmr.msrb.gmra.mxu2 %v7693_v55  ;;  %7978 = vmatpush.msra.mxu0 %v14567_v49  ;;  %v14696_v55 = vsub.f32 %v9275_v11, %v14670_v2  ;;  %v14711_v11 = vsub.f32 %v9274_v42, %v14682_v10 }
 0x865   :  { %7867 = vmatpush.msra.mxu2 %v7704_v16  ;;  %8025 = vmatpush.msra.mxu1 %v8024_v8  ;;  %v8053_v16 = vsub.f32 %v14649_v58, %v8052_v34  ;;  %v8064_v8 = vand.u32 4294901760, %v14679_v33 }
 0x866   :  { %7932 = vmatpush.msra.mxu3 %v14386_v19  ;;  %7980 = vmatpush.msra.mxu0 %v14579_v35  ;;  %v14708_v19 = vsub.f32 %v16482_v52, %v14685_v57 }
 0x867   :  { %7871 = vmatpush.msra.mxu2 %v7710_v29  ;;  %8031 = vmatpush.msra.mxu1 %v8030_v63  ;;  %v8059_v29 = vsub.f32 %v14664_v0, %v8058_v28  ;;  %v8054_v38 = vand.u32 4294901760, %v8053_v16  ;;  %v8065_v39 = vsub.f32 %v14679_v33, %v8064_v8  ;;  %v9297_v63 = vld [vmem:[%s15236_s5 + $0x358] sm:$0xff] }
 0x868   :  { %7934 = vmatpush.msra.mxu3 %v14403_v47  ;;  %7982 = vmatpush.msra.mxu0 %v14593_v27  ;;  %v8070_v47 = vand.u32 4294901760, %v14696_v55  ;;  %v14777_v52 = vand.u32 4294901760, %v9297_v63 }
 0x869   :  { %7875 = vmatpush.msra.mxu2 %v7716_v17  ;;  %8037 = vmatpush.msra.mxu1 %v8036_v6  ;;  %v7997_v17 = vand.u32 4294901760, %v14708_v19  ;;  %v8060_v21 = vand.u32 4294901760, %v8059_v29  ;;  %v16490_v6 = vand.u32 4294901760, %v14577_v24 }
 0x86a   :  { %7936 = vmatpush.msra.mxu3 %v14422_v37  ;;  %7984 = vmatpush.msra.mxu0 %v14608_v48  ;;  %v8076_v37 = vand.u32 4294901760, %v14711_v11  ;;  %v14799_v5 = vsub.f32 %v9297_v63, %v14777_v52 }
 0x86b   :  { %7879 = vmatpush.msra.mxu2 %v7722_v22  ;;  %8043 = vmatpush.msra.mxu1 %v8042_v7  ;;  %v8071_v22 = vsub.f32 %v14696_v55, %v8070_v47  ;;  %v7998_v12 = vsub.f32 %v14708_v19, %v7997_v17  ;;  %v16492_v7 = vand.u32 4294901760, %v14591_v9 }
 0x86c   :  { %7938 = vmatpush.msra.mxu3 %v14439_v54  ;;  %7986 = vmatpush.msra.mxu0 %v14624_v60  ;;  %v8066_v54 = vand.u32 4294901760, %v8065_v39  ;;  %v8316_v29 = vand.u32 4294901760, %v14799_v5 }
 0x86d   :  { %7883 = vmatpush.msra.mxu2 %v7728_v41  ;;  %8049 = vmatpush.msra.mxu1 %v8048_v32  ;;  %v8077_v41 = vsub.f32 %v14711_v11, %v8076_v37  ;;  %v8072_v18 = vand.u32 4294901760, %v8071_v22  ;;  %v9293_v32 = vld [vmem:[%s15236_s5 + $0x338] sm:$0xff] }
 0x86e   :  { %7940 = vmatpush.msra.mxu3 %v14457_v4  ;;  %7988 = vmatpush.msra.mxu0 %v14639_v25  ;;  %v16483_v4 = vand.u32 4294901760, %v14437_v43  ;;  %v16485_v43 = vand.u32 4294901760, %v14470_v51  ;;  %v16488_v51 = vand.u32 4294901760, %v14560_v59  ;;  %v9289_v22 = vld [vmem:[%s15236_s5 + $0x318] sm:$0xff] }
 0x86f   :  { %7887 = vmatpush.msra.mxu2 %v7734_v44  ;;  %8055 = vmatpush.msra.mxu1 %v8054_v38  ;;  %v16484_v44 = vand.u32 4294901760, %v14455_v50  ;;  %v8078_v42 = vand.u32 4294901760, %v8077_v41  ;;  %v16487_v50 = vand.u32 4294901760, %v14482_v20  ;;  %v16489_v20 = vand.u32 4294901760, %v14494_v61  ;;  %v9292_v38 = vld [vmem:[%s15236_s5 + $0x330] sm:$0xff] }
 0x870   :  { %7942 = vmatpush.msra.mxu3 %v14472_v53  ;;  %7990 = vmatpush.msra.mxu0 %v14651_v14  ;;  %v7999_v53 = vand.u32 4294901760, %v7998_v12  ;;  %v14788_v61 = vand.u32 4294901760, %v9296_v15  ;;  %v14845_v39 = vand.u32 4294901760, %v9292_v38 }
 0x871   :  { %7891 = vmatpush.msra.mxu2 %v16483_v4  ;;  %8061 = vmatpush.msra.mxu1 %v8060_v21  ;;  %v9290_v21 = vld [vmem:[%s15236_s5 + $0x320] sm:$0xff] }
 0x872   :  { %7944 = vmatpush.msra.mxu3 %v14484_v40  ;;  %7992 = vmatpush.msra.mxu0 %v14670_v2  ;;  %v16486_v40 = vand.u32 4294901760, %v14546_v36 }
 0x873   :  { %7895 = vmatpush.msra.mxu2 %v16484_v44  ;;  %8067 = vmatpush.msra.mxu1 %v8066_v54 }
 0x874   :  { %7946 = vmatmul.f32.vlgmr.msra.gmra.mxu3 %v14557_v26  ;;  %7994 = vmatpush.msra.mxu0 %v14682_v10 }
 0x875   :  { %8136 = vmatpush.msrb.mxu3 %v14526_v62  ;;  %7899 = vmatpush.msra.mxu2 %v16485_v43 }
 0x876   :  { %8073 = vmatpush.msra.mxu1 %v8072_v18  ;;  %8000 = vmatmul.f32.vlgmr.msra.gmra.mxu0 %v7999_v53  ;;  %v9287_v18 = vld [vmem:[%s15236_s5 + $0x308] sm:$0xff] }
 0x877   :  { %8138 = vmatpush.msrb.mxu3 %v14534_v1  ;;  %8173 = vmatpush.msrb.mxu0 %v16486_v40  ;;  %v14929_v43 = vand.u32 4294901760, %v9287_v18 }
 0x878   :  { %7903 = vmatpush.msra.mxu2 %v16487_v50  ;;  %8079 = vmatpush.msra.mxu1 %v8078_v42 }
 0x879   :  { %8081 = vmatmul.f32.vlgmr.msra.gmra.mxu1 %v14685_v57  ;;  %8140 = vmatpush.msrb.mxu3 %v14553_v45 }
 0x87a   :  { %8177 = vmatpush.msrb.mxu0 %v16488_v51  ;;  %8228 = vmatpush.msrb.mxu1 %v14526_v62  ;;  %v9295_v62 = vld [vmem:[%s15236_s5 + $0x348] sm:$0xff] }
 0x87b   :  { %7907 = vmatpush.msra.mxu2 %v16489_v20  ;;  %8142 = vmatpush.msrb.mxu3 %v14567_v49  ;;  %v14801_v16 = vand.u32 4294901760, %v9295_v62 }
 0x87c   :  { %8181 = vmatpush.msrb.mxu0 %v16490_v6  ;;  %8230 = vmatpush.msrb.mxu1 %v14534_v1  ;;  %v9294_v1 = vld [vmem:[%s15236_s5 + $0x340] sm:$0xff] }
 0x87d   :  { %7911 = vmatpush.msra.mxu2 %v16491_v56  ;;  %8144 = vmatpush.msrb.mxu3 %v14579_v35 }
 0x87e   :  { %7913 = vmatmul.f32.vlgmr.msra.gmra.mxu2 %v14557_v26  ;;  %8185 = vmatpush.msrb.mxu0 %v16492_v7  ;;  %v16493_v26 = vand.u32 4294901760, %v14606_v30 }
 0x87f   :  { %8091 = vmatpush.msrb.mxu2 %v14546_v36  ;;  %8232 = vmatpush.msrb.mxu1 %v14553_v45  ;;  %v14812_v36 = vsub.f32 %v9296_v15, %v14788_v61  ;;  %v14814_v45 = vand.u32 4294901760, %v9294_v1  ;;  %v14951_v15 = vsub.f32 %v9287_v18, %v14929_v43 }
 0x880   :  { %8146 = vmatpush.msrb.mxu3 %v14593_v27  ;;  %8189 = vmatpush.msrb.mxu0 %v16493_v26 }
 0x881   :  { %8094 = vmatpush.msrb.mxu2 %v14560_v59  ;;  %8234 = vmatpush.msrb.mxu1 %v14567_v49  ;;  %v14823_v59 = vsub.f32 %v9295_v62, %v14801_v16  ;;  %v14825_v49 = vand.u32 4294901760, %v9293_v32  ;;  %v8376_v7 = vand.u32 4294901760, %v14951_v15 }
 0x882   :  { %8148 = vmatpush.msrb.mxu3 %v14608_v48  ;;  %8193 = vmatpush.msrb.mxu0 %v8040_v13  ;;  %v9291_v13 = vld [vmem:[%s15236_s5 + $0x328] sm:$0xff] }
 0x883   :  { %8097 = vmatpush.msrb.mxu2 %v14577_v24  ;;  %8236 = vmatpush.msrb.mxu1 %v14579_v35  ;;  %v8322_v24 = vand.u32 4294901760, %v14812_v36  ;;  %v14837_v35 = vsub.f32 %v9294_v1, %v14814_v45 }
 0x884   :  { %8150 = vmatpush.msrb.mxu3 %v14624_v60  ;;  %8197 = vmatpush.msrb.mxu0 %v8046_v3  ;;  %v14854_v3 = vsub.f32 %v9293_v32, %v14825_v49  ;;  %v8377_v32 = vsub.f32 %v14951_v15, %v8376_v7 }
 0x885   :  { %8100 = vmatpush.msrb.mxu2 %v14591_v9  ;;  %8238 = vmatpush.msrb.mxu1 %v14593_v27  ;;  %v8317_v9 = vsub.f32 %v14799_v5, %v8316_v29  ;;  %v8328_v27 = vand.u32 4294901760, %v14823_v59 }
 0x886   :  { %8152 = vmatpush.msrb.mxu3 %v14639_v25  ;;  %8201 = vmatpush.msrb.mxu0 %v8052_v34  ;;  %v8334_v34 = vand.u32 4294901760, %v14837_v35  ;;  %v8340_v12 = vand.u32 4294901760, %v14854_v3 }
 0x887   :  { %8103 = vmatpush.msrb.mxu2 %v14606_v30  ;;  %8240 = vmatpush.msrb.mxu1 %v14608_v48  ;;  %v14862_v30 = vand.u32 4294901760, %v9291_v13  ;;  %v8323_v48 = vsub.f32 %v14812_v36, %v8322_v24  ;;  %v8329_v54 = vsub.f32 %v14823_v59, %v8328_v27 }
 0x888   :  { %8154 = vmatpush.msrb.mxu3 %v14651_v14  ;;  %8205 = vmatpush.msrb.mxu0 %v8058_v28  ;;  %v14877_v28 = vsub.f32 %v9292_v38, %v14845_v39  ;;  %v8335_v4 = vsub.f32 %v14837_v35, %v8334_v34  ;;  %v8341_v53 = vsub.f32 %v14854_v3, %v8340_v12 }
 0x889   :  { %8106 = vmatpush.msrb.mxu2 %v14622_v46  ;;  %8242 = vmatpush.msrb.mxu1 %v14624_v60  ;;  %v14879_v46 = vand.u32 4294901760, %v9290_v21  ;;  %v8318_v60 = vand.u32 4294901760, %v8317_v9  ;;  %v8324_v41 = vand.u32 4294901760, %v8323_v48  ;;  %v8330_v44 = vand.u32 4294901760, %v8329_v54  ;;  %v16494_v9 = vld [vmem:[#allocation75_spill] sm:$0xff] }
 0x88a   :  { %8156 = vmatpush.msrb.mxu3 %v14670_v2  ;;  %8209 = vmatpush.msrb.mxu0 %v8064_v8  ;;  %v9288_v8 = vld [vmem:[%s15236_s5 + $0x310] sm:$0xff]  ;;  %v8342_v51 = vand.u32 4294901760, %v8341_v53  ;;  %v8378_v48 = vand.u32 4294901760, %v8377_v32 }
 0x88b   :  { %8109 = vmatpush.msrb.mxu2 %v14637_v23  ;;  %8244 = vmatpush.msrb.mxu1 %v14639_v25  ;;  %v14894_v23 = vsub.f32 %v9291_v13, %v14862_v30  ;;  %v14896_v25 = vand.u32 4294901760, %v9289_v22 }
 0x88c   :  { %8158 = vmatpush.msrb.mxu3 %v14682_v10  ;;  %8213 = vmatpush.msrb.mxu0 %v8070_v47  ;;  %v8346_v47 = vand.u32 4294901760, %v14877_v28 }
 0x88d   :  { %8112 = vmatpush.msrb.mxu2 %v14649_v58  ;;  %8246 = vmatpush.msrb.mxu1 %v14651_v14  ;;  %v14912_v58 = vsub.f32 %v9290_v21, %v14879_v46  ;;  %v14914_v14 = vand.u32 4294901760, %v9288_v8  ;;  %v14927_v42 = vsub.f32 %v9289_v22, %v14896_v25  ;;  %v8301_v21 = vand.u32 4294901760, %v16494_v9 }
 0x88e   :  { %8162 = vmatmul.f32.vlgmr.msrb.gmra.mxu3 %v7997_v17  ;;  %8217 = vmatpush.msrb.mxu0 %v8076_v37  ;;  %v9286_v17 = vld [vmem:[%s15236_s5 + $0x300] sm:$0xff]  ;;  %v8352_v37 = vand.u32 4294901760, %v14894_v23 }
 0x88f   :  { %8319 = vmatpush.msra.mxu3 %v8318_v60  ;;  %8115 = vmatpush.msrb.mxu2 %v14664_v0  ;;  %v8336_v0 = vand.u32 4294901760, %v8335_v4  ;;  %v8358_v40 = vand.u32 4294901760, %v14912_v58  ;;  %v14939_v50 = vsub.f32 %v9288_v8, %v14914_v14  ;;  %v14941_v63 = vand.u32 4294901760, %v9286_v17 }
 0x890   :  { %8248 = vmatpush.msrb.mxu1 %v14670_v2  ;;  %8219 = vmatmul.f32.vlgmr.msrb.gmra.mxu0 %v14685_v57  ;;  %v8347_v2 = vsub.f32 %v14877_v28, %v8346_v47  ;;  %v8302_v60 = vsub.f32 %v16494_v9, %v8301_v21 }
 0x891   :  { %8325 = vmatpush.msra.mxu3 %v8324_v41  ;;  %8397 = vmatpush.msra.mxu0 %v14799_v5  ;;  %v8359_v20 = vsub.f32 %v14912_v58, %v8358_v40  ;;  %v8370_v6 = vand.u32 4294901760, %v14939_v50  ;;  %v14961_v62 = vsub.f32 %v9286_v17, %v14941_v63  ;;  %v6551_v5 = vpop.f32.mrf.mxu3 }
 0x892   :  { %8118 = vmatpush.msrb.mxu2 %v14679_v33  ;;  %8250 = vmatpush.msrb.mxu1 %v14682_v10  ;;  %v8353_v33 = vsub.f32 %v14894_v23, %v8352_v37  ;;  %v8364_v10 = vand.u32 4294901760, %v14927_v42  ;;  %v8303_v54 = vand.u32 4294901760, %v8302_v60 }
 0x893   :  { %8252 = vmatmul.f32.vlgmr.msrb.gmra.mxu1 %v14685_v57  ;;  %8331 = vmatpush.msra.mxu3 %v8330_v44  ;;  %v8348_v57 = vand.u32 4294901760, %v8347_v2  ;;  %v8382_v1 = vand.u32 4294901760, %v14961_v62  ;;  %v8568_v44 = vld [vmem:[%s15238_s7 + $0x10] sm:$0xf]  ;;  %v8567_v2 = vld [vmem:[%s15238_s7 + $0x8] sm:$0xff] }
 0x894   :  { %8400 = vmatpush.msra.mxu0 %v14812_v36  ;;  %8442 = vmatpush.msra.mxu1 %v14777_v52  ;;  %v8365_v56 = vsub.f32 %v14927_v42, %v8364_v10  ;;  %v8304_v8 = vsub.f32 %v8302_v60, %v8303_v54  ;;  %v8755_v53 = vsel %vm1999_vm2, %v8568_v44, 0 }
 0x895   :  { %8121 = vmatpush.msrb.mxu2 %v14696_v55  ;;  %8337 = vmatpush.msra.mxu3 %v8336_v0  ;;  %v8354_v55 = vand.u32 4294901760, %v8353_v33  ;;  %v8383_v13 = vsub.f32 %v14961_v62, %v8382_v1  ;;  %v8570_v33 = vld [vmem:[%s15239_s8 + $0x8] sm:$0xff] }
 0x896   :  { %8403 = vmatpush.msra.mxu0 %v14823_v59  ;;  %8444 = vmatpush.msra.mxu1 %v14788_v61  ;;  %v8366_v26 = vand.u32 4294901760, %v8365_v56 }
 0x897   :  { %8124 = vmatpush.msrb.mxu2 %v14711_v11  ;;  %8343 = vmatpush.msra.mxu3 %v8342_v51  ;;  %v8360_v11 = vand.u32 4294901760, %v8359_v20  ;;  %v8384_v22 = vand.u32 4294901760, %v8383_v13  ;;  %v15102_v51 = vand.u32 4294901760, %v8567_v2 }
 0x898   :  { %8127 = vmatmul.f32.vlgmr.msrb.gmra.mxu2 %v14708_v19  ;;  %8406 = vmatpush.msra.mxu0 %v14837_v35  ;;  %v8371_v19 = vsub.f32 %v14939_v50, %v8370_v6 }
 0x899   :  { %8278 = vmatpush.msra.mxu2 %v14777_v52  ;;  %8446 = vmatpush.msra.mxu1 %v14801_v16 }
 0x89a   :  { %8349 = vmatpush.msra.mxu3 %v8348_v57  ;;  %8409 = vmatpush.msra.mxu0 %v14854_v3  ;;  %v8372_v38 = vand.u32 4294901760, %v8371_v19  ;;  %v8569_v19 = vld [vmem:[%s15239_s8] sm:$0xff] }
 0x89b   :  { %8280 = vmatpush.msra.mxu2 %v14788_v61  ;;  %8448 = vmatpush.msra.mxu1 %v14814_v45 }
 0x89c   :  { %8355 = vmatpush.msra.mxu3 %v8354_v55  ;;  %8412 = vmatpush.msra.mxu0 %v14877_v28  ;;  %v15122_v55 = vand.u32 4294901760, %v8570_v33 }
 0x89d   :  { %8282 = vmatpush.msra.mxu2 %v14801_v16  ;;  %8450 = vmatpush.msra.mxu1 %v14825_v49 }
 0x89e   :  { %8361 = vmatpush.msra.mxu3 %v8360_v11  ;;  %8415 = vmatpush.msra.mxu0 %v14894_v23 }
 0x89f   :  { %8284 = vmatpush.msra.mxu2 %v14814_v45  ;;  %8452 = vmatpush.msra.mxu1 %v14845_v39 }
 0x8a0   :  { %8367 = vmatpush.msra.mxu3 %v8366_v26  ;;  %8418 = vmatpush.msra.mxu0 %v14912_v58 }
 0x8a1   :  { %8286 = vmatpush.msra.mxu2 %v14825_v49  ;;  %8454 = vmatpush.msra.mxu1 %v14862_v30 }
 0x8a2   :  { %8373 = vmatpush.msra.mxu3 %v8372_v38  ;;  %8421 = vmatpush.msra.mxu0 %v14927_v42  ;;  %v8571_v42 = vld [vmem:[%s15239_s8 + $0x10] sm:$0xf]  ;;  %v15135_v38 = vsub.f32 %v8570_v33, %v15122_v55 }
 0x8a3   :  { %8288 = vmatpush.msra.mxu2 %v14845_v39  ;;  %8456 = vmatpush.msra.mxu1 %v14879_v46  ;;  %v8578_v0 = vsel %vm1999_vm2, %v8571_v42, 0 }
 0x8a4   :  { %8379 = vmatpush.msra.mxu3 %v8378_v48  ;;  %8424 = vmatpush.msra.mxu0 %v14939_v50  ;;  %v15141_v48 = vand.u32 4294901760, %v8569_v19 }
 0x8a5   :  { %8290 = vmatpush.msra.mxu2 %v14862_v30  ;;  %8458 = vmatpush.msra.mxu1 %v14896_v25 }
 0x8a6   :  { %8385 = vmatpush.msra.mxu3 %v8384_v22  ;;  %8427 = vmatpush.msra.mxu0 %v14951_v15 }
 0x8a7   :  { %8292 = vmatpush.msra.mxu2 %v14879_v46  ;;  %8460 = vmatpush.msra.mxu1 %v14914_v14 }
 0x8a8   :  { %8387 = vmatmul.f32.vlgmr.msra.gmra.mxu3 %v8301_v21  ;;  %8430 = vmatpush.msra.mxu0 %v14961_v62  ;;  %v15120_v62 = vsub.f32 %v8567_v2, %v15102_v51 }
 0x8a9   :  { %8534 = vmatpush.msrb.mxu3 %v14777_v52  ;;  %8294 = vmatpush.msra.mxu2 %v14896_v25  ;;  %v8305_v52 = vand.u32 4294901760, %v8304_v8 }
 0x8aa   :  { %8462 = vmatpush.msra.mxu1 %v14929_v43  ;;  %8433 = vmatmul.f32.vlgmr.msra.gmra.mxu0 %v8302_v60  ;;  %v8806_v32 = vand.u32 4294901760, %v15120_v62 }
 0x8ab   :  { %8536 = vmatpush.msrb.mxu3 %v14788_v61  ;;  %8296 = vmatpush.msra.mxu2 %v14914_v14  ;;  %v6470_v61 = vpop.f32.mrf.mxu2 }
 0x8ac   :  { %8464 = vmatpush.msra.mxu1 %v14941_v63  ;;  %v8807_v8 = vsub.f32 %v15120_v62, %v8806_v32 }
 0x8ad   :  { %8468 = vmatmul.f32.vlgmr.msra.gmra.mxu1 %v8303_v54  ;;  %8538 = vmatpush.msrb.mxu3 %v14801_v16  ;;  %v6597_v16 = vpop.f32.mrf.mxu0 }
 0x8ae   :  { %8298 = vmatpush.msra.mxu2 %v14929_v43 }
 0x8af   :  { %8540 = vmatpush.msrb.mxu3 %v14814_v45  ;;  %v15050_v45 = vpop.f32.mrf.mxu1 }
 0x8b0   :  { %8300 = vmatpush.msra.mxu2 %v14941_v63 }
 0x8b1   :  { %8306 = vmatmul.f32.vlgmr.msra.gmra.mxu2 %v8305_v52  ;;  %8542 = vmatpush.msrb.mxu3 %v14825_v49  ;;  %v8629_v52 = vand.u32 4294901760, %v15135_v38 }
 0x8b2   :  { %8479 = vmatpush.msrb.mxu2 %v8316_v29  ;;  %v15052_v29 = vpop.f32.mrf.mxu3 }
 0x8b3   :  { %8544 = vmatpush.msrb.mxu3 %v14845_v39  ;;  %v15048_v36 = vpop.f32.mrf.mxu2 }
 0x8b4   :  { %8483 = vmatpush.msrb.mxu2 %v8322_v24 }
 0x8b5   :  { %8546 = vmatpush.msrb.mxu3 %v14862_v30  ;;  %v6777_v59 = vpop.f32.mrf.mxu0 }
 0x8b6   :  { %8487 = vmatpush.msrb.mxu2 %v8328_v27 }
 0x8b7   :  { %8548 = vmatpush.msrb.mxu3 %v14879_v46  ;;  %v6858_v24 = vpop.f32.mrf.mxu1 }
 0x8b8   :  { %8491 = vmatpush.msrb.mxu2 %v8334_v34 }
 0x8b9   :  { %8550 = vmatpush.msrb.mxu3 %v14896_v25 }
 0x8ba   :  { %8495 = vmatpush.msrb.mxu2 %v8340_v12  ;;  %v15054_v35 = vpop.f32.mrf.mxu3 }
 0x8bb   :  { %8552 = vmatpush.msrb.mxu3 %v14914_v14  ;;  %v6904_v49 = vpop.f32.mrf.mxu2 }
 0x8bc   :  { %8499 = vmatpush.msrb.mxu2 %v8346_v47 }
 0x8bd   :  { %8554 = vmatpush.msrb.mxu3 %v14929_v43  ;;  %v15056_v39 = vpop.f32.mrf.mxu0  ;;  %v6552_v43 = vadd.f32 %v6551_v5, %v6470_v61  ;;  %v15151_v5 = vsub.f32 %v8569_v19, %v15141_v48 }
 0x8be   :  { %8503 = vmatpush.msrb.mxu2 %v8352_v37  ;;  %v15086_v37 = vand.u32 4294901760, %v8755_v53 }
 0x8bf   :  { %8556 = vmatpush.msrb.mxu3 %v14941_v63  ;;  %v15058_v3 = vpop.f32.mrf.mxu1  ;;  %v15100_v63 = vand.u32 4294901760, %v8578_v0  ;;  %v6598_v56 = vadd.f32 %v6597_v16, %v6552_v43  ;;  %v8635_v44 = vand.u32 4294901760, %v15151_v5 }
 0x8c0   :  { %8507 = vmatpush.msrb.mxu2 %v8358_v40  ;;  %8558 = vmatmul.f32.vlgmr.msrb.gmra.mxu3 %v8301_v21  ;;  %v15098_v50 = vsub.f32 %v8755_v53, %v15086_v37 }
 0x8c1   :  { %8594 = vmatpush.msrb.mxu0 %v15100_v63  ;;  %v6633_v53 = vadd.f32 %v15050_v45, %v6598_v56 }
 0x8c2   :  { %8511 = vmatpush.msrb.mxu2 %v8364_v10  ;;  %v7164_v30 = vpop.f32.mrf.mxu3  ;;  %v8566_v10 = vld [vmem:[%s15238_s7] sm:$0xff]  ;;  %v8800_v20 = vand.u32 4294901760, %v15098_v50 }
 0x8c3   :  { %v7083_v27 = vpop.f32.mrf.mxu2  ;;  %v15126_v11 = vand.u32 4294901760, %v8566_v10  ;;  %8596 = vmatpush.msrb.mxu0 %v15122_v55  ;;  %v6690_v45 = vadd.f32 %v15048_v36, %v6633_v53 }
 0x8c4   :  { %8515 = vmatpush.msrb.mxu2 %v8370_v6  ;;  %v15117_v6 = vsub.f32 %v8578_v0, %v15100_v63  ;;  %v7165_v9 = vadd.f32 %v7164_v30, %v7083_v27 }
 0x8c5   :  { %v15060_v34 = vpop.f32.mrf.mxu0  ;;  %8598 = vmatpush.msrb.mxu0 %v15141_v48  ;;  %v6723_v36 = vadd.f32 %v15052_v29, %v6690_v45 }
 0x8c6   :  { %8519 = vmatpush.msrb.mxu2 %v8376_v7  ;;  %v6859_v7 = vadd.f32 %v6858_v24, %v6777_v59  ;;  %v8623_v26 = vand.u32 4294901760, %v15117_v6  ;;  %v8630_v24 = vsub.f32 %v15135_v38, %v8629_v52  ;;  %v7211_v43 = vadd.f32 %v15060_v34, %v7165_v9 }
 0x8c7   :  { %v15064_v46 = vpop.f32.mrf.mxu1  ;;  %8659 = vmatpush.msra.mxu0 %v15117_v6  ;;  %v6725_v29 = vadd.f32 %v6723_v36, %v14405_v31 }
 0x8c8   :  { %8523 = vmatpush.msrb.mxu2 %v8382_v1  ;;  %v8801_v1 = vsub.f32 %v15098_v50, %v8800_v20  ;;  %v6905_v13 = vadd.f32 %v6904_v49, %v6859_v7  ;;  %v8624_v54 = vsub.f32 %v15117_v6, %v8623_v26  ;;  %v8808_v49 = vand.u32 4294901760, %v8807_v8  ;;  %v8937_v6 = vld [vmem:[%s15241_s10 + $0x10] sm:$0xff] }
 0x8c9   :  { %8525 = vmatmul.f32.vlgmr.msrb.gmra.mxu2 %v8301_v21  ;;  %v15139_v21 = vsub.f32 %v8566_v10, %v15126_v11  ;;  %v8631_v33 = vand.u32 4294901760, %v8630_v24  ;;  %8662 = vmatpush.msra.mxu0 %v15135_v38 }
 0x8ca   :  { %v15066_v12 = vpop.f32.mrf.mxu3  ;;  %8771 = vmatpush.msra.mxu2 %v15086_v37  ;;  %v8802_v60 = vand.u32 4294901760, %v8801_v1  ;;  %v8625_v59 = vand.u32 4294901760, %v8624_v54  ;;  %v6940_v42 = vadd.f32 %v15054_v35, %v6905_v13 }
 0x8cb   :  { %v15062_v28 = vpop.f32.mrf.mxu2  ;;  %v8812_v61 = vand.u32 4294901760, %v15139_v21  ;;  %8665 = vmatpush.msra.mxu0 %v15151_v5 }
 0x8cc   :  { %8773 = vmatpush.msra.mxu2 %v15102_v51  ;;  %8803 = vmatpush.msra.mxu3 %v8802_v60 }
 0x8cd   :  { %v7389_v23 = vpop.f32.mrf.mxu0  ;;  %v8813_v30 = vsub.f32 %v15139_v21, %v8812_v61  ;;  %8626 = vmatpush.msrb.mxu1 %v8625_v59 }
 0x8ce   :  { %8775 = vmatpush.msra.mxu2 %v15126_v11  ;;  %8809 = vmatpush.msra.mxu3 %v8808_v49 }
 0x8cf   :  { %v7470_v41 = vpop.f32.mrf.mxu1  ;;  %8632 = vmatpush.msrb.mxu1 %v8631_v33 }
 0x8d0   :  { %8891 = vmatpush.msrb.mxu2 %v8800_v20  ;;  %v7471_v27 = vadd.f32 %v7470_v41, %v7389_v23  ;;  %v8814_v41 = vand.u32 4294901760, %v8813_v30  ;;  %v8636_v20 = vsub.f32 %v15151_v5, %v8635_v44 }
 0x8d2   :  { %v15070_v4 = vpop.f32.mrf.mxu3  ;;  %8895 = vmatpush.msrb.mxu2 %v8806_v32  ;;  %8815 = vmatpush.msra.mxu3 %v8814_v41  ;;  %v8637_v34 = vand.u32 4294901760, %v8636_v20 }
 0x8d3   :  { %v15068_v25 = vpop.f32.mrf.mxu2 }
 0x8d4   :  { %v7517_v10 = vadd.f32 %v15068_v25, %v7471_v27  ;;  %8899 = vmatpush.msrb.mxu2 %v8812_v61  ;;  %v6997_v25 = vadd.f32 %v15056_v39, %v6940_v42  ;;  %8919 = vmatpush.msrb.mxu3 %v15086_v37 }
 0x8d5   :  { %v15072_v18 = vpop.f32.mrf.mxu0  ;;  %8638 = vmatpush.msrb.mxu1 %v8637_v34 }
 0x8d6   :  { %8921 = vmatpush.msrb.mxu3 %v15102_v51  ;;  %v7030_v32 = vadd.f32 %v15058_v3, %v6997_v25 }
 0x8d7   :  { %v15076_v58 = vpop.f32.mrf.mxu1  ;;  %8686 = vmatpush.msra.mxu1 %v15100_v63 }
 0x8d8   :  { %8923 = vmatpush.msrb.mxu3 %v15126_v11  ;;  %v7032_v54 = vadd.f32 %v7030_v32, %v6725_v29 }
 0x8d9   :  { %8688 = vmatpush.msra.mxu1 %v15122_v55 }
 0x8db   :  { %8690 = vmatpush.msra.mxu1 %v15141_v48 }
 0x8dd   :  { %v15078_v14 = vpop.f32.mrf.mxu3  ;;  %v15084_v17 = vpop.f32.mrf.mxu0 }
 0x8df   :  { %v15111_v15 = vpop.f32.mrf.mxu1 }
 0x8e7   :  { %v15074_v47 = vpop.f32.mrf.mxu2 }
 0x8e8   :  { %v7777_v23 = vadd.f32 %v15078_v14, %v15074_v47  ;;  %v7246_v47 = vadd.f32 %v15064_v46, %v7211_v43  ;;  %v7552_v14 = vadd.f32 %v15070_v4, %v7517_v10 }
 0x8ea   :  { %v7823_v7 = vadd.f32 %v15084_v17, %v7777_v23  ;;  %v7303_v39 = vadd.f32 %v15062_v28, %v7246_v47  ;;  %v7609_v46 = vadd.f32 %v15072_v18, %v7552_v14 }
 0x8ec   :  { %v7858_v4 = vadd.f32 %v15111_v15, %v7823_v7  ;;  %v7336_v28 = vadd.f32 %v15066_v12, %v7303_v39  ;;  %v7642_v8 = vadd.f32 %v15076_v58, %v7609_v46 }
 0x8ee   :  { %v7338_v59 = vadd.f32 %v7336_v28, %v7032_v54 }
 0x8f0   :  { %v7644_v49 = vadd.f32 %v7642_v8, %v7338_v59 }
 0x8f3   :  { %v8001_v22 = vpop.f32.mrf.mxu0 }
 0x8f6   :  { %v8082_v0 = vpop.f32.mrf.mxu1 }
 0x8f7   :  { %v15113_v57 = vpop.f32.mrf.mxu3  ;;  %v8083_v35 = vadd.f32 %v8082_v0, %v8001_v22 }
 0x901   :  { %v15095_v40 = vpop.f32.mrf.mxu2 }
 0x902   :  { %v7915_v3 = vadd.f32 %v15095_v40, %v7858_v4 }
 0x904   :  { %v7948_v18 = vadd.f32 %v15113_v57, %v7915_v3 }
 0x906   :  { %v7950_v53 = vadd.f32 %v7948_v18, %v7644_v49 }
 0x90d   :  { %v8220_v56 = vpop.f32.mrf.mxu0 }
 0x910   :  { %v8253_v13 = vpop.f32.mrf.mxu1 }
 0x911   :  { %v8163_v2 = vpop.f32.mrf.mxu3 }
 0x91b   :  { %v8128_v16 = vpop.f32.mrf.mxu2 }
 0x91c   :  { %v8129_v19 = vadd.f32 %v8128_v16, %v8083_v35 }
 0x91e   :  { %v8164_v17 = vadd.f32 %v8163_v2, %v8129_v19 }
 0x920   :  { %v8221_v61 = vadd.f32 %v8220_v56, %v8164_v17 }
 0x922   :  { %v8254_v24 = vadd.f32 %v8253_v13, %v8221_v61 }
 0x924   :  { %v8256_v12 = vadd.f32 %v8254_v24, %v7950_v53 }
 0x927   :  { %v8434_v60 = vpop.f32.mrf.mxu0 }
 0x92a   :  { %v8469_v15 = vpop.f32.mrf.mxu1 }
 0x92b   :  { %v8388_v9 = vpop.f32.mrf.mxu3 }
 0x934   :  { %v8307_v1 = vpop.f32.mrf.mxu2 }
 0x935   :  { %v8389_v22 = vadd.f32 %v8388_v9, %v8307_v1 }
 0x937   :  { %v8435_v16 = vadd.f32 %v8434_v60, %v8389_v22 }
 0x939   :  { %v8470_v27 = vadd.f32 %v8469_v15, %v8435_v16 }
 0x943   :  { %v8559_v42 = vpop.f32.mrf.mxu3 }
 0x94c   :  { %v8526_v30 = vpop.f32.mrf.mxu2 }
 0x94d   :  { %v8527_v31 = vadd.f32 %v8526_v30, %v8470_v27 }
 0x94f   :  { %v8560_v43 = vadd.f32 %v8559_v42, %v8527_v31  ;;  %v9302_v31 = vld [vmem:[%s15240_s9] ss:$0 sm:$0xff] }
 0x951   :  { %v8562_v40 = vadd.f32 %v8560_v43, %v8256_v12 }
 0x953   :  { %9342 = vtanh.f32 %v8562_v40 }
 0x959   :  { %v9343_v58 = vpop.eup %9342 }
 0x95a   :  { %8565 = vst.msk [vmem:[%s15243_s12] sm:$0xf] %vm8564_vm5, %v9343_v58  ;;  %v8752_v57 = vsel %vm8574_vm6, %v9343_v58, 0  ;;  %v8573_v0 = vrot.slane %v9343_v58, 2 }
 0x95b   :  { %v8776_v2 = vand.u32 4294901760, %v8752_v57 }
 0x95c   :  { %v8575_v33 = vsel %vm8574_vm6, %v8573_v0, 0 }
 0x95d   :  { %v8777_v10 = vsub.f32 %v8752_v57, %v8776_v2  ;;  %8817 = vmatmul.f32.vlgmr.msra.gmra.mxu3 %v8776_v2  ;;  %v8599_v23 = vand.u32 4294901760, %v8575_v33 }
 0x95f   :  { %v8600_v41 = vsub.f32 %v8575_v33, %v8599_v23  ;;  %8640 = vmatmul.f32.vlgmr.msrb.gmra.mxu1 %v8599_v23  ;;  %v8778_v20 = vand.u32 4294901760, %v8777_v10 }
 0x960   :  { %8742 = vmatpush.msrb.mxu1 %v15100_v63 }
 0x961   :  { %v8779_v45 = vsub.f32 %v8777_v10, %v8778_v20  ;;  %v8601_v35 = vand.u32 4294901760, %v8600_v41 }
 0x962   :  { %8744 = vmatpush.msrb.mxu1 %v15122_v55 }
 0x963   :  { %v8780_v34 = vand.u32 4294901760, %v8779_v45  ;;  %v8602_v25 = vsub.f32 %v8600_v41, %v8601_v35 }
 0x964   :  { %8746 = vmatpush.msrb.mxu1 %v15141_v48  ;;  %v8935_v48 = vld [vmem:[%s15241_s10] sm:$0xff] }
 0x965   :  { %8781 = vmatmul.f32.vlgmr.msra.gmra.mxu2 %v8780_v34  ;;  %8925 = vmatmul.f32.vlgmr.msrb.gmra.mxu3 %v8776_v2  ;;  %v8603_v56 = vand.u32 4294901760, %v8602_v25  ;;  %v8965_v47 = vand.u32 4294901760, %v8935_v48 }
 0x967   :  { %8604 = vmatmul.f32.vlgmr.msrb.gmra.mxu0 %v8603_v56  ;;  %8694 = vmatmul.f32.vlgmr.msra.gmra.mxu1 %v8601_v35  ;;  %v9007_v1 = vsub.f32 %v8935_v48, %v8965_v47 }
 0x968   :  { %8714 = vmatpush.msrb.mxu0 %v8623_v26  ;;  %8863 = vmatpush.msra.mxu1 %v15086_v37  ;;  %v8938_v37 = vld [vmem:[%s15241_s10 + $0x18] sm:$0xff] }
 0x969   :  { %v9008_v13 = vand.u32 4294901760, %v9007_v1 }
 0x96a   :  { %8718 = vmatpush.msrb.mxu0 %v8629_v52  ;;  %8865 = vmatpush.msra.mxu1 %v15102_v51  ;;  %v8959_v51 = vand.u32 4294901760, %v8938_v37 }
 0x96b   :  { %v9009_v4 = vsub.f32 %v9007_v1, %v9008_v13 }
 0x96c   :  { %8722 = vmatpush.msrb.mxu0 %v8635_v44  ;;  %8867 = vmatpush.msra.mxu1 %v15126_v11  ;;  %v8989_v55 = vsub.f32 %v8938_v37, %v8959_v51  ;;  %v8961_v11 = vand.u32 4294901760, %v8937_v6 }
 0x96d   :  { %8901 = vmatmul.f32.vlgmr.msrb.gmra.mxu2 %v8776_v2  ;;  %9060 = vmatpush.msra.mxu3 %v8959_v51  ;;  %v9010_v22 = vand.u32 4294901760, %v9009_v4 }
 0x96e   :  { %v8990_v26 = vand.u32 4294901760, %v8989_v55  ;;  %v8995_v38 = vsub.f32 %v8937_v6, %v8961_v11  ;;  %9031 = vmatpush.msra.mxu2 %v8989_v55 }
 0x96f   :  { %8668 = vmatmul.f32.vlgmr.msra.gmra.mxu0 %v8600_v41  ;;  %8748 = vmatmul.f32.vlgmr.msrb.gmra.mxu1 %v8599_v23 }
 0x970   :  { %8836 = vmatpush.msra.mxu0 %v15098_v50  ;;  %v8936_v50 = vld [vmem:[%s15241_s10 + $0x8] sm:$0xff]  ;;  %9062 = vmatpush.msra.mxu3 %v8961_v11  ;;  %v8991_v52 = vsub.f32 %v8989_v55, %v8990_v26  ;;  %v8996_v5 = vand.u32 4294901760, %v8995_v38 }
 0x971   :  { %9034 = vmatpush.msra.mxu2 %v8995_v38 }
 0x972   :  { %8839 = vmatpush.msra.mxu0 %v15120_v62  ;;  %v8992_v14 = vand.u32 4294901760, %v8991_v52  ;;  %v8997_v7 = vsub.f32 %v8995_v38, %v8996_v5 }
 0x974   :  { %8842 = vmatpush.msra.mxu0 %v15139_v21  ;;  %v8963_v21 = vand.u32 4294901760, %v8936_v50  ;;  %8993 = vmatpush.msrb.mxu1 %v8992_v14  ;;  %v8998_v39 = vand.u32 4294901760, %v8997_v7 }
 0x976   :  { %v9001_v44 = vsub.f32 %v8936_v50, %v8963_v21  ;;  %9064 = vmatpush.msra.mxu3 %v8963_v21  ;;  %8999 = vmatpush.msrb.mxu1 %v8998_v39 }
 0x977   :  { %8724 = vmatmul.f32.vlgmr.msrb.gmra.mxu0 %v8599_v23  ;;  %8871 = vmatmul.f32.vlgmr.msra.gmra.mxu1 %v8778_v20  ;;  %v9303_v23 = vld [vmem:[%s15242_s11] ss:$0 sm:$0xff] }
 0x978   :  { %8960 = vmatpush.msrb.mxu0 %v8959_v51  ;;  %v9002_v19 = vand.u32 4294901760, %v9001_v44  ;;  %9037 = vmatpush.msra.mxu2 %v9001_v44 }
 0x979   :  { %9066 = vmatpush.msra.mxu3 %v8965_v47 }
 0x97a   :  { %8962 = vmatpush.msrb.mxu0 %v8961_v11  ;;  %v9003_v32 = vsub.f32 %v9001_v44, %v9002_v19  ;;  %9040 = vmatpush.msra.mxu2 %v9007_v1 }
 0x97c   :  { %8964 = vmatpush.msrb.mxu0 %v8963_v21  ;;  %v9004_v46 = vand.u32 4294901760, %v9003_v32 }
 0x97e   :  { %8966 = vmatpush.msrb.mxu0 %v8965_v47  ;;  %9005 = vmatpush.msrb.mxu1 %v9004_v46 }
 0x97f   :  { %8845 = vmatmul.f32.vlgmr.msra.gmra.mxu0 %v8777_v10 }
 0x980   :  { %9089 = vmatpush.msra.mxu0 %v8990_v26  ;;  %9011 = vmatpush.msrb.mxu1 %v9010_v22 }
 0x982   :  { %9093 = vmatpush.msra.mxu0 %v8996_v5  ;;  %9120 = vmatpush.msra.mxu1 %v8959_v51 }
 0x984   :  { %9097 = vmatpush.msra.mxu0 %v9002_v19  ;;  %9122 = vmatpush.msra.mxu1 %v8961_v11 }
 0x986   :  { %9101 = vmatpush.msra.mxu0 %v9008_v13  ;;  %9124 = vmatpush.msra.mxu1 %v8963_v21 }
 0x988   :  { %9126 = vmatpush.msra.mxu1 %v8965_v47 }
 0x9dc   :  { %v8641_v63 = vpop.f32.mrf.mxu1 }
 0x9e0   :  { %v8818_v16 = vpop.f32.mrf.mxu3 }
 0x9e4   :  { %v8605_v62 = vpop.f32.mrf.mxu0  ;;  %v8695_v36 = vpop.f32.mrf.mxu1 }
 0x9e5   :  { %v8642_v17 = vadd.f32 %v8641_v63, %v8605_v62 }
 0x9e8   :  { %v8782_v8 = vpop.f32.mrf.mxu2  ;;  %v8926_v42 = vpop.f32.mrf.mxu3 }
 0x9ec   :  { %v8669_v9 = vpop.f32.mrf.mxu0  ;;  %v8749_v3 = vpop.f32.mrf.mxu1 }
 0x9ed   :  { %v8670_v29 = vadd.f32 %v8669_v9, %v8642_v17 }
 0x9ef   :  { %v8696_v28 = vadd.f32 %v8695_v36, %v8670_v29 }
 0x9f0   :  { %v8902_v30 = vpop.f32.mrf.mxu2 }
 0x9f4   :  { %v8725_v60 = vpop.f32.mrf.mxu0  ;;  %v8872_v24 = vpop.f32.mrf.mxu1 }
 0x9f5   :  { %v8726_v54 = vadd.f32 %v8725_v60, %v8696_v28 }
 0x9f7   :  { %v8750_v61 = vadd.f32 %v8749_v3, %v8726_v54 }
 0x9f9   :  { %v8783_v59 = vadd.f32 %v8782_v8, %v8750_v61 }
 0x9fb   :  { %v8819_v18 = vadd.f32 %v8818_v16, %v8783_v59 }
 0x9fc   :  { %v8846_v15 = vpop.f32.mrf.mxu0 }
 0x9fd   :  { %v8847_v49 = vadd.f32 %v8846_v15, %v8819_v18 }
 0x9ff   :  { %v8873_v27 = vadd.f32 %v8872_v24, %v8847_v49 }
 0xa01   :  { %v8903_v53 = vadd.f32 %v8902_v30, %v8873_v27 }
 0xa03   :  { %v8927_v12 = vadd.f32 %v8926_v42, %v8903_v53 }
 0xa05   :  { %v8933_v43 = vadd.f32 %v9302_v31, %v8927_v12 }
 0xa07   :  { %9344 = vtanh.f32 %v8933_v43 }
 0xa0d   :  { %v9345_v40 = vpop.eup %9344 }
 0xa0e   :  { %v8945_v58 = vsel %vm8943_vm7, %v9345_v40, 0 }
 0xa0f   :  { %v8967_v57 = vand.u32 4294901760, %v8945_v58 }
 0xa11   :  { %9013 = vmatmul.f32.vlgmr.msrb.gmra.mxu1 %v8967_v57  ;;  %v8968_v0 = vsub.f32 %v8945_v58, %v8967_v57 }
 0xa13   :  { %9043 = vmatmul.f32.vlgmr.msra.gmra.mxu2 %v8968_v0  ;;  %v8969_v2 = vand.u32 4294901760, %v8968_v0 }
 0xa15   :  { %9070 = vmatmul.f32.vlgmr.msra.gmra.mxu3 %v8969_v2  ;;  %v8970_v33 = vsub.f32 %v8968_v0, %v8969_v2 }
 0xa17   :  { %v8971_v10 = vand.u32 4294901760, %v8970_v33 }
 0xa19   :  { %8972 = vmatmul.f32.vlgmr.msrb.gmra.mxu0 %v8971_v10  ;;  %9128 = vmatmul.f32.vlgmr.msra.gmra.mxu1 %v8967_v57 }
 0xa21   :  { %9103 = vmatmul.f32.vlgmr.msra.gmra.mxu0 %v8967_v57 }
 0xa8e   :  { %v9014_v41 = vpop.f32.mrf.mxu1 }
 0xa96   :  { %v8973_v20 = vpop.f32.mrf.mxu0  ;;  %v9044_v34 = vpop.f32.mrf.mxu2 }
 0xa97   :  { %v8974_v45 = vadd.f32 %v9303_v23, %v8973_v20  ;;  %v9129_v6 = vpop.f32.mrf.mxu1 }
 0xa98   :  { %v9071_v56 = vpop.f32.mrf.mxu3 }
 0xa99   :  { %v9015_v35 = vadd.f32 %v9014_v41, %v8974_v45 }
 0xa9b   :  { %v9045_v25 = vadd.f32 %v9044_v34, %v9015_v35 }
 0xa9d   :  { %v9072_v37 = vadd.f32 %v9071_v56, %v9045_v25 }
 0xa9e   :  { %v9104_v63 = vpop.f32.mrf.mxu0 }
 0xa9f   :  { %v9105_v51 = vadd.f32 %v9104_v63, %v9072_v37 }
 0xaa1   :  { %v9130_v55 = vadd.f32 %v9129_v6, %v9105_v51 }
 0xaa3   :  { %9133 = vst.msk [vmem:[#allocation2] sm:$0x3] %vm9132_vm8, %v9130_v55 }
 0xaa4   :  { %9146 = dma.vmem_to_hbm [thread:$0]  %s9142_s30, 32, %s9144_s15, [#allocation3]  }
 0xaa5   :  { %9371 = dma.done.wait [#allocation3], 32  }
 0xaa6   :  { %9372 = vsyncadd [#allocation3], 4294967264 }
 0xaa7   :  { %9153 = vsyncpa [#allocation3], 1 }

</bundles_post_ra>
